<compile_context>
chip_gen: v6e
topology: v6e:2x2x1
jax: 0.10.0
libtpu: 0.0.40
codegen_flags: <defaults>
</compile_context>

<pallas_src>
import numpy as np
import jax
import jax.numpy as jnp
from jax.experimental import pallas as pl
from jax.experimental.pallas import tpu as pltpu

# ---- module config (NeRF_net defaults) --------------------------------------
LX = 10
LD = 4
IN_X_CHANNEL = 3 * LX          # 30  (module sets in_x_channel * Lx)
IN_D_CHANNEL = 3 * LD          # 12
OUT_SIGMA = 1
OUT_C = 3
SIGMA_FCS_NUM = 8
SIGMA_FCS_CHANNEL = 256
C_FCS_CHANNEL = 128

N_SIGMA_LINEARS = SIGMA_FCS_NUM + 1   # 9
N_C_LINEARS = 2
N_HIDDEN = SIGMA_FCS_NUM - 1          # 7 identical 256->256 layers


# ---- deterministic parameter init (PyTorch-style layout) ---------------------
def init_params(key):
    dims = [(IN_X_CHANNEL, SIGMA_FCS_CHANNEL)]
    dims += [(SIGMA_FCS_CHANNEL, SIGMA_FCS_CHANNEL)] * (SIGMA_FCS_NUM - 1)
    dims += [(SIGMA_FCS_CHANNEL, SIGMA_FCS_CHANNEL + OUT_SIGMA)]
    dims += [(IN_D_CHANNEL + SIGMA_FCS_CHANNEL, C_FCS_CHANNEL),
             (C_FCS_CHANNEL, OUT_C)]
    params = []
    for fan_in, fan_out in dims:
        key, kw, kb = jax.random.split(key, 3)
        w = jax.random.normal(kw, (fan_in, fan_out), jnp.float32) * np.sqrt(2.0 / fan_in)
        b = jax.random.uniform(kb, (1, fan_out), jnp.float32, -0.01, 0.01)
        params.append((w, b))
    return params


# ---- param preparation: transpose / split / cast for the kernel --------------
def prepare_params(params):
    """PyTorch layout (w: (in,out), b: (1,out)) -> kernel layout.

    Kernel works channels-on-sublanes: h_out = relu(W^T @ h_in + b), so all
    weights are transposed to (out, in) and biases to (out, 1).  The last
    sigma linear is split column-wise (col 0 = sigma head, cols 1: = fx), and
    the first color linear is split row-wise (rows :256 act on fx, rows 256:
    act on d), exactly matching the original slice/concat semantics.
    """
    bf16 = jnp.bfloat16
    f32 = jnp.float32

    w0, b0 = params[0]                               # (30,256), (1,256)
    hidden = params[1:SIGMA_FCS_NUM]                 # 7 x ((256,256), (1,256))
    w8, b8 = params[SIGMA_FCS_NUM]                   # (256,257), (1,257)
    wc0, bc0 = params[SIGMA_FCS_NUM + 1]             # (268,128), (1,128)
    wc1, bc1 = params[SIGMA_FCS_NUM + 2]             # (128,3),   (1,3)

    w0T = w0.T.astype(bf16)                          # (256, 30)
    b0c = b0.T.astype(f32)                           # (256, 1)
    whT = jnp.stack([w.T for (w, _) in hidden]).astype(bf16)       # (7,256,256)
    bhc = jnp.stack([b.T for (_, b) in hidden]).astype(f32)        # (7,256,1)

    wsigT = w8[:, :OUT_SIGMA].T.astype(bf16)         # (1, 256)
    bsig = b8[:, :OUT_SIGMA].T.astype(f32)           # (1, 1)
    wfxT = w8[:, OUT_SIGMA:].T.astype(bf16)          # (256, 256)
    bfx = b8[:, OUT_SIGMA:].T.astype(f32)            # (256, 1)

    wc0fxT = wc0[:SIGMA_FCS_CHANNEL, :].T.astype(bf16)   # (128, 256)
    wc0dT = wc0[SIGMA_FCS_CHANNEL:, :].T.astype(bf16)    # (128, 12)
    bc0c = bc0.T.astype(f32)                         # (128, 1)
    wc1T = wc1.T.astype(bf16)                        # (3, 128)
    bc1c = bc1.T.astype(f32)                         # (3, 1)

    return (w0T, b0c, whT, bhc, wfxT, bfx, wsigT, bsig,
            wc0fxT, wc0dT, bc0c, wc1T, bc1c)


# ---- Pallas kernel -----------------------------------------------------------
def nerf_kernel(x_ref, d_ref,
                w0_ref, b0_ref, wh_ref, bh_ref,
                wfx_ref, bfx_ref, wsig_ref, bsig_ref,
                wc0fx_ref, wc0d_ref, bc0_ref, wc1_ref, bc1_ref,
                sigma_ref, c_ref):
    bf16 = jnp.bfloat16
    f32 = jnp.float32

    # sigma MLP (Linear + ReLU), channels on sublanes, points on lanes.
    x = x_ref[...].astype(bf16)                      # (30, tn)
    h = jnp.maximum(
        jnp.dot(w0_ref[...], x, preferred_element_type=f32) + b0_ref[...], 0.0)
    for l in range(N_HIDDEN):                        # 7 identical 256->256
        h = jnp.maximum(
            jnp.dot(wh_ref[l], h.astype(bf16), preferred_element_type=f32)
            + bh_ref[l], 0.0)

    # last sigma linear split into fx (256-wide, lane-aligned) + sigma head.
    hb = h.astype(bf16)
    fx = jnp.maximum(
        jnp.dot(wfx_ref[...], hb, preferred_element_type=f32) + bfx_ref[...], 0.0)
    sigma = jnp.maximum(
        jnp.dot(wsig_ref[...], hb, preferred_element_type=f32) + bsig_ref[...], 0.0)

    # color MLP; concat([fx, d]) replaced by two dots (K=256 and K=12).
    dv = d_ref[...].astype(bf16)                     # (12, tn)
    hc = jnp.maximum(
        jnp.dot(wc0fx_ref[...], fx.astype(bf16), preferred_element_type=f32)
        + jnp.dot(wc0d_ref[...], dv, preferred_element_type=f32)
        + bc0_ref[...], 0.0)
    c = jnp.maximum(
        jnp.dot(wc1_ref[...], hc.astype(bf16), preferred_element_type=f32)
        + bc1_ref[...], 0.0)

    sigma_ref[...] = sigma.astype(sigma_ref.dtype)   # (1, tn) lane-dense
    c_ref[...] = c.astype(c_ref.dtype)               # (3, tn) lane-dense


# ---- wrapper -----------------------------------------------------------------
def nerf_forward(x, d, params, tn=256):
    """x: (B, Cx, N), d: (B, Cd, N) -> (sigma (B,1,N), c (B,3,N))."""
    B, Cx, N = x.shape
    _, Cd, _ = d.shape
    assert Cx == IN_X_CHANNEL and Cd == IN_D_CHANNEL
    assert N % tn == 0 and tn % 128 == 0, "N must be a multiple of tn (tn % 128 == 0)"

    prep = prepare_params(params)

    def _resident(arr):
        nd = arr.ndim
        return pl.BlockSpec(arr.shape, lambda b, n, _nd=nd: (0,) * _nd)

    in_specs = [
        pl.BlockSpec((None, Cx, tn), lambda b, n: (b, 0, n)),
        pl.BlockSpec((None, Cd, tn), lambda b, n: (b, 0, n)),
    ] + [_resident(p) for p in prep]

    out_specs = [
        pl.BlockSpec((None, OUT_SIGMA, tn), lambda b, n: (b, 0, n)),
        pl.BlockSpec((None, OUT_C, tn), lambda b, n: (b, 0, n)),
    ]
    out_shape = [
        jax.ShapeDtypeStruct((B, OUT_SIGMA, N), jnp.float32),
        jax.ShapeDtypeStruct((B, OUT_C, N), jnp.float32),
    ]

    sigma, c = pl.pallas_call(
        nerf_kernel,
        grid=(B, N // tn),
        in_specs=in_specs,
        out_specs=out_specs,
        out_shape=out_shape,
        compiler_params=pltpu.CompilerParams(
            dimension_semantics=("parallel", "parallel"),
            vmem_limit_bytes=32 << 20,
        ),
    )(x, d, *prep)
    return sigma, c


# ---- pure-JAX reference (original layout, same bf16/f32 precision policy) ----
def nerf_ref(x, d, params):
    bf16 = jnp.bfloat16

    def lin_relu(h, w, b):
        y = jnp.dot(h.astype(bf16), w.astype(bf16),
                    preferred_element_type=jnp.float32) + b
        return jnp.maximum(y, 0.0)

    x2 = jnp.transpose(x, (0, 2, 1))                 # (B, N, Cx)
    d2 = jnp.transpose(d, (0, 2, 1))                 # (B, N, Cd)
    h = x2
    for w, b in params[:N_SIGMA_LINEARS]:
        h = lin_relu(h, w, b)
    sigma = h[..., :OUT_SIGMA]
    fx = h[..., OUT_SIGMA:]
    hc = jnp.concatenate([fx, d2], axis=-1)
    for w, b in params[N_SIGMA_LINEARS:]:
        hc = lin_relu(hc, w, b)
    return jnp.transpose(sigma, (0, 2, 1)), jnp.transpose(hc, (0, 2, 1))


# ---- main --------------------------------------------------------------------
if __name__ == "__main__":
    key = jax.random.PRNGKey(0)
    kp, kx, kd = jax.random.split(key, 3)

    params = init_params(kp)

    B, N = 2, 1024                      # small point batch: 2048 samples total
    x = jax.random.normal(kx, (B, IN_X_CHANNEL, N), jnp.float32)  # gamma-mapped pos
    d = jax.random.normal(kd, (B, IN_D_CHANNEL, N), jnp.float32)  # gamma-mapped dir

    sigma, c = nerf_forward(x, d, params, tn=256)
    jax.block_until_ready((sigma, c))

    sigma_ref, c_ref = nerf_ref(x, d, params)
    np.testing.assert_allclose(np.asarray(sigma), np.asarray(sigma_ref),
                               rtol=1e-2, atol=1e-2)
    np.testing.assert_allclose(np.asarray(c), np.asarray(c_ref),
                               rtol=1e-2, atol=1e-2)

    assert sigma.shape == (B, OUT_SIGMA, N) and c.shape == (B, OUT_C, N)
    print("KERNEL_OK")
</pallas_src>

<mosaic_0001>
module attributes {stable_mosaic.version = 11 : i64} {
  func.func @nerf_kernel(%arg0: i32, %arg1: i32, %arg2: memref<1x30x256xf32, #tpu.memory_space<vmem>>, %arg3: memref<1x12x256xf32, #tpu.memory_space<vmem>>, %arg4: memref<256x30xbf16, #tpu.memory_space<vmem>>, %arg5: memref<256x1xf32, #tpu.memory_space<vmem>>, %arg6: memref<7x256x256xbf16, #tpu.memory_space<vmem>>, %arg7: memref<7x256x1xf32, #tpu.memory_space<vmem>>, %arg8: memref<256x256xbf16, #tpu.memory_space<vmem>>, %arg9: memref<256x1xf32, #tpu.memory_space<vmem>>, %arg10: memref<1x256xbf16, #tpu.memory_space<vmem>>, %arg11: memref<1x1xf32, #tpu.memory_space<vmem>>, %arg12: memref<128x256xbf16, #tpu.memory_space<vmem>>, %arg13: memref<128x12xbf16, #tpu.memory_space<vmem>>, %arg14: memref<128x1xf32, #tpu.memory_space<vmem>>, %arg15: memref<3x128xbf16, #tpu.memory_space<vmem>>, %arg16: memref<3x1xf32, #tpu.memory_space<vmem>>, %arg17: memref<1x1x256xf32, #tpu.memory_space<vmem>>, %arg18: memref<1x3x256xf32, #tpu.memory_space<vmem>>) attributes {dimension_semantics = [#tpu.dimension_semantics<parallel>, #tpu.dimension_semantics<parallel>], iteration_bounds = array<i64: 2, 4>, scalar_prefetch = 0 : i64, scratch_operands = 0 : i64, tpu.core_type = #tpu.core_type<tc>, window_params = [{transform_indices = @transform_0, window_bounds = array<i64: 1, 30, 256>}, {transform_indices = @transform_1, window_bounds = array<i64: 1, 12, 256>}, {pipeline_mode = #tpu.pipeline_mode<synchronous>, transform_indices = @transform_2, window_bounds = array<i64: 256, 30>}, {pipeline_mode = #tpu.pipeline_mode<synchronous>, transform_indices = @transform_3, window_bounds = array<i64: 256, 1>}, {pipeline_mode = #tpu.pipeline_mode<synchronous>, transform_indices = @transform_4, window_bounds = array<i64: 7, 256, 256>}, {pipeline_mode = #tpu.pipeline_mode<synchronous>, transform_indices = @transform_5, window_bounds = array<i64: 7, 256, 1>}, {pipeline_mode = #tpu.pipeline_mode<synchronous>, transform_indices = @transform_6, window_bounds = array<i64: 256, 256>}, {pipeline_mode = #tpu.pipeline_mode<synchronous>, transform_indices = @transform_7, window_bounds = array<i64: 256, 1>}, {pipeline_mode = #tpu.pipeline_mode<synchronous>, transform_indices = @transform_8, window_bounds = array<i64: 1, 256>}, {pipeline_mode = #tpu.pipeline_mode<synchronous>, transform_indices = @transform_9, window_bounds = array<i64: 1, 1>}, {pipeline_mode = #tpu.pipeline_mode<synchronous>, transform_indices = @transform_10, window_bounds = array<i64: 128, 256>}, {pipeline_mode = #tpu.pipeline_mode<synchronous>, transform_indices = @transform_11, window_bounds = array<i64: 128, 12>}, {pipeline_mode = #tpu.pipeline_mode<synchronous>, transform_indices = @transform_12, window_bounds = array<i64: 128, 1>}, {pipeline_mode = #tpu.pipeline_mode<synchronous>, transform_indices = @transform_13, window_bounds = array<i64: 3, 128>}, {pipeline_mode = #tpu.pipeline_mode<synchronous>, transform_indices = @transform_14, window_bounds = array<i64: 3, 1>}, {transform_indices = @transform_15, window_bounds = array<i64: 1, 1, 256>}, {transform_indices = @transform_16, window_bounds = array<i64: 1, 3, 256>}]} {
    %c0 = arith.constant 0 : index
    %c0_0 = arith.constant 0 : index
    %c0_1 = arith.constant 0 : index
    %0 = vector.load %arg2[%c0, %c0_0, %c0_1] : memref<1x30x256xf32, #tpu.memory_space<vmem>>, vector<1x30x256xf32>
    %1 = vector.shape_cast %0 : vector<1x30x256xf32> to vector<30x256xf32>
    %2 = arith.truncf %1 : vector<30x256xf32> to vector<30x256xbf16>
    %c0_2 = arith.constant 0 : index
    %c0_3 = arith.constant 0 : index
    %3 = vector.load %arg4[%c0_2, %c0_3] : memref<256x30xbf16, #tpu.memory_space<vmem>>, vector<256x30xbf16>
    %cst = arith.constant dense<0.000000e+00> : vector<256x256xf32>
    %4 = tpu.matmul %3, %2, %cst {dimension_numbers = #tpu.dot_dimension_numbers<[1], [0], [0], [1], [0, 0, 1, 1], [], []>} : vector<256x30xbf16>, vector<30x256xbf16>, vector<256x256xf32> -> vector<256x256xf32>
    %c0_4 = arith.constant 0 : index
    %c0_5 = arith.constant 0 : index
    %5 = vector.load %arg5[%c0_4, %c0_5] : memref<256x1xf32, #tpu.memory_space<vmem>>, vector<256x1xf32>
    %6 = vector.broadcast %5 : vector<256x1xf32> to vector<256x256xf32>
    %7 = arith.addf %4, %6 : vector<256x256xf32>
    %cst_6 = arith.constant 0.000000e+00 : f32
    %8 = vector.broadcast %cst_6 : f32 to vector<256x256xf32>
    %9 = arith.maximumf %7, %8 : vector<256x256xf32>
    %c0_7 = arith.constant 0 : index
    %c0_8 = arith.constant 0 : index
    %c0_9 = arith.constant 0 : index
    %10 = vector.load %arg6[%c0_7, %c0_8, %c0_9] : memref<7x256x256xbf16, #tpu.memory_space<vmem>>, vector<1x256x256xbf16>
    %11 = vector.shape_cast %10 : vector<1x256x256xbf16> to vector<256x256xbf16>
    %12 = arith.truncf %9 : vector<256x256xf32> to vector<256x256xbf16>
    %cst_10 = arith.constant dense<0.000000e+00> : vector<256x256xf32>
    %13 = tpu.matmul %11, %12, %cst_10 {dimension_numbers = #tpu.dot_dimension_numbers<[1], [0], [0], [1], [0, 0, 1, 1], [], []>} : vector<256x256xbf16>, vector<256x256xbf16>, vector<256x256xf32> -> vector<256x256xf32>
    %c0_11 = arith.constant 0 : index
    %c0_12 = arith.constant 0 : index
    %c0_13 = arith.constant 0 : index
    %14 = vector.load %arg7[%c0_11, %c0_12, %c0_13] : memref<7x256x1xf32, #tpu.memory_space<vmem>>, vector<1x256x1xf32>
    %15 = vector.shape_cast %14 : vector<1x256x1xf32> to vector<256x1xf32>
    %16 = vector.broadcast %15 : vector<256x1xf32> to vector<256x256xf32>
    %17 = arith.addf %13, %16 : vector<256x256xf32>
    %cst_14 = arith.constant 0.000000e+00 : f32
    %18 = vector.broadcast %cst_14 : f32 to vector<256x256xf32>
    %19 = arith.maximumf %17, %18 : vector<256x256xf32>
    %c1 = arith.constant 1 : index
    %c0_15 = arith.constant 0 : index
    %c0_16 = arith.constant 0 : index
    %20 = vector.load %arg6[%c1, %c0_15, %c0_16] : memref<7x256x256xbf16, #tpu.memory_space<vmem>>, vector<1x256x256xbf16>
    %21 = vector.shape_cast %20 : vector<1x256x256xbf16> to vector<256x256xbf16>
    %22 = arith.truncf %19 : vector<256x256xf32> to vector<256x256xbf16>
    %cst_17 = arith.constant dense<0.000000e+00> : vector<256x256xf32>
    %23 = tpu.matmul %21, %22, %cst_17 {dimension_numbers = #tpu.dot_dimension_numbers<[1], [0], [0], [1], [0, 0, 1, 1], [], []>} : vector<256x256xbf16>, vector<256x256xbf16>, vector<256x256xf32> -> vector<256x256xf32>
    %c1_18 = arith.constant 1 : index
    %c0_19 = arith.constant 0 : index
    %c0_20 = arith.constant 0 : index
    %24 = vector.load %arg7[%c1_18, %c0_19, %c0_20] : memref<7x256x1xf32, #tpu.memory_space<vmem>>, vector<1x256x1xf32>
    %25 = vector.shape_cast %24 : vector<1x256x1xf32> to vector<256x1xf32>
    %26 = vector.broadcast %25 : vector<256x1xf32> to vector<256x256xf32>
    %27 = arith.addf %23, %26 : vector<256x256xf32>
    %cst_21 = arith.constant 0.000000e+00 : f32
    %28 = vector.broadcast %cst_21 : f32 to vector<256x256xf32>
    %29 = arith.maximumf %27, %28 : vector<256x256xf32>
    %c2 = arith.constant 2 : index
    %c0_22 = arith.constant 0 : index
    %c0_23 = arith.constant 0 : index
    %30 = vector.load %arg6[%c2, %c0_22, %c0_23] : memref<7x256x256xbf16, #tpu.memory_space<vmem>>, vector<1x256x256xbf16>
    %31 = vector.shape_cast %30 : vector<1x256x256xbf16> to vector<256x256xbf16>
    %32 = arith.truncf %29 : vector<256x256xf32> to vector<256x256xbf16>
    %cst_24 = arith.constant dense<0.000000e+00> : vector<256x256xf32>
    %33 = tpu.matmul %31, %32, %cst_24 {dimension_numbers = #tpu.dot_dimension_numbers<[1], [0], [0], [1], [0, 0, 1, 1], [], []>} : vector<256x256xbf16>, vector<256x256xbf16>, vector<256x256xf32> -> vector<256x256xf32>
    %c2_25 = arith.constant 2 : index
    %c0_26 = arith.constant 0 : index
    %c0_27 = arith.constant 0 : index
    %34 = vector.load %arg7[%c2_25, %c0_26, %c0_27] : memref<7x256x1xf32, #tpu.memory_space<vmem>>, vector<1x256x1xf32>
    %35 = vector.shape_cast %34 : vector<1x256x1xf32> to vector<256x1xf32>
    %36 = vector.broadcast %35 : vector<256x1xf32> to vector<256x256xf32>
    %37 = arith.addf %33, %36 : vector<256x256xf32>
    %cst_28 = arith.constant 0.000000e+00 : f32
    %38 = vector.broadcast %cst_28 : f32 to vector<256x256xf32>
    %39 = arith.maximumf %37, %38 : vector<256x256xf32>
    %c3 = arith.constant 3 : index
    %c0_29 = arith.constant 0 : index
    %c0_30 = arith.constant 0 : index
    %40 = vector.load %arg6[%c3, %c0_29, %c0_30] : memref<7x256x256xbf16, #tpu.memory_space<vmem>>, vector<1x256x256xbf16>
    %41 = vector.shape_cast %40 : vector<1x256x256xbf16> to vector<256x256xbf16>
    %42 = arith.truncf %39 : vector<256x256xf32> to vector<256x256xbf16>
    %cst_31 = arith.constant dense<0.000000e+00> : vector<256x256xf32>
    %43 = tpu.matmul %41, %42, %cst_31 {dimension_numbers = #tpu.dot_dimension_numbers<[1], [0], [0], [1], [0, 0, 1, 1], [], []>} : vector<256x256xbf16>, vector<256x256xbf16>, vector<256x256xf32> -> vector<256x256xf32>
    %c3_32 = arith.constant 3 : index
    %c0_33 = arith.constant 0 : index
    %c0_34 = arith.constant 0 : index
    %44 = vector.load %arg7[%c3_32, %c0_33, %c0_34] : memref<7x256x1xf32, #tpu.memory_space<vmem>>, vector<1x256x1xf32>
    %45 = vector.shape_cast %44 : vector<1x256x1xf32> to vector<256x1xf32>
    %46 = vector.broadcast %45 : vector<256x1xf32> to vector<256x256xf32>
    %47 = arith.addf %43, %46 : vector<256x256xf32>
    %cst_35 = arith.constant 0.000000e+00 : f32
    %48 = vector.broadcast %cst_35 : f32 to vector<256x256xf32>
    %49 = arith.maximumf %47, %48 : vector<256x256xf32>
    %c4 = arith.constant 4 : index
    %c0_36 = arith.constant 0 : index
    %c0_37 = arith.constant 0 : index
    %50 = vector.load %arg6[%c4, %c0_36, %c0_37] : memref<7x256x256xbf16, #tpu.memory_space<vmem>>, vector<1x256x256xbf16>
    %51 = vector.shape_cast %50 : vector<1x256x256xbf16> to vector<256x256xbf16>
    %52 = arith.truncf %49 : vector<256x256xf32> to vector<256x256xbf16>
    %cst_38 = arith.constant dense<0.000000e+00> : vector<256x256xf32>
    %53 = tpu.matmul %51, %52, %cst_38 {dimension_numbers = #tpu.dot_dimension_numbers<[1], [0], [0], [1], [0, 0, 1, 1], [], []>} : vector<256x256xbf16>, vector<256x256xbf16>, vector<256x256xf32> -> vector<256x256xf32>
    %c4_39 = arith.constant 4 : index
    %c0_40 = arith.constant 0 : index
    %c0_41 = arith.constant 0 : index
    %54 = vector.load %arg7[%c4_39, %c0_40, %c0_41] : memref<7x256x1xf32, #tpu.memory_space<vmem>>, vector<1x256x1xf32>
    %55 = vector.shape_cast %54 : vector<1x256x1xf32> to vector<256x1xf32>
    %56 = vector.broadcast %55 : vector<256x1xf32> to vector<256x256xf32>
    %57 = arith.addf %53, %56 : vector<256x256xf32>
    %cst_42 = arith.constant 0.000000e+00 : f32
    %58 = vector.broadcast %cst_42 : f32 to vector<256x256xf32>
    %59 = arith.maximumf %57, %58 : vector<256x256xf32>
    %c5 = arith.constant 5 : index
    %c0_43 = arith.constant 0 : index
    %c0_44 = arith.constant 0 : index
    %60 = vector.load %arg6[%c5, %c0_43, %c0_44] : memref<7x256x256xbf16, #tpu.memory_space<vmem>>, vector<1x256x256xbf16>
    %61 = vector.shape_cast %60 : vector<1x256x256xbf16> to vector<256x256xbf16>
    %62 = arith.truncf %59 : vector<256x256xf32> to vector<256x256xbf16>
    %cst_45 = arith.constant dense<0.000000e+00> : vector<256x256xf32>
    %63 = tpu.matmul %61, %62, %cst_45 {dimension_numbers = #tpu.dot_dimension_numbers<[1], [0], [0], [1], [0, 0, 1, 1], [], []>} : vector<256x256xbf16>, vector<256x256xbf16>, vector<256x256xf32> -> vector<256x256xf32>
    %c5_46 = arith.constant 5 : index
    %c0_47 = arith.constant 0 : index
    %c0_48 = arith.constant 0 : index
    %64 = vector.load %arg7[%c5_46, %c0_47, %c0_48] : memref<7x256x1xf32, #tpu.memory_space<vmem>>, vector<1x256x1xf32>
    %65 = vector.shape_cast %64 : vector<1x256x1xf32> to vector<256x1xf32>
    %66 = vector.broadcast %65 : vector<256x1xf32> to vector<256x256xf32>
    %67 = arith.addf %63, %66 : vector<256x256xf32>
    %cst_49 = arith.constant 0.000000e+00 : f32
    %68 = vector.broadcast %cst_49 : f32 to vector<256x256xf32>
    %69 = arith.maximumf %67, %68 : vector<256x256xf32>
    %c6 = arith.constant 6 : index
    %c0_50 = arith.constant 0 : index
    %c0_51 = arith.constant 0 : index
    %70 = vector.load %arg6[%c6, %c0_50, %c0_51] : memref<7x256x256xbf16, #tpu.memory_space<vmem>>, vector<1x256x256xbf16>
    %71 = vector.shape_cast %70 : vector<1x256x256xbf16> to vector<256x256xbf16>
    %72 = arith.truncf %69 : vector<256x256xf32> to vector<256x256xbf16>
    %cst_52 = arith.constant dense<0.000000e+00> : vector<256x256xf32>
    %73 = tpu.matmul %71, %72, %cst_52 {dimension_numbers = #tpu.dot_dimension_numbers<[1], [0], [0], [1], [0, 0, 1, 1], [], []>} : vector<256x256xbf16>, vector<256x256xbf16>, vector<256x256xf32> -> vector<256x256xf32>
    %c6_53 = arith.constant 6 : index
    %c0_54 = arith.constant 0 : index
    %c0_55 = arith.constant 0 : index
    %74 = vector.load %arg7[%c6_53, %c0_54, %c0_55] : memref<7x256x1xf32, #tpu.memory_space<vmem>>, vector<1x256x1xf32>
    %75 = vector.shape_cast %74 : vector<1x256x1xf32> to vector<256x1xf32>
    %76 = vector.broadcast %75 : vector<256x1xf32> to vector<256x256xf32>
    %77 = arith.addf %73, %76 : vector<256x256xf32>
    %cst_56 = arith.constant 0.000000e+00 : f32
    %78 = vector.broadcast %cst_56 : f32 to vector<256x256xf32>
    %79 = arith.maximumf %77, %78 : vector<256x256xf32>
    %80 = arith.truncf %79 : vector<256x256xf32> to vector<256x256xbf16>
    %c0_57 = arith.constant 0 : index
    %c0_58 = arith.constant 0 : index
    %81 = vector.load %arg8[%c0_57, %c0_58] : memref<256x256xbf16, #tpu.memory_space<vmem>>, vector<256x256xbf16>
    %cst_59 = arith.constant dense<0.000000e+00> : vector<256x256xf32>
    %82 = tpu.matmul %81, %80, %cst_59 {dimension_numbers = #tpu.dot_dimension_numbers<[1], [0], [0], [1], [0, 0, 1, 1], [], []>} : vector<256x256xbf16>, vector<256x256xbf16>, vector<256x256xf32> -> vector<256x256xf32>
    %c0_60 = arith.constant 0 : index
    %c0_61 = arith.constant 0 : index
    %83 = vector.load %arg9[%c0_60, %c0_61] : memref<256x1xf32, #tpu.memory_space<vmem>>, vector<256x1xf32>
    %84 = vector.broadcast %83 : vector<256x1xf32> to vector<256x256xf32>
    %85 = arith.addf %82, %84 : vector<256x256xf32>
    %cst_62 = arith.constant 0.000000e+00 : f32
    %86 = vector.broadcast %cst_62 : f32 to vector<256x256xf32>
    %87 = arith.maximumf %85, %86 : vector<256x256xf32>
    %c0_63 = arith.constant 0 : index
    %c0_64 = arith.constant 0 : index
    %88 = vector.load %arg10[%c0_63, %c0_64] : memref<1x256xbf16, #tpu.memory_space<vmem>>, vector<1x256xbf16>
    %cst_65 = arith.constant dense<0.000000e+00> : vector<1x256xf32>
    %89 = tpu.matmul %88, %80, %cst_65 {dimension_numbers = #tpu.dot_dimension_numbers<[1], [0], [0], [1], [0, 0, 1, 1], [], []>} : vector<1x256xbf16>, vector<256x256xbf16>, vector<1x256xf32> -> vector<1x256xf32>
    %c0_66 = arith.constant 0 : index
    %c0_67 = arith.constant 0 : index
    %90 = vector.load %arg11[%c0_66, %c0_67] : memref<1x1xf32, #tpu.memory_space<vmem>>, vector<1x1xf32>
    %91 = vector.broadcast %90 : vector<1x1xf32> to vector<1x256xf32>
    %92 = arith.addf %89, %91 : vector<1x256xf32>
    %cst_68 = arith.constant 0.000000e+00 : f32
    %93 = vector.broadcast %cst_68 : f32 to vector<1x256xf32>
    %94 = arith.maximumf %92, %93 : vector<1x256xf32>
    %c0_69 = arith.constant 0 : index
    %c0_70 = arith.constant 0 : index
    %c0_71 = arith.constant 0 : index
    %95 = vector.load %arg3[%c0_69, %c0_70, %c0_71] : memref<1x12x256xf32, #tpu.memory_space<vmem>>, vector<1x12x256xf32>
    %96 = vector.shape_cast %95 : vector<1x12x256xf32> to vector<12x256xf32>
    %97 = arith.truncf %96 : vector<12x256xf32> to vector<12x256xbf16>
    %c0_72 = arith.constant 0 : index
    %c0_73 = arith.constant 0 : index
    %98 = vector.load %arg12[%c0_72, %c0_73] : memref<128x256xbf16, #tpu.memory_space<vmem>>, vector<128x256xbf16>
    %99 = arith.truncf %87 : vector<256x256xf32> to vector<256x256xbf16>
    %cst_74 = arith.constant dense<0.000000e+00> : vector<128x256xf32>
    %100 = tpu.matmul %98, %99, %cst_74 {dimension_numbers = #tpu.dot_dimension_numbers<[1], [0], [0], [1], [0, 0, 1, 1], [], []>} : vector<128x256xbf16>, vector<256x256xbf16>, vector<128x256xf32> -> vector<128x256xf32>
    %c0_75 = arith.constant 0 : index
    %c0_76 = arith.constant 0 : index
    %101 = vector.load %arg13[%c0_75, %c0_76] : memref<128x12xbf16, #tpu.memory_space<vmem>>, vector<128x12xbf16>
    %cst_77 = arith.constant dense<0.000000e+00> : vector<128x256xf32>
    %102 = tpu.matmul %101, %97, %cst_77 {dimension_numbers = #tpu.dot_dimension_numbers<[1], [0], [0], [1], [0, 0, 1, 1], [], []>} : vector<128x12xbf16>, vector<12x256xbf16>, vector<128x256xf32> -> vector<128x256xf32>
    %103 = arith.addf %100, %102 : vector<128x256xf32>
    %c0_78 = arith.constant 0 : index
    %c0_79 = arith.constant 0 : index
    %104 = vector.load %arg14[%c0_78, %c0_79] : memref<128x1xf32, #tpu.memory_space<vmem>>, vector<128x1xf32>
    %105 = vector.broadcast %104 : vector<128x1xf32> to vector<128x256xf32>
    %106 = arith.addf %103, %105 : vector<128x256xf32>
    %cst_80 = arith.constant 0.000000e+00 : f32
    %107 = vector.broadcast %cst_80 : f32 to vector<128x256xf32>
    %108 = arith.maximumf %106, %107 : vector<128x256xf32>
    %c0_81 = arith.constant 0 : index
    %c0_82 = arith.constant 0 : index
    %109 = vector.load %arg15[%c0_81, %c0_82] : memref<3x128xbf16, #tpu.memory_space<vmem>>, vector<3x128xbf16>
    %110 = arith.truncf %108 : vector<128x256xf32> to vector<128x256xbf16>
    %cst_83 = arith.constant dense<0.000000e+00> : vector<3x256xf32>
    %111 = tpu.matmul %109, %110, %cst_83 {dimension_numbers = #tpu.dot_dimension_numbers<[1], [0], [0], [1], [0, 0, 1, 1], [], []>} : vector<3x128xbf16>, vector<128x256xbf16>, vector<3x256xf32> -> vector<3x256xf32>
    %c0_84 = arith.constant 0 : index
    %c0_85 = arith.constant 0 : index
    %112 = vector.load %arg16[%c0_84, %c0_85] : memref<3x1xf32, #tpu.memory_space<vmem>>, vector<3x1xf32>
    %113 = vector.broadcast %112 : vector<3x1xf32> to vector<3x256xf32>
    %114 = arith.addf %111, %113 : vector<3x256xf32>
    %cst_86 = arith.constant 0.000000e+00 : f32
    %115 = vector.broadcast %cst_86 : f32 to vector<3x256xf32>
    %116 = arith.maximumf %114, %115 : vector<3x256xf32>
    %c0_87 = arith.constant 0 : index
    %c0_88 = arith.constant 0 : index
    %c0_89 = arith.constant 0 : index
    %117 = vector.load %arg17[%c0_87, %c0_88, %c0_89] : memref<1x1x256xf32, #tpu.memory_space<vmem>>, vector<1x1x256xf32>
    %118 = vector.shape_cast %117 : vector<1x1x256xf32> to vector<1x256xf32>
    %119 = vector.shape_cast %94 : vector<1x256xf32> to vector<1x1x256xf32>
    tpu.vector_store %arg17[%c0_87, %c0_88, %c0_89], %119 {strides = array<i32>} : memref<1x1x256xf32, #tpu.memory_space<vmem>>, vector<1x1x256xf32>,
    %c0_90 = arith.constant 0 : index
    %c0_91 = arith.constant 0 : index
    %c0_92 = arith.constant 0 : index
    %120 = vector.load %arg18[%c0_90, %c0_91, %c0_92] : memref<1x3x256xf32, #tpu.memory_space<vmem>>, vector<1x3x256xf32>
    %121 = vector.shape_cast %120 : vector<1x3x256xf32> to vector<3x256xf32>
    %122 = vector.shape_cast %116 : vector<3x256xf32> to vector<1x3x256xf32>
    tpu.vector_store %arg18[%c0_90, %c0_91, %c0_92], %122 {strides = array<i32>} : memref<1x3x256xf32, #tpu.memory_space<vmem>>, vector<1x3x256xf32>,
    return
  }
  func.func @transform_0(%arg0: i32, %arg1: i32) -> (i32, i32, i32) {
    %c0_i32 = arith.constant 0 : i32
    %c0_i32_0 = arith.constant 0 : i32
    return %arg0, %c0_i32, %arg1 : i32, i32, i32
  }
  func.func @transform_1(%arg0: i32, %arg1: i32) -> (i32, i32, i32) {
    %c0_i32 = arith.constant 0 : i32
    %c0_i32_0 = arith.constant 0 : i32
    return %arg0, %c0_i32, %arg1 : i32, i32, i32
  }
  func.func @transform_2(%arg0: i32, %arg1: i32) -> (i32, i32) {
    %c0_i32 = arith.constant 0 : i32
    %c0_i32_0 = arith.constant 0 : i32
    %c0_i32_1 = arith.constant 0 : i32
    return %c0_i32, %c0_i32_0 : i32, i32
  }
  func.func @transform_3(%arg0: i32, %arg1: i32) -> (i32, i32) {
    %c0_i32 = arith.constant 0 : i32
    %c0_i32_0 = arith.constant 0 : i32
    %c0_i32_1 = arith.constant 0 : i32
    return %c0_i32, %c0_i32_0 : i32, i32
  }
  func.func @transform_4(%arg0: i32, %arg1: i32) -> (i32, i32, i32) {
    %c0_i32 = arith.constant 0 : i32
    %c0_i32_0 = arith.constant 0 : i32
    %c0_i32_1 = arith.constant 0 : i32
    %c0_i32_2 = arith.constant 0 : i32
    return %c0_i32, %c0_i32_0, %c0_i32_1 : i32, i32, i32
  }
  func.func @transform_5(%arg0: i32, %arg1: i32) -> (i32, i32, i32) {
    %c0_i32 = arith.constant 0 : i32
    %c0_i32_0 = arith.constant 0 : i32
    %c0_i32_1 = arith.constant 0 : i32
    %c0_i32_2 = arith.constant 0 : i32
    return %c0_i32, %c0_i32_0, %c0_i32_1 : i32, i32, i32
  }
  func.func @transform_6(%arg0: i32, %arg1: i32) -> (i32, i32) {
    %c0_i32 = arith.constant 0 : i32
    %c0_i32_0 = arith.constant 0 : i32
    %c0_i32_1 = arith.constant 0 : i32
    return %c0_i32, %c0_i32_0 : i32, i32
  }
  func.func @transform_7(%arg0: i32, %arg1: i32) -> (i32, i32) {
    %c0_i32 = arith.constant 0 : i32
    %c0_i32_0 = arith.constant 0 : i32
    %c0_i32_1 = arith.constant 0 : i32
    return %c0_i32, %c0_i32_0 : i32, i32
  }
  func.func @transform_8(%arg0: i32, %arg1: i32) -> (i32, i32) {
    %c0_i32 = arith.constant 0 : i32
    %c0_i32_0 = arith.constant 0 : i32
    %c0_i32_1 = arith.constant 0 : i32
    return %c0_i32, %c0_i32_0 : i32, i32
  }
  func.func @transform_9(%arg0: i32, %arg1: i32) -> (i32, i32) {
    %c0_i32 = arith.constant 0 : i32
    %c0_i32_0 = arith.constant 0 : i32
    %c0_i32_1 = arith.constant 0 : i32
    return %c0_i32, %c0_i32_0 : i32, i32
  }
  func.func @transform_10(%arg0: i32, %arg1: i32) -> (i32, i32) {
    %c0_i32 = arith.constant 0 : i32
    %c0_i32_0 = arith.constant 0 : i32
    %c0_i32_1 = arith.constant 0 : i32
    return %c0_i32, %c0_i32_0 : i32, i32
  }
  func.func @transform_11(%arg0: i32, %arg1: i32) -> (i32, i32) {
    %c0_i32 = arith.constant 0 : i32
    %c0_i32_0 = arith.constant 0 : i32
    %c0_i32_1 = arith.constant 0 : i32
    return %c0_i32, %c0_i32_0 : i32, i32
  }
  func.func @transform_12(%arg0: i32, %arg1: i32) -> (i32, i32) {
    %c0_i32 = arith.constant 0 : i32
    %c0_i32_0 = arith.constant 0 : i32
    %c0_i32_1 = arith.constant 0 : i32
    return %c0_i32, %c0_i32_0 : i32, i32
  }
  func.func @transform_13(%arg0: i32, %arg1: i32) -> (i32, i32) {
    %c0_i32 = arith.constant 0 : i32
    %c0_i32_0 = arith.constant 0 : i32
    %c0_i32_1 = arith.constant 0 : i32
    return %c0_i32, %c0_i32_0 : i32, i32
  }
  func.func @transform_14(%arg0: i32, %arg1: i32) -> (i32, i32) {
    %c0_i32 = arith.constant 0 : i32
    %c0_i32_0 = arith.constant 0 : i32
    %c0_i32_1 = arith.constant 0 : i32
    return %c0_i32, %c0_i32_0 : i32, i32
  }
  func.func @transform_15(%arg0: i32, %arg1: i32) -> (i32, i32, i32) {
    %c0_i32 = arith.constant 0 : i32
    %c0_i32_0 = arith.constant 0 : i32
    return %arg0, %c0_i32, %arg1 : i32, i32, i32
  }
  func.func @transform_16(%arg0: i32, %arg1: i32) -> (i32, i32, i32) {
    %c0_i32 = arith.constant 0 : i32
    %c0_i32_0 = arith.constant 0 : i32
    return %arg0, %c0_i32, %arg1 : i32, i32, i32
  }
}

</mosaic_0001>

<bundles_post_ra>
// kernel: tpu_custom_call.1
= control target key start
LH: loop header
LB: loop body
LE: loop exit
PB: predicated region body
PF: predicated region fallthrough
CT: control target
= control target key end

     0   :  { %s13144_s0 = inlined_call_operand.vmem [shape: f32[2,30,1024], index: 0, kind: input, shape index: {}]   ;;  %s13145_s1 = inlined_call_operand.vmem [shape: f32[2,12,1024], index: 1, kind: input, shape index: {}]   ;;  %s13146_s2 = inlined_call_operand.vmem [shape: bf16[256,30], index: 2, kind: input, shape index: {}]   ;;  %s13147_s3 = inlined_call_operand.vmem [shape: f32[256,1], index: 3, kind: input, shape index: {}]   ;;  %s13148_s4 = inlined_call_operand.vmem [shape: bf16[7,256,256], index: 4, kind: input, shape index: {}]   ;;  %s13149_s5 = inlined_call_operand.vmem [shape: f32[7,256,1], index: 5, kind: input, shape index: {}]   ;;  %s13150_s6 = inlined_call_operand.vmem [shape: bf16[256,256], index: 6, kind: input, shape index: {}]   ;;  %s13151_s7 = inlined_call_operand.vmem [shape: f32[256,1], index: 7, kind: input, shape index: {}]   ;;  %s13152_s8 = inlined_call_operand.vmem [shape: bf16[1,256], index: 8, kind: input, shape index: {}]   ;;  %s13153_s9 = inlined_call_operand.<no memory space> [shape: f32[1,1], index: 9, kind: input, shape index: {}]   ;;  %s13154_s10 = inlined_call_operand.vmem [shape: bf16[128,256], index: 10, kind: input, shape index: {}]   ;;  %s13155_s11 = inlined_call_operand.vmem [shape: bf16[128,12], index: 11, kind: input, shape index: {}]   ;;  %s13156_s12 = inlined_call_operand.vmem [shape: f32[128,1], index: 12, kind: input, shape index: {}]   ;;  %s13157_s13 = inlined_call_operand.vmem [shape: bf16[3,128], index: 13, kind: input, shape index: {}]   ;;  %s13158_s14 = inlined_call_operand.vmem [shape: f32[3,1], index: 14, kind: input, shape index: {}]   ;;  %s13159_s15 = inlined_call_operand.hbm [shape: f32[2,1,1024], index: 15, kind: output, shape index: {0}]   ;;  %s13160_s16 = inlined_call_operand.vmem [shape: f32[2,3,1024], index: 16, kind: output, shape index: {1}]  }
   0x1   :  { %13376 = sst [smem:[#allocation170_spill]] %s13144_s0  ;;  %v22_v0 = vstv %s13153_s9 }
   0x2   :  { %13377 = sst [smem:[#allocation171_spill]] %s13145_s1  ;;  %23 = vst [vmem:[#allocation2] sm:$0x1] %v22_v0 }
   0x3   :  { %13378 = sst [smem:[#allocation172_spill]] %s13146_s2 }
   0x4   :  { %13379 = sst [smem:[#allocation173_spill]] %s13147_s3 }
   0x5   :  { %13380 = sst [smem:[#allocation174_spill]] %s13148_s4 }
   0x6   :  { %13381 = sst [smem:[#allocation175_spill]] %s13149_s5 }
   0x7   :  { %13382 = sst [smem:[#allocation176_spill]] %s13157_s13 }
   0x8   :  { %13383 = sst [smem:[#allocation177_spill]] %s13159_s15 }
   0x9   :  { %13384 = sst [smem:[#allocation178_spill]] %s13160_s16 }
   0xa   :  { %24 = vsyncpa [#allocation6], 0 }
   0xb   :  { %26 = vsyncpa [#allocation6 + $0x1], 0  ;;  %s9056_s23 = smov 0   ;;  %s9058_s24 = smov 0  }
   0xc   :  { %s9060_s25 = smov 0   ;;  %s9062_s26 = smov 0  }
   0xd   :  { %s9064_s27 = smov 0   ;;  %s9066_s28 = smov 0  }
   0xe   :  { %s9068_s29 = smov 0   ;;  %s9070_s30 = smov 0  }
   0xf LB: > { %13385 = sst [smem:[#allocation8_spill]] %s8935_s23  ;;  %s7628_s9 = sadd.s32 4294967295, %s8963_s30   ;;  %s8963_s30 = sphi %s9070_s30, %s32_s30   ;;  %s8959_s29 = sphi %s9068_s29, %s13881_s29   ;;  %s8955_s28 = sphi %s9066_s28, %s13880_s28   ;;  %s8951_s27 = sphi %s9064_s27, %s13879_s27   ;;  %s8947_s26 = sphi %s9062_s26, %s13878_s26   ;;  %s8943_s25 = sphi %s9060_s25, %s13877_s25   ;;  %s8939_s24 = sphi %s9058_s24, %s13876_s24   ;;  %s8935_s23 = sphi %s9056_s23, %s13875_s23  }
  0x10   : > { %s7629_s0 = sadd.s32 4294967294, %s8963_s30   ;;  %s41_s17 = sadd.s32 1, %s8955_s28 }
  0x11   : > { %p42_p0 = scmp.ge.s32.totalorder %s41_s17, 4  ;;  %s44_s18 = sadd.s32 1, %s8959_s29 }
  0x12   : > { %p60_p1 = scmp.ne.s32.totalorder %s8943_s25, %s8939_s24  ;;  %p61_p2 = scmp.eq.s32.totalorder %s8963_s30, 0 }
  0x13   : > { %s13883_s17 = smov (%p42_p0, %s41_s17), 0  ;;  %s13885_s18 = smov (!%p42_p0, %s44_s18), %s8959_s29 }
  0x14   : > { %13386 = sst [smem:[#allocation9_spill]] %s13883_s17  ;;  %s49_s19 = ssub.s32 %s8955_s28, %s13883_s17 }
  0x15   : > { %p9108_p3 = por %p61_p2, %p60_p1  ;;  %p46_p4 = scmp.ge.s32.totalorder %s13885_s18, 2 }
  0x16   : > { %p393_p5 = scmp.eq.s32.totalorder %s7628_s9, 7  ;;  %p398_p6 = scmp.ne.s32.totalorder %s8939_s24, %s8935_s23 }
  0x17   : > { %p399_p7 = scmp.eq.s32.totalorder %s7629_s0, 7  ;;  %s13887_s18 = smov (%p46_p4, %s13885_s18), 0 }
  0x18   : > { %13388 = sst [smem:[#allocation10_spill]] %s13887_s18  ;;  %p9116_p8 = por %p393_p5, %p60_p1 }
  0x19   : > { %p9120_p9 = por %p399_p7, %p398_p6  ;;  %s48_s17 = ssub.s32 %s8959_s29, %s13887_s18 }
  0x1a   : > { %s13389_s21 = scalar_select %p9116_p8, 1, 0 }
  0x1b   : > { %s13391_s22 = scalar_select %p9120_p9, 1, 0 }
  0x1c   : > { %13390 = sst [smem:[#allocation11_spill]] %s13389_s21  ;;  %s50_s16 = sor.u32 %s49_s19, %s48_s17 }
  0x1d   : > { %13392 = sst [smem:[#allocation12_spill]] %s13391_s22  ;;  %s53_s15 = sadd.s32 1, %s8943_s25 }
  0x1e   : > { %p51_p10 = scmp.eq.s32.totalorder %s50_s16, 0  ;;  %p7631_p11 = scmp.ge.s32.totalorder %s8963_s30, 8 }
  0x20   : > { %s9128_s13 = scalar_select %p51_p10, %s8943_s25, %s53_s15  }
  0x21   : > { %482 = sbr.rel (%p7631_p11) target bundleno = 64 (0x40), region = 68 }
  0x22   : > { %13393 = sst [smem:[#allocation13_spill]] %s9128_s13 }
  0x26   : > { %485 = sbr.rel (!%p9108_p3) target bundleno = 52 (0x34), region = 72  ;;  %s487_s9 = sand.u32 (%p9108_p3), 1, %s8943_s25  }
  0x27   : > { %s7633_s0 = sshll.u32 (%p9108_p3), %s8955_s28, 1  ;;  %s7632_s23 = sshll.u32 (%p9108_p3), %s487_s9, 6 }
  0x28   : > { %s7634_s21 = sshll.u32 (%p9108_p3), %s8959_s29, 5  ;;  %s13394_s16 = sld [smem:[#allocation170_spill]] (%p9108_p3) }
  0x29   : > { %s492_s22 = sadd.s32 (%p9108_p3), %s7634_s21, %s7633_s0  ;;  %s489_s13 = scalar_lea.vmem (%p9108_p3), [#allocation3], %s7632_s23 }
  0x2a   : > { %s7635_s18 = sshll.u32 (%p9108_p3), %s492_s22, 3 }
  0x2e   : > { %s494_s15 = scalar_lea.vmem %s13394_s16, %s7635_s18 }
  0x2f   : > { %v507_v1 = vld [vmem:[%s494_s15] sm:$0xff]  ;;  %v509_v2 = vld [vmem:[%s494_s15 + $0x8] sm:$0xff] }
  0x30   : > { %v511_v3 = vld [vmem:[%s494_s15 + $0x40] sm:$0xff]  ;;  %508 = vst [vmem:[%s489_s13] sm:$0xff] %v507_v1  ;;  %510 = vst [vmem:[%s489_s13 + $0x8] sm:$0xff] %v509_v2  ;;  %v513_v4 = vld [vmem:[%s494_s15 + $0x48] sm:$0xff] }
  0x31   : > { %512 = vst [vmem:[%s489_s13 + $0x10] sm:$0xff] %v511_v3  ;;  %v515_v5 = vld [vmem:[%s494_s15 + $0x80] sm:$0xff]  ;;  %v517_v6 = vld [vmem:[%s494_s15 + $0x88] sm:$0xff]  ;;  %514 = vst [vmem:[%s489_s13 + $0x18] sm:$0xff] %v513_v4 }
  0x32   : > { %516 = vst [vmem:[%s489_s13 + $0x20] sm:$0xff] %v515_v5  ;;  %518 = vst [vmem:[%s489_s13 + $0x28] sm:$0xff] %v517_v6  ;;  %v519_v7 = vld [vmem:[%s494_s15 + $0xc0] sm:$0xff]  ;;  %v521_v8 = vld [vmem:[%s494_s15 + $0xc8] sm:$0xff] }
  0x33   : > { %520 = vst [vmem:[%s489_s13 + $0x30] sm:$0xff] %v519_v7  ;;  %522 = vst [vmem:[%s489_s13 + $0x38] sm:$0xff] %v521_v8 }
  0x34 PF: > { %528 = sbr.rel (!%p9108_p3) target bundleno = 64 (0x40), region = 95  ;;  %s530_s23 = sand.u32 (%p9108_p3), 1, %s8943_s25  }
  0x35   : > { %s7637_s18 = sshll.u32 (%p9108_p3), %s8955_s28, 1  ;;  %s7636_s21 = sshll.u32 (%p9108_p3), %s530_s23, 5 }
  0x36   : > { %s7638_s22 = sshll.u32 (%p9108_p3), %s8959_s29, 4  ;;  %s13395_s1 = sld [smem:[#allocation171_spill]] (%p9108_p3) }
  0x37   : > { %s535_s9 = sadd.s32 (%p9108_p3), %s7638_s22, %s7637_s18  ;;  %s532_s13 = scalar_lea.vmem (%p9108_p3), [#allocation4], %s7636_s21 }
  0x38   : > { %s7639_s0 = sshll.u32 (%p9108_p3), %s535_s9, 3 }
  0x3c   : > { %s537_s16 = scalar_lea.vmem %s13395_s1, %s7639_s0 }
  0x3d   : > { %v550_v9 = vld [vmem:[%s537_s16] sm:$0xff]  ;;  %v552_v10 = vld [vmem:[%s537_s16 + $0x8] sm:$0xff] }
  0x3e   : > { %v554_v11 = vld [vmem:[%s537_s16 + $0x40] sm:$0xff]  ;;  %551 = vst [vmem:[%s532_s13] sm:$0xff] %v550_v9  ;;  %553 = vst [vmem:[%s532_s13 + $0x8] sm:$0xff] %v552_v10  ;;  %v556_v12 = vld [vmem:[%s537_s16 + $0x48] sm:$0xff] }
  0x3f   : > { %555 = vst [vmem:[%s532_s13 + $0x10] sm:$0xff] %v554_v11  ;;  %557 = vst [vmem:[%s532_s13 + $0x18] sm:$0xff] %v556_v12 }
  0x40 PF: > { %p7640_p12 = scmp.ge.s32.totalorder %s8963_s30, 1  ;;  %p562_p13 = scmp.lt.s32.totalorder %s8963_s30, 9 }
  0x42   : > { %p563_p0 = pnand %p7640_p12, %p562_p13 }
  0x44   : > { %566 = sbr.rel (%p563_p0) target bundleno = 3770 (0xeba), region = 118 }
  0x49   : > { %s13396_s3 = sld [smem:[#allocation173_spill]]  ;;  %s9156_s21 = sand.u32 1, %s8939_s24   ;;  %v13168_v15 = vmov 0   ;;  %vm1017_vm0 = vcmask 1046528   ;;  %vm968_vm1 = vcmask 244736   ;;  %vm6891_vm3 = vcmask 1045504  }
  0x4a   : > { %8438 = vset.pattern.permute.xlu1 %v13168_v15  ;;  %8437 = vset.pattern.permute.xlu0 %v13168_v15  ;;  %s7641_s22 = sshll.u32 %s9156_s21, 6  ;;  %s13397_s2 = sld [smem:[#allocation172_spill]]  ;;  %vm6866_vm4 = vcmask 97280  }
  0x4b   : > { %s571_s16 = scalar_lea.vmem [#allocation3], %s7641_s22  ;;  %1056 = vmatprep.mubr.bf16.mxu0 %v13168_v15  ;;  %1136 = vmatprep.mubr.bf16.mxu1 %v13168_v15  ;;  %s13398_s5 = sld [smem:[#allocation175_spill]] }
  0x4c   : > { %v657_v18 = vld [vmem:[%s571_s16 + $0x28] sm:$0xff]  ;;  %v659_v19 = vld [vmem:[%s571_s16 + $0x38] sm:$0x3f]  ;;  %v656_v20 = vld [vmem:[%s571_s16 + $0x20] sm:$0xff]  ;;  %s13423_s4 = sld [smem:[#allocation174_spill]]  ;;  %s7643_s18 = sshll.u32 %s9156_s21, 1 }
  0x4d   : > { %v663_v21 = vpack.c.bf16 %v659_v19, %v657_v18  ;;  %v658_v22 = vld [vmem:[%s571_s16 + $0x30] sm:$0x3f]  ;;  %v653_v23 = vld [vmem:[%s571_s16 + $0x8] sm:$0xff]  ;;  %v655_v24 = vld [vmem:[%s571_s16 + $0x18] sm:$0xff]  ;;  %s12738_s22 = scalar_lea.vmem [#allocation5], %s7643_s18  ;;  %s7642_s9 = sshll.u32 %s9156_s21, 5 }
  0x4e   : > { %v662_v25 = vpack.c.bf16 %v658_v22, %v656_v20  ;;  %v661_v26 = vpack.c.bf16 %v655_v24, %v653_v23  ;;  %v652_v27 = vld [vmem:[%s571_s16] sm:$0xff]  ;;  %v654_v28 = vld [vmem:[%s571_s16 + $0x10] sm:$0xff]  ;;  %s578_s0 = scalar_lea.vmem [#allocation4], %s7642_s9  ;;  %s13867_s19 = sld [smem:[#allocation176_spill]] }
  0x4f   : > { %v710_v13 = vld [vmem:[%s13396_s3 + $0x70] sm:$0xff]  ;;  %v708_v14 = vld [vmem:[%s13396_s3 + $0x60] sm:$0xff]  ;;  %v711_v16 = vld [vmem:[%s13396_s3 + $0x78] sm:$0xff]  ;;  %7663 = vmatprep.subr.msk.bf16.mxu0 %vm1017_vm0, %v663_v21  ;;  %8360 = vmatprep.subr.msk.bf16.mxu1 %vm1017_vm0, %v663_v21  ;;  %v660_v32 = vpack.c.bf16 %v654_v28, %v652_v27  ;;  %s13088_s16 = sshll.u32 %s8947_s26, 1  ;;  %s8356_s13 = sshll.u32 %s8951_s27, 3 }
  0x50   : > { %800 = vperm.xlu0 %8437, %v710_v13   ;;  %790 = vperm.xlu1 %8438, %v708_v14   ;;  %v709_v17 = vld [vmem:[%s13396_s3 + $0x68] sm:$0xff]  ;;  %v1019_v29 = vsel %vm1017_vm0, %v662_v25, 0  ;;  %v707_v30 = vld [vmem:[%s13396_s3 + $0x58] sm:$0xff]  ;;  %v706_v31 = vld [vmem:[%s13396_s3 + $0x50] sm:$0xff]  ;;  %s7480_s20 = sadd.s32 %s8356_s13, %s13088_s16  ;;  %s13868_s1 = sld [smem:[#allocation177_spill]] }
  0x51   : > { %1037 = vmatpush1.bf16.msra.mxu0 %v1019_v29  ;;  %8362 = vmatpush1.bf16.msra.mxu1 %v1019_v29  ;;  %v705_v33 = vld [vmem:[%s13396_s3 + $0x48] sm:$0xff]  ;;  %v704_v34 = vld [vmem:[%s13396_s3 + $0x40] sm:$0xff]  ;;  %v703_v37 = vld [vmem:[%s13396_s3 + $0x38] sm:$0xff]  ;;  %s8357_s15 = sshll.u32 %s7480_s20, 4 }
  0x52   : > { %1038 = vmatprep.subr.bf16.mxu0 %v661_v26  ;;  %8361 = vmatprep.subr.bf16.mxu1 %v661_v26  ;;  %v8439_v35 = vld [vmem:[%s13397_s2] sm:$0xff]   ;;  %v702_v38 = vld [vmem:[%s13396_s3 + $0x30] sm:$0xff]  ;;  %v701_v39 = vld [vmem:[%s13396_s3 + $0x28] sm:$0xff] }
  0x53   : > { %v8440_v36 = vld [vmem:[%s13397_s2 + $0x40] sm:$0xff]   ;;  %v8441_v41 = vld [vmem:[%s13397_s2 + $0x8] sm:$0xff]   ;;  %v699_v43 = vld [vmem:[%s13396_s3 + $0x18] sm:$0xff] }
  0x54   : > { %805 = vperm.xlu0 %8437, %v711_v16   ;;  %795 = vperm.xlu1 %8438, %v709_v17   ;;  %v700_v40 = vld [vmem:[%s13396_s3 + $0x20] sm:$0xff]  ;;  %v8442_v42 = vld [vmem:[%s13397_s2 + $0x48] sm:$0xff]   ;;  %v698_v44 = vld [vmem:[%s13396_s3 + $0x10] sm:$0xff] }
  0x55   : > { %1039 = vmatpush1.bf16.msra.mxu0 %v660_v32  ;;  %8363 = vmatpush1.bf16.msra.mxu1 %v660_v32  ;;  %v697_v45 = vld [vmem:[%s13396_s3 + $0x8] sm:$0xff]  ;;  %v696_v46 = vld [vmem:[%s13396_s3] sm:$0xff]  ;;  %v8443_v47 = vld [vmem:[%s13397_s2 + $0x10] sm:$0xff]  }
  0x56   : > { %v8444_v48 = vld [vmem:[%s13397_s2 + $0x50] sm:$0xff]   ;;  %v727_v49 = vld [vmem:[%s13396_s3 + $0xf8] sm:$0xff]  ;;  %v725_v51 = vld [vmem:[%s13396_s3 + $0xe8] sm:$0xff] }
  0x57   : > { %v726_v50 = vld [vmem:[%s13396_s3 + $0xf0] sm:$0xff]  ;;  %v724_v52 = vld [vmem:[%s13396_s3 + $0xe0] sm:$0xff]  ;;  %v8445_v53 = vld [vmem:[%s13397_s2 + $0x18] sm:$0xff]  }
  0x58   : > { %785 = vperm.xlu1 %8438, %v707_v30   ;;  %780 = vperm.xlu0 %8437, %v706_v31   ;;  %v8446_v54 = vld [vmem:[%s13397_s2 + $0x58] sm:$0xff]   ;;  %v722_v56 = vld [vmem:[%s13396_s3 + $0xd0] sm:$0xff]  ;;  %v721_v57 = vld [vmem:[%s13396_s3 + $0xc8] sm:$0xff] }
  0x59   : > { %7664 = vmatmul.mubr.msk.bf16.vlgmr.msra.gmra.mxu0 %vm968_vm1, %v8439_v35  ;;  %7672 = vmatmul.mubr.msk.bf16.vlgmr.msra.gmra.mxu1 %vm968_vm1, %v8440_v36  ;;  %v723_v55 = vld [vmem:[%s13396_s3 + $0xd8] sm:$0xff]  ;;  %v720_v58 = vld [vmem:[%s13396_s3 + $0xc0] sm:$0xff]  ;;  %v718_v62 = vld [vmem:[%s13396_s3 + $0xb0] sm:$0xff] }
  0x5a   : > { %1066 = vmatprep.mubr.bf16.mxu0 %v13168_v15  ;;  %1146 = vmatprep.mubr.bf16.mxu1 %v13168_v15  ;;  %v8447_v59 = vld [vmem:[%s13397_s2 + $0x20] sm:$0xff]   ;;  %v719_v61 = vld [vmem:[%s13396_s3 + $0xb8] sm:$0xff]  ;;  %v717_v63 = vld [vmem:[%s13396_s3 + $0xa8] sm:$0xff] }
  0x5b   : > { %v8448_v60 = vld [vmem:[%s13397_s2 + $0x60] sm:$0xff]   ;;  %v8449_v1 = vld [vmem:[%s13397_s2 + $0x28] sm:$0xff]   ;;  %v715_v3 = vld [vmem:[%s13396_s3 + $0x98] sm:$0xff] }
  0x5c   : > { %775 = vperm.xlu1 %8438, %v705_v33   ;;  %770 = vperm.xlu0 %8437, %v704_v34   ;;  %v716_v0 = vld [vmem:[%s13396_s3 + $0xa0] sm:$0xff]  ;;  %v8450_v2 = vld [vmem:[%s13397_s2 + $0x68] sm:$0xff]   ;;  %v714_v4 = vld [vmem:[%s13396_s3 + $0x90] sm:$0xff] }
  0x5d   : > { %v713_v5 = vld [vmem:[%s13396_s3 + $0x88] sm:$0xff]  ;;  %v712_v6 = vld [vmem:[%s13396_s3 + $0x80] sm:$0xff]  ;;  %v8451_v7 = vld [vmem:[%s13397_s2 + $0x30] sm:$0xff]   ;;  %s7484_s3 = sshll.u32 %s12738_s22, 4  ;;  %s7485_s3 = int_to_ptr.vmem [resolvable:$true] %s7484_s3 }
  0x5e   : > { %v8452_v8 = vld [vmem:[%s13397_s2 + $0x70] sm:$0xff]   ;;  %v1360_v9 = vld [vmem:[%s13398_s5 + $0x78] sm:$0xff]  ;;  %v1358_v11 = vld [vmem:[%s13398_s5 + $0x68] sm:$0xff] }
  0x5f   : > { %v1359_v10 = vld [vmem:[%s13398_s5 + $0x70] sm:$0xff]  ;;  %v1357_v12 = vld [vmem:[%s13398_s5 + $0x60] sm:$0xff]  ;;  %v8453_v13 = vld [vmem:[%s13397_s2 + $0x38] sm:$0xff]  }
  0x60   : > { %765 = vperm.xlu1 %8438, %v703_v37   ;;  %760 = vperm.xlu0 %8437, %v702_v38   ;;  %v8454_v14 = vld [vmem:[%s13397_s2 + $0x78] sm:$0xff]   ;;  %v1355_v17 = vld [vmem:[%s13398_s5 + $0x50] sm:$0xff]  ;;  %v1354_v18 = vld [vmem:[%s13398_s5 + $0x48] sm:$0xff]  ;;  %s7482_s2 = scalar_lea.hbm %s13868_s1, %s8357_s15 }
  0x61   : > { %7665 = vmatmul.mubr.msk.bf16.gmra.mxu0 %vm968_vm1, %v8441_v41  ;;  %7673 = vmatmul.mubr.msk.bf16.gmra.mxu1 %vm968_vm1, %v8442_v42  ;;  %v1356_v16 = vld [vmem:[%s13398_s5 + $0x58] sm:$0xff]  ;;  %v1353_v19 = vld [vmem:[%s13398_s5 + $0x40] sm:$0xff]  ;;  %v1351_v21 = vld [vmem:[%s13398_s5 + $0x30] sm:$0xff] }
  0x62   : > { %1076 = vmatprep.mubr.bf16.mxu0 %v13168_v15  ;;  %1156 = vmatprep.mubr.bf16.mxu1 %v13168_v15  ;;  %v1352_v20 = vld [vmem:[%s13398_s5 + $0x38] sm:$0xff]  ;;  %v1350_v22 = vld [vmem:[%s13398_s5 + $0x28] sm:$0xff]  ;;  %v1349_v23 = vld [vmem:[%s13398_s5 + $0x20] sm:$0xff] }
  0x63   : > { %v1348_v24 = vld [vmem:[%s13398_s5 + $0x18] sm:$0xff]  ;;  %v1347_v25 = vld [vmem:[%s13398_s5 + $0x10] sm:$0xff]  ;;  %v1346_v26 = vld [vmem:[%s13398_s5 + $0x8] sm:$0xff] }
  0x64   : > { %755 = vperm.xlu1 %8438, %v701_v39   ;;  %750 = vperm.xlu0 %8437, %v700_v40   ;;  %v1345_v27 = vld [vmem:[%s13398_s5] sm:$0xff]  ;;  %v1376_v28 = vld [vmem:[%s13398_s5 + $0xf8] sm:$0xff]  ;;  %v1375_v29 = vld [vmem:[%s13398_s5 + $0xf0] sm:$0xff] }
  0x65   : > { %v1374_v30 = vld [vmem:[%s13398_s5 + $0xe8] sm:$0xff]  ;;  %v1373_v31 = vld [vmem:[%s13398_s5 + $0xe0] sm:$0xff]  ;;  %v1372_v32 = vld [vmem:[%s13398_s5 + $0xd8] sm:$0xff] }
  0x66   : > { %v1371_v33 = vld [vmem:[%s13398_s5 + $0xd0] sm:$0xff]  ;;  %v1370_v34 = vld [vmem:[%s13398_s5 + $0xc8] sm:$0xff]  ;;  %v1369_v35 = vld [vmem:[%s13398_s5 + $0xc0] sm:$0xff] }
  0x67   : > { %v1368_v36 = vld [vmem:[%s13398_s5 + $0xb8] sm:$0xff]  ;;  %v1367_v37 = vld [vmem:[%s13398_s5 + $0xb0] sm:$0xff]  ;;  %v1366_v38 = vld [vmem:[%s13398_s5 + $0xa8] sm:$0xff] }
  0x68   : > { %745 = vperm.xlu1 %8438, %v699_v43   ;;  %740 = vperm.xlu0 %8437, %v698_v44   ;;  %v1365_v39 = vld [vmem:[%s13398_s5 + $0xa0] sm:$0xff]  ;;  %v1364_v40 = vld [vmem:[%s13398_s5 + $0x98] sm:$0xff]  ;;  %v1363_v41 = vld [vmem:[%s13398_s5 + $0x90] sm:$0xff] }
  0x69   : > { %7666 = vmatmul.mubr.msk.bf16.gmra.mxu0 %vm968_vm1, %v8443_v47  ;;  %7674 = vmatmul.mubr.msk.bf16.gmra.mxu1 %vm968_vm1, %v8444_v48  ;;  %v1362_v42 = vld [vmem:[%s13398_s5 + $0x88] sm:$0xff]  ;;  %v1361_v43 = vld [vmem:[%s13398_s5 + $0x80] sm:$0xff]  ;;  %v7758_v47 = vld [vmem:[%s13398_s5 + $0x170] sm:$0xff] }
  0x6a   : > { %1086 = vmatprep.mubr.bf16.mxu0 %v13168_v15  ;;  %1166 = vmatprep.mubr.bf16.mxu1 %v13168_v15 }
  0x6c   : > { %735 = vperm.xlu1 %8438, %v697_v45   ;;  %730 = vperm.xlu0 %8437, %v696_v46   ;;  %v7759_v46 = vld [vmem:[%s13398_s5 + $0x178] sm:$0xff] }
  0x70   : > { %885 = vperm.xlu1 %8438, %v727_v49   ;;  %880 = vperm.xlu0 %8437, %v726_v50   ;;  %v7757_v50 = vld [vmem:[%s13398_s5 + $0x168] sm:$0xff] }
  0x71   : > { %7667 = vmatmul.mubr.msk.bf16.gmra.mxu0 %vm968_vm1, %v8445_v53  ;;  %7675 = vmatmul.mubr.msk.bf16.gmra.mxu1 %vm968_vm1, %v8446_v54  ;;  %v7755_v54 = vld [vmem:[%s13398_s5 + $0x158] sm:$0xff] }
  0x72   : > { %1096 = vmatprep.mubr.bf16.mxu0 %v13168_v15  ;;  %1176 = vmatprep.mubr.bf16.mxu1 %v13168_v15 }
  0x74   : > { %875 = vperm.xlu1 %8438, %v725_v51   ;;  %870 = vperm.xlu0 %8437, %v724_v52   ;;  %v7756_v51 = vld [vmem:[%s13398_s5 + $0x160] sm:$0xff] }
  0x78   : > { %865 = vperm.xlu1 %8438, %v723_v55   ;;  %860 = vperm.xlu0 %8437, %v722_v56   ;;  %v7754_v55 = vld [vmem:[%s13398_s5 + $0x150] sm:$0xff] }
  0x79   : > { %7668 = vmatmul.mubr.msk.bf16.gmra.mxu0 %vm968_vm1, %v8447_v59  ;;  %7676 = vmatmul.mubr.msk.bf16.gmra.mxu1 %vm968_vm1, %v8448_v60  ;;  %v7752_v59 = vld [vmem:[%s13398_s5 + $0x140] sm:$0xff] }
  0x7a   : > { %1106 = vmatprep.mubr.bf16.mxu0 %v13168_v15  ;;  %1186 = vmatprep.mubr.bf16.mxu1 %v13168_v15 }
  0x7c   : > { %855 = vperm.xlu1 %8438, %v721_v57   ;;  %850 = vperm.xlu0 %8437, %v720_v58   ;;  %v7753_v58 = vld [vmem:[%s13398_s5 + $0x148] sm:$0xff] }
  0x80   : > { %845 = vperm.xlu1 %8438, %v719_v61   ;;  %840 = vperm.xlu0 %8437, %v718_v62   ;;  %v7751_v62 = vld [vmem:[%s13398_s5 + $0x138] sm:$0xff] }
  0x81   : > { %7669 = vmatmul.mubr.msk.bf16.gmra.mxu0 %vm968_vm1, %v8449_v1  ;;  %7677 = vmatmul.mubr.msk.bf16.gmra.mxu1 %vm968_vm1, %v8450_v2  ;;  %v7749_v2 = vld [vmem:[%s13398_s5 + $0x128] sm:$0xff] }
  0x82   : > { %1116 = vmatprep.mubr.bf16.mxu0 %v13168_v15  ;;  %1196 = vmatprep.mubr.bf16.mxu1 %v13168_v15 }
  0x84   : > { %835 = vperm.xlu1 %8438, %v717_v63   ;;  %830 = vperm.xlu0 %8437, %v716_v0   ;;  %v7750_v63 = vld [vmem:[%s13398_s5 + $0x130] sm:$0xff] }
  0x88   : > { %825 = vperm.xlu1 %8438, %v715_v3   ;;  %820 = vperm.xlu0 %8437, %v714_v4   ;;  %v7748_v3 = vld [vmem:[%s13398_s5 + $0x120] sm:$0xff] }
  0x89   : > { %7670 = vmatmul.mubr.msk.bf16.gmra.mxu0 %vm968_vm1, %v8451_v7  ;;  %7678 = vmatmul.mubr.msk.bf16.gmra.mxu1 %vm968_vm1, %v8452_v8  ;;  %v7746_v7 = vld [vmem:[%s13398_s5 + $0x110] sm:$0xff] }
  0x8a   : > { %1126 = vmatprep.mubr.bf16.mxu0 %v13168_v15  ;;  %1206 = vmatprep.mubr.bf16.mxu1 %v13168_v15 }
  0x8c   : > { %815 = vperm.xlu1 %8438, %v713_v5   ;;  %810 = vperm.xlu0 %8437, %v712_v6   ;;  %v7747_v6 = vld [vmem:[%s13398_s5 + $0x118] sm:$0xff] }
  0x90   : > { %1454 = vperm.xlu1 %8438, %v1360_v9   ;;  %1449 = vperm.xlu0 %8437, %v1359_v10   ;;  %v7745_v10 = vld [vmem:[%s13398_s5 + $0x108] sm:$0xff] }
  0x91   : > { %7671 = vmatmul.mubr.msk.bf16.gmra.mxu0 %vm968_vm1, %v8453_v13  ;;  %7679 = vmatmul.mubr.msk.bf16.gmra.mxu1 %vm968_vm1, %v8454_v14  ;;  %v7775_v14 = vld [vmem:[%s13398_s5 + $0x1f8] sm:$0xff] }
  0x94   : > { %1444 = vperm.xlu1 %8438, %v1358_v11   ;;  %1439 = vperm.xlu0 %8437, %v1357_v12   ;;  %v7744_v11 = vld [vmem:[%s13398_s5 + $0x100] sm:$0xff] }
  0x98   : > { %1434 = vperm.xlu1 %8438, %v1356_v16   ;;  %1429 = vperm.xlu0 %8437, %v1355_v17   ;;  %v7774_v16 = vld [vmem:[%s13398_s5 + $0x1f0] sm:$0xff] }
  0x9c   : > { %1424 = vperm.xlu1 %8438, %v1354_v18   ;;  %1419 = vperm.xlu0 %8437, %v1353_v19   ;;  %v7773_v19 = vld [vmem:[%s13398_s5 + $0x1e8] sm:$0xff] }
  0xa0   : > { %1414 = vperm.xlu1 %8438, %v1352_v20   ;;  %1409 = vperm.xlu0 %8437, %v1351_v21   ;;  %v7772_v20 = vld [vmem:[%s13398_s5 + $0x1e0] sm:$0xff] }
  0xa4   : > { %1404 = vperm.xlu1 %8438, %v1350_v22   ;;  %1399 = vperm.xlu0 %8437, %v1349_v23   ;;  %v7771_v23 = vld [vmem:[%s13398_s5 + $0x1d8] sm:$0xff] }
  0xa8   : > { %1394 = vperm.xlu1 %8438, %v1348_v24   ;;  %1389 = vperm.xlu0 %8437, %v1347_v25   ;;  %v7770_v24 = vld [vmem:[%s13398_s5 + $0x1d0] sm:$0xff] }
  0xac   : > { %1384 = vperm.xlu1 %8438, %v1346_v26   ;;  %1379 = vperm.xlu0 %8437, %v1345_v27   ;;  %v7769_v27 = vld [vmem:[%s13398_s5 + $0x1c8] sm:$0xff] }
  0xb0   : > { %1534 = vperm.xlu1 %8438, %v1376_v28   ;;  %1529 = vperm.xlu0 %8437, %v1375_v29   ;;  %v7768_v28 = vld [vmem:[%s13398_s5 + $0x1c0] sm:$0xff] }
  0xb4   : > { %1524 = vperm.xlu1 %8438, %v1374_v30   ;;  %1519 = vperm.xlu0 %8437, %v1373_v31   ;;  %v7767_v31 = vld [vmem:[%s13398_s5 + $0x1b8] sm:$0xff] }
  0xb8   : > { %1514 = vperm.xlu1 %8438, %v1372_v32   ;;  %1509 = vperm.xlu0 %8437, %v1371_v33   ;;  %v7766_v32 = vld [vmem:[%s13398_s5 + $0x1b0] sm:$0xff] }
  0xbc   : > { %1504 = vperm.xlu1 %8438, %v1370_v34   ;;  %1499 = vperm.xlu0 %8437, %v1369_v35   ;;  %v7765_v35 = vld [vmem:[%s13398_s5 + $0x1a8] sm:$0xff] }
  0xc0   : > { %1494 = vperm.xlu1 %8438, %v1368_v36   ;;  %1489 = vperm.xlu0 %8437, %v1367_v37   ;;  %v7764_v36 = vld [vmem:[%s13398_s5 + $0x1a0] sm:$0xff] }
  0xc4   : > { %1484 = vperm.xlu1 %8438, %v1366_v38   ;;  %1479 = vperm.xlu0 %8437, %v1365_v39   ;;  %v7763_v39 = vld [vmem:[%s13398_s5 + $0x198] sm:$0xff] }
  0xc8   : > { %1474 = vperm.xlu1 %8438, %v1364_v40   ;;  %1469 = vperm.xlu0 %8437, %v1363_v41   ;;  %v7762_v40 = vld [vmem:[%s13398_s5 + $0x190] sm:$0xff] }
  0xcb   : > { %v9427_v44 = vpop.permute.xlu0 %800  ;;  %v9429_v45 = vpop.permute.xlu1 %790 }
  0xcc   : > { %1464 = vperm.xlu1 %8438, %v1362_v42   ;;  %1459 = vperm.xlu0 %8437, %v1361_v43   ;;  %v7761_v43 = vld [vmem:[%s13398_s5 + $0x188] sm:$0xff] }
  0xcf   : > { %v9437_v48 = vpop.permute.xlu0 %805  ;;  %v9439_v49 = vpop.permute.xlu1 %795 }
  0xd0   : > { %2129 = vperm.xlu1 %8438, %v7759_v46   ;;  %2124 = vperm.xlu0 %8437, %v7758_v47   ;;  %v7760_v46 = vld [vmem:[%s13398_s5 + $0x180] sm:$0xff] }
  0xd3   : > { %v9447_v52 = vpop.permute.xlu1 %785  ;;  %v9449_v53 = vpop.permute.xlu0 %780 }
  0xd4   : > { %2119 = vperm.xlu1 %8438, %v7757_v50   ;;  %2114 = vperm.xlu0 %8437, %v7756_v51   ;;  %v7855_v51 = vld [vmem:[%s13398_s5 + $0x278] sm:$0xff] }
  0xd7   : > { %v9457_v56 = vpop.permute.xlu1 %775  ;;  %v9459_v57 = vpop.permute.xlu0 %770 }
  0xd8   : > { %2109 = vperm.xlu1 %8438, %v7755_v54   ;;  %2104 = vperm.xlu0 %8437, %v7754_v55   ;;  %v7854_v54 = vld [vmem:[%s13398_s5 + $0x270] sm:$0xff] }
  0xdb   : > { %v9467_v60 = vpop.permute.xlu1 %765  ;;  %v9469_v61 = vpop.permute.xlu0 %760 }
  0xdc   : > { %2099 = vperm.xlu1 %8438, %v7753_v58   ;;  %2094 = vperm.xlu0 %8437, %v7752_v59   ;;  %v7853_v59 = vld [vmem:[%s13398_s5 + $0x268] sm:$0xff] }
  0xdf   : > { %v9477_v0 = vpop.permute.xlu1 %755  ;;  %v9479_v1 = vpop.permute.xlu0 %750 }
  0xe0   : > { %2089 = vperm.xlu1 %8438, %v7751_v62   ;;  %2084 = vperm.xlu0 %8437, %v7750_v63   ;;  %v7852_v62 = vld [vmem:[%s13398_s5 + $0x260] sm:$0xff] }
  0xe3   : > { %v9487_v4 = vpop.permute.xlu1 %745  ;;  %v9489_v5 = vpop.permute.xlu0 %740 }
  0xe4   : > { %2079 = vperm.xlu1 %8438, %v7749_v2   ;;  %2074 = vperm.xlu0 %8437, %v7748_v3   ;;  %v7851_v3 = vld [vmem:[%s13398_s5 + $0x258] sm:$0xff] }
  0xe7   : > { %v9497_v8 = vpop.permute.xlu1 %735  ;;  %v9499_v9 = vpop.permute.xlu0 %730 }
  0xe8   : > { %2069 = vperm.xlu1 %8438, %v7747_v6   ;;  %2064 = vperm.xlu0 %8437, %v7746_v7   ;;  %v7850_v6 = vld [vmem:[%s13398_s5 + $0x250] sm:$0xff] }
  0xeb   : > { %v9507_v12 = vpop.permute.xlu1 %885  ;;  %v9509_v13 = vpop.permute.xlu0 %880 }
  0xec   : > { %2059 = vperm.xlu1 %8438, %v7745_v10   ;;  %2054 = vperm.xlu0 %8437, %v7744_v11   ;;  %v7849_v11 = vld [vmem:[%s13398_s5 + $0x248] sm:$0xff] }
  0xef   : > { %v9517_v17 = vpop.permute.xlu1 %875  ;;  %v9519_v18 = vpop.permute.xlu0 %870 }
  0xf0   : > { %2209 = vperm.xlu1 %8438, %v7775_v14   ;;  %2204 = vperm.xlu0 %8437, %v7774_v16   ;;  %v7848_v14 = vld [vmem:[%s13398_s5 + $0x240] sm:$0xff] }
  0xf3   : > { %v9527_v21 = vpop.permute.xlu1 %865  ;;  %v9529_v22 = vpop.permute.xlu0 %860 }
  0xf4   : > { %13399 = vst [vmem:[#allocation14_spill] sm:$0xff] %v9527_v21  ;;  %2199 = vperm.xlu1 %8438, %v7773_v19   ;;  %2194 = vperm.xlu0 %8437, %v7772_v20  }
  0xf7   : > { %v9537_v25 = vpop.permute.xlu1 %855  ;;  %v9539_v26 = vpop.permute.xlu0 %850 }
  0xf8   : > { %13400 = vst [vmem:[#allocation15_spill] sm:$0xff] %v9537_v25  ;;  %13401 = vst [vmem:[#allocation16_spill] sm:$0xff] %v9539_v26  ;;  %2189 = vperm.xlu1 %8438, %v7771_v23   ;;  %2184 = vperm.xlu0 %8437, %v7770_v24   ;;  %v7847_v24 = vld [vmem:[%s13398_s5 + $0x238] sm:$0xff] }
  0xfb   : > { %v9547_v29 = vpop.permute.xlu1 %845  ;;  %v9549_v30 = vpop.permute.xlu0 %840 }
  0xfc   : > { %13402 = vst [vmem:[#allocation17_spill] sm:$0xff] %v9547_v29  ;;  %13403 = vst [vmem:[#allocation18_spill] sm:$0xff] %v9549_v30  ;;  %2179 = vperm.xlu1 %8438, %v7769_v27   ;;  %2174 = vperm.xlu0 %8437, %v7768_v28   ;;  %v7846_v27 = vld [vmem:[%s13398_s5 + $0x230] sm:$0xff] }
  0xff   : > { %v9557_v33 = vpop.permute.xlu1 %835  ;;  %v9559_v34 = vpop.permute.xlu0 %830 }
 0x100   : > { %13404 = vst [vmem:[#allocation19_spill] sm:$0xff] %v9557_v33  ;;  %13405 = vst [vmem:[#allocation20_spill] sm:$0xff] %v9559_v34  ;;  %2169 = vperm.xlu1 %8438, %v7767_v31   ;;  %2164 = vperm.xlu0 %8437, %v7766_v32  }
 0x103   : > { %v9567_v37 = vpop.permute.xlu1 %825  ;;  %v9569_v38 = vpop.permute.xlu0 %820 }
 0x104   : > { %13406 = vst [vmem:[#allocation21_spill] sm:$0xff] %v9567_v37  ;;  %13407 = vst [vmem:[#allocation22_spill] sm:$0xff] %v9569_v38  ;;  %2159 = vperm.xlu1 %8438, %v7765_v35   ;;  %2154 = vperm.xlu0 %8437, %v7764_v36  }
 0x107   : > { %v9577_v41 = vpop.permute.xlu1 %815  ;;  %v9579_v42 = vpop.permute.xlu0 %810 }
 0x108   : > { %13408 = vst [vmem:[#allocation23_spill] sm:$0xff] %v9577_v41  ;;  %13409 = vst [vmem:[#allocation24_spill] sm:$0xff] %v9579_v42  ;;  %2149 = vperm.xlu1 %8438, %v7763_v39   ;;  %2144 = vperm.xlu0 %8437, %v7762_v40   ;;  %v8457_v40 = vld [vmem:[%s13423_s4 + $0x4] ss:$8 sps:$4 sm:$0xff]  }
 0x109   : > { %1729 = vmatprep.mubr.bf16.mxu1 %v8457_v40  ;;  %v7842_v40 = vld [vmem:[%s13398_s5 + $0x210] sm:$0xff] }
 0x10b   : > { %v9587_v47 = vpop.permute.xlu1 %1454  ;;  %v9589_v50 = vpop.permute.xlu0 %1449 }
 0x10c   : > { %13410 = vst [vmem:[#allocation25_spill] sm:$0xff] %v9587_v47  ;;  %13411 = vst [vmem:[#allocation26_spill] sm:$0xff] %v9589_v50  ;;  %2139 = vperm.xlu1 %8438, %v7761_v43   ;;  %2134 = vperm.xlu0 %8437, %v7760_v46  }
 0x10f   : > { %v9597_v55 = vpop.permute.xlu1 %1444  ;;  %v9599_v58 = vpop.permute.xlu0 %1439 }
 0x110   : > { %13412 = vst [vmem:[#allocation27_spill] sm:$0xff] %v9597_v55  ;;  %13413 = vst [vmem:[#allocation28_spill] sm:$0xff] %v9599_v58  ;;  %2804 = vperm.xlu1 %8438, %v7855_v51   ;;  %2799 = vperm.xlu0 %8437, %v7854_v54   ;;  %v7845_v51 = vld [vmem:[%s13398_s5 + $0x228] sm:$0xff]  ;;  %v7844_v54 = vld [vmem:[%s13398_s5 + $0x220] sm:$0xff] }
 0x113   : > { %v9607_v63 = vpop.permute.xlu1 %1434  ;;  %v9609_v2 = vpop.permute.xlu0 %1429 }
 0x114   : > { %13414 = vst [vmem:[#allocation29_spill] sm:$0xff] %v9607_v63  ;;  %13415 = vst [vmem:[#allocation30_spill] sm:$0xff] %v9609_v2  ;;  %2794 = vperm.xlu1 %8438, %v7853_v59   ;;  %2789 = vperm.xlu0 %8437, %v7852_v62  }
 0x117   : > { %v9617_v7 = vpop.permute.xlu1 %1424  ;;  %v9619_v10 = vpop.permute.xlu0 %1419 }
 0x118   : > { %13416 = vst [vmem:[#allocation31_spill] sm:$0xff] %v9617_v7  ;;  %13417 = vst [vmem:[#allocation32_spill] sm:$0xff] %v9619_v10  ;;  %2784 = vperm.xlu1 %8438, %v7851_v3   ;;  %2779 = vperm.xlu0 %8437, %v7850_v6  }
 0x119   : > { %v1058_v20 = vpop.f32.mrf.mxu0  ;;  %v1138_v23 = vpop.f32.mrf.mxu1 }
 0x11a   : > { %v1139_v28 = vadd.f32 %v1138_v23, %v9579_v42  ;;  %v1059_v35 = vadd.f32 %v1058_v20, %v9499_v9  ;;  %v7860_v42 = vld [vmem:[%s13398_s5 + $0x2a0] sm:$0xff] }
 0x11b   : > { %v9627_v16 = vpop.permute.xlu1 %1414  ;;  %v9629_v19 = vpop.permute.xlu0 %1409 }
 0x11c   : > { %13418 = vst [vmem:[#allocation33_spill] sm:$0xff] %v9627_v16  ;;  %13419 = vst [vmem:[#allocation34_spill] sm:$0xff] %v9629_v19  ;;  %2774 = vperm.xlu1 %8438, %v7849_v11   ;;  %2769 = vperm.xlu0 %8437, %v7848_v14   ;;  %v9638_v31 = vpop.f32.mrf.mxu0  ;;  %v9640_v32 = vpop.f32.mrf.mxu1  ;;  %v1249_v59 = vmax.f32 %v1139_v28, 0.0  ;;  %v1217_v14 = vmax.f32 %v1059_v35, 0.0 }
 0x11d   : > { %13420 = vst [vmem:[#allocation35_spill] sm:$0xff] %v9640_v32  ;;  %v7861_v32 = vld [vmem:[%s13398_s5 + $0x2a8] sm:$0xff] }
 0x11e   : > { %v1062_v43 = vpop.f32.mrf.mxu0  ;;  %v1142_v46 = vpop.f32.mrf.mxu1 }
 0x11f   : > { %v9643_v36 = vpop.permute.xlu1 %1404  ;;  %v9645_v39 = vpop.permute.xlu0 %1399  ;;  %v1063_v62 = vadd.f32 %v1062_v43, %v9497_v8  ;;  %v1143_v3 = vadd.f32 %v1142_v46, %v9577_v41  ;;  %v7843_v43 = vld [vmem:[%s13398_s5 + $0x218] sm:$0xff] }
 0x120   : > { %13421 = vst [vmem:[#allocation36_spill] sm:$0xff] %v9643_v36  ;;  %13422 = vst [vmem:[#allocation37_spill] sm:$0xff] %v9645_v39  ;;  %2764 = vperm.xlu1 %8438, %v7847_v24   ;;  %2759 = vperm.xlu0 %8437, %v7846_v27   ;;  %v9658_v6 = vpop.f32.mrf.mxu0  ;;  %v9660_v11 = vpop.f32.mrf.mxu1 }
 0x121   : > { %13424 = vst [vmem:[#allocation38_spill] sm:$0xff] %v9660_v11  ;;  %v1219_v20 = vmax.f32 %v1063_v62, 0.0  ;;  %v1251_v23 = vmax.f32 %v1143_v3, 0.0 }
 0x122   : > { %v1068_v15 = vpop.f32.mrf.mxu0  ;;  %v1148_v28 = vpop.f32.mrf.mxu1 }
 0x123   : > { %v9662_v24 = vpop.permute.xlu1 %1394  ;;  %v9664_v27 = vpop.permute.xlu0 %1389  ;;  %v9672_v46 = vpack.c.bf16 %v1219_v20, %v1217_v14  ;;  %v9674_v35 = vpack.c.bf16 %v1251_v23, %v1249_v59  ;;  %v1149_v62 = vadd.f32 %v1148_v28, %v9569_v38  ;;  %v7841_v59 = vld [vmem:[%s13398_s5 + $0x208] sm:$0xff]  ;;  %v7840_v14 = vld [vmem:[%s13398_s5 + $0x200] sm:$0xff] }
 0x124   : > { %13425 = vst [vmem:[#allocation39_spill] sm:$0xff] %v9662_v24  ;;  %13426 = vst [vmem:[#allocation40_spill] sm:$0xff] %v9664_v27  ;;  %2754 = vperm.xlu1 %8438, %v7845_v51   ;;  %2749 = vperm.xlu0 %8437, %v7844_v54   ;;  %v9677_v3 = vpop.f32.mrf.mxu0  ;;  %v9679_v51 = vpop.f32.mrf.mxu1  ;;  %v1069_v54 = vadd.f32 %v1068_v15, %v9489_v5 }
 0x125   : > { %13427 = vst [vmem:[#allocation41_spill] sm:$0xff] %v9672_v46  ;;  %13428 = vst [vmem:[#allocation42_spill] sm:$0xff] %v9674_v35  ;;  %v1253_v20 = vmax.f32 %v1149_v62, 0.0 }
 0x126   : > { %13429 = vst [vmem:[#allocation43_spill] sm:$0xff] %v9679_v51  ;;  %v1072_v19 = vpop.f32.mrf.mxu0  ;;  %v1152_v16 = vpop.f32.mrf.mxu1  ;;  %v7858_v51 = vld [vmem:[%s13398_s5 + $0x290] sm:$0xff] }
 0x127   : > { %v9682_v39 = vpop.permute.xlu1 %1384  ;;  %v9684_v36 = vpop.permute.xlu0 %1379  ;;  %v1073_v23 = vadd.f32 %v1072_v19, %v9487_v4  ;;  %v1153_v15 = vadd.f32 %v1152_v16, %v9567_v37  ;;  %v7871_v16 = vld [vmem:[%s13398_s5 + $0x2f8] sm:$0xff]  ;;  %v7870_v19 = vld [vmem:[%s13398_s5 + $0x2f0] sm:$0xff] }
 0x128   : > { %13430 = vst [vmem:[#allocation44_spill] sm:$0xff] %v9682_v39  ;;  %13431 = vst [vmem:[#allocation45_spill] sm:$0xff] %v9684_v36  ;;  %2744 = vperm.xlu1 %8438, %v7843_v43   ;;  %2739 = vperm.xlu0 %8437, %v7842_v40   ;;  %v9694_v28 = vpop.f32.mrf.mxu0  ;;  %v9696_v10 = vpop.f32.mrf.mxu1  ;;  %v1221_v43 = vmax.f32 %v1069_v54, 0.0  ;;  %v7865_v36 = vld [vmem:[%s13398_s5 + $0x2c8] sm:$0xff] }
 0x129   : > { %13432 = vst [vmem:[#allocation46_spill] sm:$0xff] %v9696_v10  ;;  %v1223_v40 = vmax.f32 %v1073_v23, 0.0  ;;  %v1255_v7 = vmax.f32 %v1153_v15, 0.0 }
 0x12a   : > { %v9702_v58 = vpop.f32.mrf.mxu0  ;;  %v1158_v62 = vpop.f32.mrf.mxu1 }
 0x12b   : > { %v9698_v2 = vpop.permute.xlu1 %1534  ;;  %v9700_v63 = vpop.permute.xlu0 %1529  ;;  %v9710_v54 = vpack.c.bf16 %v1223_v40, %v1221_v43  ;;  %v9712_v23 = vpack.c.bf16 %v1255_v7, %v1253_v20  ;;  %v1159_v15 = vadd.f32 %v1158_v62, %v9559_v34  ;;  %v7869_v7 = vld [vmem:[%s13398_s5 + $0x2e8] sm:$0xff]  ;;  %v7868_v20 = vld [vmem:[%s13398_s5 + $0x2e0] sm:$0xff] }
 0x12c   : > { %13433 = vst [vmem:[#allocation47_spill] sm:$0xff] %v9698_v2  ;;  %13434 = vst [vmem:[#allocation48_spill] sm:$0xff] %v9700_v63  ;;  %2734 = vperm.xlu1 %8438, %v7841_v59   ;;  %2729 = vperm.xlu0 %8437, %v7840_v14   ;;  %v9715_v2 = vpop.f32.mrf.mxu0  ;;  %v9717_v59 = vpop.f32.mrf.mxu1 }
 0x12d   : > { %13435 = vst [vmem:[#allocation49_spill] sm:$0xff] %v9712_v23  ;;  %13436 = vst [vmem:[#allocation50_spill] sm:$0xff] %v9717_v59  ;;  %v1257_v43 = vmax.f32 %v1159_v15, 0.0  ;;  %v7867_v15 = vld [vmem:[%s13398_s5 + $0x2d8] sm:$0xff] }
 0x12e   : > { %v9723_v47 = vpop.f32.mrf.mxu0  ;;  %v1162_v50 = vpop.f32.mrf.mxu1  ;;  %v7863_v23 = vld [vmem:[%s13398_s5 + $0x2b8] sm:$0xff] }
 0x12f   : > { %v9719_v14 = vpop.permute.xlu1 %1524  ;;  %v9721_v63 = vpop.permute.xlu0 %1519  ;;  %v1163_v40 = vadd.f32 %v1162_v50, %v9557_v33  ;;  %v7866_v50 = vld [vmem:[%s13398_s5 + $0x2d0] sm:$0xff] }
 0x130   : > { %13437 = vst [vmem:[#allocation51_spill] sm:$0xff] %v9719_v14  ;;  %13438 = vst [vmem:[#allocation52_spill] sm:$0xff] %v9721_v63  ;;  %2884 = vperm.xlu1 %8438, %v7871_v16   ;;  %2879 = vperm.xlu0 %8437, %v7870_v19   ;;  %v9732_v62 = vpop.f32.mrf.mxu0  ;;  %v9734_v14 = vpop.f32.mrf.mxu1 }
 0x131   : > { %13439 = vst [vmem:[#allocation53_spill] sm:$0xff] %v9734_v14  ;;  %v1259_v16 = vmax.f32 %v1163_v40, 0.0 }
 0x132   : > { %v9740_v55 = vpop.f32.mrf.mxu0  ;;  %v9742_v24 = vpop.f32.mrf.mxu1 }
 0x133   : > { %v9736_v19 = vpop.permute.xlu1 %1514  ;;  %v9738_v63 = vpop.permute.xlu0 %1509  ;;  %13442 = vst [vmem:[#allocation56_spill] sm:$0xff] %v9742_v24  ;;  %v9750_v27 = vpack.c.bf16 %v1259_v16, %v1257_v43  ;;  %v7864_v43 = vld [vmem:[%s13398_s5 + $0x2c0] sm:$0xff] }
 0x134   : > { %13440 = vst [vmem:[#allocation54_spill] sm:$0xff] %v9736_v19  ;;  %13441 = vst [vmem:[#allocation55_spill] sm:$0xff] %v9738_v63  ;;  %2874 = vperm.xlu1 %8438, %v7869_v7   ;;  %2869 = vperm.xlu0 %8437, %v7868_v20   ;;  %v9752_v40 = vpop.f32.mrf.mxu0  ;;  %v9754_v19 = vpop.f32.mrf.mxu1 }
 0x135   : > { %13443 = vst [vmem:[#allocation57_spill] sm:$0xff] %v9750_v27  ;;  %13444 = vst [vmem:[#allocation58_spill] sm:$0xff] %v9754_v19  ;;  %v7862_v27 = vld [vmem:[%s13398_s5 + $0x2b0] sm:$0xff] }
 0x136   : > { %v9760_v63 = vpop.f32.mrf.mxu0  ;;  %v9762_v39 = vpop.f32.mrf.mxu1 }
 0x137   : > { %v9756_v7 = vpop.permute.xlu1 %1504  ;;  %v9758_v20 = vpop.permute.xlu0 %1499  ;;  %13447 = vst [vmem:[#allocation61_spill] sm:$0xff] %v9762_v39 }
 0x138   : > { %13445 = vst [vmem:[#allocation59_spill] sm:$0xff] %v9756_v7  ;;  %13446 = vst [vmem:[#allocation60_spill] sm:$0xff] %v9758_v20  ;;  %2864 = vperm.xlu1 %8438, %v7867_v15   ;;  %2859 = vperm.xlu0 %8437, %v7866_v50   ;;  %v9770_v16 = vpop.f32.mrf.mxu0  ;;  %v9772_v35 = vpop.f32.mrf.mxu1 }
 0x139   : > { %13448 = vst [vmem:[#allocation62_spill] sm:$0xff] %v9772_v35 }
 0x13a   : > { %v9778_v50 = vpop.f32.mrf.mxu0  ;;  %v9780_v20 = vpop.f32.mrf.mxu1 }
 0x13b   : > { %v9774_v7 = vpop.permute.xlu1 %1494  ;;  %v9776_v15 = vpop.permute.xlu0 %1489  ;;  %13451 = vst [vmem:[#allocation65_spill] sm:$0xff] %v9780_v20 }
 0x13c   : > { %13449 = vst [vmem:[#allocation63_spill] sm:$0xff] %v9774_v7  ;;  %13450 = vst [vmem:[#allocation64_spill] sm:$0xff] %v9776_v15  ;;  %2854 = vperm.xlu1 %8438, %v7865_v36   ;;  %2849 = vperm.xlu0 %8437, %v7864_v43   ;;  %v9788_v11 = vpop.f32.mrf.mxu0  ;;  %v9790_v41 = vpop.f32.mrf.mxu1 }
 0x13d   : > { %13452 = vst [vmem:[#allocation66_spill] sm:$0xff] %v9790_v41 }
 0x13e   : > { %v9796_v43 = vpop.f32.mrf.mxu0  ;;  %v9798_v15 = vpop.f32.mrf.mxu1 }
 0x13f   : > { %v9792_v7 = vpop.permute.xlu1 %1484  ;;  %v9794_v36 = vpop.permute.xlu0 %1479  ;;  %13455 = vst [vmem:[#allocation69_spill] sm:$0xff] %v9798_v15 }
 0x140   : > { %13453 = vst [vmem:[#allocation67_spill] sm:$0xff] %v9792_v7  ;;  %13454 = vst [vmem:[#allocation68_spill] sm:$0xff] %v9794_v36  ;;  %2844 = vperm.xlu1 %8438, %v7863_v23   ;;  %2839 = vperm.xlu0 %8437, %v7862_v27   ;;  %v9806_v10 = vpop.f32.mrf.mxu0  ;;  %v9808_v37 = vpop.f32.mrf.mxu1  ;;  %v7859_v36 = vld [vmem:[%s13398_s5 + $0x298] sm:$0xff] }
 0x141   : > { %13456 = vst [vmem:[#allocation70_spill] sm:$0xff] %v9808_v37 }
 0x142   : > { %v9814_v27 = vpop.f32.mrf.mxu0  ;;  %v9822_v38 = vpop.f32.mrf.mxu1 }
 0x143   : > { %v9810_v7 = vpop.permute.xlu1 %1474  ;;  %v9812_v23 = vpop.permute.xlu0 %1469  ;;  %13459 = vst [vmem:[#allocation73_spill] sm:$0xff] %v9822_v38 }
 0x144   : > { %13457 = vst [vmem:[#allocation71_spill] sm:$0xff] %v9810_v7  ;;  %13458 = vst [vmem:[#allocation72_spill] sm:$0xff] %v9812_v23  ;;  %2834 = vperm.xlu1 %8438, %v7861_v32   ;;  %2829 = vperm.xlu0 %8437, %v7860_v42   ;;  %v9824_v14 = vpop.f32.mrf.mxu0  ;;  %v7857_v32 = vld [vmem:[%s13398_s5 + $0x288] sm:$0xff]  ;;  %v7856_v23 = vld [vmem:[%s13398_s5 + $0x280] sm:$0xff]  ;;  %v9838_v39 = vpop.f32.mrf.mxu1 }
 0x146   : > { %v9830_v42 = vpop.f32.mrf.mxu0  ;;  %v9850_v34 = vpop.f32.mrf.mxu1 }
 0x147   : > { %v9826_v33 = vpop.permute.xlu1 %1464  ;;  %v9828_v7 = vpop.permute.xlu0 %1459  ;;  %13464 = vst [vmem:[#allocation78_spill] sm:$0xff] %v9850_v34 }
 0x148   : > { %13460 = vst [vmem:[#allocation74_spill] sm:$0xff] %v9826_v33  ;;  %13461 = vst [vmem:[#allocation75_spill] sm:$0xff] %v9828_v7  ;;  %2824 = vperm.xlu1 %8438, %v7859_v36   ;;  %2819 = vperm.xlu0 %8437, %v7858_v51   ;;  %v1114_v24 = vpop.f32.mrf.mxu0  ;;  %v7951_v36 = vld [vmem:[%s13398_s5 + $0x378] sm:$0xff]  ;;  %v7950_v7 = vld [vmem:[%s13398_s5 + $0x370] sm:$0xff] }
 0x14a   : > { %v1118_v51 = vpop.f32.mrf.mxu0 }
 0x14b   : > { %v9840_v59 = vpop.permute.xlu1 %2129  ;;  %v9842_v33 = vpop.permute.xlu0 %2124 }
 0x14c   : > { %13462 = vst [vmem:[#allocation76_spill] sm:$0xff] %v9840_v59  ;;  %13463 = vst [vmem:[#allocation77_spill] sm:$0xff] %v9842_v33  ;;  %2814 = vperm.xlu1 %8438, %v7857_v32   ;;  %2809 = vperm.xlu0 %8437, %v7856_v23   ;;  %v1120_v35 = vpop.f32.mrf.mxu0  ;;  %v7949_v23 = vld [vmem:[%s13398_s5 + $0x368] sm:$0xff]  ;;  %v7948_v59 = vld [vmem:[%s13398_s5 + $0x360] sm:$0xff]  ;;  %v9862_v33 = vpop.f32.mrf.mxu1 }
 0x14d   : > { %13467 = vst [vmem:[#allocation81_spill] sm:$0xff] %v9862_v33 }
 0x14e   : > { %v1122_v32 = vpop.f32.mrf.mxu0 }
 0x14f   : > { %v9852_v29 = vpop.permute.xlu1 %2119  ;;  %v9854_v15 = vpop.permute.xlu0 %2114 }
 0x150   : > { %13465 = vst [vmem:[#allocation79_spill] sm:$0xff] %v9852_v29  ;;  %13466 = vst [vmem:[#allocation80_spill] sm:$0xff] %v9854_v15  ;;  %3479 = vperm.xlu1 %8438, %v7951_v36   ;;  %3474 = vperm.xlu0 %8437, %v7950_v7   ;;  %v1124_v20 = vpop.f32.mrf.mxu0  ;;  %v7947_v7 = vld [vmem:[%s13398_s5 + $0x358] sm:$0xff]  ;;  %v7946_v15 = vld [vmem:[%s13398_s5 + $0x350] sm:$0xff]  ;;  %v9874_v29 = vpop.f32.mrf.mxu1 }
 0x152   : > { %v1128_v36 = vpop.f32.mrf.mxu0 }
 0x153   : > { %v9864_v19 = vpop.permute.xlu1 %2109  ;;  %v9866_v30 = vpop.permute.xlu0 %2104 }
 0x154   : > { %13468 = vst [vmem:[#allocation82_spill] sm:$0xff] %v9864_v19  ;;  %13469 = vst [vmem:[#allocation83_spill] sm:$0xff] %v9866_v30  ;;  %3469 = vperm.xlu1 %8438, %v7949_v23   ;;  %3464 = vperm.xlu0 %8437, %v7948_v59   ;;  %v1130_v37 = vpop.f32.mrf.mxu0  ;;  %v7945_v59 = vld [vmem:[%s13398_s5 + $0x348] sm:$0xff]  ;;  %v7944_v30 = vld [vmem:[%s13398_s5 + $0x340] sm:$0xff]  ;;  %v1125_v19 = vadd.f32 %v1124_v20, %v9439_v49  ;;  %v1123_v20 = vadd.f32 %v1122_v32, %v9439_v49 }
 0x155   : > { %v1131_v38 = vadd.f32 %v1130_v37, %v9427_v44  ;;  %v1111_v49 = vadd.f32 %v9824_v14, %v9449_v53  ;;  %v1105_v14 = vadd.f32 %v9806_v10, %v9457_v56 }
 0x156   : > { %v1132_v23 = vpop.f32.mrf.mxu0 }
 0x157   : > { %v9876_v25 = vpop.permute.xlu1 %2099  ;;  %v9878_v34 = vpop.permute.xlu0 %2094  ;;  %v1133_v41 = vadd.f32 %v1132_v23, %v9437_v48  ;;  %v7943_v23 = vld [vmem:[%s13398_s5 + $0x338] sm:$0xff] }
 0x158   : > { %13470 = vst [vmem:[#allocation84_spill] sm:$0xff] %v9876_v25  ;;  %13471 = vst [vmem:[#allocation85_spill] sm:$0xff] %v9878_v34  ;;  %3459 = vperm.xlu1 %8438, %v7947_v7   ;;  %3454 = vperm.xlu0 %8437, %v7946_v15   ;;  %v9889_v25 = vpop.f32.mrf.mxu1  ;;  %v1129_v7 = vadd.f32 %v1128_v36, %v9427_v44  ;;  %v1134_v15 = vpop.f32.mrf.mxu0  ;;  %v1121_v34 = vadd.f32 %v1120_v35, %v9429_v45  ;;  %v7942_v44 = vld [vmem:[%s13398_s5 + $0x330] sm:$0xff]  ;;  %v1246_v36 = vmax.f32 %v1131_v38, 0.0 }
 0x159   : > { %v1135_v26 = vadd.f32 %v1134_v15, %v9437_v48  ;;  %v1247_v37 = vmax.f32 %v1133_v41, 0.0  ;;  %v1115_v35 = vadd.f32 %v1114_v24, %v9447_v52  ;;  %v1244_v48 = vmax.f32 %v1125_v19, 0.0 }
 0x15a   : > { %v1242_v41 = vmax.f32 %v1121_v34, 0.0  ;;  %v1113_v38 = vadd.f32 %v9830_v42, %v9447_v52 }
 0x15b   : > { %v9894_v46 = vpop.permute.xlu1 %2089  ;;  %v9896_v33 = vpop.permute.xlu0 %2084  ;;  %v1248_v15 = vmax.f32 %v1135_v26, 0.0  ;;  %v1243_v26 = vmax.f32 %v1123_v20, 0.0  ;;  %v1240_v34 = vmax.f32 %v1115_v35, 0.0  ;;  %v1101_v20 = vadd.f32 %v9788_v11, %v9459_v57 }
 0x15c   : > { %13472 = vst [vmem:[#allocation86_spill] sm:$0xff] %v9894_v46  ;;  %13473 = vst [vmem:[#allocation87_spill] sm:$0xff] %v9896_v33  ;;  %3449 = vperm.xlu1 %8438, %v7945_v59   ;;  %3444 = vperm.xlu0 %8437, %v7944_v30   ;;  %v1119_v33 = vadd.f32 %v1118_v51, %v9429_v45  ;;  %v9907_v59 = vpop.f32.mrf.mxu1  ;;  %v1245_v30 = vmax.f32 %v1129_v7, 0.0  ;;  %v7941_v45 = vld [vmem:[%s13398_s5 + $0x328] sm:$0xff]  ;;  %v1326_v19 = vpack.c.bf16 %v1244_v48, %v1242_v41  ;;  %v7940_v51 = vld [vmem:[%s13398_s5 + $0x320] sm:$0xff] }
 0x15d   : > { %v1328_v21 = vpack.c.bf16 %v1248_v15, %v1246_v36  ;;  %v1109_v7 = vadd.f32 %v9814_v27, %v9449_v53  ;;  %v7939_v53 = vld [vmem:[%s13398_s5 + $0x318] sm:$0xff]  ;;  %v1236_v11 = vmax.f32 %v1105_v14, 0.0  ;;  %v7938_v48 = vld [vmem:[%s13398_s5 + $0x310] sm:$0xff]  ;;  %v1099_v36 = vadd.f32 %v9778_v50, %v9459_v57  ;;  %v7937_v57 = vld [vmem:[%s13398_s5 + $0x308] sm:$0xff] }
 0x15e   : > { %v1327_v24 = vpack.c.bf16 %v1247_v37, %v1245_v30  ;;  %v1241_v52 = vmax.f32 %v1119_v33, 0.0  ;;  %v9927_v42 = vpop.f32.mrf.mxu1  ;;  %v1238_v37 = vmax.f32 %v1111_v49, 0.0  ;;  %v1095_v33 = vadd.f32 %v9770_v16, %v9467_v60 }
 0x15f   : > { %v9911_v32 = vpop.permute.xlu1 %2079  ;;  %v9913_v46 = vpop.permute.xlu0 %2074  ;;  %1697 = vmatprep.subr.bf16.mxu1 %v1328_v21  ;;  %v1103_v21 = vadd.f32 %v9796_v43, %v9457_v56  ;;  %v1237_v56 = vmax.f32 %v1109_v7, 0.0  ;;  %v1091_v15 = vadd.f32 %v9752_v40, %v9469_v61  ;;  %v1234_v30 = vmax.f32 %v1101_v20, 0.0 }
 0x160   : > { %3439 = vperm.xlu1 %8438, %v7943_v23   ;;  %3434 = vperm.xlu0 %8437, %v7942_v44   ;;  %v1239_v44 = vmax.f32 %v1113_v38, 0.0  ;;  %v1325_v35 = vpack.c.bf16 %v1243_v26, %v1241_v52  ;;  %v1324_v27 = vpack.c.bf16 %v1240_v34, %v1238_v37  ;;  %v9947_v43 = vpop.f32.mrf.mxu1  ;;  %v1093_v41 = vadd.f32 %v9760_v63, %v9467_v60 }
 0x161   : > { %1698 = vmatpush1.bf16.msra.mxu1 %v1327_v24  ;;  %v1235_v38 = vmax.f32 %v1103_v21, 0.0  ;;  %v1085_v40 = vadd.f32 %v9732_v62, %v9477_v0  ;;  %v1232_v50 = vmax.f32 %v1095_v33, 0.0  ;;  %v1322_v24 = vpack.c.bf16 %v1236_v11, %v1234_v30  ;;  %v7966_v21 = vld [vmem:[%s13398_s5 + $0x3f0] sm:$0xff] }
 0x162   : > { %1699 = vmatprep.subr.bf16.mxu1 %v1326_v19  ;;  %v1323_v26 = vpack.c.bf16 %v1239_v44, %v1237_v56  ;;  %v1089_v14 = vadd.f32 %v9740_v55, %v9469_v61  ;;  %v1233_v60 = vmax.f32 %v1099_v36, 0.0  ;;  %v1210_v63 = vpop.f32.mrf.mxu1  ;;  %v1081_v34 = vadd.f32 %v9715_v2, %v9479_v1  ;;  %v7967_v61 = vld [vmem:[%s13398_s5 + $0x3f8] sm:$0xff] }
 0x163   : > { %v9931_v23 = vpop.permute.xlu1 %2069  ;;  %v9933_v10 = vpop.permute.xlu0 %2064  ;;  %v1230_v19 = vmax.f32 %v1091_v15, 0.0  ;;  %v1083_v62 = vadd.f32 %v9723_v47, %v9477_v0  ;;  %v1231_v52 = vmax.f32 %v1093_v41, 0.0  ;;  %v1075_v55 = vadd.f32 %v9694_v28, %v9487_v4 }
 0x164   : > { %3429 = vperm.xlu1 %8438, %v7941_v45   ;;  %3424 = vperm.xlu0 %8437, %v7940_v51   ;;  %v7936_v45 = vld [vmem:[%s13398_s5 + $0x300] sm:$0xff]  ;;  %v1321_v20 = vpack.c.bf16 %v1235_v38, %v1233_v60  ;;  %v1228_v2 = vmax.f32 %v1085_v40, 0.0  ;;  %v1079_v44 = vadd.f32 %v9702_v58, %v9479_v1  ;;  %v1229_v0 = vmax.f32 %v1089_v14, 0.0  ;;  %v1212_v47 = vpop.f32.mrf.mxu1  ;;  %v7965_v1 = vld [vmem:[%s13398_s5 + $0x3e8] sm:$0xff] }
 0x165   : > { %1700 = vmatpush1.bf16.msra.mxu1 %v1325_v35  ;;  %v1320_v37 = vpack.c.bf16 %v1232_v50, %v1230_v19  ;;  %v1071_v35 = vadd.f32 %v9677_v3, %v9489_v5  ;;  %v1227_v4 = vmax.f32 %v1083_v62, 0.0  ;;  %v1065_v58 = vadd.f32 %v9658_v6, %v9497_v8  ;;  %v7964_v5 = vld [vmem:[%s13398_s5 + $0x3e0] sm:$0xff]  ;;  %v7963_v6 = vld [vmem:[%s13398_s5 + $0x3d8] sm:$0xff]  ;;  %v7961_v14 = vld [vmem:[%s13398_s5 + $0x3c8] sm:$0xff] }
 0x166   : > { %1701 = vmatprep.subr.bf16.mxu1 %v1324_v27  ;;  %v1319_v28 = vpack.c.bf16 %v1231_v52, %v1229_v0  ;;  %v1224_v27 = vmax.f32 %v1075_v55, 0.0  ;;  %v1225_v3 = vmax.f32 %v1079_v44, 0.0  ;;  %v1214_v36 = vpop.f32.mrf.mxu1  ;;  %v1061_v56 = vadd.f32 %v9638_v31, %v9499_v9  ;;  %v7962_v9 = vld [vmem:[%s13398_s5 + $0x3d0] sm:$0xff]  ;;  %v7960_v62 = vld [vmem:[%s13398_s5 + $0x3c0] sm:$0xff] }
 0x167   : > { %v9951_v49 = vpop.permute.xlu1 %2059  ;;  %v9953_v16 = vpop.permute.xlu0 %2054  ;;  %v1222_v15 = vmax.f32 %v1071_v35, 0.0  ;;  %v1220_v38 = vmax.f32 %v1065_v58, 0.0  ;;  %v1211_v40 = vadd.f32 %v1210_v63, %v9509_v13  ;;  %v1201_v60 = vadd.f32 %v9889_v25, %v9519_v18  ;;  %v13489_v35 = vld [vmem:[#allocation73_spill] sm:$0xff] }
 0x168   : > { %3419 = vperm.xlu1 %8438, %v7939_v53   ;;  %3414 = vperm.xlu0 %8437, %v7938_v48   ;;  %v1226_v53 = vmax.f32 %v1081_v34, 0.0  ;;  %v1317_v8 = vpack.c.bf16 %v1227_v4, %v1225_v3  ;;  %v1218_v31 = vmax.f32 %v1061_v56, 0.0  ;;  %v1205_v34 = vadd.f32 %v9927_v42, %v9517_v17  ;;  %v7957_v3 = vld [vmem:[%s13398_s5 + $0x3a8] sm:$0xff] }
 0x169   : > { %1702 = vmatpush1.bf16.msra.mxu1 %v1323_v26  ;;  %v1215_v26 = vadd.f32 %v1214_v36, %v9507_v12  ;;  %v1278_v52 = vmax.f32 %v1211_v40, 0.0  ;;  %v1191_v25 = vadd.f32 %v9838_v39, %v9529_v22  ;;  %v1199_v42 = vadd.f32 %v9874_v29, %v9519_v18  ;;  %v7958_v39 = vld [vmem:[%s13398_s5 + $0x3b0] sm:$0xff]  ;;  %v13486_v29 = vld [vmem:[#allocation41_spill] sm:$0xff]  ;;  %v13494_v56 = vld [vmem:[#allocation70_spill] sm:$0xff] }
 0x16a   : > { %1703 = vmatprep.subr.bf16.mxu1 %v1322_v24  ;;  %v1318_v48 = vpack.c.bf16 %v1228_v2, %v1226_v53  ;;  %v1314_v19 = vpack.c.bf16 %v1220_v38, %v1218_v31  ;;  %v1203_v55 = vadd.f32 %v9907_v59, %v9517_v17  ;;  %v1276_v44 = vmax.f32 %v1205_v34, 0.0  ;;  %v13487_v17 = vld [vmem:[#allocation16_spill] sm:$0xff]  ;;  %v13488_v59 = vld [vmem:[#allocation66_spill] sm:$0xff]  ;;  %v13493_v36 = vld [vmem:[#allocation15_spill] sm:$0xff] }
 0x16b   : > { %v9969_v51 = vpop.permute.xlu1 %2209  ;;  %v9971_v7 = vpop.permute.xlu0 %2204  ;;  %v1280_v63 = vmax.f32 %v1215_v26, 0.0  ;;  %v1189_v53 = vadd.f32 %v13489_v35, %v9529_v22  ;;  %v1185_v22 = vadd.f32 %v13494_v56, %v13493_v36  ;;  %v7956_v38 = vld [vmem:[%s13398_s5 + $0x3a0] sm:$0xff] }
 0x16c   : > { %13474 = vst [vmem:[#allocation88_spill] sm:$0xff] %v9969_v51  ;;  %13475 = vst [vmem:[#allocation89_spill] sm:$0xff] %v9971_v7  ;;  %3409 = vperm.xlu1 %8438, %v7937_v57   ;;  %3404 = vperm.xlu0 %8437, %v7936_v45   ;;  %v1316_v57 = vpack.c.bf16 %v1224_v27, %v1222_v15  ;;  %v1213_v45 = vadd.f32 %v1212_v47, %v9507_v12  ;;  %v1273_v27 = vmax.f32 %v1199_v42, 0.0  ;;  %v13495_v26 = vld [vmem:[#allocation18_spill] sm:$0xff]  ;;  %v13497_v31 = vld [vmem:[#allocation65_spill] sm:$0xff] }
 0x16d   : > { %1704 = vmatpush1.bf16.msra.mxu1 %v1321_v20  ;;  %v1209_v12 = vadd.f32 %v9947_v43, %v9509_v13  ;;  %v7959_v13 = vld [vmem:[%s13398_s5 + $0x3b8] sm:$0xff]  ;;  %v1344_v0 = vpack.c.bf16 %v1280_v63, %v1278_v52  ;;  %v1181_v47 = vadd.f32 %v13488_v59, %v13487_v17  ;;  %v1270_v15 = vmax.f32 %v1191_v25, 0.0  ;;  %v13500_v25 = vld [vmem:[#allocation62_spill] sm:$0xff] }
 0x16e   : > { %1705 = vmatprep.subr.bf16.mxu1 %v1320_v37  ;;  %v1279_v2 = vmax.f32 %v1213_v45, 0.0  ;;  %v13485_v43 = vld [vmem:[#allocation81_spill] sm:$0xff]  ;;  %v1179_v40 = vadd.f32 %v13497_v31, %v13487_v17  ;;  %v1269_v63 = vmax.f32 %v1189_v53, 0.0  ;;  %v7953_v53 = vld [vmem:[%s13398_s5 + $0x388] sm:$0xff] }
 0x16f   : > { %v9987_v33 = vpop.permute.xlu1 %2199  ;;  %v9989_v11 = vpop.permute.xlu0 %2194  ;;  %v1277_v18 = vmax.f32 %v1209_v12, 0.0  ;;  %v7955_v12 = vld [vmem:[%s13398_s5 + $0x398] sm:$0xff]  ;;  %v13638_v7 = vld [vmem:[#allocation74_spill] sm:$0xff] }
 0x170   : > { %13476 = vst [vmem:[#allocation90_spill] sm:$0xff] %v9987_v33  ;;  %13477 = vst [vmem:[#allocation91_spill] sm:$0xff] %v9989_v11  ;;  %3559 = vperm.xlu1 %8438, %v7967_v61   ;;  %3554 = vperm.xlu0 %8437, %v7966_v21   ;;  %v1274_v21 = vmax.f32 %v1201_v60, 0.0  ;;  %v13498_v60 = vld [vmem:[#allocation69_spill] sm:$0xff]  ;;  %v1265_v59 = vmax.f32 %v1179_v40, 0.0  ;;  %v13512_v40 = vld [vmem:[#allocation46_spill] sm:$0xff] }
 0x171   : > { %1706 = vmatpush1.bf16.msra.mxu1 %v1319_v28  ;;  %v1183_v34 = vadd.f32 %v13498_v60, %v13493_v36  ;;  %v13499_v52 = vld [vmem:[#allocation17_spill] sm:$0xff] }
 0x172   : > { %1707 = vmatprep.subr.bf16.mxu1 %v1318_v48  ;;  %v1275_v48 = vmax.f32 %v1203_v55, 0.0  ;;  %v1175_v42 = vadd.f32 %v13500_v25, %v13499_v52  ;;  %v1266_v55 = vmax.f32 %v1181_v47, 0.0  ;;  %v7952_v36 = vld [vmem:[%s13398_s5 + $0x380] sm:$0xff]  ;;  %v13515_v25 = vld [vmem:[#allocation24_spill] sm:$0xff] }
 0x173   : > { %v10001_v30 = vpop.permute.xlu1 %2189  ;;  %v10003_v41 = vpop.permute.xlu0 %2184  ;;  %v1267_v47 = vmax.f32 %v1183_v34, 0.0  ;;  %v13511_v31 = vld [vmem:[#allocation21_spill] sm:$0xff] }
 0x174   : > { %13478 = vst [vmem:[#allocation92_spill] sm:$0xff] %v10001_v30  ;;  %13479 = vst [vmem:[#allocation93_spill] sm:$0xff] %v10003_v41  ;;  %3549 = vperm.xlu1 %8438, %v7965_v1   ;;  %3544 = vperm.xlu0 %8437, %v7964_v5   ;;  %v13492_v1 = vld [vmem:[#allocation78_spill] sm:$0xff]  ;;  %v1343_v5 = vpack.c.bf16 %v1279_v2, %v1277_v18  ;;  %v1268_v2 = vmax.f32 %v1185_v22, 0.0  ;;  %v1155_v60 = vadd.f32 %v13512_v40, %v13511_v31  ;;  %v8458_v40 = vld [vmem:[%s13423_s4 + $0x14] ss:$8 sps:$4 sm:$0xff]  }
 0x175   : > { %1708 = vmatpush1.bf16.msra.mxu1 %v1317_v8  ;;  %v13527_v31 = vld [vmem:[#allocation42_spill] sm:$0xff] }
 0x176   : > { %1709 = vmatprep.subr.bf16.mxu1 %v1316_v57  ;;  %v13496_v57 = vld [vmem:[#allocation58_spill] sm:$0xff] }
 0x177   : > { %v10013_v50 = vpop.permute.xlu1 %2179  ;;  %v10015_v24 = vpop.permute.xlu0 %2174 }
 0x178   : > { %13480 = vst [vmem:[#allocation94_spill] sm:$0xff] %v10013_v50  ;;  %13481 = vst [vmem:[#allocation95_spill] sm:$0xff] %v10015_v24  ;;  %3539 = vperm.xlu1 %8438, %v7963_v6   ;;  %3534 = vperm.xlu0 %8437, %v7962_v9   ;;  %v1342_v6 = vpack.c.bf16 %v1276_v44, %v1274_v21  ;;  %v1171_v9 = vadd.f32 %v13496_v57, %v13495_v26  ;;  %v13503_v44 = vld [vmem:[#allocation56_spill] sm:$0xff] }
 0x179   : > { %1710 = vmatpush1.bf16.msra.mxu1 %v9710_v54  ;;  %v13484_v54 = vld [vmem:[#allocation14_spill] sm:$0xff]  ;;  %v1337_v57 = vpack.c.bf16 %v1267_v47, %v1265_v59  ;;  %v8043_v47 = vld [vmem:[%s13398_s5 + $0x458] sm:$0xff] }
 0x17a   : > { %1711 = vmatprep.subr.bf16.mxu1 %v1314_v19  ;;  %v1195_v37 = vadd.f32 %v13485_v43, %v13484_v54  ;;  %v1193_v58 = vadd.f32 %v13492_v1, %v13484_v54  ;;  %v7954_v54 = vld [vmem:[%s13398_s5 + $0x390] sm:$0xff] }
 0x17b   : > { %v10031_v20 = vpop.permute.xlu1 %2169  ;;  %v10033_v61 = vpop.permute.xlu0 %2164  ;;  %v13501_v43 = vld [vmem:[#allocation20_spill] sm:$0xff]  ;;  %v13505_v1 = vld [vmem:[#allocation19_spill] sm:$0xff] }
 0x17c   : > { %13482 = vst [vmem:[#allocation96_spill] sm:$0xff] %v10031_v20  ;;  %13483 = vst [vmem:[#allocation97_spill] sm:$0xff] %v10033_v61  ;;  %3529 = vperm.xlu1 %8438, %v7961_v14   ;;  %3524 = vperm.xlu0 %8437, %v7960_v62   ;;  %v1272_v8 = vmax.f32 %v1195_v37, 0.0  ;;  %v1271_v19 = vmax.f32 %v1193_v58, 0.0  ;;  %v1341_v62 = vpack.c.bf16 %v1275_v48, %v1273_v27  ;;  %v13502_v37 = vld [vmem:[#allocation50_spill] sm:$0xff]  ;;  %v13506_v58 = vld [vmem:[#allocation53_spill] sm:$0xff] }
 0x17d   : > { %1712 = vmatpush1.bf16.msra.mxu1 %v13486_v29  ;;  %v1161_v21 = vadd.f32 %v13502_v37, %v13501_v43  ;;  %v13504_v29 = vld [vmem:[#allocation61_spill] sm:$0xff]  ;;  %v1165_v27 = vadd.f32 %v13506_v58, %v13505_v1  ;;  %v1262_v48 = vmax.f32 %v1171_v9, 0.0  ;;  %v13518_v43 = vld [vmem:[#allocation38_spill] sm:$0xff]  ;;  %v8042_v58 = vld [vmem:[%s13398_s5 + $0x450] sm:$0xff] }
 0x17e   : > { %1713 = vmatprep.subr.bf16.mxu1 %v1344_v0  ;;  %v1169_v0 = vadd.f32 %v13503_v44, %v13495_v26  ;;  %v1173_v17 = vadd.f32 %v13504_v29, %v13499_v52  ;;  %v1339_v35 = vpack.c.bf16 %v1271_v19, %v1269_v63  ;;  %v8047_v9 = vld [vmem:[%s13398_s5 + $0x478] sm:$0xff]  ;;  %v1256_v44 = vmax.f32 %v1155_v60, 0.0  ;;  %v8044_v29 = vld [vmem:[%s13398_s5 + $0x460] sm:$0xff] }
 0x17f   : > { %v10054_v4 = vpop.permute.xlu1 %2159  ;;  %v10056_v28 = vpop.permute.xlu0 %2154  ;;  %v1258_v34 = vmax.f32 %v1161_v21, 0.0  ;;  %v1260_v63 = vmax.f32 %v1165_v27, 0.0  ;;  %v13521_v27 = vld [vmem:[#allocation57_spill] sm:$0xff]  ;;  %v13631_v20 = vld [vmem:[#allocation28_spill] sm:$0xff] }
 0x180   : > { %13490 = vst [vmem:[#allocation14_spill] sm:$0xff] %v10054_v4  ;;  %13491 = vst [vmem:[#allocation81_spill] sm:$0xff] %v10056_v28  ;;  %3519 = vperm.xlu1 %8438, %v7959_v13   ;;  %3514 = vperm.xlu0 %8437, %v7958_v39   ;;  %v1340_v13 = vpack.c.bf16 %v1272_v8, %v1270_v15  ;;  %v13509_v15 = vld [vmem:[#allocation22_spill] sm:$0xff]  ;;  %v13510_v8 = vld [vmem:[#allocation43_spill] sm:$0xff]  ;;  %v1263_v26 = vmax.f32 %v1173_v17, 0.0 }
 0x181   : > { %1714 = vmatpush2.bf16.msra.mxu1 %v1343_v5  ;;  %v1264_v5 = vmax.f32 %v1175_v42, 0.0  ;;  %v13516_v42 = vld [vmem:[#allocation35_spill] sm:$0xff] }
 0x182   : > { %1715 = vmatprep.subr.bf16.mxu1 %v1342_v6  ;;  %v1151_v6 = vadd.f32 %v13510_v8, %v13509_v15  ;;  %v8040_v15 = vld [vmem:[%s13398_s5 + $0x440] sm:$0xff] }
 0x183   : > { %v10072_v45 = vpop.permute.xlu1 %2149  ;;  %v10074_v14 = vpop.permute.xlu0 %2144  ;;  %v1336_v19 = vpack.c.bf16 %v1264_v5, %v1262_v48  ;;  %v13524_v8 = vld [vmem:[#allocation49_spill] sm:$0xff] }
 0x184   : > { %3509 = vperm.xlu1 %8438, %v7957_v3   ;;  %3504 = vperm.xlu0 %8437, %v7956_v38   ;;  %v1338_v3 = vpack.c.bf16 %v1268_v2, %v1266_v55  ;;  %v1261_v38 = vmax.f32 %v1169_v0, 0.0  ;;  %v1141_v55 = vadd.f32 %v13516_v42, %v13515_v25  ;;  %v1254_v21 = vmax.f32 %v1151_v6, 0.0  ;;  %v8035_v42 = vld [vmem:[%s13398_s5 + $0x418] sm:$0xff] }
 0x185   : > { %1716 = vmatpush2.bf16.msra.mxu1 %v1341_v62  ;;  %v8046_v62 = vld [vmem:[%s13398_s5 + $0x470] sm:$0xff]  ;;  %v1334_v0 = vpack.c.bf16 %v1260_v63, %v1258_v34  ;;  %v8037_v63 = vld [vmem:[%s13398_s5 + $0x428] sm:$0xff] }
 0x186   : > { %1717 = vmatprep.subr.bf16.mxu1 %v1340_v13  ;;  %v1335_v2 = vpack.c.bf16 %v1263_v26, %v1261_v38  ;;  %v8045_v13 = vld [vmem:[%s13398_s5 + $0x468] sm:$0xff]  ;;  %v1332_v1 = vpack.c.bf16 %v1256_v44, %v1254_v21  ;;  %v8039_v26 = vld [vmem:[%s13398_s5 + $0x438] sm:$0xff]  ;;  %v8032_v21 = vld [vmem:[%s13398_s5 + $0x400] sm:$0xff] }
 0x187   : > { %v10090_v39 = vpop.permute.xlu1 %2139  ;;  %v10092_v18 = vpop.permute.xlu0 %2134 }
 0x188   : > { %3499 = vperm.xlu1 %8438, %v7955_v12   ;;  %3494 = vperm.xlu0 %8437, %v7954_v54   ;;  %v13517_v54 = vld [vmem:[#allocation23_spill] sm:$0xff] }
 0x189   : > { %1718 = vmatpush2.bf16.msra.mxu1 %v1339_v35  ;;  %v1145_v37 = vadd.f32 %v13518_v43, %v13517_v54  ;;  %v1250_v35 = vmax.f32 %v1141_v55, 0.0  ;;  %v8034_v55 = vld [vmem:[%s13398_s5 + $0x410] sm:$0xff] }
 0x18a   : > { %1719 = vmatprep.subr.bf16.mxu1 %v1338_v3  ;;  %v8041_v3 = vld [vmem:[%s13398_s5 + $0x448] sm:$0xff] }
 0x18b   : > { %v10104_v56 = vpop.permute.xlu1 %2804  ;;  %v10106_v22 = vpop.permute.xlu0 %2799 }
 0x18c   : > { %13507 = vst [vmem:[#allocation41_spill] sm:$0xff] %v10104_v56  ;;  %13508 = vst [vmem:[#allocation16_spill] sm:$0xff] %v10106_v22  ;;  %3489 = vperm.xlu1 %8438, %v7953_v53   ;;  %3484 = vperm.xlu0 %8437, %v7952_v36   ;;  %v1252_v53 = vmax.f32 %v1145_v37, 0.0  ;;  %v8033_v37 = vld [vmem:[%s13398_s5 + $0x408] sm:$0xff] }
 0x18d   : > { %1720 = vmatpush2.bf16.msra.mxu1 %v1337_v57  ;;  %v8038_v57 = vld [vmem:[%s13398_s5 + $0x430] sm:$0xff] }
 0x18e   : > { %1721 = vmatprep.subr.bf16.mxu1 %v1336_v19  ;;  %v1330_v36 = vpack.c.bf16 %v1252_v53, %v1250_v35  ;;  %v8036_v19 = vld [vmem:[%s13398_s5 + $0x420] sm:$0xff]  ;;  %v8464_v53 = vld [vmem:[%s13423_s4 + $0x34] ss:$8 sps:$4 sm:$0xff]  }
 0x18f   : > { %v10118_v12 = vpop.permute.xlu1 %2794  ;;  %v10120_v52 = vpop.permute.xlu0 %2789  ;;  %v8463_v35 = vld [vmem:[%s13423_s4 + $0x20] ss:$8 sps:$4 sm:$0xff]  }
 0x190   : > { %13513 = vst [vmem:[#allocation66_spill] sm:$0xff] %v10118_v12  ;;  %13514 = vst [vmem:[#allocation73_spill] sm:$0xff] %v10120_v52  ;;  %4154 = vperm.xlu1 %8438, %v8047_v9   ;;  %4149 = vperm.xlu0 %8437, %v8046_v62   ;;  %v8455_v9 = vld [vmem:[%s13423_s4] ss:$8 sps:$4 sm:$0xff]  }
 0x191   : > { %1722 = vmatpush2.bf16.msra.mxu1 %v1335_v2  ;;  %v8460_v2 = vld [vmem:[%s13423_s4 + $0x10] ss:$8 sps:$4 sm:$0xff]  }
 0x192   : > { %1723 = vmatprep.subr.bf16.mxu1 %v1334_v0 }
 0x193   : > { %v10132_v17 = vpop.permute.xlu1 %2784  ;;  %v10134_v59 = vpop.permute.xlu0 %2779 }
 0x194   : > { %13519 = vst [vmem:[#allocation78_spill] sm:$0xff] %v10132_v17  ;;  %13520 = vst [vmem:[#allocation15_spill] sm:$0xff] %v10134_v59  ;;  %4144 = vperm.xlu1 %8438, %v8045_v13   ;;  %4139 = vperm.xlu0 %8437, %v8044_v29   ;;  %v8461_v13 = vld [vmem:[%s13423_s4 + $0x24] ss:$8 sps:$4 sm:$0xff]   ;;  %v8063_v29 = vld [vmem:[%s13398_s5 + $0x4f8] sm:$0xff] }
 0x195   : > { %1724 = vmatpush2.bf16.msra.mxu1 %v13521_v27  ;;  %v8061_v27 = vld [vmem:[%s13398_s5 + $0x4e8] sm:$0xff] }
 0x196   : > { %1725 = vmatprep.subr.bf16.mxu1 %v1332_v1 }
 0x197   : > { %v10143_v48 = vpop.permute.xlu1 %2774  ;;  %v10145_v5 = vpop.permute.xlu0 %2769 }
 0x198   : > { %13522 = vst [vmem:[#allocation70_spill] sm:$0xff] %v10143_v48  ;;  %13523 = vst [vmem:[#allocation18_spill] sm:$0xff] %v10145_v5  ;;  %4134 = vperm.xlu1 %8438, %v8043_v47   ;;  %4129 = vperm.xlu0 %8437, %v8042_v58   ;;  %v8062_v47 = vld [vmem:[%s13398_s5 + $0x4f0] sm:$0xff] }
 0x199   : > { %1726 = vmatpush2.bf16.msra.mxu1 %v13524_v8  ;;  %v8059_v8 = vld [vmem:[%s13398_s5 + $0x4d8] sm:$0xff] }
 0x19a   : > { %1727 = vmatprep.subr.bf16.mxu1 %v1330_v36 }
 0x19b   : > { %v10154_v6 = vpop.permute.xlu1 %2764  ;;  %v10156_v38 = vpop.permute.xlu0 %2759 }
 0x19c   : > { %13525 = vst [vmem:[#allocation58_spill] sm:$0xff] %v10154_v6  ;;  %13526 = vst [vmem:[#allocation65_spill] sm:$0xff] %v10156_v38  ;;  %4124 = vperm.xlu1 %8438, %v8041_v3   ;;  %4119 = vperm.xlu0 %8437, %v8040_v15   ;;  %v8060_v3 = vld [vmem:[%s13398_s5 + $0x4e0] sm:$0xff]  ;;  %v6085_v6 = vld [vmem:[%s13151_s7 + $0x88] sm:$0xff] }
 0x19d   : > { %1728 = vmatpush2.bf16.msra.mxu1 %v13527_v31 }
 0x19f   : > { %v10171_v60 = vpop.permute.xlu1 %2754  ;;  %v10173_v34 = vpop.permute.xlu0 %2749 }
 0x1a0   : > { %13528 = vst [vmem:[#allocation69_spill] sm:$0xff] %v10171_v60  ;;  %13529 = vst [vmem:[#allocation17_spill] sm:$0xff] %v10173_v34  ;;  %4114 = vperm.xlu1 %8438, %v8039_v26   ;;  %4109 = vperm.xlu0 %8437, %v8038_v57   ;;  %v8058_v26 = vld [vmem:[%s13398_s5 + $0x4d0] sm:$0xff] }
 0x1a1   : > { %1730 = vmatmul.mubr.bf16.vlgmr.msra.gmra.mxu1 %v8455_v9  ;;  %v8466_v57 = vld [vmem:[%s13423_s4 + $0x30] ss:$8 sps:$4 sm:$0xff]   ;;  %v8467_v9 = vld [vmem:[%s13423_s4 + $0x44] ss:$8 sps:$4 sm:$0xff]  }
 0x1a2   : > { %1739 = vmatprep.mubr.bf16.mxu1 %v8458_v40 }
 0x1a3   : > { %v10181_v62 = vpop.permute.xlu1 %2744  ;;  %v10183_v25 = vpop.permute.xlu0 %2739 }
 0x1a4   : > { %13530 = vst [vmem:[#allocation62_spill] sm:$0xff] %v10181_v62  ;;  %13531 = vst [vmem:[#allocation20_spill] sm:$0xff] %v10183_v25  ;;  %4104 = vperm.xlu1 %8438, %v8037_v63   ;;  %4099 = vperm.xlu0 %8437, %v8036_v19   ;;  %v8057_v63 = vld [vmem:[%s13398_s5 + $0x4c8] sm:$0xff]  ;;  %v8056_v19 = vld [vmem:[%s13398_s5 + $0x4c0] sm:$0xff] }
 0x1a5   : > { %v13628_v25 = vld [vmem:[#allocation27_spill] sm:$0xff] }
 0x1a7   : > { %v10197_v54 = vpop.permute.xlu1 %2734  ;;  %v10199_v43 = vpop.permute.xlu0 %2729 }
 0x1a8   : > { %13532 = vst [vmem:[#allocation50_spill] sm:$0xff] %v10197_v54  ;;  %13533 = vst [vmem:[#allocation56_spill] sm:$0xff] %v10199_v43  ;;  %4094 = vperm.xlu1 %8438, %v8035_v42   ;;  %4089 = vperm.xlu0 %8437, %v8034_v55   ;;  %v13629_v43 = vld [vmem:[#allocation26_spill] sm:$0xff] }
 0x1a9   : > { %1740 = vmatmul.mubr.bf16.gmra.mxu1 %v8460_v2  ;;  %v8055_v2 = vld [vmem:[%s13398_s5 + $0x4b8] sm:$0xff] }
 0x1aa   : > { %1749 = vmatprep.mubr.bf16.mxu1 %v8461_v13  ;;  %v8054_v13 = vld [vmem:[%s13398_s5 + $0x4b0] sm:$0xff] }
 0x1ab   : > { %v10207_v44 = vpop.permute.xlu1 %2884  ;;  %v10209_v0 = vpop.permute.xlu0 %2879 }
 0x1ac   : > { %13534 = vst [vmem:[#allocation61_spill] sm:$0xff] %v10207_v44  ;;  %13535 = vst [vmem:[#allocation19_spill] sm:$0xff] %v10209_v0  ;;  %4084 = vperm.xlu1 %8438, %v8033_v37   ;;  %4079 = vperm.xlu0 %8437, %v8032_v21   ;;  %v8469_v37 = vld [vmem:[%s13423_s4 + $0x40] ss:$8 sps:$4 sm:$0xff]   ;;  %v8470_v21 = vld [vmem:[%s13423_s4 + $0x54] ss:$8 sps:$4 sm:$0xff]  }
 0x1af   : > { %v10223_v1 = vpop.permute.xlu1 %2874  ;;  %v10225_v58 = vpop.permute.xlu0 %2869 }
 0x1b0   : > { %13536 = vst [vmem:[#allocation53_spill] sm:$0xff] %v10223_v1  ;;  %13537 = vst [vmem:[#allocation22_spill] sm:$0xff] %v10225_v58  ;;  %4234 = vperm.xlu1 %8438, %v8063_v29   ;;  %4229 = vperm.xlu0 %8437, %v8062_v47  }
 0x1b1   : > { %1750 = vmatmul.mubr.bf16.gmra.mxu1 %v8463_v35  ;;  %v8053_v35 = vld [vmem:[%s13398_s5 + $0x4a8] sm:$0xff] }
 0x1b2   : > { %1759 = vmatprep.mubr.bf16.mxu1 %v8464_v53  ;;  %v8052_v53 = vld [vmem:[%s13398_s5 + $0x4a0] sm:$0xff] }
 0x1b3   : > { %v10233_v36 = vpop.permute.xlu1 %2864  ;;  %v10235_v15 = vpop.permute.xlu0 %2859 }
 0x1b4   : > { %13538 = vst [vmem:[#allocation43_spill] sm:$0xff] %v10233_v36  ;;  %13539 = vst [vmem:[#allocation21_spill] sm:$0xff] %v10235_v15  ;;  %4224 = vperm.xlu1 %8438, %v8061_v27   ;;  %4219 = vperm.xlu0 %8437, %v8060_v3  }
 0x1b7   : > { %v10249_v31 = vpop.permute.xlu1 %2854  ;;  %v10251_v40 = vpop.permute.xlu0 %2849 }
 0x1b8   : > { %13540 = vst [vmem:[#allocation46_spill] sm:$0xff] %v10249_v31  ;;  %13541 = vst [vmem:[#allocation24_spill] sm:$0xff] %v10251_v40  ;;  %4214 = vperm.xlu1 %8438, %v8059_v8   ;;  %4209 = vperm.xlu0 %8437, %v8058_v26   ;;  %v8051_v8 = vld [vmem:[%s13398_s5 + $0x498] sm:$0xff]  ;;  %v8050_v26 = vld [vmem:[%s13398_s5 + $0x490] sm:$0xff] }
 0x1b9   : > { %1760 = vmatmul.mubr.bf16.gmra.mxu1 %v8466_v57  ;;  %v8472_v57 = vld [vmem:[%s13423_s4 + $0x50] ss:$8 sps:$4 sm:$0xff]   ;;  %v6068_v40 = vld [vmem:[%s13151_s7] sm:$0xff] }
 0x1ba   : > { %1769 = vmatprep.mubr.bf16.mxu1 %v8467_v9  ;;  %v8473_v9 = vld [vmem:[%s13423_s4 + $0x64] ss:$8 sps:$4 sm:$0xff]  }
 0x1bb   : > { %v10259_v42 = vpop.permute.xlu1 %2844  ;;  %v10261_v55 = vpop.permute.xlu0 %2839 }
 0x1bc   : > { %13542 = vst [vmem:[#allocation35_spill] sm:$0xff] %v10259_v42  ;;  %13543 = vst [vmem:[#allocation23_spill] sm:$0xff] %v10261_v55  ;;  %4204 = vperm.xlu1 %8438, %v8057_v63   ;;  %4199 = vperm.xlu0 %8437, %v8056_v19  }
 0x1bf   : > { %v10275_v29 = vpop.permute.xlu1 %2834  ;;  %v10277_v47 = vpop.permute.xlu0 %2829 }
 0x1c0   : > { %13544 = vst [vmem:[#allocation38_spill] sm:$0xff] %v10275_v29  ;;  %13545 = vst [vmem:[#allocation57_spill] sm:$0xff] %v10277_v47  ;;  %4194 = vperm.xlu1 %8438, %v8055_v2   ;;  %4189 = vperm.xlu0 %8437, %v8054_v13   ;;  %v8049_v2 = vld [vmem:[%s13398_s5 + $0x488] sm:$0xff]  ;;  %v8048_v13 = vld [vmem:[%s13398_s5 + $0x480] sm:$0xff] }
 0x1c1   : > { %1770 = vmatmul.mubr.bf16.gmra.mxu1 %v8469_v37  ;;  %v13606_v29 = vld [vmem:[#allocation44_spill] sm:$0xff] }
 0x1c2   : > { %1779 = vmatprep.mubr.bf16.mxu1 %v8470_v21 }
 0x1c3   : > { %v10285_v27 = vpop.permute.xlu1 %2824  ;;  %v10287_v3 = vpop.permute.xlu0 %2819 }
 0x1c4   : > { %13546 = vst [vmem:[#allocation49_spill] sm:$0xff] %v10285_v27  ;;  %13547 = vst [vmem:[#allocation42_spill] sm:$0xff] %v10287_v3  ;;  %4184 = vperm.xlu1 %8438, %v8053_v35   ;;  %4179 = vperm.xlu0 %8437, %v8052_v53   ;;  %v8143_v35 = vld [vmem:[%s13398_s5 + $0x578] sm:$0xff]  ;;  %v8142_v53 = vld [vmem:[%s13398_s5 + $0x570] sm:$0xff] }
 0x1c7   : > { %v10301_v63 = vpop.permute.xlu1 %2814  ;;  %v10303_v19 = vpop.permute.xlu0 %2809 }
 0x1c8   : > { %13548 = vst [vmem:[#allocation98_spill] sm:$0xff] %v10301_v63  ;;  %13549 = vst [vmem:[#allocation99_spill] sm:$0xff] %v10303_v19  ;;  %4174 = vperm.xlu1 %8438, %v8051_v8   ;;  %4169 = vperm.xlu0 %8437, %v8050_v26   ;;  %v8475_v8 = vld [vmem:[%s13423_s4 + $0x60] ss:$8 sps:$4 sm:$0xff]   ;;  %v8476_v26 = vld [vmem:[%s13423_s4 + $0x74] ss:$8 sps:$4 sm:$0xff]  }
 0x1c9   : > { %1780 = vmatmul.mubr.bf16.gmra.mxu1 %v8472_v57 }
 0x1ca   : > { %1789 = vmatprep.mubr.bf16.mxu1 %v8473_v9 }
 0x1cb   : > { %v10311_v37 = vpop.permute.xlu1 %3479  ;;  %v10313_v21 = vpop.permute.xlu0 %3474 }
 0x1cc   : > { %13550 = vst [vmem:[#allocation100_spill] sm:$0xff] %v10311_v37  ;;  %13551 = vst [vmem:[#allocation101_spill] sm:$0xff] %v10313_v21  ;;  %4164 = vperm.xlu1 %8438, %v8049_v2   ;;  %4159 = vperm.xlu0 %8437, %v8048_v13   ;;  %v8141_v2 = vld [vmem:[%s13398_s5 + $0x568] sm:$0xff]  ;;  %v8140_v13 = vld [vmem:[%s13398_s5 + $0x560] sm:$0xff] }
 0x1cf   : > { %v10327_v57 = vpop.permute.xlu1 %3469  ;;  %v10329_v9 = vpop.permute.xlu0 %3464 }
 0x1d0   : > { %13552 = vst [vmem:[#allocation102_spill] sm:$0xff] %v10327_v57  ;;  %13553 = vst [vmem:[#allocation103_spill] sm:$0xff] %v10329_v9  ;;  %4829 = vperm.xlu1 %8438, %v8143_v35   ;;  %4824 = vperm.xlu0 %8437, %v8142_v53   ;;  %v8139_v35 = vld [vmem:[%s13398_s5 + $0x558] sm:$0xff]  ;;  %v8138_v53 = vld [vmem:[%s13398_s5 + $0x550] sm:$0xff] }
 0x1d1   : > { %1790 = vmatmul.mubr.bf16.gmra.mxu1 %v8475_v8  ;;  %v8478_v8 = vld [vmem:[%s13423_s4 + $0x70] ss:$8 sps:$4 sm:$0xff]   ;;  %v8488_v9 = vld [vmem:[%s13423_s4 + $0xb4] ss:$8 sps:$4 sm:$0xff]  }
 0x1d2   : > { %1799 = vmatprep.mubr.bf16.mxu1 %v8476_v26  ;;  %v8479_v26 = vld [vmem:[%s13423_s4 + $0x84] ss:$8 sps:$4 sm:$0xff]  }
 0x1d3   : > { %v10337_v37 = vpop.permute.xlu1 %3459  ;;  %v10339_v21 = vpop.permute.xlu0 %3454 }
 0x1d4   : > { %13554 = vst [vmem:[#allocation104_spill] sm:$0xff] %v10337_v37  ;;  %13555 = vst [vmem:[#allocation105_spill] sm:$0xff] %v10339_v21  ;;  %4819 = vperm.xlu1 %8438, %v8141_v2   ;;  %4814 = vperm.xlu0 %8437, %v8140_v13   ;;  %v8137_v13 = vld [vmem:[%s13398_s5 + $0x548] sm:$0xff]  ;;  %v8136_v21 = vld [vmem:[%s13398_s5 + $0x540] sm:$0xff] }
 0x1d7   : > { %v10353_v37 = vpop.permute.xlu1 %3449  ;;  %v10355_v2 = vpop.permute.xlu0 %3444 }
 0x1d8   : > { %13556 = vst [vmem:[#allocation106_spill] sm:$0xff] %v10353_v37  ;;  %4809 = vperm.xlu1 %8438, %v8139_v35   ;;  %13557 = vst [vmem:[#allocation107_spill] sm:$0xff] %v10355_v2  ;;  %4804 = vperm.xlu0 %8437, %v8138_v53   ;;  %v8135_v37 = vld [vmem:[%s13398_s5 + $0x538] sm:$0xff]  ;;  %v8134_v53 = vld [vmem:[%s13398_s5 + $0x530] sm:$0xff] }
 0x1d9   : > { %1800 = vmatmul.mubr.bf16.gmra.mxu1 %v8478_v8  ;;  %v8481_v8 = vld [vmem:[%s13423_s4 + $0x80] ss:$8 sps:$4 sm:$0xff]  }
 0x1da   : > { %1809 = vmatprep.mubr.bf16.mxu1 %v8479_v26  ;;  %v8133_v26 = vld [vmem:[%s13398_s5 + $0x528] sm:$0xff] }
 0x1db   : > { %v10366_v35 = vpop.permute.xlu1 %3439  ;;  %v10374_v2 = vpop.permute.xlu0 %3434 }
 0x1dc   : > { %4799 = vperm.xlu1 %8438, %v8137_v13   ;;  %4794 = vperm.xlu0 %8437, %v8136_v21   ;;  %13558 = vst [vmem:[#allocation108_spill] sm:$0xff] %v10366_v35  ;;  %13559 = vst [vmem:[#allocation109_spill] sm:$0xff] %v10374_v2  ;;  %v8482_v21 = vld [vmem:[%s13423_s4 + $0x94] ss:$8 sps:$4 sm:$0xff]   ;;  %v8132_v13 = vld [vmem:[%s13398_s5 + $0x520] sm:$0xff] }
 0x1df   : > { %v10385_v35 = vpop.permute.xlu1 %3429  ;;  %v10387_v2 = vpop.permute.xlu0 %3424 }
 0x1e0   : > { %4789 = vperm.xlu1 %8438, %v8135_v37   ;;  %4784 = vperm.xlu0 %8437, %v8134_v53   ;;  %13560 = vst [vmem:[#allocation110_spill] sm:$0xff] %v10385_v35  ;;  %13561 = vst [vmem:[#allocation111_spill] sm:$0xff] %v10387_v2  ;;  %v8131_v37 = vld [vmem:[%s13398_s5 + $0x518] sm:$0xff]  ;;  %v8130_v53 = vld [vmem:[%s13398_s5 + $0x510] sm:$0xff] }
 0x1e1   : > { %1810 = vmatmul.mubr.bf16.gmra.mxu1 %v8481_v8  ;;  %v8484_v8 = vld [vmem:[%s13423_s4 + $0x90] ss:$8 sps:$4 sm:$0xff]   ;;  %v8128_v2 = vld [vmem:[%s13398_s5 + $0x500] sm:$0xff] }
 0x1e2   : > { %1819 = vmatprep.mubr.bf16.mxu1 %v8482_v21  ;;  %v8485_v21 = vld [vmem:[%s13423_s4 + $0xa4] ss:$8 sps:$4 sm:$0xff]  }
 0x1e3   : > { %v10409_v35 = vpop.permute.xlu0 %3414 }
 0x1e4   : > { %4779 = vperm.xlu1 %8438, %v8133_v26   ;;  %4774 = vperm.xlu0 %8437, %v8132_v13   ;;  %v8129_v26 = vld [vmem:[%s13398_s5 + $0x508] sm:$0xff]  ;;  %v10404_v13 = vpop.permute.xlu1 %3419  ;;  %13563 = vst [vmem:[#allocation113_spill] sm:$0xff] %v10409_v35 }
 0x1e5   : > { %13562 = vst [vmem:[#allocation112_spill] sm:$0xff] %v10404_v13  ;;  %v8155_v13 = vld [vmem:[%s13398_s5 + $0x5d8] sm:$0xff] }
 0x1e8   : > { %4769 = vperm.xlu1 %8438, %v8131_v37   ;;  %4764 = vperm.xlu0 %8437, %v8130_v53   ;;  %v8159_v37 = vld [vmem:[%s13398_s5 + $0x5f8] sm:$0xff]  ;;  %v8158_v53 = vld [vmem:[%s13398_s5 + $0x5f0] sm:$0xff]  ;;  %v10423_v57 = vpop.permute.xlu1 %3409 }
 0x1e9   : > { %1820 = vmatmul.mubr.bf16.gmra.mxu1 %v8484_v8  ;;  %v8487_v8 = vld [vmem:[%s13423_s4 + $0xa0] ss:$8 sps:$4 sm:$0xff]   ;;  %13564 = vst [vmem:[#allocation114_spill] sm:$0xff] %v10423_v57 }
 0x1ea   : > { %1829 = vmatprep.mubr.bf16.mxu1 %v8485_v21  ;;  %v8157_v21 = vld [vmem:[%s13398_s5 + $0x5e8] sm:$0xff] }
 0x1ec   : > { %4759 = vperm.xlu1 %8438, %v8129_v26   ;;  %4754 = vperm.xlu0 %8437, %v8128_v2   ;;  %v10425_v2 = vpop.permute.xlu0 %3404  ;;  %v8156_v26 = vld [vmem:[%s13398_s5 + $0x5e0] sm:$0xff] }
 0x1ed   : > { %13565 = vst [vmem:[#allocation115_spill] sm:$0xff] %v10425_v2 }
 0x1f0   : > { %4909 = vperm.xlu1 %8438, %v8159_v37   ;;  %4904 = vperm.xlu0 %8437, %v8158_v53   ;;  %v10436_v37 = vpop.permute.xlu1 %3559  ;;  %v8154_v53 = vld [vmem:[%s13398_s5 + $0x5d0] sm:$0xff]  ;;  %v10444_v35 = vpop.permute.xlu0 %3554 }
 0x1f1   : > { %1830 = vmatmul.mubr.bf16.gmra.mxu1 %v8487_v8  ;;  %13566 = vst [vmem:[#allocation116_spill] sm:$0xff] %v10436_v37  ;;  %v8490_v8 = vld [vmem:[%s13423_s4 + $0xb0] ss:$8 sps:$4 sm:$0xff]   ;;  %13567 = vst [vmem:[#allocation117_spill] sm:$0xff] %v10444_v35 }
 0x1f2   : > { %1839 = vmatprep.mubr.bf16.mxu1 %v8488_v9  ;;  %v8491_v9 = vld [vmem:[%s13423_s4 + $0xc4] ss:$8 sps:$4 sm:$0xff]  }
 0x1f4   : > { %4899 = vperm.xlu1 %8438, %v8157_v21   ;;  %4894 = vperm.xlu0 %8437, %v8156_v26   ;;  %v8153_v21 = vld [vmem:[%s13398_s5 + $0x5c8] sm:$0xff]  ;;  %v8152_v26 = vld [vmem:[%s13398_s5 + $0x5c0] sm:$0xff]  ;;  %v10455_v37 = vpop.permute.xlu1 %3549  ;;  %v10457_v35 = vpop.permute.xlu0 %3544 }
 0x1f5   : > { %13568 = vst [vmem:[#allocation118_spill] sm:$0xff] %v10455_v37  ;;  %13569 = vst [vmem:[#allocation119_spill] sm:$0xff] %v10457_v35  ;;  %v8148_v35 = vld [vmem:[%s13398_s5 + $0x5a0] sm:$0xff] }
 0x1f8   : > { %4889 = vperm.xlu1 %8438, %v8155_v13   ;;  %4884 = vperm.xlu0 %8437, %v8154_v53   ;;  %v8151_v13 = vld [vmem:[%s13398_s5 + $0x5b8] sm:$0xff]  ;;  %v8150_v53 = vld [vmem:[%s13398_s5 + $0x5b0] sm:$0xff]  ;;  %v10479_v37 = vpop.permute.xlu0 %3534 }
 0x1f9   : > { %1840 = vmatmul.mubr.bf16.gmra.mxu1 %v8490_v8  ;;  %v8493_v8 = vld [vmem:[%s13423_s4 + $0xc0] ss:$8 sps:$4 sm:$0xff]   ;;  %13571 = vst [vmem:[#allocation121_spill] sm:$0xff] %v10479_v37 }
 0x1fa   : > { %1849 = vmatprep.mubr.bf16.mxu1 %v8491_v9  ;;  %v8494_v9 = vld [vmem:[%s13423_s4 + $0xd4] ss:$8 sps:$4 sm:$0xff]  }
 0x1fc   : > { %4879 = vperm.xlu1 %8438, %v8153_v21   ;;  %4874 = vperm.xlu0 %8437, %v8152_v26   ;;  %v8149_v21 = vld [vmem:[%s13398_s5 + $0x5a8] sm:$0xff]  ;;  %v10474_v26 = vpop.permute.xlu1 %3539 }
 0x1fd   : > { %13570 = vst [vmem:[#allocation120_spill] sm:$0xff] %v10474_v26  ;;  %v8497_v26 = vld [vmem:[%s13423_s4 + $0xe4] ss:$8 sps:$4 sm:$0xff]  }
 0x200   : > { %4869 = vperm.xlu1 %8438, %v8151_v13   ;;  %4864 = vperm.xlu0 %8437, %v8150_v53   ;;  %v8147_v13 = vld [vmem:[%s13398_s5 + $0x598] sm:$0xff]  ;;  %v8146_v53 = vld [vmem:[%s13398_s5 + $0x590] sm:$0xff]  ;;  %v10493_v37 = vpop.permute.xlu1 %3529 }
 0x201   : > { %1850 = vmatmul.mubr.bf16.gmra.mxu1 %v8493_v8  ;;  %v8496_v8 = vld [vmem:[%s13423_s4 + $0xd0] ss:$8 sps:$4 sm:$0xff]   ;;  %13572 = vst [vmem:[#allocation122_spill] sm:$0xff] %v10493_v37 }
 0x202   : > { %1859 = vmatprep.mubr.bf16.mxu1 %v8494_v9  ;;  %v8145_v9 = vld [vmem:[%s13398_s5 + $0x588] sm:$0xff]  ;;  %v8239_v37 = vld [vmem:[%s13398_s5 + $0x678] sm:$0xff] }
 0x204   : > { %4859 = vperm.xlu1 %8438, %v8149_v21   ;;  %4854 = vperm.xlu0 %8437, %v8148_v35   ;;  %v10495_v35 = vpop.permute.xlu0 %3524  ;;  %v8144_v21 = vld [vmem:[%s13398_s5 + $0x580] sm:$0xff] }
 0x205   : > { %13573 = vst [vmem:[#allocation123_spill] sm:$0xff] %v10495_v35 }
 0x208   : > { %4849 = vperm.xlu1 %8438, %v8147_v13   ;;  %4844 = vperm.xlu0 %8437, %v8146_v53   ;;  %v10506_v13 = vpop.permute.xlu1 %3519  ;;  %v8238_v53 = vld [vmem:[%s13398_s5 + $0x670] sm:$0xff]  ;;  %v10514_v35 = vpop.permute.xlu0 %3514 }
 0x209   : > { %1860 = vmatmul.mubr.bf16.gmra.mxu1 %v8496_v8  ;;  %13574 = vst [vmem:[#allocation124_spill] sm:$0xff] %v10506_v13  ;;  %v8499_v8 = vld [vmem:[%s13423_s4 + $0xe0] ss:$8 sps:$4 sm:$0xff]   ;;  %13575 = vst [vmem:[#allocation125_spill] sm:$0xff] %v10514_v35 }
 0x20a   : > { %1869 = vmatprep.mubr.bf16.mxu1 %v8497_v26  ;;  %v8500_v26 = vld [vmem:[%s13423_s4 + $0xf4] ss:$8 sps:$4 sm:$0xff]  }
 0x20c   : > { %4839 = vperm.xlu1 %8438, %v8145_v9   ;;  %4834 = vperm.xlu0 %8437, %v8144_v21   ;;  %v8237_v9 = vld [vmem:[%s13398_s5 + $0x668] sm:$0xff]  ;;  %v8236_v21 = vld [vmem:[%s13398_s5 + $0x660] sm:$0xff]  ;;  %v10525_v13 = vpop.permute.xlu1 %3509  ;;  %v10527_v35 = vpop.permute.xlu0 %3504 }
 0x20d   : > { %13576 = vst [vmem:[#allocation126_spill] sm:$0xff] %v10525_v13  ;;  %13577 = vst [vmem:[#allocation127_spill] sm:$0xff] %v10527_v35 }
 0x210   : > { %5504 = vperm.xlu1 %8438, %v8239_v37   ;;  %5499 = vperm.xlu0 %8437, %v8238_v53   ;;  %v8235_v37 = vld [vmem:[%s13398_s5 + $0x658] sm:$0xff]  ;;  %v8234_v53 = vld [vmem:[%s13398_s5 + $0x650] sm:$0xff]  ;;  %v10546_v35 = vpop.permute.xlu0 %3494 }
 0x211   : > { %1870 = vmatmul.mubr.bf16.gmra.mxu1 %v8499_v8  ;;  %v8502_v8 = vld [vmem:[%s13423_s4 + $0xf0] ss:$8 sps:$4 sm:$0xff]   ;;  %13579 = vst [vmem:[#allocation129_spill] sm:$0xff] %v10546_v35 }
 0x212   : > { %1879 = vmatprep.mubr.bf16.mxu1 %v8500_v26  ;;  %v8233_v26 = vld [vmem:[%s13398_s5 + $0x648] sm:$0xff] }
 0x214   : > { %5494 = vperm.xlu1 %8438, %v8237_v9   ;;  %5489 = vperm.xlu0 %8437, %v8236_v21   ;;  %v10541_v9 = vpop.permute.xlu1 %3499  ;;  %v8232_v21 = vld [vmem:[%s13398_s5 + $0x640] sm:$0xff] }
 0x215   : > { %13578 = vst [vmem:[#allocation128_spill] sm:$0xff] %v10541_v9  ;;  %v8229_v9 = vld [vmem:[%s13398_s5 + $0x628] sm:$0xff] }
 0x218   : > { %5484 = vperm.xlu1 %8438, %v8235_v37   ;;  %5479 = vperm.xlu0 %8437, %v8234_v53   ;;  %v8231_v37 = vld [vmem:[%s13398_s5 + $0x638] sm:$0xff]  ;;  %v8230_v53 = vld [vmem:[%s13398_s5 + $0x630] sm:$0xff]  ;;  %v10554_v13 = vpop.permute.xlu1 %3489 }
 0x219   : > { %1880 = vmatmul.mubr.bf16.gmra.mxu1 %v8502_v8  ;;  %13580 = vst [vmem:[#allocation130_spill] sm:$0xff] %v10554_v13  ;;  %v10556_v8 = vpop.permute.xlu0 %3484  ;;  %v8225_v13 = vld [vmem:[%s13398_s5 + $0x608] sm:$0xff] }
 0x21a   : > { %13581 = vst [vmem:[#allocation131_spill] sm:$0xff] %v10556_v8 }
 0x21c   : > { %5474 = vperm.xlu1 %8438, %v8233_v26   ;;  %5469 = vperm.xlu0 %8437, %v8232_v21   ;;  %v8228_v26 = vld [vmem:[%s13398_s5 + $0x620] sm:$0xff]  ;;  %v8227_v21 = vld [vmem:[%s13398_s5 + $0x618] sm:$0xff]  ;;  %v10567_v35 = vpop.permute.xlu1 %4154 }
 0x21d   : > { %13582 = vst [vmem:[#allocation132_spill] sm:$0xff] %v10567_v35 }
 0x220   : > { %5464 = vperm.xlu1 %8438, %v8231_v37   ;;  %5459 = vperm.xlu0 %8437, %v8230_v53   ;;  %v8226_v37 = vld [vmem:[%s13398_s5 + $0x610] sm:$0xff]  ;;  %v10572_v53 = vpop.permute.xlu0 %4149 }
 0x221   : > { %13583 = vst [vmem:[#allocation133_spill] sm:$0xff] %v10572_v53  ;;  %v8255_v53 = vld [vmem:[%s13398_s5 + $0x6f8] sm:$0xff] }
 0x224   : > { %5454 = vperm.xlu1 %8438, %v8229_v9   ;;  %5449 = vperm.xlu0 %8437, %v8228_v26   ;;  %v8224_v9 = vld [vmem:[%s13398_s5 + $0x600] sm:$0xff]  ;;  %v10580_v26 = vpop.permute.xlu1 %4144  ;;  %v10582_v35 = vpop.permute.xlu0 %4139 }
 0x225   : > { %13584 = vst [vmem:[#allocation134_spill] sm:$0xff] %v10580_v26  ;;  %13585 = vst [vmem:[#allocation135_spill] sm:$0xff] %v10582_v35  ;;  %v8251_v35 = vld [vmem:[%s13398_s5 + $0x6d8] sm:$0xff] }
 0x228   : > { %5444 = vperm.xlu1 %8438, %v8227_v21   ;;  %5439 = vperm.xlu0 %8437, %v8226_v37   ;;  %v8254_v21 = vld [vmem:[%s13398_s5 + $0x6f0] sm:$0xff]  ;;  %v8253_v37 = vld [vmem:[%s13398_s5 + $0x6e8] sm:$0xff]  ;;  %v10593_v8 = vpop.permute.xlu1 %4134 }
 0x229   : > { %13586 = vst [vmem:[#allocation136_spill] sm:$0xff] %v10593_v8 }
 0x22c   : > { %5434 = vperm.xlu1 %8438, %v8225_v13   ;;  %5429 = vperm.xlu0 %8437, %v8224_v9   ;;  %v8252_v13 = vld [vmem:[%s13398_s5 + $0x6e0] sm:$0xff]  ;;  %v10598_v9 = vpop.permute.xlu0 %4129 }
 0x22d   : > { %13587 = vst [vmem:[#allocation137_spill] sm:$0xff] %v10598_v9  ;;  %v8249_v9 = vld [vmem:[%s13398_s5 + $0x6c8] sm:$0xff] }
 0x230   : > { %5584 = vperm.xlu1 %8438, %v8255_v53   ;;  %5579 = vperm.xlu0 %8437, %v8254_v21   ;;  %v8250_v53 = vld [vmem:[%s13398_s5 + $0x6d0] sm:$0xff]  ;;  %v10606_v21 = vpop.permute.xlu1 %4124  ;;  %v10608_v8 = vpop.permute.xlu0 %4119 }
 0x231   : > { %13588 = vst [vmem:[#allocation138_spill] sm:$0xff] %v10606_v21  ;;  %13589 = vst [vmem:[#allocation139_spill] sm:$0xff] %v10608_v8  ;;  %v8245_v8 = vld [vmem:[%s13398_s5 + $0x6a8] sm:$0xff] }
 0x234   : > { %5574 = vperm.xlu1 %8438, %v8253_v37   ;;  %5569 = vperm.xlu0 %8437, %v8252_v13   ;;  %v8248_v37 = vld [vmem:[%s13398_s5 + $0x6c0] sm:$0xff]  ;;  %v8247_v13 = vld [vmem:[%s13398_s5 + $0x6b8] sm:$0xff]  ;;  %v10619_v26 = vpop.permute.xlu1 %4114 }
 0x235   : > { %13590 = vst [vmem:[#allocation140_spill] sm:$0xff] %v10619_v26 }
 0x238   : > { %5564 = vperm.xlu1 %8438, %v8251_v35   ;;  %5559 = vperm.xlu0 %8437, %v8250_v53   ;;  %v8246_v35 = vld [vmem:[%s13398_s5 + $0x6b0] sm:$0xff]  ;;  %v10624_v53 = vpop.permute.xlu0 %4109 }
 0x239   : > { %13591 = vst [vmem:[#allocation141_spill] sm:$0xff] %v10624_v53  ;;  %v8243_v53 = vld [vmem:[%s13398_s5 + $0x698] sm:$0xff] }
 0x23c   : > { %5554 = vperm.xlu1 %8438, %v8249_v9   ;;  %5549 = vperm.xlu0 %8437, %v8248_v37   ;;  %v8244_v9 = vld [vmem:[%s13398_s5 + $0x6a0] sm:$0xff]  ;;  %v10632_v37 = vpop.permute.xlu1 %4104  ;;  %v10634_v26 = vpop.permute.xlu0 %4099 }
 0x23d   : > { %13592 = vst [vmem:[#allocation142_spill] sm:$0xff] %v10632_v37  ;;  %13593 = vst [vmem:[#allocation143_spill] sm:$0xff] %v10634_v26  ;;  %v6083_v26 = vld [vmem:[%s13151_s7 + $0x78] sm:$0xff] }
 0x240   : > { %5544 = vperm.xlu1 %8438, %v8247_v13   ;;  %5539 = vperm.xlu0 %8437, %v8246_v35   ;;  %v8242_v13 = vld [vmem:[%s13398_s5 + $0x690] sm:$0xff]  ;;  %v8241_v35 = vld [vmem:[%s13398_s5 + $0x688] sm:$0xff]  ;;  %v10645_v21 = vpop.permute.xlu1 %4094 }
 0x241   : > { %13594 = vst [vmem:[#allocation144_spill] sm:$0xff] %v10645_v21  ;;  %v6081_v21 = vld [vmem:[%s13151_s7 + $0x68] sm:$0xff] }
 0x244   : > { %5534 = vperm.xlu1 %8438, %v8245_v8   ;;  %5529 = vperm.xlu0 %8437, %v8244_v9   ;;  %v8240_v8 = vld [vmem:[%s13398_s5 + $0x680] sm:$0xff]  ;;  %v10650_v9 = vpop.permute.xlu0 %4089  ;;  %s8871_s5 = scalar_lea.vmem %s7485_s3, 32 }
 0x245   : > { %13595 = vst [vmem:[#allocation145_spill] sm:$0xff] %v10650_v9  ;;  %p8872_p1 = scmp.ne.s32.totalorder %s7485_s3, %s8871_s5 }
 0x247   : > { %p8873_p2 = pnand %p8872_p1, %p9116_p8 }
 0x248   : > { %5524 = vperm.xlu1 %8438, %v8243_v53   ;;  %5519 = vperm.xlu0 %8437, %v8242_v13   ;;  %v6082_v53 = vld [vmem:[%s13151_s7 + $0x70] sm:$0xff]  ;;  %v10658_v13 = vpop.permute.xlu1 %4084  ;;  %v10660_v37 = vpop.permute.xlu0 %4079 }
 0x249   : > { %13596 = vst [vmem:[#allocation146_spill] sm:$0xff] %v10658_v13  ;;  %13597 = vst [vmem:[#allocation147_spill] sm:$0xff] %v10660_v37  ;;  %v6077_v13 = vld [vmem:[%s13151_s7 + $0x48] sm:$0xff]  ;;  %p8874_p3 = pneg %p8873_p2 }
 0x24c   : > { %5514 = vperm.xlu1 %8438, %v8241_v35   ;;  %5509 = vperm.xlu0 %8437, %v8240_v8   ;;  %v6080_v35 = vld [vmem:[%s13151_s7 + $0x60] sm:$0xff]  ;;  %v6079_v8 = vld [vmem:[%s13151_s7 + $0x58] sm:$0xff]  ;;  %v10671_v9 = vpop.permute.xlu1 %4234 }
 0x24d   : > { %13598 = vst [vmem:[#allocation148_spill] sm:$0xff] %v10671_v9 }
 0x250   : > { %6177 = vperm.xlu1 %8438, %v6083_v26   ;;  %6172 = vperm.xlu0 %8437, %v6082_v53   ;;  %v6078_v26 = vld [vmem:[%s13151_s7 + $0x50] sm:$0xff]  ;;  %v10676_v53 = vpop.permute.xlu0 %4229 }
 0x251   : > { %13599 = vst [vmem:[#allocation149_spill] sm:$0xff] %v10676_v53  ;;  %v6075_v53 = vld [vmem:[%s13151_s7 + $0x38] sm:$0xff] }
 0x254   : > { %6167 = vperm.xlu1 %8438, %v6081_v21   ;;  %6162 = vperm.xlu0 %8437, %v6080_v35   ;;  %v6076_v21 = vld [vmem:[%s13151_s7 + $0x40] sm:$0xff]  ;;  %v10684_v35 = vpop.permute.xlu1 %4224  ;;  %v10686_v9 = vpop.permute.xlu0 %4219 }
 0x255   : > { %13600 = vst [vmem:[#allocation150_spill] sm:$0xff] %v10684_v35  ;;  %13601 = vst [vmem:[#allocation151_spill] sm:$0xff] %v10686_v9 }
 0x258   : > { %6157 = vperm.xlu1 %8438, %v6079_v8   ;;  %6152 = vperm.xlu0 %8437, %v6078_v26   ;;  %v6074_v8 = vld [vmem:[%s13151_s7 + $0x30] sm:$0xff]  ;;  %v6073_v26 = vld [vmem:[%s13151_s7 + $0x28] sm:$0xff]  ;;  %v10697_v37 = vpop.permute.xlu1 %4214  ;;  %v10702_v9 = vpop.permute.xlu0 %4209 }
 0x259   : > { %13602 = vst [vmem:[#allocation152_spill] sm:$0xff] %v10697_v37  ;;  %13603 = vst [vmem:[#allocation153_spill] sm:$0xff] %v10702_v9  ;;  %v6070_v37 = vld [vmem:[%s13151_s7 + $0x10] sm:$0xff] }
 0x25c   : > { %6147 = vperm.xlu1 %8438, %v6077_v13   ;;  %6142 = vperm.xlu0 %8437, %v6076_v21   ;;  %v6072_v21 = vld [vmem:[%s13151_s7 + $0x20] sm:$0xff]  ;;  %v10713_v47 = vpop.permute.xlu1 %4204 }
 0x260   : > { %6137 = vperm.xlu1 %8438, %v6075_v53   ;;  %6132 = vperm.xlu0 %8437, %v6074_v8   ;;  %v6071_v53 = vld [vmem:[%s13151_s7 + $0x18] sm:$0xff] }
 0x261   : > { %v1731_v13 = vpop.f32.mrf.mxu1  ;;  %v13604_v8 = vld [vmem:[#allocation45_spill] sm:$0xff] }
 0x262   : > { %v1732_v57 = vadd.f32 %v1731_v13, %v13604_v8  ;;  %13605 = vst [vmem:[#allocation45_spill] sm:$0xff] %v10713_v47 }
 0x263   : > { %v10704_v35 = vpop.f32.mrf.mxu1 }
 0x264   : > { %6127 = vperm.xlu1 %8438, %v6073_v26   ;;  %6122 = vperm.xlu0 %8437, %v6072_v21   ;;  %v10716_v26 = vpop.permute.xlu0 %4199  ;;  %v6069_v21 = vld [vmem:[%s13151_s7 + $0x8] sm:$0xff]  ;;  %v1890_v13 = vmax.f32 %v1732_v57, 0.0 }
 0x265   : > { %v1735_v2 = vpop.f32.mrf.mxu1  ;;  %13607 = vst [vmem:[#allocation44_spill] sm:$0xff] %v10716_v26  ;;  %v13609_v26 = vld [vmem:[#allocation40_spill] sm:$0xff] }
 0x266   : > { %v1736_v55 = vadd.f32 %v1735_v2, %v13606_v29 }
 0x267   : > { %v10718_v9 = vpop.f32.mrf.mxu1 }
 0x268   : > { %6117 = vperm.xlu1 %8438, %v6071_v53   ;;  %6112 = vperm.xlu0 %8437, %v6070_v37   ;;  %v1892_v42 = vmax.f32 %v1736_v55, 0.0  ;;  %v6099_v37 = vld [vmem:[%s13151_s7 + $0xf8] sm:$0xff]  ;;  %v10733_v53 = vpop.permute.xlu1 %4194  ;;  %v6098_v55 = vld [vmem:[%s13151_s7 + $0xf0] sm:$0xff]  ;;  %v10739_v15 = vpop.permute.xlu0 %4189 }
 0x269   : > { %v1741_v31 = vpop.f32.mrf.mxu1  ;;  %13608 = vst [vmem:[#allocation154_spill] sm:$0xff] %v10733_v53  ;;  %13610 = vst [vmem:[#allocation40_spill] sm:$0xff] %v10739_v15 }
 0x26a   : > { %v10726_v47 = vpack.c.bf16 %v1892_v42, %v1890_v13  ;;  %v1742_v57 = vadd.f32 %v1741_v31, %v13609_v26  ;;  %v13611_v13 = vld [vmem:[#allocation39_spill] sm:$0xff]  ;;  %v6096_v31 = vld [vmem:[%s13151_s7 + $0xe0] sm:$0xff] }
 0x26b   : > { %v10728_v2 = vpop.f32.mrf.mxu1 }
 0x26c   : > { %6107 = vperm.xlu1 %8438, %v6069_v21   ;;  %6102 = vperm.xlu0 %8437, %v6068_v40   ;;  %v6097_v40 = vld [vmem:[%s13151_s7 + $0xe8] sm:$0xff]  ;;  %v1894_v53 = vmax.f32 %v1742_v57, 0.0  ;;  %v10752_v15 = vpop.permute.xlu1 %4184  ;;  %v6095_v57 = vld [vmem:[%s13151_s7 + $0xd8] sm:$0xff] }
 0x26d   : > { %v1745_v42 = vpop.f32.mrf.mxu1  ;;  %13612 = vst [vmem:[#allocation39_spill] sm:$0xff] %v10752_v15 }
 0x26e   : > { %v1746_v21 = vadd.f32 %v1745_v42, %v13611_v13  ;;  %v6094_v42 = vld [vmem:[%s13151_s7 + $0xd0] sm:$0xff] }
 0x26f   : > { %v10742_v36 = vpop.f32.mrf.mxu1 }
 0x270   : > { %6257 = vperm.xlu1 %8438, %v6099_v37   ;;  %6252 = vperm.xlu0 %8437, %v6098_v55   ;;  %v1896_v58 = vmax.f32 %v1746_v21, 0.0  ;;  %v10756_v37 = vpop.permute.xlu0 %4179 }
 0x271   : > { %v10750_v44 = vpop.f32.mrf.mxu1  ;;  %13613 = vst [vmem:[#allocation155_spill] sm:$0xff] %v10756_v37 }
 0x272   : > { %v10754_v0 = vpack.c.bf16 %v1896_v58, %v1894_v53  ;;  %v6093_v58 = vld [vmem:[%s13151_s7 + $0xc8] sm:$0xff]  ;;  %v10773_v53 = vpop.permute.xlu1 %4174 }
 0x273   : > { %v10758_v55 = vpop.f32.mrf.mxu1  ;;  %13614 = vst [vmem:[#allocation156_spill] sm:$0xff] %v10773_v53 }
 0x274   : > { %6247 = vperm.xlu1 %8438, %v6097_v40   ;;  %6242 = vperm.xlu0 %8437, %v6096_v31   ;;  %v6092_v40 = vld [vmem:[%s13151_s7 + $0xc0] sm:$0xff]  ;;  %v10778_v31 = vpop.permute.xlu0 %4169 }
 0x275   : > { %v10766_v21 = vpop.f32.mrf.mxu1  ;;  %13615 = vst [vmem:[#allocation157_spill] sm:$0xff] %v10778_v31 }
 0x276   : > { %v10792_v34 = vpop.permute.xlu1 %4164 }
 0x277   : > { %v10768_v15 = vpop.f32.mrf.mxu1  ;;  %13616 = vst [vmem:[#allocation158_spill] sm:$0xff] %v10792_v34 }
 0x278   : > { %6237 = vperm.xlu1 %8438, %v6095_v57   ;;  %6232 = vperm.xlu0 %8437, %v6094_v42   ;;  %v6091_v57 = vld [vmem:[%s13151_s7 + $0xb8] sm:$0xff]  ;;  %v6090_v42 = vld [vmem:[%s13151_s7 + $0xb0] sm:$0xff]  ;;  %v10794_v31 = vpop.permute.xlu0 %4159 }
 0x279   : > { %v10780_v37 = vpop.f32.mrf.mxu1  ;;  %13617 = vst [vmem:[#allocation159_spill] sm:$0xff] %v10794_v31  ;;  %v6086_v31 = vld [vmem:[%s13151_s7 + $0x90] sm:$0xff] }
 0x27a   : > { %v10814_v34 = vpop.permute.xlu1 %4829 }
 0x27b   : > { %v10782_v1 = vpop.f32.mrf.mxu1  ;;  %13618 = vst [vmem:[#allocation160_spill] sm:$0xff] %v10814_v34  ;;  %v6084_v34 = vld [vmem:[%s13151_s7 + $0x80] sm:$0xff] }
 0x27c   : > { %6227 = vperm.xlu1 %8438, %v6093_v58   ;;  %6222 = vperm.xlu0 %8437, %v6092_v40   ;;  %v6089_v58 = vld [vmem:[%s13151_s7 + $0xa8] sm:$0xff]  ;;  %v6088_v40 = vld [vmem:[%s13151_s7 + $0xa0] sm:$0xff]  ;;  %v10819_v38 = vpop.permute.xlu0 %4824 }
 0x27d   : > { %v10790_v53 = vpop.f32.mrf.mxu1  ;;  %13619 = vst [vmem:[#allocation161_spill] sm:$0xff] %v10819_v38 }
 0x27e   : > { %v10833_v63 = vpop.permute.xlu1 %4819 }
 0x27f   : > { %v10796_v27 = vpop.f32.mrf.mxu1  ;;  %13620 = vst [vmem:[#allocation162_spill] sm:$0xff] %v10833_v63 }
 0x280   : > { %6217 = vperm.xlu1 %8438, %v6091_v57   ;;  %6212 = vperm.xlu0 %8437, %v6090_v42   ;;  %v6087_v57 = vld [vmem:[%s13151_s7 + $0x98] sm:$0xff]  ;;  %v8505_v42 = vld [vmem:[%s13423_s4 + $0x104] ss:$8 sps:$4 sm:$0xff]   ;;  %v10835_v38 = vpop.permute.xlu0 %4814 }
 0x281   : > { %v10804_v60 = vpop.f32.mrf.mxu1  ;;  %2404 = vmatprep.mubr.bf16.mxu0 %v8505_v42  ;;  %13621 = vst [vmem:[#allocation163_spill] sm:$0xff] %v10835_v38 }
 0x282   : > { %v10846_v63 = vpop.permute.xlu1 %4809 }
 0x283   : > { %v10806_v3 = vpop.f32.mrf.mxu1  ;;  %13622 = vst [vmem:[#allocation164_spill] sm:$0xff] %v10846_v63 }
 0x284   : > { %6207 = vperm.xlu1 %8438, %v6089_v58   ;;  %6202 = vperm.xlu0 %8437, %v6088_v40   ;;  %v10851_v38 = vpop.permute.xlu0 %4804 }
 0x285   : > { %v10821_v58 = vpop.f32.mrf.mxu1  ;;  %13623 = vst [vmem:[#allocation165_spill] sm:$0xff] %v10851_v38 }
 0x286   : > { %v10859_v63 = vpop.permute.xlu1 %4799 }
 0x287   : > { %v10823_v40 = vpop.f32.mrf.mxu1  ;;  %13624 = vst [vmem:[#allocation166_spill] sm:$0xff] %v10859_v63 }
 0x288   : > { %6197 = vperm.xlu1 %8438, %v6087_v57   ;;  %6192 = vperm.xlu0 %8437, %v6086_v31   ;;  %v7219_v31 = vld [vmem:[%s13156_s12 + $0x78] sm:$0xff]  ;;  %v7218_v57 = vld [vmem:[%s13156_s12 + $0x70] sm:$0xff]  ;;  %v10861_v56 = vpop.permute.xlu0 %4794 }
 0x289   : > { %v10831_v5 = vpop.f32.mrf.mxu1  ;;  %13625 = vst [vmem:[#allocation167_spill] sm:$0xff] %v10861_v56 }
 0x28a   : > { %v10872_v63 = vpop.permute.xlu1 %4789 }
 0x28b   : > { %v1783_v42 = vpop.f32.mrf.mxu1  ;;  %13626 = vst [vmem:[#allocation168_spill] sm:$0xff] %v10872_v63  ;;  %v7209_v63 = vld [vmem:[%s13156_s12 + $0x28] sm:$0xff] }
 0x28c   : > { %6187 = vperm.xlu1 %8438, %v6085_v6   ;;  %6182 = vperm.xlu0 %8437, %v6084_v34   ;;  %v7217_v6 = vld [vmem:[%s13156_s12 + $0x68] sm:$0xff]  ;;  %v7216_v34 = vld [vmem:[%s13156_s12 + $0x60] sm:$0xff]  ;;  %v10877_v56 = vpop.permute.xlu0 %4784 }
 0x28d   : > { %v1785_v48 = vpop.f32.mrf.mxu1  ;;  %13627 = vst [vmem:[#allocation169_spill] sm:$0xff] %v10877_v56 }
 0x28e   : > { %v10892_v50 = vpop.permute.xlu1 %4779 }
 0x28f   : > { %v1787_v19 = vpop.f32.mrf.mxu1  ;;  %13632 = vst [vmem:[#allocation27_spill] sm:$0xff] %v10892_v50 }
 0x290   : > { %7297 = vperm.xlu1 %8438, %v7219_v31   ;;  %7292 = vperm.xlu0 %8437, %v7218_v57   ;;  %v7215_v31 = vld [vmem:[%s13156_s12 + $0x58] sm:$0xff]  ;;  %v7214_v57 = vld [vmem:[%s13156_s12 + $0x50] sm:$0xff]  ;;  %v10895_v11 = vpop.permute.xlu0 %4774 }
 0x291   : > { %v1791_v59 = vpop.f32.mrf.mxu1  ;;  %13634 = vst [vmem:[#allocation26_spill] sm:$0xff] %v10895_v11 }
 0x293   : > { %v1793_v17 = vpop.f32.mrf.mxu1 }
 0x294   : > { %7287 = vperm.xlu1 %8438, %v7217_v6   ;;  %7282 = vperm.xlu0 %8437, %v7216_v34   ;;  %v7213_v6 = vld [vmem:[%s13156_s12 + $0x48] sm:$0xff]  ;;  %v7212_v34 = vld [vmem:[%s13156_s12 + $0x40] sm:$0xff]  ;;  %v1794_v24 = vadd.f32 %v1793_v17, %v13631_v20 }
 0x295   : > { %v1795_v52 = vpop.f32.mrf.mxu1 }
 0x296   : > { %v1915_v50 = vmax.f32 %v1794_v24, 0.0 }
 0x297   : > { %v1797_v22 = vpop.f32.mrf.mxu1 }
 0x298   : > { %7277 = vperm.xlu1 %8438, %v7215_v31   ;;  %7272 = vperm.xlu0 %8437, %v7214_v57   ;;  %v7211_v31 = vld [vmem:[%s13156_s12 + $0x38] sm:$0xff]  ;;  %v7210_v57 = vld [vmem:[%s13156_s12 + $0x30] sm:$0xff]  ;;  %v1798_v54 = vadd.f32 %v1797_v22, %v13628_v25  ;;  %v7208_v22 = vld [vmem:[%s13156_s12 + $0x20] sm:$0xff] }
 0x299   : > { %v1801_v38 = vpop.f32.mrf.mxu1 }
 0x29b   : > { %v1803_v12 = vpop.f32.mrf.mxu1 }
 0x29c   : > { %7267 = vperm.xlu1 %8438, %v7213_v6   ;;  %7262 = vperm.xlu0 %8437, %v7212_v34   ;;  %v1804_v28 = vadd.f32 %v1803_v12, %v13629_v43  ;;  %v13630_v6 = vld [vmem:[#allocation25_spill] sm:$0xff]  ;;  %v1802_v34 = vadd.f32 %v1801_v38, %v13629_v43  ;;  %v1796_v12 = vadd.f32 %v1795_v52, %v13628_v25  ;;  %v13635_v52 = vld [vmem:[#allocation30_spill] sm:$0xff] }
 0x29d   : > { %v1805_v62 = vpop.f32.mrf.mxu1  ;;  %v13633_v38 = vld [vmem:[#allocation29_spill] sm:$0xff]  ;;  %v1784_v25 = vadd.f32 %v1783_v42, %v13635_v52 }
 0x29e   : > { %v1806_v4 = vadd.f32 %v1805_v62, %v13630_v6  ;;  %v1788_v43 = vadd.f32 %v1787_v19, %v13633_v38  ;;  %v1919_v41 = vmax.f32 %v1804_v28, 0.0  ;;  %v1918_v17 = vmax.f32 %v1802_v34, 0.0  ;;  %v13636_v19 = vld [vmem:[#allocation75_spill] sm:$0xff] }
 0x29f   : > { %v1807_v61 = vpop.f32.mrf.mxu1 }
 0x2a0   : > { %7257 = vperm.xlu1 %8438, %v7211_v31   ;;  %7252 = vperm.xlu0 %8437, %v7210_v57   ;;  %v1808_v56 = vadd.f32 %v1807_v61, %v13630_v6  ;;  %v1920_v62 = vmax.f32 %v1806_v4, 0.0  ;;  %v1917_v57 = vmax.f32 %v1798_v54, 0.0  ;;  %v1792_v61 = vadd.f32 %v1791_v59, %v13631_v20  ;;  %v7207_v4 = vld [vmem:[%s13156_s12 + $0x18] sm:$0xff] }
 0x2a1   : > { %v1811_v31 = vpop.f32.mrf.mxu1  ;;  %v1786_v20 = vadd.f32 %v1785_v48, %v13633_v38  ;;  %v1916_v59 = vmax.f32 %v1796_v12, 0.0  ;;  %v1913_v51 = vmax.f32 %v1788_v43, 0.0  ;;  %v7205_v48 = vld [vmem:[%s13156_s12 + $0x8] sm:$0xff]  ;;  %v10919_v12 = vpop.permute.xlu1 %4769 }
 0x2a2   : > { %v1921_v30 = vmax.f32 %v1808_v56, 0.0  ;;  %v1812_v54 = vadd.f32 %v1811_v31, %v13636_v19  ;;  %v7206_v56 = vld [vmem:[%s13156_s12 + $0x10] sm:$0xff]  ;;  %v2000_v24 = vpack.c.bf16 %v1917_v57, %v1915_v50  ;;  %13639 = vst [vmem:[#allocation25_spill] sm:$0xff] %v10919_v12  ;;  %v1911_v31 = vmax.f32 %v1784_v25, 0.0  ;;  %v10926_v43 = vpop.permute.xlu0 %4764 }
 0x2a3   : > { %v10898_v6 = vpop.f32.mrf.mxu1  ;;  %13641 = vst [vmem:[#allocation28_spill] sm:$0xff] %v10926_v43  ;;  %v13655_v43 = vld [vmem:[#allocation55_spill] sm:$0xff] }
 0x2a4   : > { %7247 = vperm.xlu1 %8438, %v7209_v63   ;;  %7242 = vperm.xlu0 %8437, %v7208_v22   ;;  %v2002_v28 = vpack.c.bf16 %v1921_v30, %v1919_v41  ;;  %v2001_v63 = vpack.c.bf16 %v1920_v62, %v1918_v17  ;;  %v13637_v22 = vld [vmem:[#allocation31_spill] sm:$0xff]  ;;  %v1782_v30 = vadd.f32 %v10831_v5, %v13635_v52  ;;  %v1914_v41 = vmax.f32 %v1792_v61, 0.0  ;;  %v7204_v5 = vld [vmem:[%s13156_s12] sm:$0xff] }
 0x2a5   : > { %v1815_v34 = vpop.f32.mrf.mxu1  ;;  %v1778_v11 = vadd.f32 %v10823_v40, %v13637_v22  ;;  %v13640_v40 = vld [vmem:[#allocation32_spill] sm:$0xff]  ;;  %v1922_v38 = vmax.f32 %v1812_v54, 0.0  ;;  %v1776_v57 = vadd.f32 %v10821_v58, %v13637_v22  ;;  %v1912_v61 = vmax.f32 %v1786_v20, 0.0  ;;  %v13642_v52 = vld [vmem:[#allocation33_spill] sm:$0xff]  ;;  %v13643_v20 = vld [vmem:[#allocation34_spill] sm:$0xff] }
 0x2a6   : > { %v1816_v33 = vadd.f32 %v1815_v34, %v13638_v7  ;;  %2372 = vmatprep.subr.bf16.mxu0 %v2002_v28  ;;  %v1774_v62 = vadd.f32 %v10806_v3, %v13640_v40  ;;  %v1999_v17 = vpack.c.bf16 %v1916_v59, %v1914_v41  ;;  %v1768_v28 = vadd.f32 %v10796_v27, %v13642_v52  ;;  %v7381_v58 = vld [vmem:[%s13158_s14] sm:$0x7]  ;;  %v13644_v59 = vld [vmem:[#allocation72_spill] sm:$0xff]  ;;  %v10946_v41 = vpop.permute.xlu1 %4759 }
 0x2a7   : > { %v10914_v42 = vpop.f32.mrf.mxu1  ;;  %2373 = vmatpush1.bf16.msra.mxu0 %v2001_v63  ;;  %v1909_v3 = vmax.f32 %v1778_v11, 0.0  ;;  %v1772_v54 = vadd.f32 %v10804_v60, %v13640_v40  ;;  %v1764_v27 = vadd.f32 %v10782_v1, %v13643_v20  ;;  %v1766_v60 = vadd.f32 %v10790_v53, %v13642_v52  ;;  %13645 = vst [vmem:[#allocation29_spill] sm:$0xff] %v10946_v41 }
 0x2a8   : > { %7237 = vperm.xlu1 %8438, %v7207_v4   ;;  %7232 = vperm.xlu0 %8437, %v7206_v56   ;;  %v1924_v50 = vmax.f32 %v1816_v33, 0.0  ;;  %v1998_v33 = vpack.c.bf16 %v1913_v51, %v1911_v31  ;;  %v1910_v56 = vmax.f32 %v1782_v30, 0.0  ;;  %v1907_v11 = vmax.f32 %v1774_v62, 0.0  ;;  %v6678_v51 = vld [vmem:[#allocation2] sm:$0x1]  ;;  %v10951_v62 = vpop.permute.xlu0 %4754 }
 0x2a9   : > { %2374 = vmatprep.subr.bf16.mxu0 %v2000_v24  ;;  %v1821_v4 = vpop.f32.mrf.mxu1  ;;  %v1908_v22 = vmax.f32 %v1776_v57, 0.0  ;;  %v1905_v31 = vmax.f32 %v1768_v28, 0.0  ;;  %13648 = vst [vmem:[#allocation30_spill] sm:$0xff] %v10951_v62  ;;  %v13649_v57 = vld [vmem:[#allocation37_spill] sm:$0xff] }
 0x2aa   : > { %v10932_v25 = vpack.c.bf16 %v1924_v50, %v1922_v38  ;;  %v1822_v34 = vadd.f32 %v1821_v4, %v13644_v59  ;;  %v1997_v24 = vpack.c.bf16 %v1912_v61, %v1910_v56  ;;  %v13647_v38 = vld [vmem:[#allocation71_spill] sm:$0xff]  ;;  %v1996_v1 = vpack.c.bf16 %v1909_v3, %v1907_v11 }
 0x2ab   : > { %v10936_v63 = vpop.f32.mrf.mxu1  ;;  %2375 = vmatpush1.bf16.msra.mxu0 %v1999_v17  ;;  %v1906_v17 = vmax.f32 %v1772_v54, 0.0  ;;  %v1754_v61 = vadd.f32 %v10758_v55, %v13649_v57  ;;  %v1903_v4 = vmax.f32 %v1764_v27, 0.0  ;;  %v1904_v3 = vmax.f32 %v1766_v60, 0.0 }
 0x2ac   : > { %7227 = vperm.xlu1 %8438, %v7205_v48   ;;  %7222 = vperm.xlu0 %8437, %v7204_v5   ;;  %v13646_v48 = vld [vmem:[#allocation36_spill] sm:$0xff]  ;;  %v1762_v5 = vadd.f32 %v10780_v37, %v13643_v20  ;;  %v1748_v37 = vadd.f32 %v10742_v36, %v13611_v13  ;;  %v1752_v55 = vadd.f32 %v10750_v44, %v13649_v57 }
 0x2ad   : > { %2376 = vmatprep.subr.bf16.mxu0 %v1998_v33  ;;  %v1825_v30 = vpop.f32.mrf.mxu1  ;;  %v1758_v40 = vadd.f32 %v10768_v15, %v13646_v48  ;;  %v1926_v15 = vmax.f32 %v1822_v34, 0.0  ;;  %v1756_v28 = vadd.f32 %v10766_v21, %v13646_v48  ;;  %v1995_v33 = vpack.c.bf16 %v1908_v22, %v1906_v17 }
 0x2ae   : > { %v1826_v50 = vadd.f32 %v1825_v30, %v13647_v38  ;;  %v1994_v20 = vpack.c.bf16 %v1905_v31, %v1903_v4  ;;  %v1902_v27 = vmax.f32 %v1762_v5, 0.0  ;;  %v1744_v21 = vadd.f32 %v10728_v2, %v13609_v26 }
 0x2af   : > { %v10955_v53 = vpop.f32.mrf.mxu1  ;;  %2377 = vmatpush1.bf16.msra.mxu0 %v1997_v24  ;;  %v1901_v54 = vmax.f32 %v1758_v40, 0.0  ;;  %v1899_v34 = vmax.f32 %v1754_v61, 0.0  ;;  %v1738_v36 = vadd.f32 %v10718_v9, %v13606_v29  ;;  %v1897_v13 = vmax.f32 %v1748_v37, 0.0 }
 0x2b0   : > { %7384 = vperm.xlu1 %8438, %v7381_v58   ;;  %6681 = vperm.xlu0 %8437, %v6678_v51   ;;  %v1928_v52 = vmax.f32 %v1826_v50, 0.0  ;;  %v1900_v51 = vmax.f32 %v1756_v28, 0.0  ;;  %v1993_v60 = vpack.c.bf16 %v1904_v3, %v1902_v27  ;;  %v1898_v30 = vmax.f32 %v1752_v55, 0.0 }
 0x2b1   : > { %2378 = vmatprep.subr.bf16.mxu0 %v1996_v1  ;;  %v10961_v56 = vpop.f32.mrf.mxu1  ;;  %v1992_v24 = vpack.c.bf16 %v1901_v54, %v1899_v34  ;;  %v1734_v48 = vadd.f32 %v10704_v35, %v13604_v8  ;;  %v1895_v40 = vmax.f32 %v1744_v21, 0.0  ;;  %v1893_v31 = vmax.f32 %v1738_v36, 0.0  ;;  %v13650_v21 = vld [vmem:[#allocation51_spill] sm:$0xff]  ;;  %v13651_v34 = vld [vmem:[#allocation48_spill] sm:$0xff] }
 0x2b2   : > { %v10965_v58 = vpack.c.bf16 %v1928_v52, %v1926_v15  ;;  %v1991_v26 = vpack.c.bf16 %v1900_v51, %v1898_v30 }
 0x2b3   : > { %v10969_v11 = vpop.f32.mrf.mxu1  ;;  %2379 = vmatpush1.bf16.msra.mxu0 %v1995_v33  ;;  %v1990_v50 = vpack.c.bf16 %v1897_v13, %v1895_v40  ;;  %v1891_v29 = vmax.f32 %v1734_v48, 0.0 }
 0x2b4   : > { %2380 = vmatprep.subr.bf16.mxu0 %v1994_v20 }
 0x2b5   : > { %v10973_v22 = vpop.f32.mrf.mxu1  ;;  %v1988_v5 = vpack.c.bf16 %v1893_v31, %v1891_v29  ;;  %v13654_v31 = vld [vmem:[#allocation54_spill] sm:$0xff] }
 0x2b7   : > { %v10977_v44 = vpop.f32.mrf.mxu1  ;;  %2381 = vmatpush1.bf16.msra.mxu0 %v1993_v60  ;;  %v13652_v60 = vld [vmem:[#allocation47_spill] sm:$0xff] }
 0x2b8   : > { %2382 = vmatprep.subr.bf16.mxu0 %v1992_v24  ;;  %v13653_v24 = vld [vmem:[#allocation52_spill] sm:$0xff] }
 0x2b9   : > { %v10981_v2 = vpop.f32.mrf.mxu1 }
 0x2bb   : > { %v10983_v1 = vpop.f32.mrf.mxu1  ;;  %2383 = vmatpush1.bf16.msra.mxu0 %v1991_v26 }
 0x2bc   : > { %2384 = vmatprep.subr.bf16.mxu0 %v1990_v50 }
 0x2bd   : > { %v10985_v9 = vpop.f32.mrf.mxu1 }
 0x2bf   : > { %v1847_v17 = vpop.f32.mrf.mxu1  ;;  %2385 = vmatpush1.bf16.msra.mxu0 %v10754_v0 }
 0x2c0   : > { %2386 = vmatprep.subr.bf16.mxu0 %v1988_v5 }
 0x2c1   : > { %v1851_v35 = vpop.f32.mrf.mxu1 }
 0x2c3   : > { %v1853_v8 = vpop.f32.mrf.mxu1  ;;  %2387 = vmatpush1.bf16.msra.mxu0 %v10726_v47 }
 0x2c5   : > { %v1855_v57 = vpop.f32.mrf.mxu1 }
 0x2c7   : > { %v1857_v61 = vpop.f32.mrf.mxu1 }
 0x2c9   : > { %v1861_v4 = vpop.f32.mrf.mxu1 }
 0x2cb   : > { %v1863_v15 = vpop.f32.mrf.mxu1 }
 0x2cd   : > { %v1865_v52 = vpop.f32.mrf.mxu1 }
 0x2cf   : > { %v1867_v28 = vpop.f32.mrf.mxu1 }
 0x2d0   : > { %v1868_v50 = vadd.f32 %v1867_v28, %v13654_v31  ;;  %v1862_v28 = vadd.f32 %v1861_v4, %v13655_v43 }
 0x2d1   : > { %v1871_v3 = vpop.f32.mrf.mxu1 }
 0x2d3   : > { %v1873_v33 = vpop.f32.mrf.mxu1 }
 0x2d4   : > { %v1874_v30 = vadd.f32 %v1873_v33, %v13653_v24 }
 0x2d5   : > { %v1875_v37 = vpop.f32.mrf.mxu1 }
 0x2d6   : > { %v1876_v40 = vadd.f32 %v1875_v37, %v13650_v21  ;;  %v1947_v41 = vmax.f32 %v1874_v30, 0.0  ;;  %v1945_v37 = vmax.f32 %v1868_v50, 0.0 }
 0x2d7   : > { %v1877_v54 = vpop.f32.mrf.mxu1 }
 0x2d8   : > { %v1878_v0 = vadd.f32 %v1877_v54, %v13650_v21  ;;  %v1872_v54 = vadd.f32 %v1871_v3, %v13653_v24  ;;  %v1948_v33 = vmax.f32 %v1876_v40, 0.0  ;;  %v1942_v40 = vmax.f32 %v1862_v28, 0.0 }
 0x2d9   : > { %v1881_v20 = vpop.f32.mrf.mxu1 }
 0x2da   : > { %v1882_v47 = vadd.f32 %v1881_v20, %v13651_v34  ;;  %v1949_v29 = vmax.f32 %v1878_v0, 0.0  ;;  %v1946_v0 = vmax.f32 %v1872_v54, 0.0 }
 0x2db   : > { %v1883_v55 = vpop.f32.mrf.mxu1 }
 0x2dc   : > { %v1884_v51 = vadd.f32 %v1883_v55, %v13651_v34  ;;  %v1950_v55 = vmax.f32 %v1882_v47, 0.0  ;;  %v1866_v34 = vadd.f32 %v1865_v52, %v13654_v31  ;;  %v2016_v21 = vpack.c.bf16 %v1949_v29, %v1947_v41  ;;  %v13658_v52 = vld [vmem:[#allocation63_spill] sm:$0xff]  ;;  %v13659_v41 = vld [vmem:[#allocation64_spill] sm:$0xff] }
 0x2dd   : > { %v1885_v27 = vpop.f32.mrf.mxu1  ;;  %v2015_v47 = vpack.c.bf16 %v1948_v33, %v1946_v0  ;;  %v1848_v24 = vadd.f32 %v1847_v17, %v13658_v52 }
 0x2de   : > { %v1886_v36 = vadd.f32 %v1885_v27, %v13652_v60  ;;  %v1951_v5 = vmax.f32 %v1884_v51, 0.0  ;;  %v1864_v27 = vadd.f32 %v1863_v15, %v13655_v43  ;;  %v13657_v51 = vld [vmem:[#allocation60_spill] sm:$0xff]  ;;  %v1844_v43 = vadd.f32 %v10983_v1, %v13659_v41 }
 0x2df   : > { %v1887_v13 = vpop.f32.mrf.mxu1  ;;  %v1854_v3 = vadd.f32 %v1853_v8, %v13657_v51  ;;  %v1846_v8 = vadd.f32 %v10985_v9, %v13658_v52  ;;  %v1937_v17 = vmax.f32 %v1848_v24, 0.0  ;;  %v8520_v52 = vld [vmem:[%s13423_s4 + $0x150] ss:$8 sps:$4 sm:$0xff]   ;;  %v8521_v24 = vld [vmem:[%s13423_s4 + $0x164] ss:$8 sps:$4 sm:$0xff]  }
 0x2e0   : > { %v1888_v48 = vadd.f32 %v1887_v13, %v13652_v60  ;;  %v1952_v26 = vmax.f32 %v1886_v36, 0.0  ;;  %v13656_v60 = vld [vmem:[#allocation59_spill] sm:$0xff]  ;;  %v1943_v36 = vmax.f32 %v1864_v27, 0.0  ;;  %v1935_v54 = vmax.f32 %v1844_v43, 0.0 }
 0x2e1   : > { %v1858_v13 = vadd.f32 %v1857_v61, %v13656_v60  ;;  %v1856_v15 = vadd.f32 %v1855_v57, %v13656_v60  ;;  %v1852_v61 = vadd.f32 %v1851_v35, %v13657_v51  ;;  %v1842_v35 = vadd.f32 %v10981_v2, %v13659_v41  ;;  %v8529_v41 = vld [vmem:[%s13423_s4 + $0x180] ss:$8 sps:$4 sm:$0xff]   ;;  %v8530_v43 = vld [vmem:[%s13423_s4 + $0x194] ss:$8 sps:$4 sm:$0xff]  }
 0x2e2   : > { %v1953_v12 = vmax.f32 %v1888_v48, 0.0  ;;  %v2017_v62 = vpack.c.bf16 %v1952_v26, %v1950_v55  ;;  %v2014_v48 = vpack.c.bf16 %v1945_v37, %v1943_v36  ;;  %v13660_v26 = vld [vmem:[#allocation67_spill] sm:$0xff]  ;;  %v1936_v55 = vmax.f32 %v1846_v8, 0.0 }
 0x2e3   : > { %v1941_v30 = vmax.f32 %v1858_v13, 0.0  ;;  %v1940_v4 = vmax.f32 %v1856_v15, 0.0  ;;  %v1838_v31 = vadd.f32 %v10977_v44, %v13660_v26  ;;  %v1938_v29 = vmax.f32 %v1852_v61, 0.0  ;;  %v8514_v36 = vld [vmem:[%s13423_s4 + $0x130] ss:$8 sps:$4 sm:$0xff]  }
 0x2e4   : > { %v2018_v20 = vpack.c.bf16 %v1953_v12, %v1951_v5  ;;  %v1944_v12 = vmax.f32 %v1866_v34, 0.0  ;;  %v13661_v5 = vld [vmem:[#allocation68_spill] sm:$0xff]  ;;  %v1836_v9 = vadd.f32 %v10973_v22, %v13660_v26  ;;  %v1828_v44 = vadd.f32 %v10955_v53, %v13647_v38  ;;  %v8515_v15 = vld [vmem:[%s13423_s4 + $0x144] ss:$8 sps:$4 sm:$0xff]  }
 0x2e5   : > { %v1834_v1 = vadd.f32 %v10969_v11, %v13661_v5  ;;  %v2011_v27 = vpack.c.bf16 %v1940_v4, %v1938_v29  ;;  %v2010_v34 = vpack.c.bf16 %v1937_v17, %v1935_v54  ;;  %v1832_v2 = vadd.f32 %v10961_v56, %v13661_v5  ;;  %v8526_v61 = vld [vmem:[%s13423_s4 + $0x170] ss:$8 sps:$4 sm:$0xff]   ;;  %v8533_v8 = vld [vmem:[%s13423_s4 + $0x1a4] ss:$8 sps:$4 sm:$0xff]   ;;  %v8535_v4 = vld [vmem:[%s13423_s4 + $0x1a0] ss:$8 sps:$4 sm:$0xff]  }
 0x2e6   : > { %2388 = vmatprep.subr.bf16.mxu0 %v2018_v20  ;;  %v2013_v57 = vpack.c.bf16 %v1944_v12, %v1942_v40  ;;  %v1933_v20 = vmax.f32 %v1838_v31, 0.0  ;;  %v1934_v33 = vmax.f32 %v1842_v35, 0.0  ;;  %v1824_v11 = vadd.f32 %v10936_v63, %v13644_v59  ;;  %v8517_v12 = vld [vmem:[%s13423_s4 + $0x140] ss:$8 sps:$4 sm:$0xff]   ;;  %v8527_v40 = vld [vmem:[%s13423_s4 + $0x184] ss:$8 sps:$4 sm:$0xff]  }
 0x2e7   : > { %2389 = vmatpush2.bf16.msra.mxu0 %v2017_v62  ;;  %v1939_v62 = vmax.f32 %v1854_v3, 0.0  ;;  %v1931_v60 = vmax.f32 %v1834_v1, 0.0  ;;  %v1932_v13 = vmax.f32 %v1836_v9, 0.0  ;;  %v1818_v22 = vadd.f32 %v10914_v42, %v13638_v7  ;;  %v8503_v7 = vld [vmem:[%s13423_s4 + $0x100] ss:$8 sps:$4 sm:$0xff]  }
 0x2e8   : > { %2390 = vmatprep.subr.bf16.mxu0 %v2016_v21  ;;  %v2009_v37 = vpack.c.bf16 %v1936_v55, %v1934_v33  ;;  %v1929_v21 = vmax.f32 %v1828_v44, 0.0  ;;  %v1930_v38 = vmax.f32 %v1832_v2, 0.0  ;;  %v1814_v53 = vadd.f32 %v10898_v6, %v13636_v19  ;;  %v8506_v6 = vld [vmem:[%s13423_s4 + $0x114] ss:$8 sps:$4 sm:$0xff]   ;;  %v8508_v19 = vld [vmem:[%s13423_s4 + $0x110] ss:$8 sps:$4 sm:$0xff]  }
 0x2e9   : > { %v2012_v50 = vpack.c.bf16 %v1941_v30, %v1939_v62  ;;  %v2008_v28 = vpack.c.bf16 %v1933_v20, %v1931_v60  ;;  %v1927_v56 = vmax.f32 %v1824_v11, 0.0  ;;  %v1925_v51 = vmax.f32 %v1818_v22, 0.0  ;;  %v8509_v42 = vld [vmem:[%s13423_s4 + $0x124] ss:$8 sps:$4 sm:$0xff]   ;;  %v8523_v30 = vld [vmem:[%s13423_s4 + $0x160] ss:$8 sps:$4 sm:$0xff]  }
 0x2ea   : > { %v2007_v0 = vpack.c.bf16 %v1932_v13, %v1930_v38  ;;  %v1923_v63 = vmax.f32 %v1814_v53, 0.0  ;;  %v8532_v62 = vld [vmem:[%s13423_s4 + $0x190] ss:$8 sps:$4 sm:$0xff]   ;;  %v8539_v31 = vld [vmem:[%s13423_s4 + $0x1c4] ss:$8 sps:$4 sm:$0xff]  }
 0x2eb   : > { %2391 = vmatpush2.bf16.msra.mxu0 %v2015_v47  ;;  %v2006_v3 = vpack.c.bf16 %v1929_v21, %v1927_v56  ;;  %v8518_v47 = vld [vmem:[%s13423_s4 + $0x154] ss:$8 sps:$4 sm:$0xff]   ;;  %v8538_v26 = vld [vmem:[%s13423_s4 + $0x1b0] ss:$8 sps:$4 sm:$0xff]   ;;  %v8541_v17 = vld [vmem:[%s13423_s4 + $0x1c0] ss:$8 sps:$4 sm:$0xff]  }
 0x2ec   : > { %2392 = vmatprep.subr.bf16.mxu0 %v2014_v48  ;;  %v2004_v59 = vpack.c.bf16 %v1925_v51, %v1923_v63  ;;  %v8524_v48 = vld [vmem:[%s13423_s4 + $0x174] ss:$8 sps:$4 sm:$0xff]   ;;  %v8544_v35 = vld [vmem:[%s13423_s4 + $0x1d0] ss:$8 sps:$4 sm:$0xff]   ;;  %v8545_v29 = vld [vmem:[%s13423_s4 + $0x1e4] ss:$8 sps:$4 sm:$0xff]  }
 0x2ed   : > { %v8547_v5 = vld [vmem:[%s13423_s4 + $0x1e0] ss:$8 sps:$4 sm:$0xff]   ;;  %v8548_v1 = vld [vmem:[%s13423_s4 + $0x1f4] ss:$8 sps:$4 sm:$0xff]   ;;  %v8550_v54 = vld [vmem:[%s13423_s4 + $0x1f0] ss:$8 sps:$4 sm:$0xff]  }
 0x2ef   : > { %2393 = vmatpush2.bf16.msra.mxu0 %v2013_v57  ;;  %v8536_v57 = vld [vmem:[%s13423_s4 + $0x1b4] ss:$8 sps:$4 sm:$0xff]  }
 0x2f0   : > { %2394 = vmatprep.subr.bf16.mxu0 %v2012_v50  ;;  %v8542_v50 = vld [vmem:[%s13423_s4 + $0x1d4] ss:$8 sps:$4 sm:$0xff]  }
 0x2f3   : > { %2395 = vmatpush2.bf16.msra.mxu0 %v2011_v27 }
 0x2f4   : > { %2396 = vmatprep.subr.bf16.mxu0 %v2010_v34 }
 0x2f7   : > { %2397 = vmatpush2.bf16.msra.mxu0 %v2009_v37 }
 0x2f8   : > { %2398 = vmatprep.subr.bf16.mxu0 %v2008_v28 }
 0x2fb   : > { %2399 = vmatpush2.bf16.msra.mxu0 %v2007_v0 }
 0x2fc   : > { %2400 = vmatprep.subr.bf16.mxu0 %v2006_v3 }
 0x2ff   : > { %2401 = vmatpush2.bf16.msra.mxu0 %v10965_v58  ;;  %v8512_v58 = vld [vmem:[%s13423_s4 + $0x134] ss:$8 sps:$4 sm:$0xff]  }
 0x300   : > { %2402 = vmatprep.subr.bf16.mxu0 %v2004_v59 }
 0x303   : > { %2403 = vmatpush2.bf16.msra.mxu0 %v10932_v25  ;;  %v8511_v25 = vld [vmem:[%s13423_s4 + $0x120] ss:$8 sps:$4 sm:$0xff]  }
 0x306   : > { %2405 = vmatmul.mubr.bf16.vlgmr.msra.gmra.mxu0 %v8503_v7 }
 0x307   : > { %2414 = vmatprep.mubr.bf16.mxu0 %v8506_v6 }
 0x30e   : > { %2415 = vmatmul.mubr.bf16.gmra.mxu0 %v8508_v19 }
 0x30f   : > { %2424 = vmatprep.mubr.bf16.mxu0 %v8509_v42 }
 0x316   : > { %2425 = vmatmul.mubr.bf16.gmra.mxu0 %v8511_v25 }
 0x317   : > { %2434 = vmatprep.mubr.bf16.mxu0 %v8512_v58  ;;  %v8553_v58 = vld [vmem:[%s13423_s4 + $0x204] ss:$8 sps:$4 sm:$0xff]  }
 0x318   : > { %3079 = vmatprep.mubr.bf16.mxu1 %v8553_v58 }
 0x31e   : > { %2435 = vmatmul.mubr.bf16.gmra.mxu0 %v8514_v36 }
 0x31f   : > { %2444 = vmatprep.mubr.bf16.mxu0 %v8515_v15 }
 0x326   : > { %2445 = vmatmul.mubr.bf16.gmra.mxu0 %v8517_v12 }
 0x327   : > { %2454 = vmatprep.mubr.bf16.mxu0 %v8518_v47 }
 0x32e   : > { %2455 = vmatmul.mubr.bf16.gmra.mxu0 %v8520_v52 }
 0x32f   : > { %2464 = vmatprep.mubr.bf16.mxu0 %v8521_v24 }
 0x336   : > { %2465 = vmatmul.mubr.bf16.gmra.mxu0 %v8523_v30 }
 0x337   : > { %2474 = vmatprep.mubr.bf16.mxu0 %v8524_v48 }
 0x33e   : > { %2475 = vmatmul.mubr.bf16.gmra.mxu0 %v8526_v61 }
 0x33f   : > { %2484 = vmatprep.mubr.bf16.mxu0 %v8527_v40 }
 0x346   : > { %2485 = vmatmul.mubr.bf16.gmra.mxu0 %v8529_v41 }
 0x347   : > { %2494 = vmatprep.mubr.bf16.mxu0 %v8530_v43 }
 0x34e   : > { %2495 = vmatmul.mubr.bf16.gmra.mxu0 %v8532_v62 }
 0x34f   : > { %2504 = vmatprep.mubr.bf16.mxu0 %v8533_v8  ;;  %v13662_v8 = vld [vmem:[#allocation79_spill] sm:$0xff] }
 0x356   : > { %2505 = vmatmul.mubr.bf16.gmra.mxu0 %v8535_v4 }
 0x357   : > { %2514 = vmatprep.mubr.bf16.mxu0 %v8536_v57  ;;  %v13663_v57 = vld [vmem:[#allocation77_spill] sm:$0xff] }
 0x35e   : > { %2515 = vmatmul.mubr.bf16.gmra.mxu0 %v8538_v26 }
 0x35f   : > { %2524 = vmatprep.mubr.bf16.mxu0 %v8539_v31  ;;  %v13664_v31 = vld [vmem:[#allocation76_spill] sm:$0xff] }
 0x366   : > { %2525 = vmatmul.mubr.bf16.gmra.mxu0 %v8541_v17 }
 0x367   : > { %2534 = vmatprep.mubr.bf16.mxu0 %v8542_v50 }
 0x36e   : > { %2535 = vmatmul.mubr.bf16.gmra.mxu0 %v8544_v35 }
 0x36f   : > { %2544 = vmatprep.mubr.bf16.mxu0 %v8545_v29  ;;  %v13665_v29 = vld [vmem:[#allocation80_spill] sm:$0xff] }
 0x376   : > { %2545 = vmatmul.mubr.bf16.gmra.mxu0 %v8547_v5 }
 0x377   : > { %2554 = vmatprep.mubr.bf16.mxu0 %v8548_v1 }
 0x37e   : > { %2555 = vmatmul.mubr.bf16.gmra.mxu0 %v8550_v54 }
 0x3c6   : > { %v2406_v9 = vpop.f32.mrf.mxu0 }
 0x3c7   : > { %v2407_v27 = vadd.f32 %v2406_v9, %v9953_v16 }
 0x3c8   : > { %v11123_v55 = vpop.f32.mrf.mxu0 }
 0x3c9   : > { %v2565_v2 = vmax.f32 %v2407_v27, 0.0 }
 0x3ca   : > { %v2410_v44 = vpop.f32.mrf.mxu0 }
 0x3cb   : > { %v2411_v20 = vadd.f32 %v2410_v44, %v9951_v49  ;;  %v13666_v44 = vld [vmem:[#allocation82_spill] sm:$0xff] }
 0x3cc   : > { %v11127_v34 = vpop.f32.mrf.mxu0 }
 0x3cd   : > { %v2567_v33 = vmax.f32 %v2411_v20, 0.0 }
 0x3ce   : > { %v2416_v11 = vpop.f32.mrf.mxu0 }
 0x3cf   : > { %v11129_v60 = vpack.c.bf16 %v2567_v33, %v2565_v2  ;;  %v2417_v37 = vadd.f32 %v2416_v11, %v9933_v10 }
 0x3d0   : > { %v11131_v13 = vpop.f32.mrf.mxu0 }
 0x3d1   : > { %v2569_v38 = vmax.f32 %v2417_v37, 0.0 }
 0x3d2   : > { %v2420_v22 = vpop.f32.mrf.mxu0 }
 0x3d3   : > { %v2421_v21 = vadd.f32 %v2420_v22, %v9931_v23 }
 0x3d4   : > { %v11135_v28 = vpop.f32.mrf.mxu0 }
 0x3d5   : > { %v2571_v53 = vmax.f32 %v2421_v21, 0.0 }
 0x3d6   : > { %v11137_v56 = vpop.f32.mrf.mxu0 }
 0x3d7   : > { %v11139_v0 = vpack.c.bf16 %v2571_v53, %v2569_v38  ;;  %v13667_v38 = vld [vmem:[#allocation83_spill] sm:$0xff] }
 0x3d8   : > { %v11141_v51 = vpop.f32.mrf.mxu0 }
 0x3da   : > { %v11143_v3 = vpop.f32.mrf.mxu0 }
 0x3dc   : > { %v11145_v63 = vpop.f32.mrf.mxu0 }
 0x3de   : > { %v11147_v59 = vpop.f32.mrf.mxu0 }
 0x3e0   : > { %v11149_v7 = vpop.f32.mrf.mxu0 }
 0x3e2   : > { %v11151_v6 = vpop.f32.mrf.mxu0 }
 0x3e4   : > { %v2442_v19 = vpop.f32.mrf.mxu0 }
 0x3e6   : > { %v11153_v42 = vpop.f32.mrf.mxu0 }
 0x3e8   : > { %v2448_v25 = vpop.f32.mrf.mxu0 }
 0x3ea   : > { %v2450_v36 = vpop.f32.mrf.mxu0 }
 0x3ec   : > { %v2452_v15 = vpop.f32.mrf.mxu0 }
 0x3ee   : > { %v2456_v12 = vpop.f32.mrf.mxu0 }
 0x3f0   : > { %v2458_v47 = vpop.f32.mrf.mxu0 }
 0x3f1   : > { %v2459_v53 = vadd.f32 %v2458_v47, %v13667_v38 }
 0x3f2   : > { %v2460_v52 = vpop.f32.mrf.mxu0 }
 0x3f4   : > { %v2462_v24 = vpop.f32.mrf.mxu0 }
 0x3f5   : > { %v2463_v20 = vadd.f32 %v2462_v24, %v13666_v44  ;;  %v13668_v24 = vld [vmem:[#allocation84_spill] sm:$0xff] }
 0x3f6   : > { %v2466_v30 = vpop.f32.mrf.mxu0 }
 0x3f7   : > { %v2467_v37 = vadd.f32 %v2466_v30, %v13665_v29 }
 0x3f8   : > { %v2468_v48 = vpop.f32.mrf.mxu0 }
 0x3f9   : > { %v2469_v5 = vadd.f32 %v2468_v48, %v13665_v29 }
 0x3fa   : > { %v2470_v61 = vpop.f32.mrf.mxu0 }
 0x3fb   : > { %v2471_v54 = vadd.f32 %v2470_v61, %v13662_v8  ;;  %v2590_v58 = vmax.f32 %v2469_v5, 0.0  ;;  %v2461_v61 = vadd.f32 %v2460_v52, %v13666_v44  ;;  %v2451_v5 = vadd.f32 %v2450_v36, %v13668_v24 }
 0x3fc   : > { %v2472_v40 = vpop.f32.mrf.mxu0 }
 0x3fd   : > { %v2473_v4 = vadd.f32 %v2472_v40, %v13662_v8  ;;  %v2453_v8 = vadd.f32 %v2452_v15, %v13668_v24  ;;  %v2587_v15 = vmax.f32 %v2461_v61, 0.0 }
 0x3fe   : > { %v2476_v41 = vpop.f32.mrf.mxu0 }
 0x3ff   : > { %v2477_v50 = vadd.f32 %v2476_v41, %v13663_v57  ;;  %v2592_v2 = vmax.f32 %v2473_v4, 0.0  ;;  %v2591_v41 = vmax.f32 %v2471_v54, 0.0  ;;  %v2588_v4 = vmax.f32 %v2463_v20, 0.0 }
 0x400   : > { %v2478_v43 = vpop.f32.mrf.mxu0  ;;  %v2584_v44 = vmax.f32 %v2453_v8, 0.0 }
 0x401   : > { %v2479_v26 = vadd.f32 %v2478_v43, %v13663_v57  ;;  %v2593_v22 = vmax.f32 %v2477_v50, 0.0  ;;  %v2675_v30 = vpack.c.bf16 %v2592_v2, %v2590_v58 }
 0x402   : > { %v2480_v62 = vpop.f32.mrf.mxu0 }
 0x403   : > { %v2481_v17 = vadd.f32 %v2480_v62, %v13664_v31  ;;  %v2594_v33 = vmax.f32 %v2479_v26, 0.0  ;;  %v2457_v26 = vadd.f32 %v2456_v12, %v13667_v38  ;;  %v2583_v38 = vmax.f32 %v2451_v5, 0.0 }
 0x404   : > { %v2482_v35 = vpop.f32.mrf.mxu0 }
 0x405   : > { %v2483_v1 = vadd.f32 %v2482_v35, %v13664_v31  ;;  %v2595_v9 = vmax.f32 %v2481_v17, 0.0  ;;  %v2589_v31 = vmax.f32 %v2467_v37, 0.0  ;;  %v13669_v17 = vld [vmem:[#allocation85_spill] sm:$0xff]  ;;  %v2586_v35 = vmax.f32 %v2459_v53, 0.0 }
 0x406   : > { %v2486_v27 = vpop.f32.mrf.mxu0  ;;  %v2449_v50 = vadd.f32 %v2448_v25, %v13669_v17  ;;  %v2447_v2 = vadd.f32 %v11153_v42, %v13669_v17  ;;  %v2433_v42 = vadd.f32 %v11145_v63, %v9911_v32  ;;  %v2431_v63 = vadd.f32 %v11143_v3, %v9911_v32 }
 0x407   : > { %v2596_v11 = vmax.f32 %v2483_v1, 0.0  ;;  %v2487_v48 = vadd.f32 %v2486_v27, %v10092_v18  ;;  %v2676_v43 = vpack.c.bf16 %v2595_v9, %v2593_v22  ;;  %v2674_v1 = vpack.c.bf16 %v2591_v41, %v2589_v31  ;;  %v13670_v9 = vld [vmem:[#allocation86_spill] sm:$0xff] }
 0x408   : > { %v11167_v21 = vpop.f32.mrf.mxu0  ;;  %v2443_v27 = vadd.f32 %v2442_v19, %v13670_v9  ;;  %v2673_v12 = vpack.c.bf16 %v2588_v4, %v2586_v35  ;;  %v2582_v36 = vmax.f32 %v2449_v50, 0.0  ;;  %v2441_v19 = vadd.f32 %v11151_v6, %v13670_v9 }
 0x409   : > { %v2677_v40 = vpack.c.bf16 %v2596_v11, %v2594_v33  ;;  %v2597_v52 = vmax.f32 %v2487_v48, 0.0  ;;  %v2585_v33 = vmax.f32 %v2457_v26, 0.0  ;;  %v13671_v11 = vld [vmem:[#allocation87_spill] sm:$0xff]  ;;  %v2581_v41 = vmax.f32 %v2447_v2, 0.0 }
 0x40a   : > { %v2490_v62 = vpop.f32.mrf.mxu0  ;;  %v2439_v37 = vadd.f32 %v11149_v7, %v13671_v11  ;;  %v2580_v48 = vmax.f32 %v2443_v27, 0.0  ;;  %v2671_v61 = vpack.c.bf16 %v2584_v44, %v2582_v36  ;;  %v2437_v7 = vadd.f32 %v11147_v59, %v13671_v11 }
 0x40b   : > { %v2491_v57 = vadd.f32 %v2490_v62, %v10090_v39  ;;  %3047 = vmatprep.subr.bf16.mxu1 %v2677_v40  ;;  %v2672_v53 = vpack.c.bf16 %v2587_v15, %v2585_v33  ;;  %v2429_v6 = vadd.f32 %v11141_v51, %v9913_v46  ;;  %v2579_v4 = vmax.f32 %v2441_v19, 0.0 }
 0x40c   : > { %v11175_v47 = vpop.f32.mrf.mxu0  ;;  %3048 = vmatpush1.bf16.msra.mxu1 %v2676_v43  ;;  %v2578_v62 = vmax.f32 %v2439_v37, 0.0  ;;  %v2423_v59 = vadd.f32 %v11135_v28, %v9931_v23  ;;  %v2576_v26 = vmax.f32 %v2433_v42, 0.0  ;;  %v2427_v51 = vadd.f32 %v11137_v56, %v9913_v46 }
 0x40d   : > { %v2599_v29 = vmax.f32 %v2491_v57, 0.0  ;;  %3049 = vmatprep.subr.bf16.mxu1 %v2675_v30  ;;  %v2670_v57 = vpack.c.bf16 %v2583_v38, %v2581_v41  ;;  %v2577_v50 = vmax.f32 %v2437_v7, 0.0  ;;  %v2419_v32 = vadd.f32 %v11131_v13, %v9933_v10  ;;  %v13672_v7 = vld [vmem:[#allocation90_spill] sm:$0xff]  ;;  %v13673_v41 = vld [vmem:[#allocation89_spill] sm:$0xff] }
 0x40e   : > { %v2496_v54 = vpop.f32.mrf.mxu0  ;;  %v2669_v17 = vpack.c.bf16 %v2580_v48, %v2578_v62  ;;  %v2574_v3 = vmax.f32 %v2429_v6, 0.0  ;;  %v2413_v23 = vadd.f32 %v11127_v34, %v9951_v49  ;;  %v2572_v28 = vmax.f32 %v2423_v59, 0.0  ;;  %v13674_v62 = vld [vmem:[#allocation88_spill] sm:$0xff] }
 0x40f   : > { %v11180_v20 = vpack.c.bf16 %v2599_v29, %v2597_v52  ;;  %v2497_v22 = vadd.f32 %v2496_v54, %v10074_v14  ;;  %v2575_v52 = vmax.f32 %v2431_v63, 0.0  ;;  %v2668_v29 = vpack.c.bf16 %v2579_v4, %v2577_v50  ;;  %v13675_v63 = vld [vmem:[#allocation91_spill] sm:$0xff] }
 0x410   : > { %v11184_v25 = vpop.f32.mrf.mxu0  ;;  %3050 = vmatpush1.bf16.msra.mxu1 %v2674_v1  ;;  %v2667_v15 = vpack.c.bf16 %v2576_v26, %v2574_v3  ;;  %v2573_v1 = vmax.f32 %v2427_v51, 0.0  ;;  %v2409_v56 = vadd.f32 %v11123_v55, %v9953_v16  ;;  %v2570_v54 = vmax.f32 %v2419_v32, 0.0 }
 0x411   : > { %3051 = vmatprep.subr.bf16.mxu1 %v2673_v12  ;;  %v2601_v24 = vmax.f32 %v2497_v22, 0.0  ;;  %v2568_v9 = vmax.f32 %v2413_v23, 0.0  ;;  %v13677_v23 = vld [vmem:[#allocation93_spill] sm:$0xff] }
 0x412   : > { %v2500_v58 = vpop.f32.mrf.mxu0  ;;  %v2666_v10 = vpack.c.bf16 %v2575_v52, %v2573_v1  ;;  %v2665_v27 = vpack.c.bf16 %v2572_v28, %v2570_v54  ;;  %v2566_v49 = vmax.f32 %v2409_v56, 0.0 }
 0x413   : > { %v2501_v40 = vadd.f32 %v2500_v58, %v10072_v45 }
 0x414   : > { %v11196_v43 = vpop.f32.mrf.mxu0  ;;  %3052 = vmatpush1.bf16.msra.mxu1 %v2672_v53  ;;  %v2663_v12 = vpack.c.bf16 %v2568_v9, %v2566_v49  ;;  %v13678_v9 = vld [vmem:[#allocation94_spill] sm:$0xff] }
 0x415   : > { %v2603_v8 = vmax.f32 %v2501_v40, 0.0  ;;  %3053 = vmatprep.subr.bf16.mxu1 %v2671_v61 }
 0x416   : > { %v11202_v30 = vpop.f32.mrf.mxu0 }
 0x417   : > { %v11206_v31 = vpack.c.bf16 %v2603_v8, %v2601_v24 }
 0x418   : > { %v11210_v35 = vpop.f32.mrf.mxu0  ;;  %3054 = vmatpush1.bf16.msra.mxu1 %v2670_v57 }
 0x419   : > { %3055 = vmatprep.subr.bf16.mxu1 %v2669_v17  ;;  %v13676_v17 = vld [vmem:[#allocation92_spill] sm:$0xff] }
 0x41a   : > { %v11214_v5 = vpop.f32.mrf.mxu0 }
 0x41c   : > { %v11218_v46 = vpop.f32.mrf.mxu0  ;;  %3056 = vmatpush1.bf16.msra.mxu1 %v2668_v29 }
 0x41d   : > { %3057 = vmatprep.subr.bf16.mxu1 %v2667_v15 }
 0x41e   : > { %v11222_v13 = vpop.f32.mrf.mxu0 }
 0x420   : > { %v11224_v44 = vpop.f32.mrf.mxu0  ;;  %3058 = vmatpush1.bf16.msra.mxu1 %v2666_v10 }
 0x421   : > { %3059 = vmatprep.subr.bf16.mxu1 %v2665_v27 }
 0x422   : > { %v11226_v34 = vpop.f32.mrf.mxu0 }
 0x424   : > { %v2522_v2 = vpop.f32.mrf.mxu0  ;;  %3060 = vmatpush1.bf16.msra.mxu1 %v11139_v0 }
 0x425   : > { %3061 = vmatprep.subr.bf16.mxu1 %v2663_v12 }
 0x426   : > { %v2526_v16 = vpop.f32.mrf.mxu0 }
 0x428   : > { %v2528_v55 = vpop.f32.mrf.mxu0  ;;  %3062 = vmatpush1.bf16.msra.mxu1 %v11129_v60 }
 0x42a   : > { %v2530_v33 = vpop.f32.mrf.mxu0 }
 0x42c   : > { %v2532_v11 = vpop.f32.mrf.mxu0 }
 0x42d   : > { %v2533_v27 = vadd.f32 %v2532_v11, %v13678_v9 }
 0x42e   : > { %v2536_v37 = vpop.f32.mrf.mxu0 }
 0x430   : > { %v2538_v36 = vpop.f32.mrf.mxu0 }
 0x431   : > { %v2539_v28 = vadd.f32 %v2538_v36, %v13677_v23  ;;  %v2531_v36 = vadd.f32 %v2530_v33, %v13678_v9  ;;  %v8563_v9 = vld [vmem:[%s13423_s4 + $0x240] ss:$8 sps:$4 sm:$0xff]  }
 0x432   : > { %v2540_v22 = vpop.f32.mrf.mxu0 }
 0x433   : > { %v2541_v56 = vadd.f32 %v2540_v22, %v13676_v17  ;;  %v13680_v22 = vld [vmem:[#allocation96_spill] sm:$0xff] }
 0x434   : > { %v2542_v19 = vpop.f32.mrf.mxu0 }
 0x435   : > { %v2543_v51 = vadd.f32 %v2542_v19, %v13676_v17  ;;  %v2537_v19 = vadd.f32 %v2536_v37, %v13677_v23 }
 0x436   : > { %v2546_v38 = vpop.f32.mrf.mxu0 }
 0x437   : > { %v2547_v52 = vadd.f32 %v2546_v38, %v13675_v63  ;;  %v2620_v49 = vmax.f32 %v2543_v51, 0.0 }
 0x438   : > { %v2548_v53 = vpop.f32.mrf.mxu0 }
 0x439   : > { %v2549_v4 = vadd.f32 %v2548_v53, %v13675_v63  ;;  %v2621_v53 = vmax.f32 %v2547_v52, 0.0 }
 0x43a   : > { %v2550_v58 = vpop.f32.mrf.mxu0 }
 0x43b   : > { %v2551_v59 = vadd.f32 %v2550_v58, %v13672_v7  ;;  %v2622_v15 = vmax.f32 %v2549_v4, 0.0  ;;  %v13679_v58 = vld [vmem:[#allocation95_spill] sm:$0xff] }
 0x43c   : > { %v2552_v42 = vpop.f32.mrf.mxu0  ;;  %v2529_v38 = vadd.f32 %v2528_v55, %v13679_v58  ;;  %v2527_v11 = vadd.f32 %v2526_v16, %v13679_v58  ;;  %v2521_v55 = vadd.f32 %v11226_v34, %v13680_v22  ;;  %v8572_v58 = vld [vmem:[%s13423_s4 + $0x270] ss:$8 sps:$4 sm:$0xff]  }
 0x43d   : > { %v2553_v0 = vadd.f32 %v2552_v42, %v13672_v7  ;;  %v2623_v54 = vmax.f32 %v2551_v59, 0.0  ;;  %v2618_v42 = vmax.f32 %v2539_v28, 0.0  ;;  %v2616_v7 = vmax.f32 %v2533_v27, 0.0  ;;  %v8568_v27 = vld [vmem:[%s13423_s4 + $0x254] ss:$8 sps:$4 sm:$0xff]  }
 0x43e   : > { %v2556_v48 = vpop.f32.mrf.mxu0  ;;  %v2613_v4 = vmax.f32 %v2527_v11, 0.0  ;;  %v8587_v11 = vld [vmem:[%s13423_s4 + $0x2c0] ss:$8 sps:$4 sm:$0xff]  }
 0x43f   : > { %v2557_v60 = vadd.f32 %v2556_v48, %v13673_v41  ;;  %v2624_v50 = vmax.f32 %v2553_v0, 0.0  ;;  %v2619_v48 = vmax.f32 %v2541_v56, 0.0  ;;  %v2689_v0 = vpack.c.bf16 %v2620_v49, %v2618_v42  ;;  %v8566_v49 = vld [vmem:[%s13423_s4 + $0x250] ss:$8 sps:$4 sm:$0xff]   ;;  %v8575_v42 = vld [vmem:[%s13423_s4 + $0x280] ss:$8 sps:$4 sm:$0xff]  }
 0x440   : > { %v2558_v40 = vpop.f32.mrf.mxu0 }
 0x441   : > { %v2559_v6 = vadd.f32 %v2558_v40, %v13673_v41  ;;  %v2625_v29 = vmax.f32 %v2557_v60, 0.0  ;;  %v2691_v12 = vpack.c.bf16 %v2624_v50, %v2622_v15  ;;  %v2690_v40 = vpack.c.bf16 %v2623_v54, %v2621_v53  ;;  %v13682_v60 = vld [vmem:[#allocation14_spill] sm:$0xff]  ;;  %v8562_v54 = vld [vmem:[%s13423_s4 + $0x230] ss:$8 sps:$4 sm:$0xff]   ;;  %v8574_v53 = vld [vmem:[%s13423_s4 + $0x274] ss:$8 sps:$4 sm:$0xff]  }
 0x442   : > { %v2560_v61 = vpop.f32.mrf.mxu0  ;;  %v2617_v41 = vmax.f32 %v2537_v19, 0.0  ;;  %v2511_v34 = vadd.f32 %v11214_v5, %v13682_v60  ;;  %v2493_v5 = vadd.f32 %v11175_v47, %v10090_v39  ;;  %v8551_v39 = vld [vmem:[%s13423_s4 + $0x200] ss:$8 sps:$4 sm:$0xff]   ;;  %v8557_v47 = vld [vmem:[%s13423_s4 + $0x224] ss:$8 sps:$4 sm:$0xff]  }
 0x443   : > { %v2561_v24 = vadd.f32 %v2560_v61, %v13674_v62  ;;  %v2626_v32 = vmax.f32 %v2559_v6, 0.0  ;;  %v2523_v61 = vadd.f32 %v2522_v2, %v13680_v22  ;;  %v13681_v6 = vld [vmem:[#allocation97_spill] sm:$0xff] }
 0x444   : > { %v2562_v8 = vpop.f32.mrf.mxu0  ;;  %v2519_v37 = vadd.f32 %v11224_v44, %v13681_v6  ;;  %v2688_v33 = vpack.c.bf16 %v2619_v48, %v2617_v41  ;;  %v2517_v16 = vadd.f32 %v11222_v13, %v13681_v6  ;;  %v2607_v52 = vmax.f32 %v2511_v34, 0.0  ;;  %v8569_v19 = vld [vmem:[%s13423_s4 + $0x260] ss:$8 sps:$4 sm:$0xff]   ;;  %v8578_v48 = vld [vmem:[%s13423_s4 + $0x290] ss:$8 sps:$4 sm:$0xff]  }
 0x445   : > { %v2563_v57 = vadd.f32 %v2562_v8, %v13674_v62  ;;  %v2627_v26 = vmax.f32 %v2561_v24, 0.0  ;;  %v2614_v62 = vmax.f32 %v2529_v38, 0.0  ;;  %v2615_v24 = vmax.f32 %v2531_v36, 0.0  ;;  %v8577_v38 = vld [vmem:[%s13423_s4 + $0x284] ss:$8 sps:$4 sm:$0xff]  }
 0x446   : > { %v2513_v8 = vadd.f32 %v11218_v46, %v13682_v60  ;;  %v2612_v2 = vmax.f32 %v2523_v61, 0.0  ;;  %v2610_v59 = vmax.f32 %v2519_v37, 0.0  ;;  %v2503_v46 = vadd.f32 %v11196_v43, %v10072_v45  ;;  %v8580_v36 = vld [vmem:[%s13423_s4 + $0x294] ss:$8 sps:$4 sm:$0xff]   ;;  %v8581_v22 = vld [vmem:[%s13423_s4 + $0x2a0] ss:$8 sps:$4 sm:$0xff]  }
 0x447   : > { %v2628_v3 = vmax.f32 %v2563_v57, 0.0  ;;  %v2692_v10 = vpack.c.bf16 %v2627_v26, %v2625_v29  ;;  %v2687_v63 = vpack.c.bf16 %v2616_v7, %v2614_v62  ;;  %v13683_v57 = vld [vmem:[#allocation81_spill] sm:$0xff]  ;;  %v2611_v26 = vmax.f32 %v2521_v55, 0.0  ;;  %v8584_v7 = vld [vmem:[%s13423_s4 + $0x2b0] ss:$8 sps:$4 sm:$0xff]  }
 0x448   : > { %v2509_v44 = vadd.f32 %v11210_v35, %v13683_v57  ;;  %v2686_v17 = vpack.c.bf16 %v2615_v24, %v2613_v4  ;;  %v2608_v51 = vmax.f32 %v2513_v8, 0.0  ;;  %v2685_v50 = vpack.c.bf16 %v2612_v2, %v2610_v59  ;;  %v8586_v61 = vld [vmem:[%s13423_s4 + $0x2b4] ss:$8 sps:$4 sm:$0xff]   ;;  %v8590_v6 = vld [vmem:[%s13423_s4 + $0x2d0] ss:$8 sps:$4 sm:$0xff]  }
 0x449   : > { %v2693_v1 = vpack.c.bf16 %v2628_v3, %v2626_v32  ;;  %v2507_v13 = vadd.f32 %v11202_v30, %v13683_v57  ;;  %v2609_v32 = vmax.f32 %v2517_v16, 0.0  ;;  %v2499_v35 = vadd.f32 %v11184_v25, %v10074_v14  ;;  %v8592_v41 = vld [vmem:[%s13423_s4 + $0x2d4] ss:$8 sps:$4 sm:$0xff]   ;;  %v8595_v37 = vld [vmem:[%s13423_s4 + $0x2e4] ss:$8 sps:$4 sm:$0xff]  }
 0x44a   : > { %v2606_v3 = vmax.f32 %v2509_v44, 0.0  ;;  %v2604_v23 = vmax.f32 %v2503_v46, 0.0  ;;  %v2489_v43 = vadd.f32 %v11167_v21, %v10092_v18  ;;  %v8554_v18 = vld [vmem:[%s13423_s4 + $0x214] ss:$8 sps:$4 sm:$0xff]   ;;  %v8556_v21 = vld [vmem:[%s13423_s4 + $0x210] ss:$8 sps:$4 sm:$0xff]  }
 0x44b   : > { %3063 = vmatprep.subr.bf16.mxu1 %v2693_v1  ;;  %v2684_v29 = vpack.c.bf16 %v2611_v26, %v2609_v32  ;;  %v2605_v45 = vmax.f32 %v2507_v13, 0.0  ;;  %v2602_v30 = vmax.f32 %v2499_v35, 0.0  ;;  %v2600_v1 = vmax.f32 %v2493_v5, 0.0  ;;  %v8593_v62 = vld [vmem:[%s13423_s4 + $0x2e0] ss:$8 sps:$4 sm:$0xff]   ;;  %v13684_v8 = vld [vmem:[#allocation56_spill] sm:$0xff] }
 0x44c   : > { %3064 = vmatpush2.bf16.msra.mxu1 %v2692_v10  ;;  %v2683_v28 = vpack.c.bf16 %v2608_v51, %v2606_v3  ;;  %v2598_v14 = vmax.f32 %v2489_v43, 0.0  ;;  %v8565_v10 = vld [vmem:[%s13423_s4 + $0x244] ss:$8 sps:$4 sm:$0xff]   ;;  %v8598_v55 = vld [vmem:[%s13423_s4 + $0x2f4] ss:$8 sps:$4 sm:$0xff]  }
 0x44d   : > { %3065 = vmatprep.subr.bf16.mxu1 %v2691_v12  ;;  %v2682_v15 = vpack.c.bf16 %v2607_v52, %v2605_v45  ;;  %v2681_v56 = vpack.c.bf16 %v2604_v23, %v2602_v30  ;;  %v8571_v12 = vld [vmem:[%s13423_s4 + $0x264] ss:$8 sps:$4 sm:$0xff]   ;;  %v8596_v24 = vld [vmem:[%s13423_s4 + $0x2f0] ss:$8 sps:$4 sm:$0xff]  }
 0x44e   : > { %v2679_v25 = vpack.c.bf16 %v2600_v1, %v2598_v14  ;;  %v13685_v16 = vld [vmem:[#allocation50_spill] sm:$0xff]  ;;  %v13686_v46 = vld [vmem:[#allocation20_spill] sm:$0xff] }
 0x44f   : > { %v13687_v13 = vld [vmem:[#allocation62_spill] sm:$0xff] }
 0x450   : > { %3066 = vmatpush2.bf16.msra.mxu1 %v2690_v40  ;;  %v8583_v40 = vld [vmem:[%s13423_s4 + $0x2a4] ss:$8 sps:$4 sm:$0xff]  }
 0x451   : > { %3067 = vmatprep.subr.bf16.mxu1 %v2689_v0  ;;  %v8589_v0 = vld [vmem:[%s13423_s4 + $0x2c4] ss:$8 sps:$4 sm:$0xff]  }
 0x454   : > { %3068 = vmatpush2.bf16.msra.mxu1 %v2688_v33 }
 0x455   : > { %3069 = vmatprep.subr.bf16.mxu1 %v2687_v63 }
 0x458   : > { %3070 = vmatpush2.bf16.msra.mxu1 %v2686_v17 }
 0x459   : > { %3071 = vmatprep.subr.bf16.mxu1 %v2685_v50 }
 0x45c   : > { %3072 = vmatpush2.bf16.msra.mxu1 %v2684_v29 }
 0x45d   : > { %3073 = vmatprep.subr.bf16.mxu1 %v2683_v28 }
 0x460   : > { %3074 = vmatpush2.bf16.msra.mxu1 %v2682_v15 }
 0x461   : > { %3075 = vmatprep.subr.bf16.mxu1 %v2681_v56 }
 0x464   : > { %3076 = vmatpush2.bf16.msra.mxu1 %v11206_v31  ;;  %v8560_v31 = vld [vmem:[%s13423_s4 + $0x234] ss:$8 sps:$4 sm:$0xff]  }
 0x465   : > { %3077 = vmatprep.subr.bf16.mxu1 %v2679_v25  ;;  %v8601_v25 = vld [vmem:[%s13423_s4 + $0x304] ss:$8 sps:$4 sm:$0xff]  }
 0x466   : > { %3754 = vmatprep.mubr.bf16.mxu0 %v8601_v25 }
 0x468   : > { %3078 = vmatpush2.bf16.msra.mxu1 %v11180_v20  ;;  %v8559_v20 = vld [vmem:[%s13423_s4 + $0x220] ss:$8 sps:$4 sm:$0xff]  }
 0x46b   : > { %3080 = vmatmul.mubr.bf16.vlgmr.msra.gmra.mxu1 %v8551_v39 }
 0x46c   : > { %3089 = vmatprep.mubr.bf16.mxu1 %v8554_v18 }
 0x473   : > { %3090 = vmatmul.mubr.bf16.gmra.mxu1 %v8556_v21 }
 0x474   : > { %3099 = vmatprep.mubr.bf16.mxu1 %v8557_v47 }
 0x47b   : > { %3100 = vmatmul.mubr.bf16.gmra.mxu1 %v8559_v20 }
 0x47c   : > { %3109 = vmatprep.mubr.bf16.mxu1 %v8560_v31 }
 0x483   : > { %3110 = vmatmul.mubr.bf16.gmra.mxu1 %v8562_v54 }
 0x484   : > { %3119 = vmatprep.mubr.bf16.mxu1 %v8565_v10 }
 0x48b   : > { %3120 = vmatmul.mubr.bf16.gmra.mxu1 %v8563_v9 }
 0x48c   : > { %3129 = vmatprep.mubr.bf16.mxu1 %v8568_v27 }
 0x493   : > { %3130 = vmatmul.mubr.bf16.gmra.mxu1 %v8566_v49 }
 0x494   : > { %3139 = vmatprep.mubr.bf16.mxu1 %v8571_v12 }
 0x49b   : > { %3140 = vmatmul.mubr.bf16.gmra.mxu1 %v8569_v19 }
 0x49c   : > { %3149 = vmatprep.mubr.bf16.mxu1 %v8574_v53  ;;  %v13688_v53 = vld [vmem:[#allocation66_spill] sm:$0xff] }
 0x4a3   : > { %3150 = vmatmul.mubr.bf16.gmra.mxu1 %v8572_v58 }
 0x4a4   : > { %3159 = vmatprep.mubr.bf16.mxu1 %v8577_v38  ;;  %v13689_v38 = vld [vmem:[#allocation16_spill] sm:$0xff] }
 0x4ab   : > { %3160 = vmatmul.mubr.bf16.gmra.mxu1 %v8575_v42 }
 0x4ac   : > { %3169 = vmatprep.mubr.bf16.mxu1 %v8580_v36  ;;  %v13690_v36 = vld [vmem:[#allocation41_spill] sm:$0xff] }
 0x4b3   : > { %3170 = vmatmul.mubr.bf16.gmra.mxu1 %v8578_v48 }
 0x4b4   : > { %3179 = vmatprep.mubr.bf16.mxu1 %v8583_v40 }
 0x4bb   : > { %3180 = vmatmul.mubr.bf16.gmra.mxu1 %v8581_v22 }
 0x4bc   : > { %3189 = vmatprep.mubr.bf16.mxu1 %v8586_v61  ;;  %v13691_v61 = vld [vmem:[#allocation73_spill] sm:$0xff] }
 0x4c3   : > { %3190 = vmatmul.mubr.bf16.gmra.mxu1 %v8584_v7 }
 0x4c4   : > { %3199 = vmatprep.mubr.bf16.mxu1 %v8589_v0 }
 0x4cb   : > { %3200 = vmatmul.mubr.bf16.gmra.mxu1 %v8587_v11 }
 0x4cc   : > { %3209 = vmatprep.mubr.bf16.mxu1 %v8592_v41 }
 0x4d3   : > { %3210 = vmatmul.mubr.bf16.gmra.mxu1 %v8590_v6 }
 0x4d4   : > { %3219 = vmatprep.mubr.bf16.mxu1 %v8595_v37  ;;  %v13692_v37 = vld [vmem:[#allocation78_spill] sm:$0xff] }
 0x4db   : > { %3220 = vmatmul.mubr.bf16.gmra.mxu1 %v8593_v62 }
 0x4dc   : > { %3229 = vmatprep.mubr.bf16.mxu1 %v8598_v55 }
 0x4e3   : > { %3230 = vmatmul.mubr.bf16.gmra.mxu1 %v8596_v24 }
 0x52b   : > { %v3081_v33 = vpop.f32.mrf.mxu1 }
 0x52c   : > { %v3082_v2 = vadd.f32 %v3081_v33, %v13684_v8 }
 0x52d   : > { %v11364_v60 = vpop.f32.mrf.mxu1 }
 0x52e   : > { %v3240_v44 = vmax.f32 %v3082_v2, 0.0 }
 0x52f   : > { %v3085_v63 = vpop.f32.mrf.mxu1 }
 0x530   : > { %v3086_v4 = vadd.f32 %v3085_v63, %v13685_v16 }
 0x531   : > { %v11368_v57 = vpop.f32.mrf.mxu1 }
 0x532   : > { %v3242_v59 = vmax.f32 %v3086_v4, 0.0 }
 0x533   : > { %v3091_v34 = vpop.f32.mrf.mxu1 }
 0x534   : > { %v11370_v26 = vpack.c.bf16 %v3242_v59, %v3240_v44  ;;  %v3092_v51 = vadd.f32 %v3091_v34, %v13686_v46  ;;  %v13693_v44 = vld [vmem:[#allocation15_spill] sm:$0xff] }
 0x535   : > { %v11372_v17 = vpop.f32.mrf.mxu1 }
 0x536   : > { %v3244_v3 = vmax.f32 %v3092_v51, 0.0  ;;  %v13694_v51 = vld [vmem:[#allocation99_spill] sm:$0xff] }
 0x537   : > { %v3095_v50 = vpop.f32.mrf.mxu1 }
 0x538   : > { %v3096_v32 = vadd.f32 %v3095_v50, %v13687_v13 }
 0x539   : > { %v11376_v35 = vpop.f32.mrf.mxu1 }
 0x53a   : > { %v3246_v52 = vmax.f32 %v3096_v32, 0.0 }
 0x53b   : > { %v11378_v29 = vpop.f32.mrf.mxu1 }
 0x53c   : > { %v11380_v5 = vpack.c.bf16 %v3246_v52, %v3244_v3 }
 0x53d   : > { %v11382_v23 = vpop.f32.mrf.mxu1 }
 0x53f   : > { %v11384_v28 = vpop.f32.mrf.mxu1 }
 0x541   : > { %v11386_v45 = vpop.f32.mrf.mxu1 }
 0x543   : > { %v11388_v43 = vpop.f32.mrf.mxu1 }
 0x545   : > { %v11390_v30 = vpop.f32.mrf.mxu1 }
 0x547   : > { %v11392_v15 = vpop.f32.mrf.mxu1 }
 0x549   : > { %v3117_v1 = vpop.f32.mrf.mxu1 }
 0x54b   : > { %v11394_v56 = vpop.f32.mrf.mxu1 }
 0x54d   : > { %v3123_v14 = vpop.f32.mrf.mxu1 }
 0x54f   : > { %v3125_v39 = vpop.f32.mrf.mxu1 }
 0x551   : > { %v3127_v18 = vpop.f32.mrf.mxu1 }
 0x553   : > { %v3131_v21 = vpop.f32.mrf.mxu1 }
 0x555   : > { %v3133_v47 = vpop.f32.mrf.mxu1 }
 0x556   : > { %v3134_v59 = vadd.f32 %v3133_v47, %v13693_v44 }
 0x557   : > { %v3135_v20 = vpop.f32.mrf.mxu1 }
 0x558   : > { %v3136_v3 = vadd.f32 %v3135_v20, %v13692_v37 }
 0x559   : > { %v3137_v31 = vpop.f32.mrf.mxu1 }
 0x55a   : > { %v3138_v62 = vadd.f32 %v3137_v31, %v13692_v37  ;;  %v13695_v31 = vld [vmem:[#allocation70_spill] sm:$0xff]  ;;  %v13699_v37 = vld [vmem:[#allocation65_spill] sm:$0xff] }
 0x55b   : > { %v3141_v54 = vpop.f32.mrf.mxu1 }
 0x55c   : > { %v3142_v2 = vadd.f32 %v3141_v54, %v13691_v61 }
 0x55d   : > { %v3143_v10 = vpop.f32.mrf.mxu1 }
 0x55e   : > { %v3144_v7 = vadd.f32 %v3143_v10, %v13691_v61  ;;  %v13698_v61 = vld [vmem:[#allocation58_spill] sm:$0xff] }
 0x55f   : > { %v3145_v9 = vpop.f32.mrf.mxu1 }
 0x560   : > { %v3146_v11 = vadd.f32 %v3145_v9, %v13688_v53  ;;  %v3265_v34 = vmax.f32 %v3144_v7, 0.0  ;;  %v3128_v9 = vadd.f32 %v3127_v18, %v13695_v31  ;;  %v3262_v18 = vmax.f32 %v3136_v3, 0.0 }
 0x561   : > { %v3147_v27 = vpop.f32.mrf.mxu1  ;;  %v3118_v7 = vadd.f32 %v3117_v1, %v13698_v61  ;;  %v3116_v1 = vadd.f32 %v11392_v15, %v13698_v61  ;;  %v3084_v61 = vadd.f32 %v11364_v60, %v13684_v8 }
 0x562   : > { %v3148_v58 = vadd.f32 %v3147_v27, %v13688_v53  ;;  %v3266_v52 = vmax.f32 %v3146_v11, 0.0  ;;  %v3263_v27 = vmax.f32 %v3138_v62, 0.0  ;;  %v3264_v53 = vmax.f32 %v3142_v2, 0.0 }
 0x563   : > { %v3151_v49 = vpop.f32.mrf.mxu1  ;;  %v3114_v62 = vadd.f32 %v11390_v30, %v13699_v37  ;;  %v3112_v30 = vadd.f32 %v11388_v43, %v13699_v37  ;;  %v3098_v43 = vadd.f32 %v11376_v35, %v13687_v13  ;;  %v3088_v13 = vadd.f32 %v11368_v57, %v13685_v16 }
 0x564   : > { %v3152_v40 = vadd.f32 %v3151_v49, %v13689_v38  ;;  %v3267_v55 = vmax.f32 %v3148_v58, 0.0  ;;  %v13696_v49 = vld [vmem:[#allocation98_spill] sm:$0xff]  ;;  %v3241_v16 = vmax.f32 %v3084_v61, 0.0 }
 0x565   : > { %v3153_v12 = vpop.f32.mrf.mxu1  ;;  %v13697_v58 = vld [vmem:[#allocation18_spill] sm:$0xff]  ;;  %v3247_v35 = vmax.f32 %v3098_v43, 0.0 }
 0x566   : > { %v3154_v42 = vadd.f32 %v3153_v12, %v13689_v38  ;;  %v3268_v63 = vmax.f32 %v3152_v40, 0.0  ;;  %v3350_v54 = vpack.c.bf16 %v3267_v55, %v3265_v34  ;;  %v3124_v38 = vadd.f32 %v3123_v14, %v13697_v58  ;;  %v13700_v55 = vld [vmem:[#allocation42_spill] sm:$0xff]  ;;  %v13702_v34 = vld [vmem:[#allocation49_spill] sm:$0xff] }
 0x567   : > { %v3155_v19 = vpop.f32.mrf.mxu1  ;;  %v3349_v40 = vpack.c.bf16 %v3266_v52, %v3264_v53 }
 0x568   : > { %v3156_v48 = vadd.f32 %v3155_v19, %v13690_v36  ;;  %v3269_v24 = vmax.f32 %v3154_v42, 0.0  ;;  %v3132_v19 = vadd.f32 %v3131_v21, %v13693_v44  ;;  %v3261_v42 = vmax.f32 %v3134_v59, 0.0  ;;  %v13701_v44 = vld [vmem:[#allocation69_spill] sm:$0xff] }
 0x569   : > { %v3157_v22 = vpop.f32.mrf.mxu1  ;;  %v3255_v59 = vmax.f32 %v3118_v7, 0.0 }
 0x56a   : > { %v3158_v0 = vadd.f32 %v3157_v22, %v13690_v36  ;;  %v3270_v41 = vmax.f32 %v3156_v48, 0.0  ;;  %v3126_v48 = vadd.f32 %v3125_v39, %v13695_v31  ;;  %v3348_v21 = vpack.c.bf16 %v3263_v27, %v3261_v42 }
 0x56b   : > { %v3161_v6 = vpop.f32.mrf.mxu1  ;;  %v3257_v39 = vmax.f32 %v3124_v38, 0.0  ;;  %v3254_v27 = vmax.f32 %v3116_v1, 0.0  ;;  %v3252_v38 = vmax.f32 %v3112_v30, 0.0 }
 0x56c   : > { %v3271_v33 = vmax.f32 %v3158_v0, 0.0  ;;  %v3162_v50 = vadd.f32 %v3161_v6, %v13694_v51  ;;  %v3351_v25 = vpack.c.bf16 %v3270_v41, %v3268_v63  ;;  %v3259_v0 = vmax.f32 %v3128_v9, 0.0 }
 0x56d   : > { %v11408_v4 = vpop.f32.mrf.mxu1  ;;  %v3122_v41 = vadd.f32 %v11394_v56, %v13697_v58  ;;  %v3260_v6 = vmax.f32 %v3132_v19, 0.0  ;;  %v3108_v56 = vadd.f32 %v11386_v45, %v13701_v44  ;;  %v3106_v45 = vadd.f32 %v11384_v28, %v13701_v44 }
 0x56e   : > { %v3352_v32 = vpack.c.bf16 %v3271_v33, %v3269_v24  ;;  %v3272_v20 = vmax.f32 %v3162_v50, 0.0  ;;  %v3258_v33 = vmax.f32 %v3126_v48, 0.0  ;;  %v3094_v28 = vadd.f32 %v11372_v17, %v13686_v46 }
 0x56f   : > { %v3165_v10 = vpop.f32.mrf.mxu1  ;;  %v3347_v2 = vpack.c.bf16 %v3262_v18, %v3260_v6  ;;  %v3256_v3 = vmax.f32 %v3122_v41, 0.0  ;;  %v3251_v19 = vmax.f32 %v3108_v56, 0.0  ;;  %v3343_v48 = vpack.c.bf16 %v3254_v27, %v3252_v38 }
 0x570   : > { %v3166_v12 = vadd.f32 %v3165_v10, %v13696_v49  ;;  %3722 = vmatprep.subr.bf16.mxu0 %v3352_v32  ;;  %v3346_v32 = vpack.c.bf16 %v3259_v0, %v3257_v39  ;;  %v3253_v10 = vmax.f32 %v3114_v62, 0.0  ;;  %v3245_v7 = vmax.f32 %v3094_v28, 0.0 }
 0x571   : > { %v11416_v47 = vpop.f32.mrf.mxu1  ;;  %3723 = vmatpush1.bf16.msra.mxu0 %v3351_v25  ;;  %v13703_v25 = vld [vmem:[#allocation17_spill] sm:$0xff]  ;;  %v3243_v0 = vmax.f32 %v3088_v13, 0.0 }
 0x572   : > { %v3274_v36 = vmax.f32 %v3166_v12, 0.0  ;;  %3724 = vmatprep.subr.bf16.mxu0 %v3350_v54  ;;  %v3104_v15 = vadd.f32 %v11382_v23, %v13703_v25  ;;  %v3345_v12 = vpack.c.bf16 %v3258_v33, %v3256_v3  ;;  %v3344_v58 = vpack.c.bf16 %v3255_v59, %v3253_v10  ;;  %v13704_v3 = vld [vmem:[#allocation53_spill] sm:$0xff] }
 0x573   : > { %v3171_v22 = vpop.f32.mrf.mxu1  ;;  %v3102_v23 = vadd.f32 %v11378_v29, %v13703_v25  ;;  %v3338_v6 = vpack.c.bf16 %v3243_v0, %v3241_v16  ;;  %v13705_v25 = vld [vmem:[#allocation19_spill] sm:$0xff]  ;;  %v13706_v10 = vld [vmem:[#allocation61_spill] sm:$0xff]  ;;  %v13710_v0 = vld [vmem:[#allocation46_spill] sm:$0xff] }
 0x574   : > { %v11421_v11 = vpack.c.bf16 %v3274_v36, %v3272_v20  ;;  %v3172_v24 = vadd.f32 %v3171_v22, %v13700_v55  ;;  %v3249_v20 = vmax.f32 %v3104_v15, 0.0  ;;  %v3250_v36 = vmax.f32 %v3106_v45, 0.0  ;;  %v13707_v45 = vld [vmem:[#allocation22_spill] sm:$0xff]  ;;  %v13709_v13 = vld [vmem:[#allocation21_spill] sm:$0xff] }
 0x575   : > { %v11425_v14 = vpop.f32.mrf.mxu1  ;;  %3725 = vmatpush1.bf16.msra.mxu0 %v3349_v40  ;;  %v3248_v22 = vmax.f32 %v3102_v23, 0.0 }
 0x576   : > { %3726 = vmatprep.subr.bf16.mxu0 %v3348_v21  ;;  %v3276_v31 = vmax.f32 %v3172_v24, 0.0  ;;  %v3342_v40 = vpack.c.bf16 %v3251_v19, %v3249_v20  ;;  %v3340_v21 = vpack.c.bf16 %v3247_v35, %v3245_v7 }
 0x577   : > { %v3175_v63 = vpop.f32.mrf.mxu1  ;;  %v3341_v17 = vpack.c.bf16 %v3250_v36, %v3248_v22 }
 0x578   : > { %v3176_v50 = vadd.f32 %v3175_v63, %v13702_v34 }
 0x579   : > { %v11437_v52 = vpop.f32.mrf.mxu1  ;;  %3727 = vmatpush1.bf16.msra.mxu0 %v3347_v2 }
 0x57a   : > { %v3278_v9 = vmax.f32 %v3176_v50, 0.0  ;;  %3728 = vmatprep.subr.bf16.mxu0 %v3346_v32 }
 0x57b   : > { %v11443_v54 = vpop.f32.mrf.mxu1 }
 0x57c   : > { %v11447_v53 = vpack.c.bf16 %v3278_v9, %v3276_v31 }
 0x57d   : > { %v11451_v42 = vpop.f32.mrf.mxu1  ;;  %3729 = vmatpush1.bf16.msra.mxu0 %v3345_v12 }
 0x57e   : > { %3730 = vmatprep.subr.bf16.mxu0 %v3344_v58  ;;  %v13708_v58 = vld [vmem:[#allocation43_spill] sm:$0xff] }
 0x57f   : > { %v11455_v18 = vpop.f32.mrf.mxu1 }
 0x581   : > { %v11459_v29 = vpop.f32.mrf.mxu1  ;;  %3731 = vmatpush1.bf16.msra.mxu0 %v3343_v48 }
 0x582   : > { %3732 = vmatprep.subr.bf16.mxu0 %v3342_v40 }
 0x583   : > { %v11463_v46 = vpop.f32.mrf.mxu1 }
 0x585   : > { %v11465_v41 = vpop.f32.mrf.mxu1  ;;  %3733 = vmatpush1.bf16.msra.mxu0 %v3341_v17 }
 0x586   : > { %3734 = vmatprep.subr.bf16.mxu0 %v3340_v21 }
 0x587   : > { %v11467_v57 = vpop.f32.mrf.mxu1 }
 0x589   : > { %v3197_v37 = vpop.f32.mrf.mxu1  ;;  %3735 = vmatpush1.bf16.msra.mxu0 %v11380_v5 }
 0x58a   : > { %3736 = vmatprep.subr.bf16.mxu0 %v3338_v6 }
 0x58b   : > { %v3201_v60 = vpop.f32.mrf.mxu1 }
 0x58d   : > { %v3203_v8 = vpop.f32.mrf.mxu1  ;;  %3737 = vmatpush1.bf16.msra.mxu0 %v11370_v26 }
 0x58f   : > { %v3205_v62 = vpop.f32.mrf.mxu1 }
 0x591   : > { %v3207_v39 = vpop.f32.mrf.mxu1 }
 0x592   : > { %v3208_v21 = vadd.f32 %v3207_v39, %v13710_v0 }
 0x593   : > { %v3211_v24 = vpop.f32.mrf.mxu1 }
 0x595   : > { %v3213_v1 = vpop.f32.mrf.mxu1 }
 0x596   : > { %v3214_v35 = vadd.f32 %v3213_v1, %v13709_v13  ;;  %v3206_v1 = vadd.f32 %v3205_v62, %v13710_v0  ;;  %v8611_v0 = vld [vmem:[%s13423_s4 + $0x340] ss:$8 sps:$4 sm:$0xff]  }
 0x597   : > { %v3215_v33 = vpop.f32.mrf.mxu1 }
 0x598   : > { %v3216_v61 = vadd.f32 %v3215_v33, %v13708_v58  ;;  %v13712_v33 = vld [vmem:[#allocation35_spill] sm:$0xff] }
 0x599   : > { %v3217_v2 = vpop.f32.mrf.mxu1 }
 0x59a   : > { %v3218_v23 = vadd.f32 %v3217_v2, %v13708_v58  ;;  %v3212_v2 = vadd.f32 %v3211_v24, %v13709_v13 }
 0x59b   : > { %v3221_v63 = vpop.f32.mrf.mxu1 }
 0x59c   : > { %v3222_v36 = vadd.f32 %v3221_v63, %v13707_v45  ;;  %v3295_v16 = vmax.f32 %v3218_v23, 0.0 }
 0x59d   : > { %v3223_v44 = vpop.f32.mrf.mxu1 }
 0x59e   : > { %v3224_v27 = vadd.f32 %v3223_v44, %v13707_v45  ;;  %v3296_v44 = vmax.f32 %v3222_v36, 0.0 }
 0x59f   : > { %v3225_v56 = vpop.f32.mrf.mxu1 }
 0x5a0   : > { %v3226_v43 = vadd.f32 %v3225_v56, %v13704_v3  ;;  %v3297_v40 = vmax.f32 %v3224_v27, 0.0  ;;  %v13711_v56 = vld [vmem:[#allocation24_spill] sm:$0xff] }
 0x5a1   : > { %v3227_v59 = vpop.f32.mrf.mxu1  ;;  %v3204_v63 = vadd.f32 %v3203_v8, %v13711_v56  ;;  %v3202_v39 = vadd.f32 %v3201_v60, %v13711_v56  ;;  %v3196_v8 = vadd.f32 %v11467_v57, %v13712_v33  ;;  %v8620_v56 = vld [vmem:[%s13423_s4 + $0x370] ss:$8 sps:$4 sm:$0xff]  }
 0x5a2   : > { %v3228_v5 = vadd.f32 %v3227_v59, %v13704_v3  ;;  %v3298_v7 = vmax.f32 %v3226_v43, 0.0  ;;  %v3293_v59 = vmax.f32 %v3214_v35, 0.0  ;;  %v3291_v3 = vmax.f32 %v3208_v21, 0.0  ;;  %v8616_v21 = vld [vmem:[%s13423_s4 + $0x354] ss:$8 sps:$4 sm:$0xff]  }
 0x5a3   : > { %v3231_v50 = vpop.f32.mrf.mxu1  ;;  %v3288_v27 = vmax.f32 %v3202_v39, 0.0  ;;  %v8635_v39 = vld [vmem:[%s13423_s4 + $0x3c0] ss:$8 sps:$4 sm:$0xff]  }
 0x5a4   : > { %v3232_v26 = vadd.f32 %v3231_v50, %v13705_v25  ;;  %v3299_v38 = vmax.f32 %v3228_v5, 0.0  ;;  %v3294_v50 = vmax.f32 %v3216_v61, 0.0  ;;  %v3364_v5 = vpack.c.bf16 %v3295_v16, %v3293_v59  ;;  %v8614_v16 = vld [vmem:[%s13423_s4 + $0x350] ss:$8 sps:$4 sm:$0xff]   ;;  %v8623_v59 = vld [vmem:[%s13423_s4 + $0x380] ss:$8 sps:$4 sm:$0xff]  }
 0x5a5   : > { %v3233_v32 = vpop.f32.mrf.mxu1 }
 0x5a6   : > { %v3234_v15 = vadd.f32 %v3233_v32, %v13705_v25  ;;  %v3300_v48 = vmax.f32 %v3232_v26, 0.0  ;;  %v3366_v6 = vpack.c.bf16 %v3299_v38, %v3297_v40  ;;  %v3365_v32 = vpack.c.bf16 %v3298_v7, %v3296_v44  ;;  %v13714_v26 = vld [vmem:[#allocation38_spill] sm:$0xff]  ;;  %v8610_v7 = vld [vmem:[%s13423_s4 + $0x330] ss:$8 sps:$4 sm:$0xff]   ;;  %v8622_v44 = vld [vmem:[%s13423_s4 + $0x374] ss:$8 sps:$4 sm:$0xff]  }
 0x5a7   : > { %v3235_v30 = vpop.f32.mrf.mxu1  ;;  %v3292_v25 = vmax.f32 %v3212_v2, 0.0  ;;  %v3186_v57 = vadd.f32 %v11455_v18, %v13714_v26  ;;  %v3168_v18 = vadd.f32 %v11416_v47, %v13696_v49  ;;  %v8599_v49 = vld [vmem:[%s13423_s4 + $0x300] ss:$8 sps:$4 sm:$0xff]   ;;  %v8605_v47 = vld [vmem:[%s13423_s4 + $0x324] ss:$8 sps:$4 sm:$0xff]  }
 0x5a8   : > { %v3236_v31 = vadd.f32 %v3235_v30, %v13706_v10  ;;  %v3301_v28 = vmax.f32 %v3234_v15, 0.0  ;;  %v3198_v30 = vadd.f32 %v3197_v37, %v13712_v33  ;;  %v13713_v15 = vld [vmem:[#allocation23_spill] sm:$0xff]  ;;  %v8617_v2 = vld [vmem:[%s13423_s4 + $0x360] ss:$8 sps:$4 sm:$0xff]  }
 0x5a9   : > { %v3237_v9 = vpop.f32.mrf.mxu1  ;;  %v3194_v24 = vadd.f32 %v11465_v41, %v13713_v15  ;;  %v3363_v62 = vpack.c.bf16 %v3294_v50, %v3292_v25  ;;  %v3192_v60 = vadd.f32 %v11463_v46, %v13713_v15  ;;  %v3282_v36 = vmax.f32 %v3186_v57, 0.0  ;;  %v8626_v50 = vld [vmem:[%s13423_s4 + $0x390] ss:$8 sps:$4 sm:$0xff]   ;;  %v8629_v33 = vld [vmem:[%s13423_s4 + $0x3a0] ss:$8 sps:$4 sm:$0xff]  }
 0x5aa   : > { %v3238_v12 = vadd.f32 %v3237_v9, %v13706_v10  ;;  %v3302_v19 = vmax.f32 %v3236_v31, 0.0  ;;  %v3289_v10 = vmax.f32 %v3204_v63, 0.0  ;;  %v3290_v31 = vmax.f32 %v3206_v1, 0.0  ;;  %v8625_v63 = vld [vmem:[%s13423_s4 + $0x384] ss:$8 sps:$4 sm:$0xff]  }
 0x5ab   : > { %v3188_v9 = vadd.f32 %v11459_v29, %v13714_v26  ;;  %v3287_v37 = vmax.f32 %v3198_v30, 0.0  ;;  %v3285_v43 = vmax.f32 %v3194_v24, 0.0  ;;  %v3178_v29 = vadd.f32 %v11437_v52, %v13702_v34  ;;  %v8628_v1 = vld [vmem:[%s13423_s4 + $0x394] ss:$8 sps:$4 sm:$0xff]   ;;  %v8638_v15 = vld [vmem:[%s13423_s4 + $0x3d0] ss:$8 sps:$4 sm:$0xff]  }
 0x5ac   : > { %v3303_v20 = vmax.f32 %v3238_v12, 0.0  ;;  %v3367_v17 = vpack.c.bf16 %v3302_v19, %v3300_v48  ;;  %v3362_v45 = vpack.c.bf16 %v3291_v3, %v3289_v10  ;;  %v13715_v12 = vld [vmem:[#allocation57_spill] sm:$0xff]  ;;  %v3286_v19 = vmax.f32 %v3196_v8, 0.0  ;;  %v8632_v3 = vld [vmem:[%s13423_s4 + $0x3b0] ss:$8 sps:$4 sm:$0xff]  }
 0x5ad   : > { %v3184_v41 = vadd.f32 %v11451_v42, %v13715_v12  ;;  %v3361_v58 = vpack.c.bf16 %v3290_v31, %v3288_v27  ;;  %v3283_v23 = vmax.f32 %v3188_v9, 0.0  ;;  %v3360_v38 = vpack.c.bf16 %v3287_v37, %v3285_v43  ;;  %v8634_v30 = vld [vmem:[%s13423_s4 + $0x3b4] ss:$8 sps:$4 sm:$0xff]   ;;  %v8643_v24 = vld [vmem:[%s13423_s4 + $0x3e4] ss:$8 sps:$4 sm:$0xff]  }
 0x5ae   : > { %v3368_v22 = vpack.c.bf16 %v3303_v20, %v3301_v28  ;;  %v3182_v46 = vadd.f32 %v11443_v54, %v13715_v12  ;;  %v3284_v28 = vmax.f32 %v3192_v60, 0.0  ;;  %v3174_v42 = vadd.f32 %v11425_v14, %v13700_v55  ;;  %v8640_v25 = vld [vmem:[%s13423_s4 + $0x3d4] ss:$8 sps:$4 sm:$0xff]   ;;  %v8641_v10 = vld [vmem:[%s13423_s4 + $0x3e0] ss:$8 sps:$4 sm:$0xff]  }
 0x5af   : > { %v3281_v20 = vmax.f32 %v3184_v41, 0.0  ;;  %v3279_v13 = vmax.f32 %v3178_v29, 0.0  ;;  %v3164_v52 = vadd.f32 %v11408_v4, %v13694_v51  ;;  %v8602_v4 = vld [vmem:[%s13423_s4 + $0x314] ss:$8 sps:$4 sm:$0xff]   ;;  %v8604_v51 = vld [vmem:[%s13423_s4 + $0x310] ss:$8 sps:$4 sm:$0xff]  }
 0x5b0   : > { %3738 = vmatprep.subr.bf16.mxu0 %v3368_v22  ;;  %v3359_v48 = vpack.c.bf16 %v3286_v19, %v3284_v28  ;;  %v3280_v34 = vmax.f32 %v3182_v46, 0.0  ;;  %v3277_v54 = vmax.f32 %v3174_v42, 0.0  ;;  %v3275_v22 = vmax.f32 %v3168_v18, 0.0  ;;  %v8646_v8 = vld [vmem:[%s13423_s4 + $0x3f4] ss:$8 sps:$4 sm:$0xff]   ;;  %v13717_v60 = vld [vmem:[#allocation114_spill] sm:$0xff] }
 0x5b1   : > { %3739 = vmatpush2.bf16.msra.mxu0 %v3367_v17  ;;  %v3358_v35 = vpack.c.bf16 %v3283_v23, %v3281_v20  ;;  %v3273_v14 = vmax.f32 %v3164_v52, 0.0  ;;  %v8613_v17 = vld [vmem:[%s13423_s4 + $0x344] ss:$8 sps:$4 sm:$0xff]   ;;  %v8644_v31 = vld [vmem:[%s13423_s4 + $0x3f0] ss:$8 sps:$4 sm:$0xff]  }
 0x5b2   : > { %3740 = vmatprep.subr.bf16.mxu0 %v3366_v6  ;;  %v3357_v40 = vpack.c.bf16 %v3282_v36, %v3280_v34  ;;  %v3356_v61 = vpack.c.bf16 %v3279_v13, %v3277_v54  ;;  %v8619_v6 = vld [vmem:[%s13423_s4 + $0x364] ss:$8 sps:$4 sm:$0xff]   ;;  %v13719_v46 = vld [vmem:[#allocation112_spill] sm:$0xff] }
 0x5b3   : > { %v3354_v55 = vpack.c.bf16 %v3275_v22, %v3273_v14  ;;  %v13716_v9 = vld [vmem:[#allocation115_spill] sm:$0xff]  ;;  %v13718_v29 = vld [vmem:[#allocation113_spill] sm:$0xff] }
 0x5b5   : > { %3741 = vmatpush2.bf16.msra.mxu0 %v3365_v32  ;;  %v8631_v32 = vld [vmem:[%s13423_s4 + $0x3a4] ss:$8 sps:$4 sm:$0xff]  }
 0x5b6   : > { %3742 = vmatprep.subr.bf16.mxu0 %v3364_v5  ;;  %v8637_v5 = vld [vmem:[%s13423_s4 + $0x3c4] ss:$8 sps:$4 sm:$0xff]  }
 0x5b9   : > { %3743 = vmatpush2.bf16.msra.mxu0 %v3363_v62 }
 0x5ba   : > { %3744 = vmatprep.subr.bf16.mxu0 %v3362_v45 }
 0x5bd   : > { %3745 = vmatpush2.bf16.msra.mxu0 %v3361_v58 }
 0x5be   : > { %3746 = vmatprep.subr.bf16.mxu0 %v3360_v38 }
 0x5c1   : > { %3747 = vmatpush2.bf16.msra.mxu0 %v3359_v48 }
 0x5c2   : > { %3748 = vmatprep.subr.bf16.mxu0 %v3358_v35 }
 0x5c5   : > { %3749 = vmatpush2.bf16.msra.mxu0 %v3357_v40 }
 0x5c6   : > { %3750 = vmatprep.subr.bf16.mxu0 %v3356_v61 }
 0x5c9   : > { %3751 = vmatpush2.bf16.msra.mxu0 %v11447_v53  ;;  %v8608_v53 = vld [vmem:[%s13423_s4 + $0x334] ss:$8 sps:$4 sm:$0xff]  }
 0x5ca   : > { %3752 = vmatprep.subr.bf16.mxu0 %v3354_v55  ;;  %v8649_v55 = vld [vmem:[%s13423_s4 + $0x404] ss:$8 sps:$4 sm:$0xff]  }
 0x5cb   : > { %4429 = vmatprep.mubr.bf16.mxu1 %v8649_v55 }
 0x5cd   : > { %3753 = vmatpush2.bf16.msra.mxu0 %v11421_v11  ;;  %v8607_v11 = vld [vmem:[%s13423_s4 + $0x320] ss:$8 sps:$4 sm:$0xff]  }
 0x5d0   : > { %3755 = vmatmul.mubr.bf16.vlgmr.msra.gmra.mxu0 %v8599_v49 }
 0x5d1   : > { %3764 = vmatprep.mubr.bf16.mxu0 %v8602_v4 }
 0x5d8   : > { %3765 = vmatmul.mubr.bf16.gmra.mxu0 %v8604_v51 }
 0x5d9   : > { %3774 = vmatprep.mubr.bf16.mxu0 %v8605_v47 }
 0x5e0   : > { %3775 = vmatmul.mubr.bf16.gmra.mxu0 %v8607_v11 }
 0x5e1   : > { %3784 = vmatprep.mubr.bf16.mxu0 %v8608_v53 }
 0x5e8   : > { %3785 = vmatmul.mubr.bf16.gmra.mxu0 %v8610_v7 }
 0x5e9   : > { %3794 = vmatprep.mubr.bf16.mxu0 %v8613_v17 }
 0x5f0   : > { %3795 = vmatmul.mubr.bf16.gmra.mxu0 %v8611_v0 }
 0x5f1   : > { %3804 = vmatprep.mubr.bf16.mxu0 %v8616_v21 }
 0x5f8   : > { %3805 = vmatmul.mubr.bf16.gmra.mxu0 %v8614_v16 }
 0x5f9   : > { %3814 = vmatprep.mubr.bf16.mxu0 %v8619_v6 }
 0x600   : > { %3815 = vmatmul.mubr.bf16.gmra.mxu0 %v8617_v2 }
 0x601   : > { %3824 = vmatprep.mubr.bf16.mxu0 %v8622_v44  ;;  %v13720_v44 = vld [vmem:[#allocation102_spill] sm:$0xff] }
 0x608   : > { %3825 = vmatmul.mubr.bf16.gmra.mxu0 %v8620_v56 }
 0x609   : > { %3834 = vmatprep.mubr.bf16.mxu0 %v8625_v63  ;;  %v13721_v63 = vld [vmem:[#allocation101_spill] sm:$0xff] }
 0x610   : > { %3835 = vmatmul.mubr.bf16.gmra.mxu0 %v8623_v59 }
 0x611   : > { %3844 = vmatprep.mubr.bf16.mxu0 %v8628_v1  ;;  %v13722_v1 = vld [vmem:[#allocation100_spill] sm:$0xff] }
 0x618   : > { %3845 = vmatmul.mubr.bf16.gmra.mxu0 %v8626_v50 }
 0x619   : > { %3854 = vmatprep.mubr.bf16.mxu0 %v8631_v32 }
 0x620   : > { %3855 = vmatmul.mubr.bf16.gmra.mxu0 %v8629_v33 }
 0x621   : > { %3864 = vmatprep.mubr.bf16.mxu0 %v8634_v30  ;;  %v13723_v30 = vld [vmem:[#allocation103_spill] sm:$0xff] }
 0x628   : > { %3865 = vmatmul.mubr.bf16.gmra.mxu0 %v8632_v3 }
 0x629   : > { %3874 = vmatprep.mubr.bf16.mxu0 %v8637_v5 }
 0x630   : > { %3875 = vmatmul.mubr.bf16.gmra.mxu0 %v8635_v39 }
 0x631   : > { %3884 = vmatprep.mubr.bf16.mxu0 %v8640_v25 }
 0x638   : > { %3885 = vmatmul.mubr.bf16.gmra.mxu0 %v8638_v15 }
 0x639   : > { %3894 = vmatprep.mubr.bf16.mxu0 %v8643_v24  ;;  %v13724_v24 = vld [vmem:[#allocation104_spill] sm:$0xff] }
 0x640   : > { %3895 = vmatmul.mubr.bf16.gmra.mxu0 %v8641_v10 }
 0x641   : > { %3904 = vmatprep.mubr.bf16.mxu0 %v8646_v8 }
 0x648   : > { %3905 = vmatmul.mubr.bf16.gmra.mxu0 %v8644_v31 }
 0x690   : > { %v3756_v62 = vpop.f32.mrf.mxu0 }
 0x691   : > { %v3757_v37 = vadd.f32 %v3756_v62, %v13716_v9 }
 0x692   : > { %v11605_v26 = vpop.f32.mrf.mxu0 }
 0x693   : > { %v3915_v41 = vmax.f32 %v3757_v37, 0.0 }
 0x694   : > { %v3760_v45 = vpop.f32.mrf.mxu0 }
 0x695   : > { %v3761_v27 = vadd.f32 %v3760_v45, %v13717_v60 }
 0x696   : > { %v11609_v12 = vpop.f32.mrf.mxu0 }
 0x697   : > { %v3917_v43 = vmax.f32 %v3761_v27, 0.0 }
 0x698   : > { %v3766_v57 = vpop.f32.mrf.mxu0 }
 0x699   : > { %v11611_v19 = vpack.c.bf16 %v3917_v43, %v3915_v41  ;;  %v3767_v23 = vadd.f32 %v3766_v57, %v13718_v29  ;;  %v13725_v41 = vld [vmem:[#allocation105_spill] sm:$0xff] }
 0x69a   : > { %v11613_v58 = vpop.f32.mrf.mxu0 }
 0x69b   : > { %v3919_v20 = vmax.f32 %v3767_v23, 0.0  ;;  %v13726_v23 = vld [vmem:[#allocation131_spill] sm:$0xff] }
 0x69c   : > { %v3770_v38 = vpop.f32.mrf.mxu0 }
 0x69d   : > { %v3771_v28 = vadd.f32 %v3770_v38, %v13719_v46 }
 0x69e   : > { %v11617_v42 = vpop.f32.mrf.mxu0 }
 0x69f   : > { %v3921_v36 = vmax.f32 %v3771_v28, 0.0 }
 0x6a0   : > { %v11619_v48 = vpop.f32.mrf.mxu0 }
 0x6a1   : > { %v11621_v18 = vpack.c.bf16 %v3921_v36, %v3919_v20 }
 0x6a2   : > { %v11623_v13 = vpop.f32.mrf.mxu0 }
 0x6a4   : > { %v11625_v35 = vpop.f32.mrf.mxu0 }
 0x6a6   : > { %v11627_v34 = vpop.f32.mrf.mxu0 }
 0x6a8   : > { %v11629_v52 = vpop.f32.mrf.mxu0 }
 0x6aa   : > { %v11631_v54 = vpop.f32.mrf.mxu0 }
 0x6ac   : > { %v11633_v40 = vpop.f32.mrf.mxu0 }
 0x6ae   : > { %v3792_v22 = vpop.f32.mrf.mxu0 }
 0x6b0   : > { %v11635_v61 = vpop.f32.mrf.mxu0 }
 0x6b2   : > { %v3798_v14 = vpop.f32.mrf.mxu0 }
 0x6b4   : > { %v3800_v49 = vpop.f32.mrf.mxu0 }
 0x6b6   : > { %v3802_v4 = vpop.f32.mrf.mxu0 }
 0x6b8   : > { %v3806_v51 = vpop.f32.mrf.mxu0 }
 0x6ba   : > { %v3808_v47 = vpop.f32.mrf.mxu0 }
 0x6bb   : > { %v3809_v43 = vadd.f32 %v3808_v47, %v13725_v41 }
 0x6bc   : > { %v3810_v11 = vpop.f32.mrf.mxu0 }
 0x6bd   : > { %v3811_v20 = vadd.f32 %v3810_v11, %v13724_v24 }
 0x6be   : > { %v3812_v53 = vpop.f32.mrf.mxu0 }
 0x6bf   : > { %v3813_v10 = vadd.f32 %v3812_v53, %v13724_v24  ;;  %v13727_v53 = vld [vmem:[#allocation106_spill] sm:$0xff]  ;;  %v13731_v24 = vld [vmem:[#allocation109_spill] sm:$0xff] }
 0x6c0   : > { %v3816_v7 = vpop.f32.mrf.mxu0 }
 0x6c1   : > { %v3817_v37 = vadd.f32 %v3816_v7, %v13723_v30 }
 0x6c2   : > { %v3818_v17 = vpop.f32.mrf.mxu0 }
 0x6c3   : > { %v3819_v3 = vadd.f32 %v3818_v17, %v13723_v30  ;;  %v13730_v30 = vld [vmem:[#allocation108_spill] sm:$0xff] }
 0x6c4   : > { %v3820_v0 = vpop.f32.mrf.mxu0 }
 0x6c5   : > { %v3821_v39 = vadd.f32 %v3820_v0, %v13720_v44  ;;  %v3940_v57 = vmax.f32 %v3819_v3, 0.0  ;;  %v3803_v0 = vadd.f32 %v3802_v4, %v13727_v53  ;;  %v3937_v4 = vmax.f32 %v3811_v20, 0.0 }
 0x6c6   : > { %v3822_v21 = vpop.f32.mrf.mxu0  ;;  %v3793_v3 = vadd.f32 %v3792_v22, %v13730_v30  ;;  %v3791_v22 = vadd.f32 %v11633_v40, %v13730_v30  ;;  %v3759_v30 = vadd.f32 %v11605_v26, %v13716_v9 }
 0x6c7   : > { %v3823_v56 = vadd.f32 %v3822_v21, %v13720_v44  ;;  %v3941_v36 = vmax.f32 %v3821_v39, 0.0  ;;  %v3938_v21 = vmax.f32 %v3813_v10, 0.0  ;;  %v3939_v44 = vmax.f32 %v3817_v37, 0.0 }
 0x6c8   : > { %v3826_v16 = vpop.f32.mrf.mxu0  ;;  %v3789_v10 = vadd.f32 %v11631_v54, %v13731_v24  ;;  %v3787_v54 = vadd.f32 %v11629_v52, %v13731_v24  ;;  %v3773_v52 = vadd.f32 %v11617_v42, %v13719_v46  ;;  %v3763_v46 = vadd.f32 %v11609_v12, %v13717_v60 }
 0x6c9   : > { %v3827_v32 = vadd.f32 %v3826_v16, %v13721_v63  ;;  %v3942_v8 = vmax.f32 %v3823_v56, 0.0  ;;  %v13728_v16 = vld [vmem:[#allocation130_spill] sm:$0xff]  ;;  %v13729_v56 = vld [vmem:[#allocation107_spill] sm:$0xff]  ;;  %v3916_v60 = vmax.f32 %v3759_v30, 0.0 }
 0x6ca   : > { %v3828_v6 = vpop.f32.mrf.mxu0  ;;  %v3922_v42 = vmax.f32 %v3773_v52, 0.0 }
 0x6cb   : > { %v3829_v59 = vadd.f32 %v3828_v6, %v13721_v63  ;;  %v3943_v45 = vmax.f32 %v3827_v32, 0.0  ;;  %v4025_v7 = vpack.c.bf16 %v3942_v8, %v3940_v57  ;;  %v3799_v63 = vadd.f32 %v3798_v14, %v13729_v56  ;;  %v13732_v8 = vld [vmem:[#allocation129_spill] sm:$0xff]  ;;  %v13734_v57 = vld [vmem:[#allocation128_spill] sm:$0xff] }
 0x6cc   : > { %v3830_v2 = vpop.f32.mrf.mxu0  ;;  %v4024_v32 = vpack.c.bf16 %v3941_v36, %v3939_v44 }
 0x6cd   : > { %v3831_v50 = vadd.f32 %v3830_v2, %v13722_v1  ;;  %v3944_v31 = vmax.f32 %v3829_v59, 0.0  ;;  %v3807_v2 = vadd.f32 %v3806_v51, %v13725_v41  ;;  %v3936_v59 = vmax.f32 %v3809_v43, 0.0  ;;  %v13733_v41 = vld [vmem:[#allocation110_spill] sm:$0xff] }
 0x6ce   : > { %v3832_v33 = vpop.f32.mrf.mxu0  ;;  %v3930_v43 = vmax.f32 %v3793_v3, 0.0 }
 0x6cf   : > { %v3833_v5 = vadd.f32 %v3832_v33, %v13722_v1  ;;  %v3945_v25 = vmax.f32 %v3831_v50, 0.0  ;;  %v3801_v50 = vadd.f32 %v3800_v49, %v13727_v53  ;;  %v4023_v51 = vpack.c.bf16 %v3938_v21, %v3936_v59 }
 0x6d0   : > { %v3836_v15 = vpop.f32.mrf.mxu0  ;;  %v3932_v49 = vmax.f32 %v3799_v63, 0.0  ;;  %v3929_v21 = vmax.f32 %v3791_v22, 0.0  ;;  %v3927_v63 = vmax.f32 %v3787_v54, 0.0 }
 0x6d1   : > { %v3946_v62 = vmax.f32 %v3833_v5, 0.0  ;;  %v3837_v38 = vadd.f32 %v3836_v15, %v13726_v23  ;;  %v4026_v55 = vpack.c.bf16 %v3945_v25, %v3943_v45  ;;  %v3934_v5 = vmax.f32 %v3803_v0, 0.0 }
 0x6d2   : > { %v11649_v27 = vpop.f32.mrf.mxu0  ;;  %v3797_v25 = vadd.f32 %v11635_v61, %v13729_v56  ;;  %v3935_v15 = vmax.f32 %v3807_v2, 0.0  ;;  %v3783_v61 = vadd.f32 %v11627_v34, %v13733_v41  ;;  %v3781_v34 = vadd.f32 %v11625_v35, %v13733_v41 }
 0x6d3   : > { %v4027_v28 = vpack.c.bf16 %v3946_v62, %v3944_v31  ;;  %v3947_v11 = vmax.f32 %v3837_v38, 0.0  ;;  %v3933_v62 = vmax.f32 %v3801_v50, 0.0  ;;  %v3769_v35 = vadd.f32 %v11613_v58, %v13718_v29 }
 0x6d4   : > { %v3840_v17 = vpop.f32.mrf.mxu0  ;;  %v4022_v37 = vpack.c.bf16 %v3937_v4, %v3935_v15  ;;  %v3931_v20 = vmax.f32 %v3797_v25, 0.0  ;;  %v3926_v2 = vmax.f32 %v3783_v61, 0.0  ;;  %v4018_v50 = vpack.c.bf16 %v3929_v21, %v3927_v63 }
 0x6d5   : > { %v3841_v6 = vadd.f32 %v3840_v17, %v13728_v16  ;;  %4397 = vmatprep.subr.bf16.mxu1 %v4027_v28  ;;  %v4021_v28 = vpack.c.bf16 %v3934_v5, %v3932_v49  ;;  %v3928_v17 = vmax.f32 %v3789_v10, 0.0  ;;  %v3920_v3 = vmax.f32 %v3769_v35, 0.0 }
 0x6d6   : > { %v11657_v47 = vpop.f32.mrf.mxu0  ;;  %4398 = vmatpush1.bf16.msra.mxu1 %v4026_v55  ;;  %v13735_v55 = vld [vmem:[#allocation111_spill] sm:$0xff]  ;;  %v3918_v5 = vmax.f32 %v3763_v46, 0.0  ;;  %v13741_v46 = vld [vmem:[#allocation121_spill] sm:$0xff] }
 0x6d7   : > { %v3949_v1 = vmax.f32 %v3841_v6, 0.0  ;;  %4399 = vmatprep.subr.bf16.mxu1 %v4025_v7  ;;  %v3779_v40 = vadd.f32 %v11623_v13, %v13735_v55  ;;  %v4020_v6 = vpack.c.bf16 %v3933_v62, %v3931_v20  ;;  %v4019_v56 = vpack.c.bf16 %v3930_v43, %v3928_v17  ;;  %v13736_v20 = vld [vmem:[#allocation118_spill] sm:$0xff]  ;;  %v13738_v17 = vld [vmem:[#allocation116_spill] sm:$0xff] }
 0x6d8   : > { %v3846_v33 = vpop.f32.mrf.mxu0  ;;  %v3777_v13 = vadd.f32 %v11619_v48, %v13735_v55  ;;  %v4013_v15 = vpack.c.bf16 %v3918_v5, %v3916_v60  ;;  %v13737_v55 = vld [vmem:[#allocation117_spill] sm:$0xff]  ;;  %v13742_v5 = vld [vmem:[#allocation122_spill] sm:$0xff] }
 0x6d9   : > { %v11662_v39 = vpack.c.bf16 %v3949_v1, %v3947_v11  ;;  %v3847_v31 = vadd.f32 %v3846_v33, %v13732_v8  ;;  %v3924_v11 = vmax.f32 %v3779_v40, 0.0  ;;  %v3925_v1 = vmax.f32 %v3781_v34, 0.0  ;;  %v13739_v34 = vld [vmem:[#allocation119_spill] sm:$0xff] }
 0x6da   : > { %v11666_v14 = vpop.f32.mrf.mxu0  ;;  %4400 = vmatpush1.bf16.msra.mxu1 %v4024_v32  ;;  %v3923_v33 = vmax.f32 %v3777_v13, 0.0 }
 0x6db   : > { %4401 = vmatprep.subr.bf16.mxu1 %v4023_v51  ;;  %v3951_v53 = vmax.f32 %v3847_v31, 0.0  ;;  %v4017_v32 = vpack.c.bf16 %v3926_v2, %v3924_v11  ;;  %v4015_v51 = vpack.c.bf16 %v3922_v42, %v3920_v3 }
 0x6dc   : > { %v3850_v45 = vpop.f32.mrf.mxu0  ;;  %v4016_v58 = vpack.c.bf16 %v3925_v1, %v3923_v33 }
 0x6dd   : > { %v3851_v38 = vadd.f32 %v3850_v45, %v13734_v57 }
 0x6de   : > { %v11678_v36 = vpop.f32.mrf.mxu0  ;;  %4402 = vmatpush1.bf16.msra.mxu1 %v4022_v37 }
 0x6df   : > { %v3953_v0 = vmax.f32 %v3851_v38, 0.0  ;;  %4403 = vmatprep.subr.bf16.mxu1 %v4021_v28 }
 0x6e0   : > { %v11684_v7 = vpop.f32.mrf.mxu0 }
 0x6e1   : > { %v11688_v44 = vpack.c.bf16 %v3953_v0, %v3951_v53 }
 0x6e2   : > { %v11692_v59 = vpop.f32.mrf.mxu0  ;;  %4404 = vmatpush1.bf16.msra.mxu1 %v4020_v6 }
 0x6e3   : > { %4405 = vmatprep.subr.bf16.mxu1 %v4019_v56  ;;  %v13740_v56 = vld [vmem:[#allocation120_spill] sm:$0xff] }
 0x6e4   : > { %v11696_v4 = vpop.f32.mrf.mxu0 }
 0x6e6   : > { %v11700_v48 = vpop.f32.mrf.mxu0  ;;  %4406 = vmatpush1.bf16.msra.mxu1 %v4018_v50 }
 0x6e7   : > { %4407 = vmatprep.subr.bf16.mxu1 %v4017_v32 }
 0x6e8   : > { %v11704_v29 = vpop.f32.mrf.mxu0 }
 0x6ea   : > { %v11706_v25 = vpop.f32.mrf.mxu0  ;;  %4408 = vmatpush1.bf16.msra.mxu1 %v4016_v58 }
 0x6eb   : > { %4409 = vmatprep.subr.bf16.mxu1 %v4015_v51 }
 0x6ec   : > { %v11708_v12 = vpop.f32.mrf.mxu0 }
 0x6ee   : > { %v3872_v24 = vpop.f32.mrf.mxu0  ;;  %4410 = vmatpush1.bf16.msra.mxu1 %v11621_v18 }
 0x6ef   : > { %4411 = vmatprep.subr.bf16.mxu1 %v4013_v15 }
 0x6f0   : > { %v3876_v26 = vpop.f32.mrf.mxu0 }
 0x6f2   : > { %v3878_v9 = vpop.f32.mrf.mxu0  ;;  %4412 = vmatpush1.bf16.msra.mxu1 %v11611_v19 }
 0x6f4   : > { %v3880_v10 = vpop.f32.mrf.mxu0 }
 0x6f6   : > { %v3882_v49 = vpop.f32.mrf.mxu0 }
 0x6f7   : > { %v3883_v51 = vadd.f32 %v3882_v49, %v13742_v5 }
 0x6f8   : > { %v3886_v31 = vpop.f32.mrf.mxu0 }
 0x6fa   : > { %v3888_v22 = vpop.f32.mrf.mxu0 }
 0x6fb   : > { %v3889_v42 = vadd.f32 %v3888_v22, %v13741_v46  ;;  %v3881_v22 = vadd.f32 %v3880_v10, %v13742_v5  ;;  %v8659_v5 = vld [vmem:[%s13423_s4 + $0x440] ss:$8 sps:$4 sm:$0xff]  }
 0x6fc   : > { %v3890_v62 = vpop.f32.mrf.mxu0 }
 0x6fd   : > { %v3891_v30 = vadd.f32 %v3890_v62, %v13740_v56  ;;  %v13744_v62 = vld [vmem:[#allocation124_spill] sm:$0xff] }
 0x6fe   : > { %v3892_v37 = vpop.f32.mrf.mxu0 }
 0x6ff   : > { %v3893_v13 = vadd.f32 %v3892_v37, %v13740_v56  ;;  %v3887_v37 = vadd.f32 %v3886_v31, %v13741_v46 }
 0x700   : > { %v3896_v45 = vpop.f32.mrf.mxu0 }
 0x701   : > { %v3897_v1 = vadd.f32 %v3896_v45, %v13739_v34  ;;  %v3970_v60 = vmax.f32 %v3893_v13, 0.0 }
 0x702   : > { %v3898_v41 = vpop.f32.mrf.mxu0 }
 0x703   : > { %v3899_v21 = vadd.f32 %v3898_v41, %v13739_v34  ;;  %v3971_v41 = vmax.f32 %v3897_v1, 0.0 }
 0x704   : > { %v3900_v61 = vpop.f32.mrf.mxu0 }
 0x705   : > { %v3901_v52 = vadd.f32 %v3900_v61, %v13736_v20  ;;  %v3972_v32 = vmax.f32 %v3899_v21, 0.0  ;;  %v13743_v61 = vld [vmem:[#allocation123_spill] sm:$0xff] }
 0x706   : > { %v3902_v43 = vpop.f32.mrf.mxu0  ;;  %v3879_v45 = vadd.f32 %v3878_v9, %v13743_v61  ;;  %v3877_v49 = vadd.f32 %v3876_v26, %v13743_v61  ;;  %v3871_v9 = vadd.f32 %v11708_v12, %v13744_v62  ;;  %v8668_v61 = vld [vmem:[%s13423_s4 + $0x470] ss:$8 sps:$4 sm:$0xff]  }
 0x707   : > { %v3903_v18 = vadd.f32 %v3902_v43, %v13736_v20  ;;  %v3973_v3 = vmax.f32 %v3901_v52, 0.0  ;;  %v3968_v43 = vmax.f32 %v3889_v42, 0.0  ;;  %v3966_v20 = vmax.f32 %v3883_v51, 0.0  ;;  %v8664_v51 = vld [vmem:[%s13423_s4 + $0x454] ss:$8 sps:$4 sm:$0xff]  }
 0x708   : > { %v3906_v38 = vpop.f32.mrf.mxu0  ;;  %v3963_v21 = vmax.f32 %v3877_v49, 0.0  ;;  %v8683_v49 = vld [vmem:[%s13423_s4 + $0x4c0] ss:$8 sps:$4 sm:$0xff]  }
 0x709   : > { %v3907_v19 = vadd.f32 %v3906_v38, %v13737_v55  ;;  %v3974_v63 = vmax.f32 %v3903_v18, 0.0  ;;  %v3969_v38 = vmax.f32 %v3891_v30, 0.0  ;;  %v4039_v18 = vpack.c.bf16 %v3970_v60, %v3968_v43  ;;  %v8662_v60 = vld [vmem:[%s13423_s4 + $0x450] ss:$8 sps:$4 sm:$0xff]   ;;  %v8671_v43 = vld [vmem:[%s13423_s4 + $0x480] ss:$8 sps:$4 sm:$0xff]  }
 0x70a   : > { %v3908_v28 = vpop.f32.mrf.mxu0 }
 0x70b   : > { %v3909_v40 = vadd.f32 %v3908_v28, %v13737_v55  ;;  %v3975_v50 = vmax.f32 %v3907_v19, 0.0  ;;  %v4041_v15 = vpack.c.bf16 %v3974_v63, %v3972_v32  ;;  %v4040_v28 = vpack.c.bf16 %v3973_v3, %v3971_v41  ;;  %v13746_v19 = vld [vmem:[#allocation126_spill] sm:$0xff]  ;;  %v8656_v3 = vld [vmem:[%s13423_s4 + $0x430] ss:$8 sps:$4 sm:$0xff]   ;;  %v8670_v41 = vld [vmem:[%s13423_s4 + $0x474] ss:$8 sps:$4 sm:$0xff]  }
 0x70c   : > { %v3910_v54 = vpop.f32.mrf.mxu0  ;;  %v3967_v55 = vmax.f32 %v3887_v37, 0.0  ;;  %v3861_v12 = vadd.f32 %v11696_v4, %v13746_v19  ;;  %v3843_v4 = vadd.f32 %v11657_v47, %v13728_v16  ;;  %v8647_v16 = vld [vmem:[%s13423_s4 + $0x400] ss:$8 sps:$4 sm:$0xff]   ;;  %v8655_v47 = vld [vmem:[%s13423_s4 + $0x424] ss:$8 sps:$4 sm:$0xff]  }
 0x70d   : > { %v3911_v53 = vadd.f32 %v3910_v54, %v13738_v17  ;;  %v3976_v35 = vmax.f32 %v3909_v40, 0.0  ;;  %v3873_v54 = vadd.f32 %v3872_v24, %v13744_v62  ;;  %v13745_v40 = vld [vmem:[#allocation125_spill] sm:$0xff] }
 0x70e   : > { %v3912_v0 = vpop.f32.mrf.mxu0  ;;  %v3869_v31 = vadd.f32 %v11706_v25, %v13745_v40  ;;  %v4038_v10 = vpack.c.bf16 %v3969_v38, %v3967_v55  ;;  %v3867_v26 = vadd.f32 %v11704_v29, %v13745_v40  ;;  %v3957_v1 = vmax.f32 %v3861_v12, 0.0  ;;  %v8665_v37 = vld [vmem:[%s13423_s4 + $0x460] ss:$8 sps:$4 sm:$0xff]   ;;  %v8674_v38 = vld [vmem:[%s13423_s4 + $0x490] ss:$8 sps:$4 sm:$0xff]  }
 0x70f   : > { %v3913_v6 = vadd.f32 %v3912_v0, %v13738_v17  ;;  %v3977_v2 = vmax.f32 %v3911_v53, 0.0  ;;  %v3964_v17 = vmax.f32 %v3879_v45, 0.0  ;;  %v3965_v53 = vmax.f32 %v3881_v22, 0.0  ;;  %v8673_v45 = vld [vmem:[%s13423_s4 + $0x484] ss:$8 sps:$4 sm:$0xff]  }
 0x710   : > { %v3863_v0 = vadd.f32 %v11700_v48, %v13746_v19  ;;  %v3962_v24 = vmax.f32 %v3873_v54, 0.0  ;;  %v3960_v52 = vmax.f32 %v3869_v31, 0.0  ;;  %v3853_v48 = vadd.f32 %v11678_v36, %v13734_v57  ;;  %v8676_v22 = vld [vmem:[%s13423_s4 + $0x494] ss:$8 sps:$4 sm:$0xff]   ;;  %v8677_v62 = vld [vmem:[%s13423_s4 + $0x4a0] ss:$8 sps:$4 sm:$0xff]  }
 0x711   : > { %v3978_v11 = vmax.f32 %v3913_v6, 0.0  ;;  %v4042_v58 = vpack.c.bf16 %v3977_v2, %v3975_v50  ;;  %v4037_v34 = vpack.c.bf16 %v3966_v20, %v3964_v17  ;;  %v13747_v6 = vld [vmem:[#allocation127_spill] sm:$0xff]  ;;  %v3961_v2 = vmax.f32 %v3871_v9, 0.0  ;;  %v8689_v17 = vld [vmem:[%s13423_s4 + $0x4e0] ss:$8 sps:$4 sm:$0xff]  }
 0x712   : > { %v3859_v25 = vadd.f32 %v11692_v59, %v13747_v6  ;;  %v4036_v56 = vpack.c.bf16 %v3965_v53, %v3963_v21  ;;  %v3958_v13 = vmax.f32 %v3863_v0, 0.0  ;;  %v4035_v63 = vpack.c.bf16 %v3962_v24, %v3960_v52  ;;  %v8682_v54 = vld [vmem:[%s13423_s4 + $0x4b4] ss:$8 sps:$4 sm:$0xff]   ;;  %v8680_v20 = vld [vmem:[%s13423_s4 + $0x4b0] ss:$8 sps:$4 sm:$0xff]  }
 0x713   : > { %v4043_v33 = vpack.c.bf16 %v3978_v11, %v3976_v35  ;;  %v3857_v29 = vadd.f32 %v11684_v7, %v13747_v6  ;;  %v3959_v35 = vmax.f32 %v3867_v26, 0.0  ;;  %v3849_v59 = vadd.f32 %v11666_v14, %v13732_v8  ;;  %v8688_v55 = vld [vmem:[%s13423_s4 + $0x4d4] ss:$8 sps:$4 sm:$0xff]   ;;  %v8686_v40 = vld [vmem:[%s13423_s4 + $0x4d0] ss:$8 sps:$4 sm:$0xff]   ;;  %v13749_v26 = vld [vmem:[#allocation146_spill] sm:$0xff] }
 0x714   : > { %v3956_v11 = vmax.f32 %v3859_v25, 0.0  ;;  %v3954_v46 = vmax.f32 %v3853_v48, 0.0  ;;  %v3839_v36 = vadd.f32 %v11649_v27, %v13726_v23  ;;  %v8652_v27 = vld [vmem:[%s13423_s4 + $0x414] ss:$8 sps:$4 sm:$0xff]   ;;  %v8650_v23 = vld [vmem:[%s13423_s4 + $0x410] ss:$8 sps:$4 sm:$0xff]  }
 0x715   : > { %4413 = vmatprep.subr.bf16.mxu1 %v4043_v33  ;;  %v4034_v50 = vpack.c.bf16 %v3961_v2, %v3959_v35  ;;  %v3955_v57 = vmax.f32 %v3857_v29, 0.0  ;;  %v3952_v7 = vmax.f32 %v3849_v59, 0.0  ;;  %v3950_v33 = vmax.f32 %v3843_v4, 0.0  ;;  %v8691_v31 = vld [vmem:[%s13423_s4 + $0x4e4] ss:$8 sps:$4 sm:$0xff]   ;;  %v13751_v29 = vld [vmem:[#allocation144_spill] sm:$0xff] }
 0x716   : > { %4414 = vmatpush2.bf16.msra.mxu1 %v4042_v58  ;;  %v4033_v42 = vpack.c.bf16 %v3958_v13, %v3956_v11  ;;  %v3948_v14 = vmax.f32 %v3839_v36, 0.0  ;;  %v8661_v58 = vld [vmem:[%s13423_s4 + $0x444] ss:$8 sps:$4 sm:$0xff]   ;;  %v8694_v9 = vld [vmem:[%s13423_s4 + $0x4f4] ss:$8 sps:$4 sm:$0xff]  }
 0x717   : > { %4415 = vmatprep.subr.bf16.mxu1 %v4041_v15  ;;  %v4032_v32 = vpack.c.bf16 %v3957_v1, %v3955_v57  ;;  %v4031_v30 = vpack.c.bf16 %v3954_v46, %v3952_v7  ;;  %v8667_v15 = vld [vmem:[%s13423_s4 + $0x464] ss:$8 sps:$4 sm:$0xff]   ;;  %v8692_v53 = vld [vmem:[%s13423_s4 + $0x4f0] ss:$8 sps:$4 sm:$0xff]  }
 0x718   : > { %v4029_v8 = vpack.c.bf16 %v3950_v33, %v3948_v14  ;;  %v13748_v0 = vld [vmem:[#allocation147_spill] sm:$0xff]  ;;  %v13750_v48 = vld [vmem:[#allocation145_spill] sm:$0xff] }
 0x71a   : > { %4416 = vmatpush2.bf16.msra.mxu1 %v4040_v28  ;;  %v8679_v28 = vld [vmem:[%s13423_s4 + $0x4a4] ss:$8 sps:$4 sm:$0xff]  }
 0x71b   : > { %4417 = vmatprep.subr.bf16.mxu1 %v4039_v18  ;;  %v8685_v18 = vld [vmem:[%s13423_s4 + $0x4c4] ss:$8 sps:$4 sm:$0xff]  }
 0x71e   : > { %4418 = vmatpush2.bf16.msra.mxu1 %v4038_v10 }
 0x71f   : > { %4419 = vmatprep.subr.bf16.mxu1 %v4037_v34 }
 0x722   : > { %4420 = vmatpush2.bf16.msra.mxu1 %v4036_v56 }
 0x723   : > { %4421 = vmatprep.subr.bf16.mxu1 %v4035_v63 }
 0x726   : > { %4422 = vmatpush2.bf16.msra.mxu1 %v4034_v50 }
 0x727   : > { %4423 = vmatprep.subr.bf16.mxu1 %v4033_v42 }
 0x72a   : > { %4424 = vmatpush2.bf16.msra.mxu1 %v4032_v32 }
 0x72b   : > { %4425 = vmatprep.subr.bf16.mxu1 %v4031_v30 }
 0x72e   : > { %4426 = vmatpush2.bf16.msra.mxu1 %v11688_v44  ;;  %v8658_v44 = vld [vmem:[%s13423_s4 + $0x434] ss:$8 sps:$4 sm:$0xff]  }
 0x72f   : > { %4427 = vmatprep.subr.bf16.mxu1 %v4029_v8  ;;  %v8697_v8 = vld [vmem:[%s13423_s4 + $0x504] ss:$8 sps:$4 sm:$0xff]  }
 0x730   : > { %5104 = vmatprep.mubr.bf16.mxu0 %v8697_v8 }
 0x732   : > { %4428 = vmatpush2.bf16.msra.mxu1 %v11662_v39  ;;  %v8653_v39 = vld [vmem:[%s13423_s4 + $0x420] ss:$8 sps:$4 sm:$0xff]  }
 0x735   : > { %4430 = vmatmul.mubr.bf16.vlgmr.msra.gmra.mxu1 %v8647_v16 }
 0x736   : > { %4439 = vmatprep.mubr.bf16.mxu1 %v8652_v27 }
 0x73d   : > { %4440 = vmatmul.mubr.bf16.gmra.mxu1 %v8650_v23 }
 0x73e   : > { %4449 = vmatprep.mubr.bf16.mxu1 %v8655_v47 }
 0x745   : > { %4450 = vmatmul.mubr.bf16.gmra.mxu1 %v8653_v39 }
 0x746   : > { %4459 = vmatprep.mubr.bf16.mxu1 %v8658_v44 }
 0x74d   : > { %4460 = vmatmul.mubr.bf16.gmra.mxu1 %v8656_v3 }
 0x74e   : > { %4469 = vmatprep.mubr.bf16.mxu1 %v8661_v58 }
 0x755   : > { %4470 = vmatmul.mubr.bf16.gmra.mxu1 %v8659_v5 }
 0x756   : > { %4479 = vmatprep.mubr.bf16.mxu1 %v8664_v51 }
 0x75d   : > { %4480 = vmatmul.mubr.bf16.gmra.mxu1 %v8662_v60 }
 0x75e   : > { %4489 = vmatprep.mubr.bf16.mxu1 %v8667_v15 }
 0x765   : > { %4490 = vmatmul.mubr.bf16.gmra.mxu1 %v8665_v37 }
 0x766   : > { %4499 = vmatprep.mubr.bf16.mxu1 %v8670_v41  ;;  %v13752_v41 = vld [vmem:[#allocation134_spill] sm:$0xff] }
 0x76d   : > { %4500 = vmatmul.mubr.bf16.gmra.mxu1 %v8668_v61 }
 0x76e   : > { %4509 = vmatprep.mubr.bf16.mxu1 %v8673_v45  ;;  %v13753_v45 = vld [vmem:[#allocation133_spill] sm:$0xff] }
 0x775   : > { %4510 = vmatmul.mubr.bf16.gmra.mxu1 %v8671_v43 }
 0x776   : > { %4519 = vmatprep.mubr.bf16.mxu1 %v8676_v22  ;;  %v13754_v22 = vld [vmem:[#allocation132_spill] sm:$0xff] }
 0x77d   : > { %4520 = vmatmul.mubr.bf16.gmra.mxu1 %v8674_v38 }
 0x77e   : > { %4529 = vmatprep.mubr.bf16.mxu1 %v8679_v28 }
 0x785   : > { %4530 = vmatmul.mubr.bf16.gmra.mxu1 %v8677_v62 }
 0x786   : > { %4539 = vmatprep.mubr.bf16.mxu1 %v8682_v54  ;;  %v13755_v54 = vld [vmem:[#allocation135_spill] sm:$0xff] }
 0x78d   : > { %4540 = vmatmul.mubr.bf16.gmra.mxu1 %v8680_v20 }
 0x78e   : > { %4549 = vmatprep.mubr.bf16.mxu1 %v8685_v18 }
 0x795   : > { %4550 = vmatmul.mubr.bf16.gmra.mxu1 %v8683_v49 }
 0x796   : > { %4559 = vmatprep.mubr.bf16.mxu1 %v8688_v55 }
 0x79d   : > { %4560 = vmatmul.mubr.bf16.gmra.mxu1 %v8686_v40 }
 0x79e   : > { %4569 = vmatprep.mubr.bf16.mxu1 %v8691_v31  ;;  %v13756_v31 = vld [vmem:[#allocation136_spill] sm:$0xff] }
 0x7a5   : > { %4570 = vmatmul.mubr.bf16.gmra.mxu1 %v8689_v17 }
 0x7a6   : > { %4579 = vmatprep.mubr.bf16.mxu1 %v8694_v9 }
 0x7ad   : > { %4580 = vmatmul.mubr.bf16.gmra.mxu1 %v8692_v53 }
 0x7f5   : > { %v4431_v10 = vpop.f32.mrf.mxu1 }
 0x7f6   : > { %v4432_v24 = vadd.f32 %v4431_v10, %v13748_v0 }
 0x7f7   : > { %v11846_v19 = vpop.f32.mrf.mxu1 }
 0x7f8   : > { %v4590_v25 = vmax.f32 %v4432_v24, 0.0 }
 0x7f9   : > { %v4435_v34 = vpop.f32.mrf.mxu1 }
 0x7fa   : > { %v4436_v21 = vadd.f32 %v4435_v34, %v13749_v26 }
 0x7fb   : > { %v11850_v6 = vpop.f32.mrf.mxu1 }
 0x7fc   : > { %v4592_v52 = vmax.f32 %v4436_v21, 0.0 }
 0x7fd   : > { %v4441_v12 = vpop.f32.mrf.mxu1 }
 0x7fe   : > { %v11852_v2 = vpack.c.bf16 %v4592_v52, %v4590_v25  ;;  %v4442_v13 = vadd.f32 %v4441_v12, %v13750_v48  ;;  %v13757_v25 = vld [vmem:[#allocation137_spill] sm:$0xff] }
 0x7ff   : > { %v11854_v56 = vpop.f32.mrf.mxu1 }
 0x800   : > { %v4594_v11 = vmax.f32 %v4442_v13, 0.0  ;;  %v13758_v13 = vld [vmem:[#allocation159_spill] sm:$0xff] }
 0x801   : > { %v4445_v63 = vpop.f32.mrf.mxu1 }
 0x802   : > { %v4446_v35 = vadd.f32 %v4445_v63, %v13751_v29 }
 0x803   : > { %v11858_v59 = vpop.f32.mrf.mxu1 }
 0x804   : > { %v4596_v1 = vmax.f32 %v4446_v35, 0.0 }
 0x805   : > { %v11860_v50 = vpop.f32.mrf.mxu1 }
 0x806   : > { %v11862_v4 = vpack.c.bf16 %v4596_v1, %v4594_v11 }
 0x807   : > { %v11864_v46 = vpop.f32.mrf.mxu1 }
 0x809   : > { %v11866_v42 = vpop.f32.mrf.mxu1 }
 0x80b   : > { %v11868_v57 = vpop.f32.mrf.mxu1 }
 0x80d   : > { %v11870_v36 = vpop.f32.mrf.mxu1 }
 0x80f   : > { %v11872_v7 = vpop.f32.mrf.mxu1 }
 0x811   : > { %v11874_v32 = vpop.f32.mrf.mxu1 }
 0x813   : > { %v4467_v33 = vpop.f32.mrf.mxu1 }
 0x815   : > { %v11876_v30 = vpop.f32.mrf.mxu1 }
 0x817   : > { %v4473_v14 = vpop.f32.mrf.mxu1 }
 0x819   : > { %v4475_v16 = vpop.f32.mrf.mxu1 }
 0x81b   : > { %v4477_v27 = vpop.f32.mrf.mxu1 }
 0x81d   : > { %v4481_v23 = vpop.f32.mrf.mxu1 }
 0x81f   : > { %v4483_v47 = vpop.f32.mrf.mxu1 }
 0x820   : > { %v4484_v52 = vadd.f32 %v4483_v47, %v13757_v25 }
 0x821   : > { %v4485_v39 = vpop.f32.mrf.mxu1 }
 0x822   : > { %v4486_v11 = vadd.f32 %v4485_v39, %v13756_v31 }
 0x823   : > { %v4487_v44 = vpop.f32.mrf.mxu1 }
 0x824   : > { %v4488_v17 = vadd.f32 %v4487_v44, %v13756_v31  ;;  %v13759_v44 = vld [vmem:[#allocation138_spill] sm:$0xff]  ;;  %v13763_v31 = vld [vmem:[#allocation141_spill] sm:$0xff] }
 0x825   : > { %v4491_v3 = vpop.f32.mrf.mxu1 }
 0x826   : > { %v4492_v24 = vadd.f32 %v4491_v3, %v13755_v54 }
 0x827   : > { %v4493_v58 = vpop.f32.mrf.mxu1 }
 0x828   : > { %v4494_v20 = vadd.f32 %v4493_v58, %v13755_v54  ;;  %v13762_v54 = vld [vmem:[#allocation140_spill] sm:$0xff] }
 0x829   : > { %v4495_v5 = vpop.f32.mrf.mxu1 }
 0x82a   : > { %v4496_v49 = vadd.f32 %v4495_v5, %v13752_v41  ;;  %v4615_v12 = vmax.f32 %v4494_v20, 0.0  ;;  %v4478_v5 = vadd.f32 %v4477_v27, %v13759_v44  ;;  %v4612_v27 = vmax.f32 %v4486_v11, 0.0 }
 0x82b   : > { %v4497_v51 = vpop.f32.mrf.mxu1  ;;  %v4468_v20 = vadd.f32 %v4467_v33, %v13762_v54  ;;  %v4466_v33 = vadd.f32 %v11874_v32, %v13762_v54  ;;  %v4434_v54 = vadd.f32 %v11846_v19, %v13748_v0 }
 0x82c   : > { %v4498_v61 = vadd.f32 %v4497_v51, %v13752_v41  ;;  %v4616_v1 = vmax.f32 %v4496_v49, 0.0  ;;  %v4613_v51 = vmax.f32 %v4488_v17, 0.0  ;;  %v4614_v41 = vmax.f32 %v4492_v24, 0.0 }
 0x82d   : > { %v4501_v60 = vpop.f32.mrf.mxu1  ;;  %v4464_v17 = vadd.f32 %v11872_v7, %v13763_v31  ;;  %v4462_v7 = vadd.f32 %v11870_v36, %v13763_v31  ;;  %v4448_v36 = vadd.f32 %v11858_v59, %v13751_v29  ;;  %v4438_v29 = vadd.f32 %v11850_v6, %v13749_v26 }
 0x82e   : > { %v4502_v28 = vadd.f32 %v4501_v60, %v13753_v45  ;;  %v4617_v9 = vmax.f32 %v4498_v61, 0.0  ;;  %v13760_v60 = vld [vmem:[#allocation158_spill] sm:$0xff]  ;;  %v13761_v61 = vld [vmem:[#allocation139_spill] sm:$0xff]  ;;  %v4591_v26 = vmax.f32 %v4434_v54, 0.0 }
 0x82f   : > { %v4503_v15 = vpop.f32.mrf.mxu1  ;;  %v4597_v59 = vmax.f32 %v4448_v36, 0.0 }
 0x830   : > { %v4504_v43 = vadd.f32 %v4503_v15, %v13753_v45  ;;  %v4618_v34 = vmax.f32 %v4502_v28, 0.0  ;;  %v4700_v3 = vpack.c.bf16 %v4617_v9, %v4615_v12  ;;  %v4474_v45 = vadd.f32 %v4473_v14, %v13761_v61  ;;  %v13764_v9 = vld [vmem:[#allocation157_spill] sm:$0xff]  ;;  %v13766_v12 = vld [vmem:[#allocation156_spill] sm:$0xff] }
 0x831   : > { %v4505_v37 = vpop.f32.mrf.mxu1  ;;  %v4699_v28 = vpack.c.bf16 %v4616_v1, %v4614_v41 }
 0x832   : > { %v4506_v38 = vadd.f32 %v4505_v37, %v13754_v22  ;;  %v4619_v53 = vmax.f32 %v4504_v43, 0.0  ;;  %v4482_v37 = vadd.f32 %v4481_v23, %v13757_v25  ;;  %v4611_v43 = vmax.f32 %v4484_v52, 0.0  ;;  %v13765_v25 = vld [vmem:[#allocation142_spill] sm:$0xff] }
 0x833   : > { %v4507_v62 = vpop.f32.mrf.mxu1  ;;  %v4605_v52 = vmax.f32 %v4468_v20, 0.0 }
 0x834   : > { %v4508_v18 = vadd.f32 %v4507_v62, %v13754_v22  ;;  %v4620_v55 = vmax.f32 %v4506_v38, 0.0  ;;  %v4476_v38 = vadd.f32 %v4475_v16, %v13759_v44  ;;  %v4698_v23 = vpack.c.bf16 %v4613_v51, %v4611_v43 }
 0x835   : > { %v4511_v40 = vpop.f32.mrf.mxu1  ;;  %v4607_v16 = vmax.f32 %v4474_v45, 0.0  ;;  %v4604_v51 = vmax.f32 %v4466_v33, 0.0  ;;  %v4602_v45 = vmax.f32 %v4462_v7, 0.0 }
 0x836   : > { %v4621_v10 = vmax.f32 %v4508_v18, 0.0  ;;  %v4512_v63 = vadd.f32 %v4511_v40, %v13758_v13  ;;  %v4701_v8 = vpack.c.bf16 %v4620_v55, %v4618_v34  ;;  %v4609_v18 = vmax.f32 %v4478_v5, 0.0 }
 0x837   : > { %v11890_v21 = vpop.f32.mrf.mxu1  ;;  %v4472_v55 = vadd.f32 %v11876_v30, %v13761_v61  ;;  %v4610_v40 = vmax.f32 %v4482_v37, 0.0  ;;  %v4458_v30 = vadd.f32 %v11868_v57, %v13765_v25  ;;  %v4456_v57 = vadd.f32 %v11866_v42, %v13765_v25 }
 0x838   : > { %v4702_v35 = vpack.c.bf16 %v4621_v10, %v4619_v53  ;;  %v4622_v39 = vmax.f32 %v4512_v63, 0.0  ;;  %v4608_v10 = vmax.f32 %v4476_v38, 0.0  ;;  %v4444_v42 = vadd.f32 %v11854_v56, %v13750_v48 }
 0x839   : > { %v4515_v58 = vpop.f32.mrf.mxu1  ;;  %v4697_v24 = vpack.c.bf16 %v4612_v27, %v4610_v40  ;;  %v4606_v11 = vmax.f32 %v4472_v55, 0.0  ;;  %v4601_v37 = vmax.f32 %v4458_v30, 0.0  ;;  %v4693_v38 = vpack.c.bf16 %v4604_v51, %v4602_v45 }
 0x83a   : > { %v4516_v15 = vadd.f32 %v4515_v58, %v13760_v60  ;;  %5072 = vmatprep.subr.bf16.mxu0 %v4702_v35  ;;  %v4696_v35 = vpack.c.bf16 %v4609_v18, %v4607_v16  ;;  %v4603_v58 = vmax.f32 %v4464_v17, 0.0  ;;  %v4595_v20 = vmax.f32 %v4444_v42, 0.0 }
 0x83b   : > { %v11898_v47 = vpop.f32.mrf.mxu1  ;;  %5073 = vmatpush1.bf16.msra.mxu0 %v4701_v8  ;;  %v13767_v8 = vld [vmem:[#allocation143_spill] sm:$0xff]  ;;  %v4593_v18 = vmax.f32 %v4438_v29, 0.0  ;;  %v13773_v29 = vld [vmem:[#allocation153_spill] sm:$0xff] }
 0x83c   : > { %v4624_v22 = vmax.f32 %v4516_v15, 0.0  ;;  %5074 = vmatprep.subr.bf16.mxu0 %v4700_v3  ;;  %v4454_v32 = vadd.f32 %v11864_v46, %v13767_v8  ;;  %v4695_v15 = vpack.c.bf16 %v4608_v10, %v4606_v11  ;;  %v4694_v61 = vpack.c.bf16 %v4605_v52, %v4603_v58  ;;  %v13768_v11 = vld [vmem:[#allocation150_spill] sm:$0xff]  ;;  %v13770_v58 = vld [vmem:[#allocation148_spill] sm:$0xff] }
 0x83d   : > { %v4521_v62 = vpop.f32.mrf.mxu1  ;;  %v4452_v46 = vadd.f32 %v11860_v50, %v13767_v8  ;;  %v4688_v40 = vpack.c.bf16 %v4593_v18, %v4591_v26  ;;  %v13769_v8 = vld [vmem:[#allocation149_spill] sm:$0xff] }
 0x83e   : > { %v11903_v49 = vpack.c.bf16 %v4624_v22, %v4622_v39  ;;  %v4522_v53 = vadd.f32 %v4521_v62, %v13764_v9  ;;  %v4599_v39 = vmax.f32 %v4454_v32, 0.0  ;;  %v4600_v22 = vmax.f32 %v4456_v57, 0.0  ;;  %v13771_v57 = vld [vmem:[#allocation151_spill] sm:$0xff]  ;;  %v13774_v18 = vld [vmem:[#allocation45_spill] sm:$0xff] }
 0x83f   : > { %v11907_v14 = vpop.f32.mrf.mxu1  ;;  %5075 = vmatpush1.bf16.msra.mxu0 %v4699_v28  ;;  %v4598_v62 = vmax.f32 %v4452_v46, 0.0 }
 0x840   : > { %5076 = vmatprep.subr.bf16.mxu0 %v4698_v23  ;;  %v4626_v44 = vmax.f32 %v4522_v53, 0.0  ;;  %v4692_v28 = vpack.c.bf16 %v4601_v37, %v4599_v39  ;;  %v4690_v23 = vpack.c.bf16 %v4597_v59, %v4595_v20 }
 0x841   : > { %v4525_v34 = vpop.f32.mrf.mxu1  ;;  %v4691_v56 = vpack.c.bf16 %v4600_v22, %v4598_v62 }
 0x842   : > { %v4526_v63 = vadd.f32 %v4525_v34, %v13766_v12 }
 0x843   : > { %v11919_v1 = vpop.f32.mrf.mxu1  ;;  %5077 = vmatpush1.bf16.msra.mxu0 %v4697_v24 }
 0x844   : > { %v4628_v5 = vmax.f32 %v4526_v63, 0.0  ;;  %5078 = vmatprep.subr.bf16.mxu0 %v4696_v35 }
 0x845   : > { %v11925_v3 = vpop.f32.mrf.mxu1 }
 0x846   : > { %v11929_v41 = vpack.c.bf16 %v4628_v5, %v4626_v44 }
 0x847   : > { %v11933_v43 = vpop.f32.mrf.mxu1  ;;  %5079 = vmatpush1.bf16.msra.mxu0 %v4695_v15 }
 0x848   : > { %5080 = vmatprep.subr.bf16.mxu0 %v4694_v61  ;;  %v13772_v61 = vld [vmem:[#allocation152_spill] sm:$0xff] }
 0x849   : > { %v11937_v27 = vpop.f32.mrf.mxu1 }
 0x84b   : > { %v11941_v50 = vpop.f32.mrf.mxu1  ;;  %5081 = vmatpush1.bf16.msra.mxu0 %v4693_v38 }
 0x84c   : > { %5082 = vmatprep.subr.bf16.mxu0 %v4692_v28 }
 0x84d   : > { %v11945_v48 = vpop.f32.mrf.mxu1 }
 0x84f   : > { %v11947_v55 = vpop.f32.mrf.mxu1  ;;  %5083 = vmatpush1.bf16.msra.mxu0 %v4691_v56 }
 0x850   : > { %5084 = vmatprep.subr.bf16.mxu0 %v4690_v23 }
 0x851   : > { %v11949_v6 = vpop.f32.mrf.mxu1 }
 0x853   : > { %v4547_v31 = vpop.f32.mrf.mxu1  ;;  %5085 = vmatpush1.bf16.msra.mxu0 %v11862_v4 }
 0x854   : > { %5086 = vmatprep.subr.bf16.mxu0 %v4688_v40 }
 0x855   : > { %v4551_v19 = vpop.f32.mrf.mxu1 }
 0x857   : > { %v4553_v0 = vpop.f32.mrf.mxu1  ;;  %5087 = vmatpush1.bf16.msra.mxu0 %v11852_v2 }
 0x859   : > { %v4555_v17 = vpop.f32.mrf.mxu1 }
 0x85b   : > { %v4557_v16 = vpop.f32.mrf.mxu1 }
 0x85c   : > { %v4558_v23 = vadd.f32 %v4557_v16, %v13774_v18 }
 0x85d   : > { %v4561_v53 = vpop.f32.mrf.mxu1 }
 0x85f   : > { %v4563_v33 = vpop.f32.mrf.mxu1 }
 0x860   : > { %v4564_v59 = vadd.f32 %v4563_v33, %v13773_v29  ;;  %v4556_v33 = vadd.f32 %v4555_v17, %v13774_v18  ;;  %v8707_v18 = vld [vmem:[%s13423_s4 + $0x540] ss:$8 sps:$4 sm:$0xff]  }
 0x861   : > { %v4565_v10 = vpop.f32.mrf.mxu1 }
 0x862   : > { %v4566_v54 = vadd.f32 %v4565_v10, %v13772_v61  ;;  %v13776_v10 = vld [vmem:[#allocation154_spill] sm:$0xff] }
 0x863   : > { %v4567_v24 = vpop.f32.mrf.mxu1 }
 0x864   : > { %v4568_v46 = vadd.f32 %v4567_v24, %v13772_v61  ;;  %v4562_v24 = vadd.f32 %v4561_v53, %v13773_v29 }
 0x865   : > { %v4571_v34 = vpop.f32.mrf.mxu1 }
 0x866   : > { %v4572_v22 = vadd.f32 %v4571_v34, %v13771_v57  ;;  %v4645_v26 = vmax.f32 %v4568_v46, 0.0 }
 0x867   : > { %v4573_v25 = vpop.f32.mrf.mxu1 }
 0x868   : > { %v4574_v51 = vadd.f32 %v4573_v25, %v13771_v57  ;;  %v4646_v25 = vmax.f32 %v4572_v22, 0.0 }
 0x869   : > { %v4575_v30 = vpop.f32.mrf.mxu1 }
 0x86a   : > { %v4576_v36 = vadd.f32 %v4575_v30, %v13768_v11  ;;  %v4647_v28 = vmax.f32 %v4574_v51, 0.0  ;;  %v13775_v30 = vld [vmem:[#allocation44_spill] sm:$0xff] }
 0x86b   : > { %v4577_v52 = vpop.f32.mrf.mxu1  ;;  %v4554_v34 = vadd.f32 %v4553_v0, %v13775_v30  ;;  %v4552_v16 = vadd.f32 %v4551_v19, %v13775_v30  ;;  %v4546_v0 = vadd.f32 %v11949_v6, %v13776_v10  ;;  %v8716_v30 = vld [vmem:[%s13423_s4 + $0x570] ss:$8 sps:$4 sm:$0xff]  }
 0x86c   : > { %v4578_v4 = vadd.f32 %v4577_v52, %v13768_v11  ;;  %v4648_v20 = vmax.f32 %v4576_v36, 0.0  ;;  %v4643_v52 = vmax.f32 %v4564_v59, 0.0  ;;  %v4641_v11 = vmax.f32 %v4558_v23, 0.0  ;;  %v8712_v23 = vld [vmem:[%s13423_s4 + $0x554] ss:$8 sps:$4 sm:$0xff]  }
 0x86d   : > { %v4581_v63 = vpop.f32.mrf.mxu1  ;;  %v4638_v51 = vmax.f32 %v4552_v16, 0.0  ;;  %v8731_v16 = vld [vmem:[%s13423_s4 + $0x5c0] ss:$8 sps:$4 sm:$0xff]  }
 0x86e   : > { %v4582_v2 = vadd.f32 %v4581_v63, %v13769_v8  ;;  %v4649_v45 = vmax.f32 %v4578_v4, 0.0  ;;  %v4644_v63 = vmax.f32 %v4566_v54, 0.0  ;;  %v4714_v4 = vpack.c.bf16 %v4645_v26, %v4643_v52  ;;  %v8710_v26 = vld [vmem:[%s13423_s4 + $0x550] ss:$8 sps:$4 sm:$0xff]   ;;  %v8719_v52 = vld [vmem:[%s13423_s4 + $0x580] ss:$8 sps:$4 sm:$0xff]  }
 0x86f   : > { %v4583_v35 = vpop.f32.mrf.mxu1 }
 0x870   : > { %v4584_v32 = vadd.f32 %v4583_v35, %v13769_v8  ;;  %v4650_v38 = vmax.f32 %v4582_v2, 0.0  ;;  %v4716_v40 = vpack.c.bf16 %v4649_v45, %v4647_v28  ;;  %v4715_v35 = vpack.c.bf16 %v4648_v20, %v4646_v25  ;;  %v13778_v2 = vld [vmem:[#allocation39_spill] sm:$0xff] }
 0x871   : > { %v4585_v7 = vpop.f32.mrf.mxu1  ;;  %v4642_v8 = vmax.f32 %v4562_v24, 0.0  ;;  %v4536_v6 = vadd.f32 %v11937_v27, %v13778_v2  ;;  %v4518_v27 = vadd.f32 %v11898_v47, %v13760_v60  ;;  %v8695_v60 = vld [vmem:[%s13423_s4 + $0x500] ss:$8 sps:$4 sm:$0xff]   ;;  %v8703_v47 = vld [vmem:[%s13423_s4 + $0x524] ss:$8 sps:$4 sm:$0xff]  }
 0x872   : > { %v4586_v44 = vadd.f32 %v4585_v7, %v13770_v58  ;;  %v4651_v42 = vmax.f32 %v4584_v32, 0.0  ;;  %v4548_v7 = vadd.f32 %v4547_v31, %v13776_v10  ;;  %v13777_v32 = vld [vmem:[#allocation40_spill] sm:$0xff]  ;;  %v8713_v24 = vld [vmem:[%s13423_s4 + $0x560] ss:$8 sps:$4 sm:$0xff]  }
 0x873   : > { %v4587_v5 = vpop.f32.mrf.mxu1  ;;  %v4544_v53 = vadd.f32 %v11947_v55, %v13777_v32  ;;  %v4713_v17 = vpack.c.bf16 %v4644_v63, %v4642_v8  ;;  %v4542_v19 = vadd.f32 %v11945_v48, %v13777_v32  ;;  %v4632_v22 = vmax.f32 %v4536_v6, 0.0  ;;  %v8704_v20 = vld [vmem:[%s13423_s4 + $0x530] ss:$8 sps:$4 sm:$0xff]   ;;  %v8718_v25 = vld [vmem:[%s13423_s4 + $0x574] ss:$8 sps:$4 sm:$0xff]  }
 0x874   : > { %v4588_v15 = vadd.f32 %v4587_v5, %v13770_v58  ;;  %v4652_v37 = vmax.f32 %v4586_v44, 0.0  ;;  %v4639_v58 = vmax.f32 %v4554_v34, 0.0  ;;  %v4640_v44 = vmax.f32 %v4556_v33, 0.0  ;;  %v8721_v34 = vld [vmem:[%s13423_s4 + $0x584] ss:$8 sps:$4 sm:$0xff]  }
 0x875   : > { %v4538_v5 = vadd.f32 %v11941_v50, %v13778_v2  ;;  %v4637_v31 = vmax.f32 %v4548_v7, 0.0  ;;  %v4635_v36 = vmax.f32 %v4544_v53, 0.0  ;;  %v4528_v50 = vadd.f32 %v11919_v1, %v13766_v12  ;;  %v8724_v33 = vld [vmem:[%s13423_s4 + $0x594] ss:$8 sps:$4 sm:$0xff]   ;;  %v8722_v63 = vld [vmem:[%s13423_s4 + $0x590] ss:$8 sps:$4 sm:$0xff]  }
 0x876   : > { %v4653_v39 = vmax.f32 %v4588_v15, 0.0  ;;  %v4717_v56 = vpack.c.bf16 %v4652_v37, %v4650_v38  ;;  %v4712_v57 = vpack.c.bf16 %v4641_v11, %v4639_v58  ;;  %v13779_v15 = vld [vmem:[#allocation155_spill] sm:$0xff]  ;;  %v4636_v37 = vmax.f32 %v4546_v0, 0.0  ;;  %v8725_v10 = vld [vmem:[%s13423_s4 + $0x5a0] ss:$8 sps:$4 sm:$0xff]  }
 0x877   : > { %v4534_v55 = vadd.f32 %v11933_v43, %v13779_v15  ;;  %v4711_v61 = vpack.c.bf16 %v4640_v44, %v4638_v51  ;;  %v4633_v46 = vmax.f32 %v4538_v5, 0.0  ;;  %v4710_v45 = vpack.c.bf16 %v4637_v31, %v4635_v36  ;;  %v8730_v7 = vld [vmem:[%s13423_s4 + $0x5b4] ss:$8 sps:$4 sm:$0xff]   ;;  %v8728_v11 = vld [vmem:[%s13423_s4 + $0x5b0] ss:$8 sps:$4 sm:$0xff]   ;;  %v13780_v5 = vld [vmem:[#allocation30_spill] sm:$0xff] }
 0x878   : > { %v4718_v62 = vpack.c.bf16 %v4653_v39, %v4651_v42  ;;  %v4532_v48 = vadd.f32 %v11925_v3, %v13779_v15  ;;  %v4634_v42 = vmax.f32 %v4542_v19, 0.0  ;;  %v4524_v43 = vadd.f32 %v11907_v14, %v13764_v9  ;;  %v8736_v8 = vld [vmem:[%s13423_s4 + $0x5d4] ss:$8 sps:$4 sm:$0xff]   ;;  %v8734_v32 = vld [vmem:[%s13423_s4 + $0x5d0] ss:$8 sps:$4 sm:$0xff]  }
 0x879   : > { %v4631_v39 = vmax.f32 %v4534_v55, 0.0  ;;  %v4629_v29 = vmax.f32 %v4528_v50, 0.0  ;;  %v4514_v1 = vadd.f32 %v11890_v21, %v13758_v13  ;;  %v8700_v21 = vld [vmem:[%s13423_s4 + $0x514] ss:$8 sps:$4 sm:$0xff]   ;;  %v8698_v13 = vld [vmem:[%s13423_s4 + $0x510] ss:$8 sps:$4 sm:$0xff]  }
 0x87a   : > { %5088 = vmatprep.subr.bf16.mxu0 %v4718_v62  ;;  %v4709_v38 = vpack.c.bf16 %v4636_v37, %v4634_v42  ;;  %v4630_v12 = vmax.f32 %v4532_v48, 0.0  ;;  %v4627_v3 = vmax.f32 %v4524_v43, 0.0  ;;  %v4625_v62 = vmax.f32 %v4518_v27, 0.0  ;;  %v8739_v53 = vld [vmem:[%s13423_s4 + $0x5e4] ss:$8 sps:$4 sm:$0xff]   ;;  %v13782_v50 = vld [vmem:[#allocation28_spill] sm:$0xff] }
 0x87b   : > { %5089 = vmatpush2.bf16.msra.mxu0 %v4717_v56  ;;  %v4708_v59 = vpack.c.bf16 %v4633_v46, %v4631_v39  ;;  %v4623_v14 = vmax.f32 %v4514_v1, 0.0  ;;  %v8709_v56 = vld [vmem:[%s13423_s4 + $0x544] ss:$8 sps:$4 sm:$0xff]   ;;  %v8737_v58 = vld [vmem:[%s13423_s4 + $0x5e0] ss:$8 sps:$4 sm:$0xff]   ;;  %v12111_v1 = vpop.permute.xlu0 %4904 }
 0x87c   : > { %5090 = vmatprep.subr.bf16.mxu0 %v4716_v40  ;;  %v4707_v28 = vpack.c.bf16 %v4632_v22, %v4630_v12  ;;  %v4706_v54 = vpack.c.bf16 %v4629_v29, %v4627_v3  ;;  %v8715_v40 = vld [vmem:[%s13423_s4 + $0x564] ss:$8 sps:$4 sm:$0xff]   ;;  %v8742_v0 = vld [vmem:[%s13423_s4 + $0x5f4] ss:$8 sps:$4 sm:$0xff]   ;;  %v8740_v44 = vld [vmem:[%s13423_s4 + $0x5f0] ss:$8 sps:$4 sm:$0xff]  }
 0x87d   : > { %v4704_v9 = vpack.c.bf16 %v4625_v62, %v4623_v14  ;;  %v13781_v19 = vld [vmem:[#allocation29_spill] sm:$0xff] }
 0x87e   : > { %v13783_v48 = vld [vmem:[#allocation25_spill] sm:$0xff] }
 0x87f   : > { %5091 = vmatpush2.bf16.msra.mxu0 %v4715_v35  ;;  %v8727_v35 = vld [vmem:[%s13423_s4 + $0x5a4] ss:$8 sps:$4 sm:$0xff]   ;;  %v12121_v14 = vpop.permute.xlu0 %4894 }
 0x880   : > { %5092 = vmatprep.subr.bf16.mxu0 %v4714_v4  ;;  %v8733_v4 = vld [vmem:[%s13423_s4 + $0x5c4] ss:$8 sps:$4 sm:$0xff]  }
 0x883   : > { %5093 = vmatpush2.bf16.msra.mxu0 %v4713_v17 }
 0x884   : > { %5094 = vmatprep.subr.bf16.mxu0 %v4712_v57 }
 0x887   : > { %5095 = vmatpush2.bf16.msra.mxu0 %v4711_v61 }
 0x888   : > { %5096 = vmatprep.subr.bf16.mxu0 %v4710_v45 }
 0x88b   : > { %5097 = vmatpush2.bf16.msra.mxu0 %v4709_v38 }
 0x88c   : > { %5098 = vmatprep.subr.bf16.mxu0 %v4708_v59 }
 0x88f   : > { %5099 = vmatpush2.bf16.msra.mxu0 %v4707_v28  ;;  %v12115_v28 = vpop.permute.xlu1 %4909 }
 0x890   : > { %5100 = vmatprep.subr.bf16.mxu0 %v4706_v54 }
 0x893   : > { %5101 = vmatpush2.bf16.msra.mxu0 %v11929_v41  ;;  %v8706_v41 = vld [vmem:[%s13423_s4 + $0x534] ss:$8 sps:$4 sm:$0xff]  }
 0x894   : > { %5102 = vmatprep.subr.bf16.mxu0 %v4704_v9 }
 0x897   : > { %5103 = vmatpush2.bf16.msra.mxu0 %v11903_v49  ;;  %v8701_v49 = vld [vmem:[%s13423_s4 + $0x520] ss:$8 sps:$4 sm:$0xff]  }
 0x89a   : > { %5105 = vmatmul.mubr.bf16.vlgmr.msra.gmra.mxu0 %v8695_v60  ;;  %v12125_v60 = vpop.permute.xlu1 %4899 }
 0x89b   : > { %5114 = vmatprep.mubr.bf16.mxu0 %v8700_v21 }
 0x8a2   : > { %5115 = vmatmul.mubr.bf16.gmra.mxu0 %v8698_v13 }
 0x8a3   : > { %5124 = vmatprep.mubr.bf16.mxu0 %v8703_v47  ;;  %v8745_v47 = vld [vmem:[%s13423_s4 + $0x604] ss:$8 sps:$4 sm:$0xff]  }
 0x8a4   : > { %5779 = vmatprep.mubr.bf16.mxu1 %v8745_v47 }
 0x8aa   : > { %5125 = vmatmul.mubr.bf16.gmra.mxu0 %v8701_v49  ;;  %v12132_v49 = vpop.permute.xlu0 %4884 }
 0x8ab   : > { %5134 = vmatprep.mubr.bf16.mxu0 %v8706_v41 }
 0x8b2   : > { %5135 = vmatmul.mubr.bf16.gmra.mxu0 %v8704_v20  ;;  %v12136_v20 = vpop.permute.xlu1 %4889 }
 0x8b3   : > { %5144 = vmatprep.mubr.bf16.mxu0 %v8709_v56 }
 0x8ba   : > { %5145 = vmatmul.mubr.bf16.gmra.mxu0 %v8707_v18 }
 0x8bb   : > { %5154 = vmatprep.mubr.bf16.mxu0 %v8712_v23  ;;  %v12138_v23 = vpop.permute.xlu0 %4874 }
 0x8c2   : > { %5155 = vmatmul.mubr.bf16.gmra.mxu0 %v8710_v26 }
 0x8c3   : > { %5164 = vmatprep.mubr.bf16.mxu0 %v8715_v40  ;;  %v12140_v40 = vpop.permute.xlu1 %4879 }
 0x8ca   : > { %5165 = vmatmul.mubr.bf16.gmra.mxu0 %v8713_v24 }
 0x8cb   : > { %5174 = vmatprep.mubr.bf16.mxu0 %v8718_v25 }
 0x8d2   : > { %5175 = vmatmul.mubr.bf16.gmra.mxu0 %v8716_v30  ;;  %v12142_v30 = vpop.permute.xlu0 %4864 }
 0x8d3   : > { %5184 = vmatprep.mubr.bf16.mxu0 %v8721_v34  ;;  %13784 = vst [vmem:[#allocation75_spill] sm:$0xff] %v12142_v30 }
 0x8da   : > { %5185 = vmatmul.mubr.bf16.gmra.mxu0 %v8719_v52  ;;  %v12144_v52 = vpop.permute.xlu1 %4869 }
 0x8db   : > { %5194 = vmatprep.mubr.bf16.mxu0 %v8724_v33  ;;  %13785 = vst [vmem:[#allocation31_spill] sm:$0xff] %v12144_v52 }
 0x8e2   : > { %5195 = vmatmul.mubr.bf16.gmra.mxu0 %v8722_v63 }
 0x8e3   : > { %5204 = vmatprep.mubr.bf16.mxu0 %v8727_v35  ;;  %v12146_v35 = vpop.permute.xlu0 %4854 }
 0x8e4   : > { %13786 = vst [vmem:[#allocation74_spill] sm:$0xff] %v12146_v35 }
 0x8ea   : > { %5205 = vmatmul.mubr.bf16.gmra.mxu0 %v8725_v10 }
 0x8eb   : > { %5214 = vmatprep.mubr.bf16.mxu0 %v8730_v7  ;;  %v12148_v7 = vpop.permute.xlu1 %4859 }
 0x8ec   : > { %13787 = vst [vmem:[#allocation32_spill] sm:$0xff] %v12148_v7 }
 0x8f2   : > { %5215 = vmatmul.mubr.bf16.gmra.mxu0 %v8728_v11 }
 0x8f3   : > { %5224 = vmatprep.mubr.bf16.mxu0 %v8733_v4 }
 0x8fa   : > { %5225 = vmatmul.mubr.bf16.gmra.mxu0 %v8731_v16  ;;  %v12150_v16 = vpop.permute.xlu0 %4844 }
 0x8fb   : > { %5234 = vmatprep.mubr.bf16.mxu0 %v8736_v8 }
 0x8fe   : > { %v12162_v35 = vpop.permute.xlu0 %4834 }
 0x902   : > { %5235 = vmatmul.mubr.bf16.gmra.mxu0 %v8734_v32  ;;  %v13788_v32 = vld [vmem:[#allocation162_spill] sm:$0xff] }
 0x903   : > { %5244 = vmatprep.mubr.bf16.mxu0 %v8739_v53 }
 0x90a   : > { %5245 = vmatmul.mubr.bf16.gmra.mxu0 %v8737_v58  ;;  %v13789_v58 = vld [vmem:[#allocation161_spill] sm:$0xff] }
 0x90b   : > { %5254 = vmatprep.mubr.bf16.mxu0 %v8742_v0 }
 0x912   : > { %5255 = vmatmul.mubr.bf16.gmra.mxu0 %v8740_v44  ;;  %v13790_v44 = vld [vmem:[#allocation160_spill] sm:$0xff] }
 0x95a   : > { %v5106_v17 = vpop.f32.mrf.mxu0 }
 0x95b   : > { %v5107_v31 = vadd.f32 %v5106_v17, %v13780_v5 }
 0x95c   : > { %v12087_v2 = vpop.f32.mrf.mxu0 }
 0x95d   : > { %v5265_v55 = vmax.f32 %v5107_v31, 0.0  ;;  %v12155_v31 = vpop.permute.xlu1 %4849 }
 0x95e   : > { %v5110_v57 = vpop.f32.mrf.mxu0 }
 0x95f   : > { %v5111_v51 = vadd.f32 %v5110_v57, %v13781_v19 }
 0x960   : > { %v12091_v15 = vpop.f32.mrf.mxu0 }
 0x961   : > { %v5267_v36 = vmax.f32 %v5111_v51, 0.0 }
 0x962   : > { %v5116_v6 = vpop.f32.mrf.mxu0 }
 0x963   : > { %v12093_v37 = vpack.c.bf16 %v5267_v36, %v5265_v55  ;;  %v5117_v46 = vadd.f32 %v5116_v6, %v13782_v50  ;;  %v13791_v55 = vld [vmem:[#allocation163_spill] sm:$0xff] }
 0x964   : > { %v12095_v61 = vpop.f32.mrf.mxu0 }
 0x965   : > { %v5269_v39 = vmax.f32 %v5117_v46, 0.0 }
 0x966   : > { %v5120_v45 = vpop.f32.mrf.mxu0 }
 0x967   : > { %v5121_v42 = vadd.f32 %v5120_v45, %v13783_v48 }
 0x968   : > { %v12099_v43 = vpop.f32.mrf.mxu0 }
 0x969   : > { %v5271_v22 = vmax.f32 %v5121_v42, 0.0 }
 0x96a   : > { %v12101_v38 = vpop.f32.mrf.mxu0 }
 0x96b   : > { %v12103_v27 = vpack.c.bf16 %v5271_v22, %v5269_v39  ;;  %v13792_v39 = vld [vmem:[#allocation164_spill] sm:$0xff] }
 0x96c   : > { %v12105_v29 = vpop.f32.mrf.mxu0 }
 0x96e   : > { %v12107_v59 = vpop.f32.mrf.mxu0 }
 0x970   : > { %v12109_v12 = vpop.f32.mrf.mxu0 }
 0x972   : > { %v12113_v3 = vpop.f32.mrf.mxu0 }
 0x974   : > { %v12117_v62 = vpop.f32.mrf.mxu0 }
 0x976   : > { %v12119_v54 = vpop.f32.mrf.mxu0 }
 0x978   : > { %v12123_v9 = vpop.f32.mrf.mxu0 }
 0x97a   : > { %v12127_v21 = vpop.f32.mrf.mxu0 }
 0x97c   : > { %v5148_v13 = vpop.f32.mrf.mxu0 }
 0x97e   : > { %v12134_v41 = vpop.f32.mrf.mxu0 }
 0x980   : > { %v5152_v56 = vpop.f32.mrf.mxu0 }
 0x982   : > { %v5156_v18 = vpop.f32.mrf.mxu0 }
 0x984   : > { %v5158_v26 = vpop.f32.mrf.mxu0 }
 0x986   : > { %v5160_v24 = vpop.f32.mrf.mxu0 }
 0x988   : > { %v5162_v25 = vpop.f32.mrf.mxu0 }
 0x989   : > { %v5163_v22 = vadd.f32 %v5162_v25, %v13792_v39  ;;  %v5161_v25 = vadd.f32 %v5160_v24, %v13792_v39 }
 0x98a   : > { %v5166_v34 = vpop.f32.mrf.mxu0 }
 0x98b   : > { %v5288_v52 = vmax.f32 %v5163_v22, 0.0  ;;  %v13796_v22 = vld [vmem:[#allocation168_spill] sm:$0xff] }
 0x98c   : > { %v5168_v33 = vpop.f32.mrf.mxu0 }
 0x98d   : > { %v5169_v36 = vadd.f32 %v5168_v33, %v13791_v55 }
 0x98e   : > { %v5170_v63 = vpop.f32.mrf.mxu0 }
 0x98f   : > { %v5171_v46 = vadd.f32 %v5170_v63, %v13788_v32  ;;  %v5290_v30 = vmax.f32 %v5169_v36, 0.0 }
 0x990   : > { %v5172_v10 = vpop.f32.mrf.mxu0 }
 0x991   : > { %v5173_v53 = vadd.f32 %v5172_v10, %v13788_v32  ;;  %v12169_v32 = vpop.permute.xlu1 %4839 }
 0x992   : > { %v5176_v11 = vpop.f32.mrf.mxu0 }
 0x993   : > { %v5177_v57 = vadd.f32 %v5176_v11, %v13789_v58  ;;  %v5292_v47 = vmax.f32 %v5173_v53, 0.0  ;;  %v5291_v53 = vmax.f32 %v5171_v46, 0.0 }
 0x994   : > { %v5178_v4 = vpop.f32.mrf.mxu0 }
 0x995   : > { %v5179_v0 = vadd.f32 %v5178_v4, %v13789_v58  ;;  %v5293_v7 = vmax.f32 %v5177_v57, 0.0  ;;  %v13793_v58 = vld [vmem:[#allocation165_spill] sm:$0xff]  ;;  %v5375_v57 = vpack.c.bf16 %v5292_v47, %v5290_v30  ;;  %v5143_v30 = vadd.f32 %v12123_v9, %v13796_v22 }
 0x996   : > { %v5180_v8 = vpop.f32.mrf.mxu0  ;;  %v5159_v33 = vadd.f32 %v5158_v26, %v13793_v58  ;;  %v5157_v26 = vadd.f32 %v5156_v18, %v13793_v58  ;;  %v5141_v9 = vadd.f32 %v12119_v54, %v13796_v22 }
 0x997   : > { %v5181_v17 = vadd.f32 %v5180_v8, %v13790_v44  ;;  %v5294_v10 = vmax.f32 %v5179_v0, 0.0  ;;  %v5167_v8 = vadd.f32 %v5166_v34, %v13791_v55 }
 0x998   : > { %v5182_v51 = vpop.f32.mrf.mxu0  ;;  %v5285_v58 = vmax.f32 %v5157_v26, 0.0 }
 0x999   : > { %v5183_v6 = vadd.f32 %v5182_v51, %v13790_v44  ;;  %v5295_v45 = vmax.f32 %v5181_v17, 0.0  ;;  %v13794_v51 = vld [vmem:[#allocation166_spill] sm:$0xff]  ;;  %v5289_v55 = vmax.f32 %v5167_v8, 0.0 }
 0x99a   : > { %v5186_v42 = vpop.f32.mrf.mxu0 }
 0x99b   : > { %v5296_v4 = vmax.f32 %v5183_v6, 0.0  ;;  %v5187_v44 = vadd.f32 %v5186_v42, %v12162_v35  ;;  %v5376_v0 = vpack.c.bf16 %v5295_v45, %v5293_v7  ;;  %v5153_v6 = vadd.f32 %v5152_v56, %v13794_v51  ;;  %v13795_v42 = vld [vmem:[#allocation167_spill] sm:$0xff] }
 0x99c   : > { %v12165_v11 = vpop.f32.mrf.mxu0  ;;  %v5151_v56 = vadd.f32 %v12134_v41, %v13794_v51  ;;  %v5287_v7 = vmax.f32 %v5161_v25, 0.0  ;;  %v5374_v45 = vpack.c.bf16 %v5291_v53, %v5289_v55  ;;  %v5280_v51 = vmax.f32 %v5143_v30, 0.0  ;;  %v13799_v55 = vld [vmem:[#allocation26_spill] sm:$0xff] }
 0x99d   : > { %v5377_v63 = vpack.c.bf16 %v5296_v4, %v5294_v10  ;;  %v5149_v10 = vadd.f32 %v5148_v13, %v13795_v42  ;;  %v5286_v4 = vmax.f32 %v5159_v33, 0.0  ;;  %v5297_v24 = vmax.f32 %v5187_v44, 0.0  ;;  %v13797_v44 = vld [vmem:[#allocation169_spill] sm:$0xff] }
 0x99e   : > { %v5190_v17 = vpop.f32.mrf.mxu0  ;;  %v5284_v18 = vmax.f32 %v5153_v6, 0.0  ;;  %v5147_v13 = vadd.f32 %v12127_v21, %v13795_v42  ;;  %v5139_v41 = vadd.f32 %v12117_v62, %v13797_v44  ;;  %v5283_v53 = vmax.f32 %v5151_v56, 0.0 }
 0x99f   : > { %v5191_v34 = vadd.f32 %v5190_v17, %v12169_v32  ;;  %5747 = vmatprep.subr.bf16.mxu1 %v5377_v63  ;;  %v5373_v8 = vpack.c.bf16 %v5288_v52, %v5286_v4  ;;  %v5282_v63 = vmax.f32 %v5149_v10, 0.0  ;;  %v13798_v17 = vld [vmem:[#allocation27_spill] sm:$0xff]  ;;  %v5137_v62 = vadd.f32 %v12113_v3, %v13797_v44 }
 0x9a0   : > { %v12175_v36 = vpop.f32.mrf.mxu0  ;;  %5748 = vmatpush1.bf16.msra.mxu1 %v5376_v0  ;;  %v5372_v0 = vpack.c.bf16 %v5287_v7, %v5285_v58  ;;  %v5133_v21 = vadd.f32 %v12109_v12, %v13798_v17  ;;  %v5129_v54 = vadd.f32 %v12105_v29, %v13799_v55  ;;  %v5278_v42 = vmax.f32 %v5139_v41, 0.0 }
 0x9a1   : > { %v5299_v46 = vmax.f32 %v5191_v34, 0.0  ;;  %5749 = vmatprep.subr.bf16.mxu1 %v5375_v57  ;;  %v5371_v34 = vpack.c.bf16 %v5284_v18, %v5282_v63  ;;  %v5281_v57 = vmax.f32 %v5147_v13, 0.0  ;;  %v5131_v12 = vadd.f32 %v12107_v59, %v13798_v17 }
 0x9a2   : > { %v5196_v39 = vpop.f32.mrf.mxu0  ;;  %v5123_v3 = vadd.f32 %v12099_v43, %v13783_v48  ;;  %v5276_v7 = vmax.f32 %v5133_v21, 0.0  ;;  %v5127_v29 = vadd.f32 %v12101_v38, %v13799_v55  ;;  %v5277_v22 = vmax.f32 %v5137_v62, 0.0 }
 0x9a3   : > { %v12182_v47 = vpack.c.bf16 %v5299_v46, %v5297_v24  ;;  %v5197_v25 = vadd.f32 %v5196_v39, %v12150_v16  ;;  %v5279_v24 = vmax.f32 %v5141_v9, 0.0  ;;  %v5370_v46 = vpack.c.bf16 %v5283_v53, %v5281_v57 }
 0x9a4   : > { %v12186_v33 = vpop.f32.mrf.mxu0  ;;  %5750 = vmatpush1.bf16.msra.mxu1 %v5374_v45  ;;  %v5369_v39 = vpack.c.bf16 %v5280_v51, %v5278_v42  ;;  %v5119_v59 = vadd.f32 %v12095_v61, %v13782_v50  ;;  %v5274_v18 = vmax.f32 %v5129_v54, 0.0  ;;  %v5113_v48 = vadd.f32 %v12091_v15, %v13781_v19 }
 0x9a5   : > { %5751 = vmatprep.subr.bf16.mxu1 %v5373_v8  ;;  %v5301_v10 = vmax.f32 %v5197_v25, 0.0  ;;  %v5275_v8 = vmax.f32 %v5131_v12, 0.0  ;;  %v5368_v13 = vpack.c.bf16 %v5279_v24, %v5277_v22  ;;  %v5272_v43 = vmax.f32 %v5123_v3, 0.0 }
 0x9a6   : > { %v5200_v52 = vpop.f32.mrf.mxu0  ;;  %v5367_v44 = vpack.c.bf16 %v5276_v7, %v5274_v18  ;;  %v5273_v41 = vmax.f32 %v5127_v29, 0.0  ;;  %v5109_v63 = vadd.f32 %v12087_v2, %v13780_v5  ;;  %v5270_v25 = vmax.f32 %v5119_v59, 0.0 }
 0x9a7   : > { %v5201_v6 = vadd.f32 %v5200_v52, %v12155_v31  ;;  %v5268_v9 = vmax.f32 %v5113_v48, 0.0 }
 0x9a8   : > { %v12198_v26 = vpop.f32.mrf.mxu0  ;;  %5752 = vmatpush1.bf16.msra.mxu1 %v5372_v0  ;;  %v5366_v61 = vpack.c.bf16 %v5275_v8, %v5273_v41  ;;  %v5365_v53 = vpack.c.bf16 %v5272_v43, %v5270_v25  ;;  %v5266_v19 = vmax.f32 %v5109_v63, 0.0 }
 0x9a9   : > { %v5303_v4 = vmax.f32 %v5201_v6, 0.0  ;;  %5753 = vmatprep.subr.bf16.mxu1 %v5371_v34 }
 0x9aa   : > { %v12204_v56 = vpop.f32.mrf.mxu0  ;;  %v5363_v52 = vpack.c.bf16 %v5268_v9, %v5266_v19 }
 0x9ab   : > { %v12208_v45 = vpack.c.bf16 %v5303_v4, %v5301_v10 }
 0x9ac   : > { %v12212_v30 = vpop.f32.mrf.mxu0  ;;  %5754 = vmatpush1.bf16.msra.mxu1 %v5370_v46 }
 0x9ad   : > { %5755 = vmatprep.subr.bf16.mxu1 %v5369_v39 }
 0x9ae   : > { %v12216_v58 = vpop.f32.mrf.mxu0 }
 0x9b0   : > { %v12220_v38 = vpop.f32.mrf.mxu0  ;;  %5756 = vmatpush1.bf16.msra.mxu1 %v5368_v13 }
 0x9b1   : > { %5757 = vmatprep.subr.bf16.mxu1 %v5367_v44 }
 0x9b2   : > { %v12224_v50 = vpop.f32.mrf.mxu0 }
 0x9b4   : > { %v12226_v0 = vpop.f32.mrf.mxu0  ;;  %5758 = vmatpush1.bf16.msra.mxu1 %v5366_v61 }
 0x9b5   : > { %5759 = vmatprep.subr.bf16.mxu1 %v5365_v53 }
 0x9b6   : > { %v12228_v15 = vpop.f32.mrf.mxu0 }
 0x9b8   : > { %v5222_v17 = vpop.f32.mrf.mxu0  ;;  %5760 = vmatpush1.bf16.msra.mxu1 %v12103_v27 }
 0x9b9   : > { %5761 = vmatprep.subr.bf16.mxu1 %v5363_v52 }
 0x9ba   : > { %v5226_v2 = vpop.f32.mrf.mxu0 }
 0x9bc   : > { %v5228_v5 = vpop.f32.mrf.mxu0  ;;  %5762 = vmatpush1.bf16.msra.mxu1 %v12093_v37 }
 0x9be   : > { %v5230_v21 = vpop.f32.mrf.mxu0 }
 0x9c0   : > { %v5232_v51 = vpop.f32.mrf.mxu0 }
 0x9c2   : > { %v5236_v6 = vpop.f32.mrf.mxu0 }
 0x9c3   : > { %v5237_v19 = vadd.f32 %v5236_v6, %v12132_v49 }
 0x9c4   : > { %v5238_v34 = vpop.f32.mrf.mxu0 }
 0x9c5   : > { %v5239_v41 = vadd.f32 %v5238_v34, %v12132_v49  ;;  %v5231_v34 = vadd.f32 %v5230_v21, %v12140_v40  ;;  %v13802_v21 = vld [vmem:[#allocation32_spill] sm:$0xff] }
 0x9c6   : > { %v5240_v62 = vpop.f32.mrf.mxu0 }
 0x9c7   : > { %v5241_v25 = vadd.f32 %v5240_v62, %v12136_v20 }
 0x9c8   : > { %v5242_v57 = vpop.f32.mrf.mxu0 }
 0x9c9   : > { %v5243_v18 = vadd.f32 %v5242_v57, %v12136_v20  ;;  %v5318_v57 = vmax.f32 %v5239_v41, 0.0  ;;  %v13800_v20 = vld [vmem:[#allocation31_spill] sm:$0xff] }
 0x9ca   : > { %v5246_v55 = vpop.f32.mrf.mxu0  ;;  %v5223_v62 = vadd.f32 %v5222_v17, %v13800_v20 }
 0x9cb   : > { %v5247_v43 = vadd.f32 %v5246_v55, %v12121_v14  ;;  %v5319_v55 = vmax.f32 %v5241_v25, 0.0  ;;  %v8757_v25 = vld [vmem:[%s13423_s4 + $0x644] ss:$8 sps:$4 sm:$0xff]  }
 0x9cc   : > { %v5248_v54 = vpop.f32.mrf.mxu0  ;;  %v5312_v17 = vmax.f32 %v5223_v62, 0.0  ;;  %v8778_v62 = vld [vmem:[%s13423_s4 + $0x6b4] ss:$8 sps:$4 sm:$0xff]  }
 0x9cd   : > { %v5249_v39 = vadd.f32 %v5248_v54, %v12121_v14  ;;  %v5321_v52 = vmax.f32 %v5247_v43, 0.0  ;;  %v5229_v14 = vadd.f32 %v5228_v5, %v12138_v23  ;;  %v5221_v5 = vadd.f32 %v12228_v15, %v13800_v20  ;;  %v8773_v20 = vld [vmem:[%s13423_s4 + $0x6a0] ss:$8 sps:$4 sm:$0xff]  }
 0x9ce   : > { %v5250_v42 = vpop.f32.mrf.mxu0  ;;  %v5211_v15 = vadd.f32 %v12216_v58, %v13802_v21  ;;  %v5193_v58 = vadd.f32 %v12175_v36, %v12169_v32  ;;  %v8743_v32 = vld [vmem:[%s13423_s4 + $0x600] ss:$8 sps:$4 sm:$0xff]   ;;  %v8751_v36 = vld [vmem:[%s13423_s4 + $0x624] ss:$8 sps:$4 sm:$0xff]  }
 0x9cf   : > { %v5251_v22 = vadd.f32 %v5250_v42, %v12125_v60  ;;  %v5322_v63 = vmax.f32 %v5249_v39, 0.0  ;;  %v5314_v6 = vmax.f32 %v5229_v14, 0.0  ;;  %v8769_v14 = vld [vmem:[%s13423_s4 + $0x684] ss:$8 sps:$4 sm:$0xff]  }
 0x9d0   : > { %v5252_v10 = vpop.f32.mrf.mxu0  ;;  %v5300_v41 = vmax.f32 %v5193_v58, 0.0 }
 0x9d1   : > { %v5253_v27 = vadd.f32 %v5252_v10, %v12125_v60  ;;  %v5323_v61 = vmax.f32 %v5251_v22, 0.0  ;;  %v5320_v60 = vmax.f32 %v5243_v18, 0.0 }
 0x9d2   : > { %v5256_v4 = vpop.f32.mrf.mxu0 }
 0x9d3   : > { %v5257_v37 = vadd.f32 %v5256_v4, %v12111_v1  ;;  %v5324_v8 = vmax.f32 %v5253_v27, 0.0  ;;  %v5390_v54 = vpack.c.bf16 %v5323_v61, %v5321_v52  ;;  %v5389_v10 = vpack.c.bf16 %v5320_v60, %v5318_v57  ;;  %v8755_v61 = vld [vmem:[%s13423_s4 + $0x640] ss:$8 sps:$4 sm:$0xff]   ;;  %v8763_v60 = vld [vmem:[%s13423_s4 + $0x664] ss:$8 sps:$4 sm:$0xff]  }
 0x9d4   : > { %v5258_v12 = vpop.f32.mrf.mxu0  ;;  %v5317_v4 = vmax.f32 %v5237_v19, 0.0  ;;  %v5213_v27 = vadd.f32 %v12220_v38, %v13802_v21  ;;  %v5203_v38 = vadd.f32 %v12198_v26, %v12155_v31  ;;  %v5189_v26 = vadd.f32 %v12165_v11, %v12162_v35  ;;  %v8748_v35 = vld [vmem:[%s13423_s4 + $0x614] ss:$8 sps:$4 sm:$0xff]   ;;  %v8746_v11 = vld [vmem:[%s13423_s4 + $0x610] ss:$8 sps:$4 sm:$0xff]   ;;  %v12368_v21 = vpop.permute.xlu1 %5504 }
 0x9d5   : > { %v5259_v46 = vadd.f32 %v5258_v12, %v12111_v1  ;;  %v5325_v44 = vmax.f32 %v5257_v37, 0.0  ;;  %v5391_v53 = vpack.c.bf16 %v5324_v8, %v5322_v63  ;;  %v13801_v12 = vld [vmem:[#allocation75_spill] sm:$0xff]  ;;  %v5307_v8 = vmax.f32 %v5211_v15, 0.0  ;;  %v8767_v57 = vld [vmem:[%s13423_s4 + $0x680] ss:$8 sps:$4 sm:$0xff]  }
 0x9d6   : > { %v5260_v24 = vpop.f32.mrf.mxu0  ;;  %v5219_v49 = vadd.f32 %v12226_v0, %v13801_v12  ;;  %v8766_v19 = vld [vmem:[%s13423_s4 + $0x674] ss:$8 sps:$4 sm:$0xff]   ;;  %v8764_v52 = vld [vmem:[%s13423_s4 + $0x670] ss:$8 sps:$4 sm:$0xff]  }
 0x9d7   : > { %v5261_v3 = vadd.f32 %v5260_v24, %v12115_v28  ;;  %v5326_v13 = vmax.f32 %v5259_v46, 0.0  ;;  %v5315_v24 = vmax.f32 %v5231_v34, 0.0  ;;  %v8772_v34 = vld [vmem:[%s13423_s4 + $0x694] ss:$8 sps:$4 sm:$0xff]  }
 0x9d8   : > { %v5262_v7 = vpop.f32.mrf.mxu0  ;;  %v5310_v37 = vmax.f32 %v5219_v49, 0.0  ;;  %v8787_v49 = vld [vmem:[%s13423_s4 + $0x6e4] ss:$8 sps:$4 sm:$0xff]  }
 0x9d9   : > { %v5263_v29 = vadd.f32 %v5262_v7, %v12115_v28  ;;  %v5327_v59 = vmax.f32 %v5261_v3, 0.0  ;;  %v5233_v28 = vadd.f32 %v5232_v51, %v12140_v40  ;;  %v5227_v51 = vadd.f32 %v5226_v2, %v12138_v23  ;;  %v13803_v3 = vld [vmem:[#allocation74_spill] sm:$0xff] }
 0x9da   : > { %v5388_v40 = vpack.c.bf16 %v5319_v55, %v5317_v4  ;;  %v5217_v23 = vadd.f32 %v12224_v50, %v13801_v12  ;;  %v5209_v0 = vadd.f32 %v12212_v30, %v13803_v3  ;;  %v5311_v7 = vmax.f32 %v5221_v5, 0.0  ;;  %v8770_v55 = vld [vmem:[%s13423_s4 + $0x690] ss:$8 sps:$4 sm:$0xff]   ;;  %v8784_v4 = vld [vmem:[%s13423_s4 + $0x6d4] ss:$8 sps:$4 sm:$0xff]  }
 0x9db   : > { %v5328_v48 = vmax.f32 %v5263_v29, 0.0  ;;  %v5392_v9 = vpack.c.bf16 %v5327_v59, %v5325_v44  ;;  %v5316_v42 = vmax.f32 %v5233_v28, 0.0  ;;  %v5313_v2 = vmax.f32 %v5227_v51, 0.0  ;;  %v8758_v28 = vld [vmem:[%s13423_s4 + $0x650] ss:$8 sps:$4 sm:$0xff]  }
 0x9dc   : > { %v5308_v29 = vmax.f32 %v5213_v27, 0.0  ;;  %v5385_v22 = vpack.c.bf16 %v5312_v17, %v5310_v37  ;;  %v5207_v50 = vadd.f32 %v12204_v56, %v13803_v3  ;;  %v5309_v59 = vmax.f32 %v5217_v23, 0.0  ;;  %v8779_v51 = vld [vmem:[%s13423_s4 + $0x6c0] ss:$8 sps:$4 sm:$0xff]   ;;  %v8782_v12 = vld [vmem:[%s13423_s4 + $0x6d0] ss:$8 sps:$4 sm:$0xff]   ;;  %v12372_v17 = vpop.permute.xlu1 %5494 }
 0x9dd   : > { %v5393_v1 = vpack.c.bf16 %v5328_v48, %v5326_v13  ;;  %v5387_v46 = vpack.c.bf16 %v5316_v42, %v5314_v6  ;;  %v5386_v39 = vpack.c.bf16 %v5315_v24, %v5313_v2  ;;  %v5199_v30 = vadd.f32 %v12186_v33, %v12150_v16  ;;  %v8776_v42 = vld [vmem:[%s13423_s4 + $0x6b0] ss:$8 sps:$4 sm:$0xff]   ;;  %v8785_v6 = vld [vmem:[%s13423_s4 + $0x6e0] ss:$8 sps:$4 sm:$0xff]   ;;  %v8790_v5 = vld [vmem:[%s13423_s4 + $0x6f4] ss:$8 sps:$4 sm:$0xff]  }
 0x9de   : > { %v5306_v18 = vmax.f32 %v5209_v0, 0.0  ;;  %v5384_v13 = vpack.c.bf16 %v5311_v7, %v5309_v59  ;;  %v5304_v48 = vmax.f32 %v5203_v38, 0.0  ;;  %v5305_v31 = vmax.f32 %v5207_v50, 0.0  ;;  %v8788_v24 = vld [vmem:[%s13423_s4 + $0x6f0] ss:$8 sps:$4 sm:$0xff]  }
 0x9df   : > { %5763 = vmatprep.subr.bf16.mxu1 %v5393_v1  ;;  %v5302_v56 = vmax.f32 %v5199_v30, 0.0  ;;  %v5298_v16 = vmax.f32 %v5189_v26, 0.0  ;;  %v8752_v1 = vld [vmem:[%s13423_s4 + $0x630] ss:$8 sps:$4 sm:$0xff]  }
 0x9e0   : > { %5764 = vmatpush2.bf16.msra.mxu1 %v5392_v9  ;;  %v5383_v43 = vpack.c.bf16 %v5308_v29, %v5306_v18  ;;  %v5382_v44 = vpack.c.bf16 %v5307_v8, %v5305_v31  ;;  %v8760_v9 = vld [vmem:[%s13423_s4 + $0x654] ss:$8 sps:$4 sm:$0xff]   ;;  %v12376_v23 = vpop.permute.xlu1 %5484 }
 0x9e1   : > { %5765 = vmatprep.subr.bf16.mxu1 %v5391_v53  ;;  %v5381_v63 = vpack.c.bf16 %v5304_v48, %v5302_v56  ;;  %v5379_v33 = vpack.c.bf16 %v5300_v41, %v5298_v16  ;;  %v8761_v53 = vld [vmem:[%s13423_s4 + $0x660] ss:$8 sps:$4 sm:$0xff]  }
 0x9e4   : > { %5766 = vmatpush2.bf16.msra.mxu1 %v5390_v54  ;;  %v8775_v54 = vld [vmem:[%s13423_s4 + $0x6a4] ss:$8 sps:$4 sm:$0xff]   ;;  %v12380_v3 = vpop.permute.xlu1 %5474 }
 0x9e5   : > { %5767 = vmatprep.subr.bf16.mxu1 %v5389_v10  ;;  %v8781_v10 = vld [vmem:[%s13423_s4 + $0x6c4] ss:$8 sps:$4 sm:$0xff]  }
 0x9e8   : > { %5768 = vmatpush2.bf16.msra.mxu1 %v5388_v40  ;;  %v12366_v40 = vpop.permute.xlu0 %5499  ;;  %v12384_v37 = vpop.permute.xlu1 %5464 }
 0x9e9   : > { %5769 = vmatprep.subr.bf16.mxu1 %v5387_v46 }
 0x9ec   : > { %5770 = vmatpush2.bf16.msra.mxu1 %v5386_v39  ;;  %v12370_v27 = vpop.permute.xlu0 %5489  ;;  %v12388_v7 = vpop.permute.xlu1 %5454 }
 0x9ed   : > { %5771 = vmatprep.subr.bf16.mxu1 %v5385_v22 }
 0x9f0   : > { %5772 = vmatpush2.bf16.msra.mxu1 %v5384_v13  ;;  %v12374_v46 = vpop.permute.xlu0 %5479  ;;  %v5445_v38 = vpop.permute.xlu1 %5444 }
 0x9f1   : > { %5773 = vmatprep.subr.bf16.mxu1 %v5383_v43 }
 0x9f4   : > { %5774 = vmatpush2.bf16.msra.mxu1 %v5382_v44  ;;  %v12378_v2 = vpop.permute.xlu0 %5469  ;;  %v5435_v30 = vpop.permute.xlu1 %5434 }
 0x9f5   : > { %5775 = vmatprep.subr.bf16.mxu1 %v5381_v63 }
 0x9f8   : > { %5776 = vmatpush2.bf16.msra.mxu1 %v12208_v45  ;;  %v8754_v45 = vld [vmem:[%s13423_s4 + $0x634] ss:$8 sps:$4 sm:$0xff]   ;;  %v12382_v0 = vpop.permute.xlu0 %5459 }
 0x9f9   : > { %5777 = vmatprep.subr.bf16.mxu1 %v5379_v33 }
 0x9fc   : > { %5778 = vmatpush2.bf16.msra.mxu1 %v12182_v47  ;;  %v8749_v47 = vld [vmem:[%s13423_s4 + $0x620] ss:$8 sps:$4 sm:$0xff]   ;;  %v12386_v15 = vpop.permute.xlu0 %5449  ;;  %s7459_s4 = scalar_lea.sflag [#allocation6], %s9156_s21 }
 0x9ff   : > { %5780 = vmatmul.mubr.bf16.vlgmr.msra.gmra.mxu1 %v8743_v32 }
 0xa00   : > { %5789 = vmatprep.mubr.bf16.mxu1 %v8748_v35  ;;  %v5440_v39 = vpop.permute.xlu0 %5439 }
 0xa04   : > { %v5430_v22 = vpop.permute.xlu0 %5429 }
 0xa07   : > { %5790 = vmatmul.mubr.bf16.gmra.mxu1 %v8746_v11 }
 0xa08   : > { %5799 = vmatprep.mubr.bf16.mxu1 %v8751_v36 }
 0xa0f   : > { %5800 = vmatmul.mubr.bf16.gmra.mxu1 %v8749_v47 }
 0xa10   : > { %5809 = vmatprep.mubr.bf16.mxu1 %v8754_v45 }
 0xa17   : > { %5810 = vmatmul.mubr.bf16.gmra.mxu1 %v8752_v1 }
 0xa18   : > { %5819 = vmatprep.mubr.bf16.mxu1 %v8757_v25 }
 0xa1f   : > { %5820 = vmatmul.mubr.bf16.gmra.mxu1 %v8755_v61 }
 0xa20   : > { %5829 = vmatprep.mubr.bf16.mxu1 %v8760_v9 }
 0xa27   : > { %5830 = vmatmul.mubr.bf16.gmra.mxu1 %v8758_v28 }
 0xa28   : > { %5839 = vmatprep.mubr.bf16.mxu1 %v8763_v60 }
 0xa2f   : > { %5840 = vmatmul.mubr.bf16.gmra.mxu1 %v8761_v53 }
 0xa30   : > { %5849 = vmatprep.mubr.bf16.mxu1 %v8766_v19 }
 0xa37   : > { %5850 = vmatmul.mubr.bf16.gmra.mxu1 %v8764_v52  ;;  %v8966_v52 = vmov 1966171168  }
 0xa38   : > { %5859 = vmatprep.mubr.bf16.mxu1 %v8769_v14  ;;  %v6698_v14 = vunpack.c.l.s4 %v8966_v52 }
 0xa3f   : > { %5860 = vmatmul.mubr.bf16.gmra.mxu1 %v8767_v57 }
 0xa40   : > { %5869 = vmatprep.mubr.bf16.mxu1 %v8772_v34  ;;  %v12406_v34 = vpop.permute.xlu0 %5579 }
 0xa47   : > { %5870 = vmatmul.mubr.bf16.gmra.mxu1 %v8770_v55  ;;  %v13351_v55 = vlaneseq }
 0xa48   : > { %5879 = vmatprep.mubr.bf16.mxu1 %v8775_v54 }
 0xa4f   : > { %5880 = vmatmul.mubr.bf16.gmra.mxu1 %v8773_v20  ;;  %v12410_v20 = vpop.permute.xlu1 %5584 }
 0xa50   : > { %5889 = vmatprep.mubr.bf16.mxu1 %v8778_v62  ;;  %v6699_v62 = vunpack.c.0.s8 %v6698_v14 }
 0xa57   : > { %5890 = vmatmul.mubr.bf16.gmra.mxu1 %v8776_v42 }
 0xa58   : > { %5899 = vmatprep.mubr.bf16.mxu1 %v8781_v10  ;;  %v12415_v10 = vshrl.u32 %v13351_v55, 7 }
 0xa5a   : > { %13804 = vst [vmem:[#allocation33_spill] sm:$0xff] %v12415_v10 }
 0xa5f   : > { %5900 = vmatmul.mubr.bf16.gmra.mxu1 %v8779_v51 }
 0xa60   : > { %5909 = vmatprep.mubr.bf16.mxu1 %v8784_v4  ;;  %v12419_v4 = vpop.permute.xlu0 %5569 }
 0xa67   : > { %5910 = vmatmul.mubr.bf16.gmra.mxu1 %v8782_v12  ;;  %v12422_v12 = vsub.s32 %v6699_v62, %v12415_v10 }
 0xa68   : > { %5919 = vmatprep.mubr.bf16.mxu1 %v8787_v49 }
 0xa69   : > { %13805 = vst [vmem:[#allocation34_spill] sm:$0xff] %v12422_v12 }
 0xa6f   : > { %5920 = vmatmul.mubr.bf16.gmra.mxu1 %v8785_v6  ;;  %v12429_v6 = vld.sshfl [vmem:[%s13152_s8] sm:$0x11 pattern:$0x75316420] }
 0xa70   : > { %5929 = vmatprep.mubr.bf16.mxu1 %v8790_v5  ;;  %13806 = vst [vmem:[#allocation72_spill] sm:$0xff] %v12429_v6  ;;  %v12431_v5 = vpop.permute.xlu1 %5574 }
 0xa77   : > { %5930 = vmatmul.mubr.bf16.gmra.mxu1 %v8788_v24 }
 0xabf   : > { %v5781_v29 = vpop.f32.mrf.mxu1 }
 0xac0   : > { %v5782_v59 = vadd.f32 %v5781_v29, %v5430_v22  ;;  %v8793_v29 = vld [vmem:[%s13150_s6 + $0x4] ss:$8 sps:$4 sm:$0xff]  }
 0xac1   : > { %v5783_v50 = vpop.f32.mrf.mxu1  ;;  %6452 = vmatprep.mubr.bf16.mxu0 %v8793_v29 }
 0xac2   : > { %v5784_v8 = vadd.f32 %v5783_v50, %v5430_v22  ;;  %v5940_v48 = vmax.f32 %v5782_v59, 0.0  ;;  %v12443_v50 = vpop.permute.xlu0 %5559 }
 0xac3   : > { %v5785_v18 = vpop.f32.mrf.mxu1 }
 0xac4   : > { %v5786_v13 = vadd.f32 %v5785_v18, %v5435_v30  ;;  %v5941_v56 = vmax.f32 %v5784_v8, 0.0 }
 0xac5   : > { %v5787_v58 = vpop.f32.mrf.mxu1 }
 0xac6   : > { %v5942_v43 = vmax.f32 %v5786_v13, 0.0  ;;  %v5788_v31 = vadd.f32 %v5787_v58, %v5435_v30  ;;  %v12447_v30 = vpop.permute.xlu1 %5564  ;;  %v12449_v13 = vpop.permute.xlu0 %5549 }
 0xac7   : > { %v5791_v26 = vpop.f32.mrf.mxu1  ;;  %13807 = vst [vmem:[#allocation36_spill] sm:$0xff] %v12449_v13 }
 0xac8   : > { %v12390_v44 = vpack.c.bf16 %v5942_v43, %v5940_v48  ;;  %v5943_v41 = vmax.f32 %v5788_v31, 0.0  ;;  %v5792_v33 = vadd.f32 %v5791_v26, %v5440_v39 }
 0xac9   : > { %v5793_v63 = vpop.f32.mrf.mxu1 }
 0xaca   : > { %v12392_v16 = vpack.c.bf16 %v5943_v41, %v5941_v56  ;;  %v5794_v35 = vadd.f32 %v5793_v63, %v5440_v39  ;;  %v5944_v47 = vmax.f32 %v5792_v33, 0.0  ;;  %v6696_v39 = vcombine.high %v12429_v6, %v12429_v6  ;;  %v12451_v48 = vpop.permute.xlu1 %5554  ;;  %v12453_v26 = vpop.permute.xlu0 %5539 }
 0xacb   : > { %v5795_v32 = vpop.f32.mrf.mxu1  ;;  %13808 = vst [vmem:[#allocation71_spill] sm:$0xff] %v12451_v48  ;;  %13809 = vst [vmem:[#allocation37_spill] sm:$0xff] %v12453_v26 }
 0xacc   : > { %v5796_v11 = vadd.f32 %v5795_v32, %v5445_v38  ;;  %v5945_v61 = vmax.f32 %v5794_v35, 0.0  ;;  %v6710_v22 = vrot.slane %v6696_v39, %v12422_v12 }
 0xacd   : > { %v5797_v36 = vpop.f32.mrf.mxu1 }
 0xace   : > { %v5946_v45 = vmax.f32 %v5796_v11, 0.0  ;;  %v5798_v1 = vadd.f32 %v5797_v36, %v5445_v38  ;;  %6745 = vmatprep.mubr.bf16.mxu1 %v6710_v22  ;;  %v12455_v41 = vpop.permute.xlu1 %5544  ;;  %v12457_v32 = vpop.permute.xlu0 %5529 }
 0xacf   : > { %v12394_v25 = vpop.f32.mrf.mxu1  ;;  %13810 = vst [vmem:[#allocation51_spill] sm:$0xff] %v12455_v41  ;;  %13811 = vst [vmem:[#allocation48_spill] sm:$0xff] %v12457_v32 }
 0xad0   : > { %v12396_v9 = vpack.c.bf16 %v5946_v45, %v5944_v47  ;;  %v5947_v28 = vmax.f32 %v5798_v1, 0.0 }
 0xad1   : > { %v12398_v60 = vpop.f32.mrf.mxu1 }
 0xad2   : > { %v12400_v53 = vpack.c.bf16 %v5947_v28, %v5945_v61  ;;  %v12459_v11 = vpop.permute.xlu1 %5534  ;;  %v12461_v45 = vpop.permute.xlu0 %5519 }
 0xad3   : > { %v12402_v19 = vpop.f32.mrf.mxu1  ;;  %13812 = vst [vmem:[#allocation47_spill] sm:$0xff] %v12459_v11 }
 0xad5   : > { %v12404_v57 = vpop.f32.mrf.mxu1 }
 0xad6   : > { %v12466_v14 = vpop.permute.xlu1 %5524  ;;  %v5510_v11 = vpop.permute.xlu0 %5509 }
 0xad7   : > { %v12408_v54 = vpop.f32.mrf.mxu1 }
 0xad9   : > { %v12412_v42 = vpop.f32.mrf.mxu1 }
 0xadb   : > { %v12417_v51 = vpop.f32.mrf.mxu1 }
 0xadd   : > { %v12424_v49 = vpop.f32.mrf.mxu1 }
 0xadf   : > { %v12433_v24 = vpop.f32.mrf.mxu1 }
 0xae1   : > { %v12437_v38 = vpop.f32.mrf.mxu1 }
 0xae3   : > { %v12445_v59 = vpop.f32.mrf.mxu1 }
 0xae5   : > { %v5827_v18 = vpop.f32.mrf.mxu1 }
 0xae7   : > { %v5831_v8 = vpop.f32.mrf.mxu1 }
 0xae9   : > { %v5833_v58 = vpop.f32.mrf.mxu1 }
 0xaeb   : > { %v5835_v43 = vpop.f32.mrf.mxu1 }
 0xaed   : > { %v5837_v31 = vpop.f32.mrf.mxu1 }
 0xaee   : > { %v5838_v12 = vadd.f32 %v5837_v31, %v12376_v23 }
 0xaef   : > { %v5841_v56 = vpop.f32.mrf.mxu1 }
 0xaf1   : > { %v5843_v63 = vpop.f32.mrf.mxu1 }
 0xaf2   : > { %v5844_v29 = vadd.f32 %v5843_v63, %v12370_v27 }
 0xaf3   : > { %v5845_v33 = vpop.f32.mrf.mxu1 }
 0xaf4   : > { %v5846_v55 = vadd.f32 %v5845_v33, %v12372_v17  ;;  %v5836_v33 = vadd.f32 %v5835_v43, %v12376_v23  ;;  %v5826_v43 = vadd.f32 %v12445_v59, %v12380_v3 }
 0xaf5   : > { %v5847_v35 = vpop.f32.mrf.mxu1 }
 0xaf6   : > { %v5848_v61 = vadd.f32 %v5847_v35, %v12372_v17  ;;  %v5828_v17 = vadd.f32 %v5827_v18, %v12380_v3 }
 0xaf7   : > { %v5851_v36 = vpop.f32.mrf.mxu1 }
 0xaf8   : > { %v5852_v62 = vadd.f32 %v5851_v36, %v12366_v40  ;;  %v5967_v35 = vmax.f32 %v5848_v61, 0.0  ;;  %v5965_v36 = vmax.f32 %v5844_v29, 0.0  ;;  %v5814_v29 = vadd.f32 %v12412_v42, %v12382_v0 }
 0xaf9   : > { %v5853_v47 = vpop.f32.mrf.mxu1 }
 0xafa   : > { %v5854_v28 = vadd.f32 %v5853_v47, %v12366_v40  ;;  %v5968_v26 = vmax.f32 %v5852_v62, 0.0  ;;  %v5834_v40 = vadd.f32 %v5833_v58, %v12374_v46  ;;  %v5832_v58 = vadd.f32 %v5831_v8, %v12374_v46 }
 0xafb   : > { %v5855_v1 = vpop.f32.mrf.mxu1  ;;  %v5822_v62 = vadd.f32 %v12433_v24, %v12378_v2  ;;  %v5958_v24 = vmax.f32 %v5826_v43, 0.0 }
 0xafc   : > { %v5856_v52 = vadd.f32 %v5855_v1, %v12368_v21  ;;  %v5969_v32 = vmax.f32 %v5854_v28, 0.0  ;;  %v5842_v1 = vadd.f32 %v5841_v56, %v12370_v27  ;;  %v5963_v28 = vmax.f32 %v5838_v12, 0.0 }
 0xafd   : > { %v5857_v39 = vpop.f32.mrf.mxu1  ;;  %v5818_v27 = vadd.f32 %v12424_v49, %v12384_v37  ;;  %v5961_v23 = vmax.f32 %v5834_v40, 0.0  ;;  %v5962_v49 = vmax.f32 %v5836_v33, 0.0  ;;  %v5812_v33 = vadd.f32 %v12408_v54, %v12382_v0 }
 0xafe   : > { %v5858_v22 = vadd.f32 %v5857_v39, %v12368_v21  ;;  %v5970_v10 = vmax.f32 %v5856_v52, 0.0  ;;  %v5515_v21 = vpop.permute.xlu1 %5514  ;;  %v5966_v52 = vmax.f32 %v5846_v55, 0.0  ;;  %v6017_v39 = vpack.c.bf16 %v5967_v35, %v5965_v36 }
 0xaff   : > { %v5861_v6 = vpop.f32.mrf.mxu1  ;;  %v5964_v18 = vmax.f32 %v5842_v1, 0.0  ;;  %v5955_v36 = vmax.f32 %v5818_v27, 0.0 }
 0xb00   : > { %v5971_v47 = vmax.f32 %v5858_v22, 0.0  ;;  %v5862_v13 = vadd.f32 %v5861_v6, %v5510_v11  ;;  %v6018_v31 = vpack.c.bf16 %v5970_v10, %v5968_v26  ;;  %v5824_v6 = vadd.f32 %v12437_v38, %v12378_v2 }
 0xb01   : > { %v5863_v41 = vpop.f32.mrf.mxu1  ;;  %v5959_v26 = vmax.f32 %v5828_v17, 0.0  ;;  %v6015_v38 = vpack.c.bf16 %v5963_v28, %v5961_v23  ;;  %v5816_v2 = vadd.f32 %v12417_v51, %v12384_v37  ;;  %v5804_v17 = vadd.f32 %v12398_v60, %v12386_v15 }
 0xb02   : > { %v6019_v63 = vpack.c.bf16 %v5971_v47, %v5969_v32  ;;  %v5864_v22 = vadd.f32 %v5863_v41, %v5510_v11  ;;  %v5972_v55 = vmax.f32 %v5862_v13, 0.0  ;;  %v6016_v41 = vpack.c.bf16 %v5966_v52, %v5964_v18 }
 0xb03   : > { %v5865_v61 = vpop.f32.mrf.mxu1  ;;  %v5960_v13 = vmax.f32 %v5832_v58, 0.0  ;;  %v5957_v3 = vmax.f32 %v5824_v6, 0.0  ;;  %v5808_v47 = vadd.f32 %v12404_v57, %v12388_v7  ;;  %v5956_v52 = vmax.f32 %v5822_v62, 0.0 }
 0xb04   : > { %v5866_v48 = vadd.f32 %v5865_v61, %v5515_v21  ;;  %6420 = vmatprep.subr.bf16.mxu0 %v6019_v63  ;;  %6713 = vmatprep.subr.bf16.mxu1 %v6019_v63  ;;  %v5973_v11 = vmax.f32 %v5864_v22, 0.0  ;;  %v5953_v37 = vmax.f32 %v5814_v29, 0.0  ;;  %v5802_v58 = vadd.f32 %v12394_v25, %v12386_v15 }
 0xb05   : > { %v5867_v56 = vpop.f32.mrf.mxu1  ;;  %6421 = vmatpush1.bf16.msra.mxu0 %v6018_v31  ;;  %6714 = vmatpush1.bf16.msra.mxu1 %v6018_v31  ;;  %v6014_v1 = vpack.c.bf16 %v5962_v49, %v5960_v13  ;;  %v6013_v63 = vpack.c.bf16 %v5959_v26, %v5957_v3  ;;  %v5951_v28 = vmax.f32 %v5808_v47, 0.0  ;;  %v6012_v60 = vpack.c.bf16 %v5958_v24, %v5956_v52 }
 0xb06   : > { %v5974_v10 = vmax.f32 %v5866_v48, 0.0  ;;  %v5868_v12 = vadd.f32 %v5867_v56, %v5515_v21  ;;  %6422 = vmatprep.subr.bf16.mxu0 %v6017_v39  ;;  %6715 = vmatprep.subr.bf16.mxu1 %v6017_v39  ;;  %v5954_v39 = vmax.f32 %v5816_v2, 0.0  ;;  %v6011_v0 = vpack.c.bf16 %v5955_v36, %v5953_v37 }
 0xb07   : > { %v5871_v32 = vpop.f32.mrf.mxu1  ;;  %v5952_v18 = vmax.f32 %v5812_v33, 0.0  ;;  %v5949_v56 = vmax.f32 %v5804_v17, 0.0 }
 0xb08   : > { %v12484_v46 = vpack.c.bf16 %v5974_v10, %v5972_v55  ;;  %v5975_v8 = vmax.f32 %v5868_v12, 0.0  ;;  %v5872_v35 = vadd.f32 %v5871_v32, %v12461_v45  ;;  %v5948_v12 = vmax.f32 %v5802_v58, 0.0 }
 0xb09   : > { %v5873_v48 = vpop.f32.mrf.mxu1  ;;  %6423 = vmatpush1.bf16.msra.mxu0 %v6016_v41  ;;  %6716 = vmatpush1.bf16.msra.mxu1 %v6016_v41  ;;  %v6010_v23 = vpack.c.bf16 %v5954_v39, %v5952_v18  ;;  %v6009_v10 = vpack.c.bf16 %v5951_v28, %v5949_v56 }
 0xb0a   : > { %v12490_v59 = vpack.c.bf16 %v5975_v8, %v5973_v11  ;;  %6424 = vmatprep.subr.bf16.mxu0 %v6015_v38  ;;  %6717 = vmatprep.subr.bf16.mxu1 %v6015_v38  ;;  %v5874_v42 = vadd.f32 %v5873_v48, %v12461_v45  ;;  %v5976_v51 = vmax.f32 %v5872_v35, 0.0  ;;  %v5806_v45 = vadd.f32 %v12402_v19, %v12388_v7 }
 0xb0b   : > { %v5875_v40 = vpop.f32.mrf.mxu1 }
 0xb0c   : > { %v5876_v21 = vadd.f32 %v5875_v40, %v12466_v14  ;;  %v5977_v54 = vmax.f32 %v5874_v42, 0.0  ;;  %v5950_v19 = vmax.f32 %v5806_v45, 0.0 }
 0xb0d   : > { %v5877_v57 = vpop.f32.mrf.mxu1  ;;  %6425 = vmatpush1.bf16.msra.mxu0 %v6014_v1  ;;  %6718 = vmatpush1.bf16.msra.mxu1 %v6014_v1 }
 0xb0e   : > { %v5978_v31 = vmax.f32 %v5876_v21, 0.0  ;;  %v5878_v61 = vadd.f32 %v5877_v57, %v12466_v14  ;;  %6426 = vmatprep.subr.bf16.mxu0 %v6013_v63  ;;  %6719 = vmatprep.subr.bf16.mxu1 %v6013_v63  ;;  %v6008_v15 = vpack.c.bf16 %v5950_v19, %v5948_v12 }
 0xb0f   : > { %v12506_v22 = vpop.f32.mrf.mxu1 }
 0xb10   : > { %v12508_v27 = vpack.c.bf16 %v5978_v31, %v5976_v51  ;;  %v5979_v6 = vmax.f32 %v5878_v61, 0.0 }
 0xb11   : > { %v12512_v14 = vpop.f32.mrf.mxu1  ;;  %6427 = vmatpush1.bf16.msra.mxu0 %v6012_v60  ;;  %6720 = vmatpush1.bf16.msra.mxu1 %v6012_v60 }
 0xb12   : > { %v12514_v7 = vpack.c.bf16 %v5979_v6, %v5977_v54  ;;  %6428 = vmatprep.subr.bf16.mxu0 %v6011_v0  ;;  %6721 = vmatprep.subr.bf16.mxu1 %v6011_v0 }
 0xb13   : > { %v12516_v55 = vpop.f32.mrf.mxu1 }
 0xb15   : > { %v12518_v43 = vpop.f32.mrf.mxu1  ;;  %6429 = vmatpush1.bf16.msra.mxu0 %v6010_v23  ;;  %6722 = vmatpush1.bf16.msra.mxu1 %v6010_v23 }
 0xb16   : > { %6430 = vmatprep.subr.bf16.mxu0 %v6009_v10  ;;  %6723 = vmatprep.subr.bf16.mxu1 %v6009_v10  ;;  %v13815_v10 = vld [vmem:[#allocation51_spill] sm:$0xff] }
 0xb17   : > { %v12520_v25 = vpop.f32.mrf.mxu1 }
 0xb19   : > { %v12522_v26 = vpop.f32.mrf.mxu1  ;;  %6431 = vmatpush1.bf16.msra.mxu0 %v6008_v15  ;;  %6724 = vmatpush1.bf16.msra.mxu1 %v6008_v15 }
 0xb1a   : > { %6432 = vmatprep.subr.bf16.mxu0 %v12400_v53  ;;  %6725 = vmatprep.subr.bf16.mxu1 %v12400_v53 }
 0xb1b   : > { %v12526_v49 = vpop.f32.mrf.mxu1 }
 0xb1d   : > { %v5897_v41 = vpop.f32.mrf.mxu1  ;;  %6433 = vmatpush1.bf16.msra.mxu0 %v12396_v9  ;;  %6726 = vmatpush1.bf16.msra.mxu1 %v12396_v9 }
 0xb1e   : > { %6434 = vmatprep.subr.bf16.mxu0 %v12392_v16  ;;  %6727 = vmatprep.subr.bf16.mxu1 %v12392_v16  ;;  %v5898_v12 = vadd.f32 %v5897_v41, %v13815_v10 }
 0xb1f   : > { %v5901_v32 = vpop.f32.mrf.mxu1 }
 0xb21   : > { %v5903_v38 = vpop.f32.mrf.mxu1  ;;  %6435 = vmatpush1.bf16.msra.mxu0 %v12390_v44  ;;  %6728 = vmatpush1.bf16.msra.mxu1 %v12390_v44 }
 0xb23   : > { %v5905_v11 = vpop.f32.mrf.mxu1 }
 0xb25   : > { %v5907_v8 = vpop.f32.mrf.mxu1 }
 0xb27   : > { %v5911_v53 = vpop.f32.mrf.mxu1 }
 0xb28   : > { %v5912_v6 = vadd.f32 %v5911_v53, %v12443_v50 }
 0xb29   : > { %v5913_v62 = vpop.f32.mrf.mxu1 }
 0xb2a   : > { %v5914_v61 = vadd.f32 %v5913_v62, %v12443_v50  ;;  %v13816_v50 = vld [vmem:[#allocation37_spill] sm:$0xff] }
 0xb2b   : > { %v5915_v13 = vpop.f32.mrf.mxu1  ;;  %v5894_v53 = vadd.f32 %v12522_v26, %v13816_v50  ;;  %v13818_v26 = vld [vmem:[#allocation48_spill] sm:$0xff] }
 0xb2c   : > { %v5916_v28 = vadd.f32 %v5915_v13, %v12447_v30  ;;  %v5993_v56 = vmax.f32 %v5914_v61, 0.0  ;;  %v5992_v13 = vmax.f32 %v5912_v6, 0.0  ;;  %v8803_v61 = vld [vmem:[%s13150_s6 + $0x40] ss:$8 sps:$4 sm:$0xff]  }
 0xb2d   : > { %v5917_v48 = vpop.f32.mrf.mxu1 }
 0xb2e   : > { %v5918_v33 = vadd.f32 %v5917_v48, %v12447_v30  ;;  %v5994_v19 = vmax.f32 %v5916_v28, 0.0  ;;  %v8811_v28 = vld [vmem:[%s13150_s6 + $0x64] ss:$8 sps:$4 sm:$0xff]  }
 0xb2f   : > { %v5921_v29 = vpop.f32.mrf.mxu1 }
 0xb30   : > { %v5922_v51 = vadd.f32 %v5921_v29, %v12419_v4  ;;  %v6030_v29 = vpack.c.bf16 %v5994_v19, %v5992_v13  ;;  %v8823_v19 = vld [vmem:[%s13150_s6 + $0xa4] ss:$8 sps:$4 sm:$0xff]  }
 0xb31   : > { %v5923_v3 = vpop.f32.mrf.mxu1 }
 0xb32   : > { %v5924_v63 = vadd.f32 %v5923_v3, %v12419_v4  ;;  %v5996_v58 = vmax.f32 %v5922_v51, 0.0  ;;  %v13814_v4 = vld [vmem:[#allocation36_spill] sm:$0xff]  ;;  %v13817_v3 = vld [vmem:[#allocation47_spill] sm:$0xff] }
 0xb33   : > { %v5925_v35 = vpop.f32.mrf.mxu1  ;;  %v5904_v18 = vadd.f32 %v5903_v38, %v13814_v4  ;;  %v5902_v62 = vadd.f32 %v5901_v32, %v13814_v4  ;;  %v5888_v41 = vadd.f32 %v12518_v43, %v13817_v3  ;;  %v5892_v32 = vadd.f32 %v12520_v25, %v13816_v50  ;;  %v8800_v51 = vld [vmem:[%s13150_s6 + $0x30] ss:$8 sps:$4 sm:$0xff]   ;;  %v8820_v4 = vld [vmem:[%s13150_s6 + $0x94] ss:$8 sps:$4 sm:$0xff]  }
 0xb34   : > { %v5926_v21 = vadd.f32 %v5925_v35, %v12431_v5  ;;  %v5997_v45 = vmax.f32 %v5924_v63, 0.0  ;;  %v5987_v35 = vmax.f32 %v5898_v12, 0.0  ;;  %v8826_v12 = vld [vmem:[%s13150_s6 + $0xb4] ss:$8 sps:$4 sm:$0xff]  }
 0xb35   : > { %v5927_v9 = vpop.f32.mrf.mxu1  ;;  %v5989_v38 = vmax.f32 %v5904_v18, 0.0  ;;  %v5983_v43 = vmax.f32 %v5888_v41, 0.0  ;;  %v5984_v25 = vmax.f32 %v5892_v32, 0.0  ;;  %v8833_v41 = vld [vmem:[%s13150_s6 + $0xe0] ss:$8 sps:$4 sm:$0xff]  }
 0xb36   : > { %v5928_v16 = vadd.f32 %v5927_v9, %v12431_v5  ;;  %v5998_v39 = vmax.f32 %v5926_v21, 0.0  ;;  %v5995_v5 = vmax.f32 %v5918_v33, 0.0  ;;  %v13820_v33 = vld [vmem:[#allocation72_spill] sm:$0xff] }
 0xb37   : > { %v5931_v47 = vpop.f32.mrf.mxu1 }
 0xb38   : > { %v5932_v44 = vadd.f32 %v5931_v47, %v12406_v34  ;;  %v5999_v52 = vmax.f32 %v5928_v16, 0.0  ;;  %v6032_v23 = vpack.c.bf16 %v5998_v39, %v5996_v58  ;;  %v5988_v47 = vmax.f32 %v5902_v62, 0.0  ;;  %v12612_v39 = vpop.permute.xlu0 %6172  ;;  %v8815_v58 = vld [vmem:[%s13150_s6 + $0x80] ss:$8 sps:$4 sm:$0xff]   ;;  %v8829_v62 = vld [vmem:[%s13150_s6 + $0xc4] ss:$8 sps:$4 sm:$0xff]  }
 0xb39   : > { %v5933_v2 = vpop.f32.mrf.mxu1 }
 0xb3a   : > { %v5934_v1 = vadd.f32 %v5933_v2, %v12406_v34  ;;  %v6000_v31 = vmax.f32 %v5932_v44, 0.0  ;;  %v6033_v54 = vpack.c.bf16 %v5999_v52, %v5997_v45  ;;  %v5884_v2 = vadd.f32 %v12512_v14, %v13818_v26  ;;  %v8808_v45 = vld [vmem:[%s13150_s6 + $0x54] ss:$8 sps:$4 sm:$0xff]  }
 0xb3b   : > { %v5935_v24 = vpop.f32.mrf.mxu1  ;;  %v5882_v44 = vadd.f32 %v12506_v22, %v13818_v26  ;;  %v8791_v22 = vld [vmem:[%s13150_s6] ss:$8 sps:$4 sm:$0xff]  }
 0xb3c   : > { %v5936_v40 = vadd.f32 %v5935_v24, %v12410_v20  ;;  %v6001_v57 = vmax.f32 %v5934_v1, 0.0  ;;  %v5985_v24 = vmax.f32 %v5894_v53, 0.0  ;;  %v8827_v53 = vld [vmem:[%s13150_s6 + $0xc0] ss:$8 sps:$4 sm:$0xff]  }
 0xb3d   : > { %v5937_v36 = vpop.f32.mrf.mxu1  ;;  %v5980_v21 = vmax.f32 %v5882_v44, 0.0 }
 0xb3e   : > { %v5938_v42 = vadd.f32 %v5937_v36, %v12410_v20  ;;  %v6002_v17 = vmax.f32 %v5936_v40, 0.0  ;;  %v13813_v20 = vld [vmem:[#allocation71_spill] sm:$0xff]  ;;  %v6027_v40 = vpack.c.bf16 %v5987_v35, %v5985_v24  ;;  %v5981_v36 = vmax.f32 %v5884_v2, 0.0 }
 0xb3f   : > { %v5908_v0 = vadd.f32 %v5907_v8, %v13813_v20  ;;  %v5906_v30 = vadd.f32 %v5905_v11, %v13813_v20  ;;  %v6031_v8 = vpack.c.bf16 %v5995_v5, %v5993_v56  ;;  %v5896_v11 = vadd.f32 %v12526_v49, %v13815_v10  ;;  %v8814_v20 = vld [vmem:[%s13150_s6 + $0x74] ss:$8 sps:$4 sm:$0xff]   ;;  %v8812_v5 = vld [vmem:[%s13150_s6 + $0x70] ss:$8 sps:$4 sm:$0xff]   ;;  %v8821_v10 = vld [vmem:[%s13150_s6 + $0xa0] ss:$8 sps:$4 sm:$0xff]  }
 0xb40   : > { %v6003_v37 = vmax.f32 %v5938_v42, 0.0  ;;  %v6034_v60 = vpack.c.bf16 %v6002_v17, %v6000_v31  ;;  %v5886_v49 = vadd.f32 %v12516_v55, %v13817_v3  ;;  %v6025_v42 = vpack.c.bf16 %v5983_v43, %v5981_v36  ;;  %v13819_v17 = vld [vmem:[#allocation34_spill] sm:$0xff]  ;;  %v8838_v35 = vld [vmem:[%s13150_s6 + $0xf4] ss:$8 sps:$4 sm:$0xff]   ;;  %v12705_v43 = vpop.permute.xlu1 %6177 }
 0xb41   : > { %v5991_v15 = vmax.f32 %v5908_v0, 0.0  ;;  %v5990_v48 = vmax.f32 %v5906_v30, 0.0  ;;  %v5986_v16 = vmax.f32 %v5896_v11, 0.0  ;;  %v6703_v52 = vrot.slane %v13820_v33, %v13819_v17  ;;  %v8805_v31 = vld [vmem:[%s13150_s6 + $0x44] ss:$8 sps:$4 sm:$0xff]   ;;  %v12620_v0 = vpop.permute.xlu0 %6162 }
 0xb42   : > { %v6035_v34 = vpack.c.bf16 %v6003_v37, %v6001_v57  ;;  %v5982_v14 = vmax.f32 %v5886_v49, 0.0  ;;  %v8799_v57 = vld [vmem:[%s13150_s6 + $0x24] ss:$8 sps:$4 sm:$0xff]   ;;  %v8802_v37 = vld [vmem:[%s13150_s6 + $0x34] ss:$8 sps:$4 sm:$0xff]  }
 0xb43   : > { %v6029_v9 = vpack.c.bf16 %v5991_v15, %v5989_v38  ;;  %v6028_v1 = vpack.c.bf16 %v5990_v48, %v5988_v47  ;;  %v6026_v63 = vpack.c.bf16 %v5986_v16, %v5984_v25  ;;  %v8818_v30 = vld [vmem:[%s13150_s6 + $0x90] ss:$8 sps:$4 sm:$0xff]   ;;  %v8832_v38 = vld [vmem:[%s13150_s6 + $0xd4] ss:$8 sps:$4 sm:$0xff]  }
 0xb44   : > { %6436 = vmatprep.subr.bf16.mxu0 %v6035_v34  ;;  %6729 = vmatprep.subr.bf16.mxu1 %v6035_v34  ;;  %v6024_v55 = vpack.c.bf16 %v5982_v14, %v5980_v21  ;;  %v8806_v34 = vld [vmem:[%s13150_s6 + $0x50] ss:$8 sps:$4 sm:$0xff]   ;;  %v12709_v44 = vpop.permute.xlu1 %6167  ;;  %v13833_v33 = vld [vmem:[#allocation33_spill] sm:$0xff] }
 0xb45   : > { %6437 = vmatpush2.bf16.msra.mxu0 %v6034_v60  ;;  %6730 = vmatpush2.bf16.msra.mxu1 %v6034_v60  ;;  %v8809_v60 = vld [vmem:[%s13150_s6 + $0x60] ss:$8 sps:$4 sm:$0xff]   ;;  %v12628_v6 = vpop.permute.xlu0 %6152  ;;  %v8830_v48 = vld [vmem:[%s13150_s6 + $0xd0] ss:$8 sps:$4 sm:$0xff]  }
 0xb46   : > { %6438 = vmatprep.subr.bf16.mxu0 %v6033_v54  ;;  %6731 = vmatprep.subr.bf16.mxu1 %v6033_v54  ;;  %v8817_v54 = vld [vmem:[%s13150_s6 + $0x84] ss:$8 sps:$4 sm:$0xff]   ;;  %v8836_v47 = vld [vmem:[%s13150_s6 + $0xf0] ss:$8 sps:$4 sm:$0xff]  }
 0xb48   : > { %v12713_v36 = vpop.permute.xlu1 %6157 }
 0xb49   : > { %6439 = vmatpush2.bf16.msra.mxu0 %v6032_v23  ;;  %6732 = vmatpush2.bf16.msra.mxu1 %v6032_v23  ;;  %v12636_v18 = vpop.permute.xlu0 %6142 }
 0xb4a   : > { %6440 = vmatprep.subr.bf16.mxu0 %v6031_v8  ;;  %6733 = vmatprep.subr.bf16.mxu1 %v6031_v8  ;;  %v8824_v8 = vld [vmem:[%s13150_s6 + $0xb0] ss:$8 sps:$4 sm:$0xff]  }
 0xb4d   : > { %6441 = vmatpush2.bf16.msra.mxu0 %v6030_v29  ;;  %6734 = vmatpush2.bf16.msra.mxu1 %v6030_v29  ;;  %v12638_v56 = vpop.permute.xlu0 %6132  ;;  %v8835_v29 = vld [vmem:[%s13150_s6 + $0xe4] ss:$8 sps:$4 sm:$0xff]  }
 0xb4e   : > { %6442 = vmatprep.subr.bf16.mxu0 %v6029_v9  ;;  %6735 = vmatprep.subr.bf16.mxu1 %v6029_v9 }
 0xb51   : > { %6443 = vmatpush2.bf16.msra.mxu0 %v6028_v1  ;;  %6736 = vmatpush2.bf16.msra.mxu1 %v6028_v1  ;;  %v12646_v23 = vpop.permute.xlu0 %6122 }
 0xb52   : > { %6444 = vmatprep.subr.bf16.mxu0 %v6027_v40  ;;  %6737 = vmatprep.subr.bf16.mxu1 %v6027_v40 }
 0xb55   : > { %6445 = vmatpush2.bf16.msra.mxu0 %v6026_v63  ;;  %6738 = vmatpush2.bf16.msra.mxu1 %v6026_v63  ;;  %v12654_v15 = vpop.permute.xlu0 %6112  ;;  %v12717_v63 = vpop.permute.xlu1 %6147 }
 0xb56   : > { %6446 = vmatprep.subr.bf16.mxu0 %v6025_v42  ;;  %6739 = vmatprep.subr.bf16.mxu1 %v6025_v42 }
 0xb59   : > { %6447 = vmatpush2.bf16.msra.mxu0 %v6024_v55  ;;  %6740 = vmatpush2.bf16.msra.mxu1 %v6024_v55  ;;  %v6103_v13 = vpop.permute.xlu0 %6102  ;;  %v12721_v21 = vpop.permute.xlu1 %6137 }
 0xb5a   : > { %6448 = vmatprep.subr.bf16.mxu0 %v12514_v7  ;;  %6741 = vmatprep.subr.bf16.mxu1 %v12514_v7  ;;  %v8796_v7 = vld [vmem:[%s13150_s6 + $0x14] ss:$8 sps:$4 sm:$0xff]  }
 0xb5d   : > { %6449 = vmatpush2.bf16.msra.mxu0 %v12508_v27  ;;  %6742 = vmatpush2.bf16.msra.mxu1 %v12508_v27  ;;  %v13821_v27 = vmov 0   ;;  %v12662_v50 = vpop.permute.xlu0 %6252 }
 0xb5e   : > { %6450 = vmatprep.subr.bf16.mxu0 %v12490_v59  ;;  %6743 = vmatprep.subr.bf16.mxu1 %v12490_v59  ;;  %v8794_v59 = vld [vmem:[%s13150_s6 + $0x10] ss:$8 sps:$4 sm:$0xff]  }
 0xb61   : > { %6451 = vmatpush2.bf16.msra.mxu0 %v12484_v46  ;;  %6744 = vmatpush2.bf16.msra.mxu1 %v12484_v46  ;;  %v8797_v46 = vld [vmem:[%s13150_s6 + $0x20] ss:$8 sps:$4 sm:$0xff]   ;;  %v12670_v11 = vpop.permute.xlu0 %6242 }
 0xb64   : > { %6453 = vmatmul.mubr.bf16.vlgmr.msra.gmra.mxu0 %v8791_v22  ;;  %6746 = vmatmul.mubr.bf16.vlgmr.msra.gmra.mxu1 %v6703_v52  ;;  %v12725_v22 = vpop.permute.xlu1 %6127  ;;  %v6686_v52 = vsub.s32 0, %v13833_v33 }
 0xb65   : > { %6462 = vmatprep.mubr.bf16.mxu0 %v8796_v7  ;;  %6930 = vmatprep.mubr.bf16.mxu1 %v13821_v27  ;;  %v12678_v3 = vpop.permute.xlu0 %6232 }
 0xb69   : > { %v12686_v9 = vpop.permute.xlu0 %6222 }
 0xb6a   : > { %13822 = vst [vmem:[#allocation52_spill] sm:$0xff] %v12686_v9 }
 0xb6c   : > { %6463 = vmatmul.mubr.bf16.gmra.mxu0 %v8794_v59  ;;  %v6118_v59 = vpop.permute.xlu1 %6117 }
 0xb6d   : > { %6472 = vmatprep.mubr.bf16.mxu0 %v8799_v57  ;;  %v12688_v32 = vpop.permute.xlu0 %6212 }
 0xb6e   : > { %13823 = vst [vmem:[#allocation54_spill] sm:$0xff] %v12688_v32 }
 0xb71   : > { %v12693_v26 = vpop.permute.xlu0 %6202 }
 0xb72   : > { %13824 = vst [vmem:[#allocation55_spill] sm:$0xff] %v12693_v26 }
 0xb74   : > { %6473 = vmatmul.mubr.bf16.gmra.mxu0 %v8797_v46 }
 0xb75   : > { %6482 = vmatprep.mubr.bf16.mxu0 %v8802_v37  ;;  %v12695_v2 = vpop.permute.xlu0 %6192 }
 0xb79   : > { %v12697_v24 = vpop.permute.xlu0 %6182 }
 0xb7c   : > { %6483 = vmatmul.mubr.bf16.gmra.mxu0 %v8800_v51 }
 0xb7d   : > { %6492 = vmatprep.mubr.bf16.mxu0 %v8805_v31  ;;  %v12699_v49 = vpop.permute.xlu0 %7292 }
 0xb7e   : > { %13825 = vst [vmem:[#allocation59_spill] sm:$0xff] %v12699_v49 }
 0xb81   : > { %v12701_v16 = vpop.permute.xlu0 %7282 }
 0xb82   : > { %13826 = vst [vmem:[#allocation60_spill] sm:$0xff] %v12701_v16 }
 0xb84   : > { %6493 = vmatmul.mubr.bf16.gmra.mxu0 %v8803_v61 }
 0xb85   : > { %6502 = vmatprep.mubr.bf16.mxu0 %v8808_v45  ;;  %v12703_v1 = vpop.permute.xlu0 %7272  ;;  %v6108_v45 = vpop.permute.xlu1 %6107 }
 0xb86   : > { %13827 = vst [vmem:[#allocation63_spill] sm:$0xff] %v12703_v1 }
 0xb89   : > { %v12707_v40 = vpop.permute.xlu0 %7262 }
 0xb8a   : > { %13828 = vst [vmem:[#allocation64_spill] sm:$0xff] %v12707_v40  ;;  %v8855_v40 = vld [vmem:[%s13155_s11 + $0x20] sm:$0xff]  }
 0xb8c   : > { %6503 = vmatmul.mubr.bf16.gmra.mxu0 %v8806_v34 }
 0xb8d   : > { %6512 = vmatprep.mubr.bf16.mxu0 %v8811_v28  ;;  %v12711_v25 = vpop.permute.xlu0 %7252 }
 0xb8e   : > { %13829 = vst [vmem:[#allocation67_spill] sm:$0xff] %v12711_v25 }
 0xb91   : > { %v12715_v14 = vpop.permute.xlu0 %7242 }
 0xb92   : > { %13830 = vst [vmem:[#allocation68_spill] sm:$0xff] %v12715_v14 }
 0xb94   : > { %6513 = vmatmul.mubr.bf16.gmra.mxu0 %v8809_v60 }
 0xb95   : > { %6522 = vmatprep.mubr.bf16.mxu0 %v8814_v20  ;;  %v12719_v42 = vpop.permute.xlu0 %7232 }
 0xb96   : > { %13831 = vst [vmem:[#allocation79_spill] sm:$0xff] %v12719_v42 }
 0xb99   : > { %v12723_v55 = vpop.permute.xlu0 %7222 }
 0xb9a   : > { %13832 = vst [vmem:[#allocation77_spill] sm:$0xff] %v12723_v55 }
 0xb9c   : > { %6523 = vmatmul.mubr.bf16.gmra.mxu0 %v8812_v5 }
 0xb9d   : > { %6532 = vmatprep.mubr.bf16.mxu0 %v8817_v54  ;;  %v6682_v7 = vpop.permute.xlu0 %6681 }
 0xb9e   : > { %v6687_v57 = vrot.slane %v6682_v7, %v6686_v52 }
 0xba4   : > { %6533 = vmatmul.mubr.bf16.gmra.mxu0 %v8815_v58 }
 0xba5   : > { %6542 = vmatprep.mubr.bf16.mxu0 %v8820_v4 }
 0xbac   : > { %6543 = vmatmul.mubr.bf16.gmra.mxu0 %v8818_v30 }
 0xbad   : > { %6552 = vmatprep.mubr.bf16.mxu0 %v8823_v19 }
 0xbb4   : > { %6553 = vmatmul.mubr.bf16.gmra.mxu0 %v8821_v10 }
 0xbb5   : > { %6562 = vmatprep.mubr.bf16.mxu0 %v8826_v12 }
 0xbbc   : > { %6563 = vmatmul.mubr.bf16.gmra.mxu0 %v8824_v8 }
 0xbbd   : > { %6572 = vmatprep.mubr.bf16.mxu0 %v8829_v62 }
 0xbc4   : > { %6573 = vmatmul.mubr.bf16.gmra.mxu0 %v8827_v53 }
 0xbc5   : > { %6582 = vmatprep.mubr.bf16.mxu0 %v8832_v38 }
 0xbcc   : > { %6583 = vmatmul.mubr.bf16.gmra.mxu0 %v8830_v48 }
 0xbcd   : > { %6592 = vmatprep.mubr.bf16.mxu0 %v8835_v29 }
 0xbd4   : > { %6593 = vmatmul.mubr.bf16.gmra.mxu0 %v8833_v41 }
 0xbd5   : > { %6602 = vmatprep.mubr.bf16.mxu0 %v8838_v35 }
 0xbdc   : > { %6603 = vmatmul.mubr.bf16.gmra.mxu0 %v8836_v47  ;;  %v13834_v47 = vlaneseq }
 0xbde   : > { %vm7450_vm2 = vcmp.lt.s32.totalorder %v13834_v47, 256 }
 0xc24   : > { %v6454_v46 = vpop.f32.mrf.mxu0  ;;  %v6747_v37 = vpop.f32.mrf.mxu1 }
 0xc25   : > { %v6748_v51 = vadd.f32 %v6747_v37, %v6687_v57  ;;  %v6455_v34 = vadd.f32 %v6454_v46, %v6103_v13 }
 0xc26   : > { %v6456_v31 = vpop.f32.mrf.mxu0  ;;  %v6749_v61 = vpop.f32.mrf.mxu1 }
 0xc27   : > { %v6750_v28 = vadd.f32 %v6749_v61, %v6687_v57  ;;  %v6754_v5 = vmax.f32 %v6748_v51, 0.0  ;;  %v6457_v54 = vadd.f32 %v6456_v31, %v6103_v13  ;;  %v6613_v10 = vmax.f32 %v6455_v34, 0.0 }
 0xc28   : > { %v6458_v60 = vpop.f32.mrf.mxu0  ;;  %v6751_v20 = vpop.f32.mrf.mxu1 }
 0xc29   : > { %v6755_v58 = vmax.f32 %v6750_v28, 0.0  ;;  %v6459_v4 = vadd.f32 %v6458_v60, %v6108_v45  ;;  %v6614_v38 = vmax.f32 %v6457_v54, 0.0 }
 0xc2a   : > { %v6460_v30 = vpop.f32.mrf.mxu0  ;;  %v6752_v19 = vpop.f32.mrf.mxu1 }
 0xc2b   : > { %v7432_v12 = vcombine.low %v6754_v5, %v6755_v58  ;;  %v6615_v8 = vmax.f32 %v6459_v4, 0.0  ;;  %v6461_v62 = vadd.f32 %v6460_v30, %v6108_v45  ;;  %v6757_v58 = vld [vmem:[%s578_s0 + $0x8] sm:$0xff]  ;;  %v6756_v4 = vld [vmem:[%s578_s0] sm:$0xff]  ;;  %v6758_v19 = vld [vmem:[%s578_s0 + $0x10] sm:$0xf] }
 0xc2c   : > { %v6464_v53 = vpop.f32.mrf.mxu0 }
 0xc2d   : > { %v7439_v48 = vrot.slane %v7432_v12, %v13819_v17  ;;  %v12730_v29 = vpack.c.bf16 %v6615_v8, %v6613_v10  ;;  %v6616_v41 = vmax.f32 %v6461_v62, 0.0  ;;  %v6465_v52 = vadd.f32 %v6464_v53, %v12654_v15  ;;  %v12756_v10 = vpop.permute.xlu1 %6257 }
 0xc2e   : > { %v6466_v35 = vpop.f32.mrf.mxu0  ;;  %v6760_v8 = vpack.c.bf16 %v6758_v19, %v6756_v4  ;;  %v8851_v19 = vld [vmem:[%s13155_s11 + $0x18] sm:$0xff]  }
 0xc2f   : > { %v7446_v13 = vrot.slane %v7439_v48, %v13819_v17  ;;  %v12734_v33 = vpack.c.bf16 %v6616_v41, %v6614_v38  ;;  %v6467_v57 = vadd.f32 %v6466_v35, %v12654_v15  ;;  %v6617_v51 = vmax.f32 %v6465_v52, 0.0  ;;  %v8839_v38 = vld [vmem:[%s13155_s11] sm:$0xff]  }
 0xc30   : > { %v6468_v7 = vpop.f32.mrf.mxu0  ;;  %v6893_v53 = vsel %vm6891_vm3, %v6760_v8, 0 }
 0xc31   : > { %v6469_v46 = vadd.f32 %v6468_v7, %v6118_v59  ;;  %7452 = vst.msk [vmem:[%s12738_s22] sm:$0x3] %vm7450_vm2, %v7446_v13  ;;  %v6618_v17 = vmax.f32 %v6467_v57, 0.0  ;;  %v12767_v41 = vpop.permute.xlu1 %6247  ;;  %v8842_v13 = vld [vmem:[%s13154_s10 + $0x4] ss:$8 sps:$4 sm:$0xff]  }
 0xc32   : > { %v6470_v37 = vpop.f32.mrf.mxu0  ;;  %7123 = vmatprep.mubr.bf16.mxu0 %v8842_v13  ;;  %v8843_v7 = vld [vmem:[%s13155_s11 + $0x8] sm:$0xff]  }
 0xc33   : > { %v6619_v31 = vmax.f32 %v6469_v46, 0.0  ;;  %v6471_v61 = vadd.f32 %v6470_v37, %v6118_v59  ;;  %v6759_v59 = vld [vmem:[%s578_s0 + $0x18] sm:$0xf]  ;;  %s8967_s0 = smov [#allocation5]  }
 0xc34   : > { %v12741_v45 = vpop.f32.mrf.mxu0  ;;  %v6761_v30 = vpack.c.bf16 %v6759_v59, %v6757_v58  ;;  %s8875_s17 = sshll.u32 %s8967_s0, 4  ;;  %s8876_s17 = int_to_ptr.vmem [resolvable:$false] %s8875_s17 }
 0xc35   : > { %v12743_v34 = vpack.c.bf16 %v6619_v31, %v6617_v51  ;;  %v6620_v28 = vmax.f32 %v6471_v61, 0.0  ;;  %v12783_v57 = vpop.permute.xlu1 %6237  ;;  %s8877_s26 = scalar_lea.vmem %s8876_s17, 64  ;;  %p8878_p4 = scmp.lt.s32.totalorder %s7485_s3, %s8876_s17 }
 0xc36   : > { %v12745_v60 = vpop.f32.mrf.mxu0  ;;  %8329 = vmatprep.subr.msk.bf16.mxu1 %vm6891_vm3, %v6761_v30  ;;  %p8879_p5 = scmp.lt.s32.totalorder %s8877_s26, %s8871_s5 }
 0xc37   : > { %v12747_v20 = vpack.c.bf16 %v6620_v28, %v6618_v17  ;;  %6913 = vmatpush1.bf16.msra.mxu1 %v6893_v53  ;;  %v8847_v17 = vld [vmem:[%s13155_s11 + $0x10] sm:$0xff]  }
 0xc38   : > { %v12749_v15 = vpop.f32.mrf.mxu0  ;;  %p8880_p6 = por %p8879_p5, %p8878_p4 }
 0xc39   : > { %v12787_v31 = vpop.permute.xlu1 %6227 }
 0xc3a   : > { %v12751_v5 = vpop.f32.mrf.mxu0  ;;  %8330 = vmatmul.mubr.msk.bf16.vlgmr.msra.gmra.mxu1 %vm6866_vm4, %v8839_v38  ;;  %p8881_p7 = pnand %p8880_p6, %p8874_p3 }
 0xc3b   : > { %6940 = vmatprep.mubr.bf16.mxu1 %v13821_v27 }
 0xc3c   : > { %v12754_v54 = vpop.f32.mrf.mxu0 }
 0xc3d   : > { %v12794_v59 = vpop.permute.xlu1 %6217 }
 0xc3e   : > { %v12758_v12 = vpop.f32.mrf.mxu0  ;;  %13835 = vst [vmem:[#allocation76_spill] sm:$0xff] %v12794_v59 }
 0xc40   : > { %v12760_v62 = vpop.f32.mrf.mxu0 }
 0xc41   : > { %v12799_v53 = vpop.permute.xlu1 %6207 }
 0xc42   : > { %v12765_v48 = vpop.f32.mrf.mxu0  ;;  %8331 = vmatmul.mubr.msk.bf16.gmra.mxu1 %vm6866_vm4, %v8843_v7  ;;  %13836 = vst [vmem:[#allocation80_spill] sm:$0xff] %v12799_v53 }
 0xc43   : > { %6950 = vmatprep.mubr.bf16.mxu1 %v13821_v27 }
 0xc44   : > { %v12769_v35 = vpop.f32.mrf.mxu0 }
 0xc45   : > { %v12809_v1 = vpop.permute.xlu1 %6197 }
 0xc46   : > { %v12773_v47 = vpop.f32.mrf.mxu0 }
 0xc48   : > { %v12778_v52 = vpop.f32.mrf.mxu0 }
 0xc4a   : > { %v6500_v46 = vpop.f32.mrf.mxu0  ;;  %8332 = vmatmul.mubr.msk.bf16.gmra.mxu1 %vm6866_vm4, %v8847_v17 }
 0xc4b   : > { %6960 = vmatprep.mubr.bf16.mxu1 %v13821_v27 }
 0xc4c   : > { %v6504_v37 = vpop.f32.mrf.mxu0 }
 0xc4e   : > { %v6506_v51 = vpop.f32.mrf.mxu0 }
 0xc50   : > { %v6508_v61 = vpop.f32.mrf.mxu0 }
 0xc52   : > { %v6510_v28 = vpop.f32.mrf.mxu0  ;;  %8333 = vmatmul.mubr.msk.bf16.gmra.mxu1 %vm6866_vm4, %v8851_v19 }
 0xc53   : > { %6970 = vmatprep.mubr.bf16.mxu1 %v13821_v27 }
 0xc54   : > { %v6514_v58 = vpop.f32.mrf.mxu0 }
 0xc56   : > { %v6516_v4 = vpop.f32.mrf.mxu0 }
 0xc57   : > { %v6517_v19 = vadd.f32 %v6516_v4, %v12620_v0  ;;  %v6507_v4 = vadd.f32 %v6506_v51, %v12628_v6 }
 0xc58   : > { %v6518_v30 = vpop.f32.mrf.mxu0 }
 0xc59   : > { %v6519_v55 = vadd.f32 %v6518_v30, %v12709_v44 }
 0xc5a   : > { %v6520_v8 = vpop.f32.mrf.mxu0  ;;  %8334 = vmatmul.mubr.msk.bf16.gmra.mxu1 %vm6866_vm4, %v8855_v40  ;;  %v6501_v40 = vadd.f32 %v6500_v46, %v12717_v63  ;;  %v6497_v46 = vadd.f32 %v12773_v47, %v12636_v18 }
 0xc5b   : > { %v6521_v17 = vadd.f32 %v6520_v8, %v12709_v44  ;;  %6980 = vmatprep.mubr.bf16.mxu1 %v13821_v27  ;;  %v6639_v30 = vmax.f32 %v6519_v55, 0.0 }
 0xc5c   : > { %v6524_v38 = vpop.f32.mrf.mxu0 }
 0xc5d   : > { %v6525_v16 = vadd.f32 %v6524_v38, %v12612_v39 }
 0xc5e   : > { %v6526_v13 = vpop.f32.mrf.mxu0 }
 0xc5f   : > { %v6527_v14 = vadd.f32 %v6526_v13, %v12612_v39  ;;  %v6511_v13 = vadd.f32 %v6510_v28, %v12713_v36  ;;  %v6515_v39 = vadd.f32 %v6514_v58, %v12620_v0  ;;  %v6641_v38 = vmax.f32 %v6525_v16, 0.0 }
 0xc60   : > { %v6528_v7 = vpop.f32.mrf.mxu0  ;;  %v6509_v28 = vadd.f32 %v6508_v61, %v12713_v36  ;;  %v6505_v36 = vadd.f32 %v6504_v37, %v12628_v6  ;;  %v6634_v61 = vmax.f32 %v6507_v4, 0.0 }
 0xc61   : > { %v6529_v25 = vadd.f32 %v6528_v7, %v12705_v43  ;;  %v6640_v7 = vmax.f32 %v6521_v17, 0.0  ;;  %v6642_v53 = vmax.f32 %v6527_v14, 0.0  ;;  %v6636_v17 = vmax.f32 %v6511_v13, 0.0 }
 0xc62   : > { %v6530_v49 = vpop.f32.mrf.mxu0  ;;  %v6637_v55 = vmax.f32 %v6515_v39, 0.0  ;;  %v6495_v39 = vadd.f32 %v12769_v35, %v12636_v18 }
 0xc63   : > { %v6531_v42 = vadd.f32 %v6530_v49, %v12705_v43  ;;  %v6643_v8 = vmax.f32 %v6529_v25, 0.0  ;;  %v6638_v49 = vmax.f32 %v6517_v19, 0.0  ;;  %v6188_v25 = vpop.permute.xlu1 %6187  ;;  %v6632_v19 = vmax.f32 %v6501_v40, 0.0 }
 0xc64   : > { %v6534_v26 = vpop.f32.mrf.mxu0  ;;  %v6790_v13 = vpack.c.bf16 %v6639_v30, %v6637_v55  ;;  %v6789_v47 = vpack.c.bf16 %v6636_v17, %v6634_v61 }
 0xc65   : > { %v6644_v32 = vmax.f32 %v6531_v42, 0.0  ;;  %v6535_v44 = vadd.f32 %v6534_v26, %v12697_v24  ;;  %v6792_v14 = vpack.c.bf16 %v6643_v8, %v6641_v38  ;;  %v6791_v9 = vpack.c.bf16 %v6640_v7, %v6638_v49 }
 0xc66   : > { %v6536_v59 = vpop.f32.mrf.mxu0  ;;  %v6491_v26 = vadd.f32 %v12765_v48, %v12721_v21  ;;  %v6635_v8 = vmax.f32 %v6509_v28, 0.0 }
 0xc67   : > { %v6793_v43 = vpack.c.bf16 %v6644_v32, %v6642_v53  ;;  %v6537_v0 = vadd.f32 %v6536_v59, %v12697_v24  ;;  %v8859_v32 = vld [vmem:[%s13155_s11 + $0x28] sm:$0xff]   ;;  %v6645_v58 = vmax.f32 %v6535_v44, 0.0  ;;  %v6499_v53 = vadd.f32 %v12778_v52, %v12717_v63 }
 0xc68   : > { %v6538_v42 = vpop.f32.mrf.mxu0  ;;  %8335 = vmatmul.mubr.msk.bf16.gmra.mxu1 %vm6866_vm4, %v8859_v32  ;;  %v6487_v63 = vadd.f32 %v12758_v12, %v12638_v56  ;;  %v6630_v52 = vmax.f32 %v6497_v46, 0.0  ;;  %v6489_v44 = vadd.f32 %v12760_v62, %v12721_v21  ;;  %v6628_v40 = vmax.f32 %v6491_v26, 0.0 }
 0xc69   : > { %v6539_v16 = vadd.f32 %v6538_v42, %v6188_v25  ;;  %7091 = vmatprep.subr.bf16.mxu0 %v6793_v43  ;;  %v6646_v7 = vmax.f32 %v6537_v0, 0.0  ;;  %6990 = vmatprep.mubr.bf16.mxu1 %v13821_v27  ;;  %v6481_v43 = vadd.f32 %v12751_v5, %v12725_v22  ;;  %v6477_v42 = vadd.f32 %v12745_v60, %v12646_v23 }
 0xc6a   : > { %v6540_v51 = vpop.f32.mrf.mxu0  ;;  %7092 = vmatpush1.bf16.msra.mxu0 %v6792_v14  ;;  %v6787_v28 = vpack.c.bf16 %v6632_v19, %v6630_v52  ;;  %v8863_v14 = vld [vmem:[%s13155_s11 + $0x30] sm:$0xff]   ;;  %v6485_v5 = vadd.f32 %v12754_v54, %v12638_v56  ;;  %v6629_v21 = vmax.f32 %v6495_v39, 0.0  ;;  %v6626_v17 = vmax.f32 %v6487_v63, 0.0 }
 0xc6b   : > { %v6647_v24 = vmax.f32 %v6539_v16, 0.0  ;;  %v6541_v59 = vadd.f32 %v6540_v51, %v6188_v25  ;;  %7093 = vmatprep.subr.bf16.mxu0 %v6791_v9  ;;  %v6633_v9 = vmax.f32 %v6505_v36, 0.0  ;;  %v6631_v25 = vmax.f32 %v6499_v53, 0.0 }
 0xc6c   : > { %v6544_v48 = vpop.f32.mrf.mxu0  ;;  %v6479_v32 = vadd.f32 %v12749_v15, %v12725_v22  ;;  %v6624_v26 = vmax.f32 %v6481_v43, 0.0  ;;  %v6627_v46 = vmax.f32 %v6489_v44, 0.0  ;;  %v6785_v56 = vpack.c.bf16 %v6628_v40, %v6626_v17 }
 0xc6d   : > { %v12835_v6 = vpack.c.bf16 %v6647_v24, %v6645_v58  ;;  %v6648_v37 = vmax.f32 %v6541_v59, 0.0  ;;  %v6545_v49 = vadd.f32 %v6544_v48, %v12695_v2  ;;  %v6788_v18 = vpack.c.bf16 %v6635_v8, %v6633_v9  ;;  %v8867_v8 = vld [vmem:[%s13155_s11 + $0x38] sm:$0xff]  }
 0xc6e   : > { %v6546_v38 = vpop.f32.mrf.mxu0  ;;  %7094 = vmatpush1.bf16.msra.mxu0 %v6790_v13  ;;  %v6786_v36 = vpack.c.bf16 %v6631_v25, %v6629_v21  ;;  %v6625_v61 = vmax.f32 %v6485_v5, 0.0  ;;  %v6622_v22 = vmax.f32 %v6477_v42, 0.0  ;;  %v6623_v24 = vmax.f32 %v6479_v32, 0.0 }
 0xc6f   : > { %v12842_v4 = vpack.c.bf16 %v6648_v37, %v6646_v7  ;;  %7095 = vmatprep.subr.bf16.mxu0 %v6789_v47  ;;  %v6547_v30 = vadd.f32 %v6546_v38, %v12695_v2  ;;  %v6649_v0 = vmax.f32 %v6545_v49, 0.0 }
 0xc70   : > { %v6548_v35 = vpop.f32.mrf.mxu0  ;;  %8336 = vmatmul.mubr.msk.bf16.gmra.mxu1 %vm6866_vm4, %v8863_v14  ;;  %v6784_v59 = vpack.c.bf16 %v6627_v46, %v6625_v61  ;;  %v6783_v19 = vpack.c.bf16 %v6624_v26, %v6622_v22 }
 0xc71   : > { %v6549_v12 = vadd.f32 %v6548_v35, %v12809_v1  ;;  %v6650_v60 = vmax.f32 %v6547_v30, 0.0  ;;  %7000 = vmatprep.mubr.bf16.mxu1 %v13821_v27 }
 0xc72   : > { %v6550_v62 = vpop.f32.mrf.mxu0  ;;  %7096 = vmatpush1.bf16.msra.mxu0 %v6788_v18 }
 0xc73   : > { %v6651_v16 = vmax.f32 %v6549_v12, 0.0  ;;  %v6551_v2 = vadd.f32 %v6550_v62, %v12809_v1  ;;  %7097 = vmatprep.subr.bf16.mxu0 %v6787_v28  ;;  %v6475_v1 = vadd.f32 %v12741_v45, %v12646_v23 }
 0xc74   : > { %v12861_v55 = vpop.f32.mrf.mxu0 }
 0xc75   : > { %v12864_v54 = vpack.c.bf16 %v6651_v16, %v6649_v0  ;;  %v6652_v51 = vmax.f32 %v6551_v2, 0.0  ;;  %v6621_v13 = vmax.f32 %v6475_v1, 0.0 }
 0xc76   : > { %v12869_v58 = vpop.f32.mrf.mxu0  ;;  %7098 = vmatpush1.bf16.msra.mxu0 %v6786_v36 }
 0xc77   : > { %v12871_v15 = vpack.c.bf16 %v6652_v51, %v6650_v60  ;;  %7099 = vmatprep.subr.bf16.mxu0 %v6785_v56  ;;  %v6782_v23 = vpack.c.bf16 %v6623_v24, %v6621_v13  ;;  %v13837_v24 = vld [vmem:[#allocation52_spill] sm:$0xff] }
 0xc78   : > { %v12873_v53 = vpop.f32.mrf.mxu0  ;;  %8337 = vmatmul.mubr.msk.bf16.gmra.mxu1 %vm6866_vm4, %v8867_v8 }
 0xc7a   : > { %v12878_v48 = vpop.f32.mrf.mxu0  ;;  %7100 = vmatpush1.bf16.msra.mxu0 %v6784_v59 }
 0xc7b   : > { %7101 = vmatprep.subr.bf16.mxu0 %v6783_v19 }
 0xc7c   : > { %v12880_v45 = vpop.f32.mrf.mxu0 }
 0xc7e   : > { %v12883_v47 = vpop.f32.mrf.mxu0  ;;  %7102 = vmatpush1.bf16.msra.mxu0 %v6782_v23 }
 0xc7f   : > { %7103 = vmatprep.subr.bf16.mxu0 %v12747_v20 }
 0xc80   : > { %v12886_v7 = vpop.f32.mrf.mxu0 }
 0xc82   : > { %v6570_v37 = vpop.f32.mrf.mxu0  ;;  %7104 = vmatpush1.bf16.msra.mxu0 %v12743_v34 }
 0xc83   : > { %7105 = vmatprep.subr.bf16.mxu0 %v12734_v33 }
 0xc84   : > { %v6574_v39 = vpop.f32.mrf.mxu0 }
 0xc86   : > { %v6576_v9 = vpop.f32.mrf.mxu0  ;;  %7106 = vmatpush1.bf16.msra.mxu0 %v12730_v29 }
 0xc88   : > { %v6578_v38 = vpop.f32.mrf.mxu0 }
 0xc89   : > { %v6579_v19 = vadd.f32 %v6578_v38, %v12787_v31  ;;  %v13840_v38 = vld [vmem:[#allocation80_spill] sm:$0xff] }
 0xc8a   : > { %v6580_v63 = vpop.f32.mrf.mxu0 }
 0xc8c   : > { %v6584_v52 = vpop.f32.mrf.mxu0 }
 0xc8d   : > { %v6585_v61 = vadd.f32 %v6584_v52, %v12678_v3 }
 0xc8e   : > { %v6586_v49 = vpop.f32.mrf.mxu0 }
 0xc8f   : > { %v6587_v46 = vadd.f32 %v6586_v49, %v12678_v3 }
 0xc90   : > { %v6588_v43 = vpop.f32.mrf.mxu0 }
 0xc91   : > { %v6589_v56 = vadd.f32 %v6588_v43, %v12783_v57  ;;  %v6666_v59 = vmax.f32 %v6587_v46, 0.0  ;;  %v8864_v46 = vld [vmem:[%s13154_s10 + $0x60] ss:$8 sps:$4 sm:$0xff]  }
 0xc92   : > { %v6590_v44 = vpop.f32.mrf.mxu0 }
 0xc93   : > { %v6591_v17 = vadd.f32 %v6590_v44, %v12783_v57  ;;  %v6667_v8 = vmax.f32 %v6589_v56, 0.0  ;;  %v13838_v57 = vld [vmem:[#allocation76_spill] sm:$0xff]  ;;  %v6665_v44 = vmax.f32 %v6585_v61, 0.0 }
 0xc94   : > { %v6594_v25 = vpop.f32.mrf.mxu0  ;;  %v6571_v23 = vadd.f32 %v6570_v37, %v13838_v57 }
 0xc95   : > { %v6595_v32 = vadd.f32 %v6594_v25, %v12670_v11  ;;  %v13839_v25 = vld [vmem:[#allocation54_spill] sm:$0xff] }
 0xc96   : > { %v6596_v18 = vpop.f32.mrf.mxu0  ;;  %v6567_v3 = vadd.f32 %v12883_v47, %v13839_v25  ;;  %v6660_v37 = vmax.f32 %v6571_v23, 0.0 }
 0xc97   : > { %v6597_v42 = vadd.f32 %v6596_v18, %v12670_v11  ;;  %v6669_v22 = vmax.f32 %v6595_v32, 0.0  ;;  %v6577_v11 = vadd.f32 %v6576_v9, %v13837_v24  ;;  %v6569_v9 = vadd.f32 %v12886_v7, %v13838_v57  ;;  %v8860_v32 = vld [vmem:[%s13154_s10 + $0x50] ss:$8 sps:$4 sm:$0xff]  }
 0xc98   : > { %v6598_v20 = vpop.f32.mrf.mxu0  ;;  %v6663_v18 = vmax.f32 %v6579_v19, 0.0  ;;  %v6559_v7 = vadd.f32 %v12873_v53, %v13840_v38  ;;  %v8846_v53 = vld [vmem:[%s13154_s10 + $0x14] ss:$8 sps:$4 sm:$0xff]  }
 0xc99   : > { %v6599_v21 = vadd.f32 %v6598_v20, %v12767_v41  ;;  %v6670_v36 = vmax.f32 %v6597_v42, 0.0  ;;  %v6662_v52 = vmax.f32 %v6577_v11, 0.0  ;;  %v6561_v20 = vadd.f32 %v12878_v48, %v13840_v38 }
 0xc9a   : > { %v6600_v35 = vpop.f32.mrf.mxu0  ;;  %v6655_v42 = vmax.f32 %v6559_v7, 0.0 }
 0xc9b   : > { %v6601_v34 = vadd.f32 %v6600_v35, %v12767_v41  ;;  %v6671_v60 = vmax.f32 %v6599_v21, 0.0  ;;  %v6668_v41 = vmax.f32 %v6591_v17, 0.0  ;;  %v8852_v17 = vld [vmem:[%s13154_s10 + $0x30] ss:$8 sps:$4 sm:$0xff]  }
 0xc9c   : > { %v6604_v40 = vpop.f32.mrf.mxu0 }
 0xc9d   : > { %v6605_v29 = vadd.f32 %v6604_v40, %v12662_v50  ;;  %v6672_v0 = vmax.f32 %v6601_v34, 0.0  ;;  %v6806_v13 = vpack.c.bf16 %v6671_v60, %v6669_v22  ;;  %v6805_v43 = vpack.c.bf16 %v6668_v41, %v6666_v59  ;;  %v12972_v22 = vpop.permute.xlu1 %7297 }
 0xc9e   : > { %v6606_v28 = vpop.f32.mrf.mxu0  ;;  %v6659_v34 = vmax.f32 %v6569_v9, 0.0 }
 0xc9f   : > { %v6607_v33 = vadd.f32 %v6606_v28, %v12662_v50  ;;  %v6673_v26 = vmax.f32 %v6605_v29, 0.0  ;;  %v6807_v1 = vpack.c.bf16 %v6672_v0, %v6670_v36  ;;  %v13841_v28 = vld [vmem:[#allocation55_spill] sm:$0xff] }
 0xca0   : > { %v6608_v30 = vpop.f32.mrf.mxu0  ;;  %v6557_v47 = vadd.f32 %v12869_v58, %v13841_v28  ;;  %v6555_v48 = vadd.f32 %v12861_v55, %v13841_v28  ;;  %v8840_v55 = vld [vmem:[%s13154_s10] ss:$8 sps:$4 sm:$0xff]   ;;  %v8858_v0 = vld [vmem:[%s13154_s10 + $0x44] ss:$8 sps:$4 sm:$0xff]   ;;  %v8870_v36 = vld [vmem:[%s13154_s10 + $0x74] ss:$8 sps:$4 sm:$0xff]  }
 0xca1   : > { %v6609_v12 = vadd.f32 %v6608_v30, %v12756_v10  ;;  %v6674_v16 = vmax.f32 %v6607_v33, 0.0  ;;  %v6658_v30 = vmax.f32 %v6567_v3, 0.0  ;;  %v12974_v11 = vpop.permute.xlu1 %7287 }
 0xca2   : > { %v6610_v14 = vpop.f32.mrf.mxu0  ;;  %v6653_v58 = vmax.f32 %v6555_v48, 0.0 }
 0xca3   : > { %v6611_v5 = vadd.f32 %v6610_v14, %v12756_v10  ;;  %v6675_v62 = vmax.f32 %v6609_v12, 0.0  ;;  %v6581_v10 = vadd.f32 %v6580_v63, %v12787_v31  ;;  %v6575_v63 = vadd.f32 %v6574_v39, %v13837_v24 }
 0xca4   : > { %v6804_v31 = vpack.c.bf16 %v6667_v8, %v6665_v44  ;;  %v6565_v39 = vadd.f32 %v12880_v45, %v13839_v25  ;;  %v6656_v12 = vmax.f32 %v6561_v20, 0.0  ;;  %v6801_v29 = vpack.c.bf16 %v6660_v37, %v6658_v30 }
 0xca5   : > { %v6676_v2 = vmax.f32 %v6611_v5, 0.0  ;;  %v6808_v51 = vpack.c.bf16 %v6675_v62, %v6673_v26  ;;  %v6664_v49 = vmax.f32 %v6581_v10, 0.0  ;;  %v6661_v40 = vmax.f32 %v6575_v63, 0.0  ;;  %v8866_v26 = vld [vmem:[%s13154_s10 + $0x64] ss:$8 sps:$4 sm:$0xff]   ;;  %v12980_v8 = vpop.permute.xlu1 %7277 }
 0xca6   : > { %v6657_v14 = vmax.f32 %v6565_v39, 0.0  ;;  %v6654_v45 = vmax.f32 %v6557_v47, 0.0  ;;  %v6798_v62 = vpack.c.bf16 %v6655_v42, %v6653_v58 }
 0xca7   : > { %v6809_v50 = vpack.c.bf16 %v6676_v2, %v6674_v16  ;;  %v6803_v35 = vpack.c.bf16 %v6664_v49, %v6662_v52  ;;  %v6802_v33 = vpack.c.bf16 %v6663_v18, %v6661_v40  ;;  %v8856_v16 = vld [vmem:[%s13154_s10 + $0x40] ss:$8 sps:$4 sm:$0xff]   ;;  %v8862_v2 = vld [vmem:[%s13154_s10 + $0x54] ss:$8 sps:$4 sm:$0xff]  }
 0xca8   : > { %v6800_v5 = vpack.c.bf16 %v6659_v34, %v6657_v14  ;;  %v6799_v21 = vpack.c.bf16 %v6656_v12, %v6654_v45 }
 0xca9   : > { %7107 = vmatprep.subr.bf16.mxu0 %v6809_v50  ;;  %v8868_v50 = vld [vmem:[%s13154_s10 + $0x70] ss:$8 sps:$4 sm:$0xff]  }
 0xcaa   : > { %7108 = vmatpush2.bf16.msra.mxu0 %v6808_v51 }
 0xcab   : > { %7109 = vmatprep.subr.bf16.mxu0 %v6807_v1 }
 0xcae   : > { %7110 = vmatpush2.bf16.msra.mxu0 %v6806_v13 }
 0xcaf   : > { %7111 = vmatprep.subr.bf16.mxu0 %v6805_v43 }
 0xcb2   : > { %7112 = vmatpush2.bf16.msra.mxu0 %v6804_v31 }
 0xcb3   : > { %7113 = vmatprep.subr.bf16.mxu0 %v6803_v35  ;;  %v13844_v35 = vld [vmem:[#allocation77_spill] sm:$0xff] }
 0xcb6   : > { %7114 = vmatpush2.bf16.msra.mxu0 %v6802_v33 }
 0xcb7   : > { %7115 = vmatprep.subr.bf16.mxu0 %v6801_v29 }
 0xcba   : > { %7116 = vmatpush2.bf16.msra.mxu0 %v6800_v5 }
 0xcbb   : > { %7117 = vmatprep.subr.bf16.mxu0 %v6799_v21 }
 0xcbe   : > { %7118 = vmatpush2.bf16.msra.mxu0 %v6798_v62 }
 0xcbf   : > { %7119 = vmatprep.subr.bf16.mxu0 %v12871_v15  ;;  %v8844_v15 = vld [vmem:[%s13154_s10 + $0x10] ss:$8 sps:$4 sm:$0xff]  }
 0xcc2   : > { %7120 = vmatpush2.bf16.msra.mxu0 %v12864_v54  ;;  %v8854_v54 = vld [vmem:[%s13154_s10 + $0x34] ss:$8 sps:$4 sm:$0xff]  }
 0xcc3   : > { %7121 = vmatprep.subr.bf16.mxu0 %v12842_v4  ;;  %v8850_v4 = vld [vmem:[%s13154_s10 + $0x24] ss:$8 sps:$4 sm:$0xff]  }
 0xcc6   : > { %7122 = vmatpush2.bf16.msra.mxu0 %v12835_v6  ;;  %v8848_v6 = vld [vmem:[%s13154_s10 + $0x20] ss:$8 sps:$4 sm:$0xff]  }
 0xcc9   : > { %7124 = vmatmul.mubr.bf16.vlgmr.msra.gmra.mxu0 %v8840_v55 }
 0xcca   : > { %7133 = vmatprep.mubr.bf16.mxu0 %v8846_v53  ;;  %v13846_v53 = vld [vmem:[#allocation79_spill] sm:$0xff] }
 0xcd1   : > { %7134 = vmatmul.mubr.bf16.gmra.mxu0 %v8844_v15 }
 0xcd2   : > { %7143 = vmatprep.mubr.bf16.mxu0 %v8850_v4 }
 0xcd9   : > { %7144 = vmatmul.mubr.bf16.gmra.mxu0 %v8848_v6 }
 0xcda   : > { %7153 = vmatprep.mubr.bf16.mxu0 %v8854_v54 }
 0xce1   : > { %7154 = vmatmul.mubr.bf16.gmra.mxu0 %v8852_v17 }
 0xce2   : > { %7163 = vmatprep.mubr.bf16.mxu0 %v8858_v0 }
 0xce9   : > { %7164 = vmatmul.mubr.bf16.gmra.mxu0 %v8856_v16 }
 0xcea   : > { %7173 = vmatprep.mubr.bf16.mxu0 %v8862_v2 }
 0xcf1   : > { %7174 = vmatmul.mubr.bf16.gmra.mxu0 %v8860_v32 }
 0xcf2   : > { %7183 = vmatprep.mubr.bf16.mxu0 %v8866_v26 }
 0xcf9   : > { %7184 = vmatmul.mubr.bf16.gmra.mxu0 %v8864_v46 }
 0xcfa   : > { %7193 = vmatprep.mubr.bf16.mxu0 %v8870_v36  ;;  %v6932_v56 = vpop.f32.mrf.mxu1 }
 0xcfc   : > { %v6934_v60 = vpop.f32.mrf.mxu1 }
 0xcfe   : > { %v6936_v51 = vpop.f32.mrf.mxu1 }
 0xd00   : > { %v6938_v10 = vpop.f32.mrf.mxu1 }
 0xd01   : > { %7194 = vmatmul.mubr.bf16.gmra.mxu0 %v8868_v50 }
 0xd02   : > { %7419 = vmatprep.mubr.bf16.mxu0 %v13821_v27  ;;  %v6942_v41 = vpop.f32.mrf.mxu1  ;;  %v12984_v27 = vpop.permute.xlu1 %7267 }
 0xd04   : > { %v6944_v1 = vpop.f32.mrf.mxu1 }
 0xd06   : > { %v6946_v61 = vpop.f32.mrf.mxu1  ;;  %v12990_v49 = vpop.permute.xlu1 %7257 }
 0xd08   : > { %v6948_v24 = vpop.f32.mrf.mxu1 }
 0xd0a   : > { %v12976_v59 = vpop.f32.mrf.mxu1  ;;  %v12994_v63 = vpop.permute.xlu1 %7247 }
 0xd0b   : > { %13842 = vst [vmem:[#allocation82_spill] sm:$0xff] %v12976_v59  ;;  %13843 = vst [vmem:[#allocation83_spill] sm:$0xff] %v12994_v63 }
 0xd0c   : > { %v12978_v19 = vpop.f32.mrf.mxu1 }
 0xd0e   : > { %v12982_v13 = vpop.f32.mrf.mxu1  ;;  %v7238_v3 = vpop.permute.xlu1 %7237 }
 0xd10   : > { %v12986_v57 = vpop.f32.mrf.mxu1 }
 0xd12   : > { %v12988_v23 = vpop.f32.mrf.mxu1  ;;  %v7228_v37 = vpop.permute.xlu1 %7227 }
 0xd14   : > { %v12992_v43 = vpop.f32.mrf.mxu1 }
 0xd16   : > { %v12996_v44 = vpop.f32.mrf.mxu1 }
 0xd18   : > { %v12998_v25 = vpop.f32.mrf.mxu1 }
 0xd1a   : > { %v13000_v31 = vpop.f32.mrf.mxu1 }
 0xd1c   : > { %v13003_v47 = vpop.f32.mrf.mxu1 }
 0xd1e   : > { %v13006_v42 = vpop.f32.mrf.mxu1 }
 0xd20   : > { %v13013_v17 = vpop.f32.mrf.mxu1 }
 0xd89   : > { %v7125_v52 = vpop.f32.mrf.mxu0 }
 0xd8a   : > { %v7126_v9 = vadd.f32 %v7125_v52, %v6932_v56  ;;  %v6982_v56 = vpop.f32.mrf.mxu1 }
 0xd8b   : > { %v7127_v18 = vpop.f32.mrf.mxu0 }
 0xd8c   : > { %v7128_v38 = vadd.f32 %v7127_v18, %v6934_v60  ;;  %v7300_v39 = vadd.f32 %v13844_v35, %v7126_v9  ;;  %v6984_v52 = vpop.f32.mrf.mxu1 }
 0xd8d   : > { %v7129_v20 = vpop.f32.mrf.mxu0 }
 0xd8e   : > { %v7130_v40 = vadd.f32 %v7129_v20, %v6936_v51  ;;  %v7301_v30 = vadd.f32 %v13844_v35, %v7128_v38  ;;  %v7332_v12 = vmax.f32 %v7300_v39, 0.0  ;;  %v6986_v18 = vpop.f32.mrf.mxu1 }
 0xd8f   : > { %v7131_v28 = vpop.f32.mrf.mxu0 }
 0xd90   : > { %v7302_v7 = vadd.f32 %v7228_v37, %v7130_v40  ;;  %v7132_v34 = vadd.f32 %v7131_v28, %v6938_v10  ;;  %v7333_v5 = vmax.f32 %v7301_v30, 0.0  ;;  %v6988_v20 = vpop.f32.mrf.mxu1 }
 0xd91   : > { %v7135_v33 = vpop.f32.mrf.mxu0 }
 0xd92   : > { %v7334_v29 = vmax.f32 %v7302_v7, 0.0  ;;  %v7303_v48 = vadd.f32 %v7228_v37, %v7132_v34  ;;  %v7136_v14 = vadd.f32 %v7135_v33, %v6942_v41  ;;  %v6992_v39 = vpop.f32.mrf.mxu1 }
 0xd93   : > { %v7137_v45 = vpop.f32.mrf.mxu0 }
 0xd94   : > { %v13008_v21 = vpack.c.bf16 %v7334_v29, %v7332_v12  ;;  %v7335_v58 = vmax.f32 %v7303_v48, 0.0  ;;  %v7138_v62 = vadd.f32 %v7137_v45, %v6944_v1  ;;  %v7304_v15 = vadd.f32 %v13846_v53, %v7136_v14  ;;  %v6994_v30 = vpop.f32.mrf.mxu1 }
 0xd95   : > { %v7139_v55 = vpop.f32.mrf.mxu0 }
 0xd96   : > { %13845 = vst [vmem:[#allocation84_spill] sm:$0xff] %v13008_v21  ;;  %v7140_v4 = vadd.f32 %v7139_v55, %v6946_v61  ;;  %v13011_v6 = vpack.c.bf16 %v7335_v58, %v7333_v5  ;;  %v7305_v0 = vadd.f32 %v13846_v53, %v7138_v62  ;;  %v7336_v26 = vmax.f32 %v7304_v15, 0.0  ;;  %v6996_v33 = vpop.f32.mrf.mxu1 }
 0xd97   : > { %v7141_v54 = vpop.f32.mrf.mxu0 }
 0xd98   : > { %13847 = vst [vmem:[#allocation85_spill] sm:$0xff] %v13011_v6  ;;  %v7306_v16 = vadd.f32 %v7238_v3, %v7140_v4  ;;  %v7142_v2 = vadd.f32 %v7141_v54, %v6948_v24  ;;  %v7337_v60 = vmax.f32 %v7305_v0, 0.0  ;;  %v6998_v48 = vpop.f32.mrf.mxu1 }
 0xd99   : > { %v13016_v32 = vpop.f32.mrf.mxu0 }
 0xd9a   : > { %13848 = vst [vmem:[#allocation86_spill] sm:$0xff] %v13016_v32  ;;  %v7338_v46 = vmax.f32 %v7306_v16, 0.0  ;;  %v7307_v36 = vadd.f32 %v7238_v3, %v7142_v2  ;;  %v7002_v45 = vpop.f32.mrf.mxu1 }
 0xd9b   : > { %v13018_v50 = vpop.f32.mrf.mxu0 }
 0xd9c   : > { %v13020_v51 = vpack.c.bf16 %v7338_v46, %v7336_v26  ;;  %v7339_v10 = vmax.f32 %v7307_v36, 0.0  ;;  %v7004_v62 = vpop.f32.mrf.mxu1 }
 0xd9d   : > { %v13022_v41 = vpop.f32.mrf.mxu0 }
 0xd9e   : > { %13849 = vst [vmem:[#allocation87_spill] sm:$0xff] %v13020_v51  ;;  %13850 = vst [vmem:[#allocation90_spill] sm:$0xff] %v13022_v41  ;;  %v13024_v1 = vpack.c.bf16 %v7339_v10, %v7337_v60  ;;  %v7006_v15 = vpop.f32.mrf.mxu1  ;;  %v13852_v51 = vld [vmem:[#allocation59_spill] sm:$0xff] }
 0xd9f   : > { %v13026_v61 = vpop.f32.mrf.mxu0 }
 0xda0   : > { %13851 = vst [vmem:[#allocation89_spill] sm:$0xff] %v13024_v1  ;;  %v7008_v10 = vpop.f32.mrf.mxu1 }
 0xda1   : > { %v13028_v24 = vpop.f32.mrf.mxu0 }
 0xda3   : > { %v13030_v9 = vpop.f32.mrf.mxu0 }
 0xda5   : > { %v13032_v3 = vpop.f32.mrf.mxu0 }
 0xda7   : > { %v7161_v38 = vpop.f32.mrf.mxu0 }
 0xda9   : > { %v13034_v37 = vpop.f32.mrf.mxu0 }
 0xdab   : > { %v7167_v35 = vpop.f32.mrf.mxu0 }
 0xdad   : > { %v7169_v40 = vpop.f32.mrf.mxu0 }
 0xdaf   : > { %v7171_v28 = vpop.f32.mrf.mxu0 }
 0xdb1   : > { %v7175_v7 = vpop.f32.mrf.mxu0 }
 0xdb3   : > { %v7177_v34 = vpop.f32.mrf.mxu0 }
 0xdb5   : > { %v7179_v12 = vpop.f32.mrf.mxu0 }
 0xdb7   : > { %v7181_v29 = vpop.f32.mrf.mxu0 }
 0xdb8   : > { %v7182_v36 = vadd.f32 %v7181_v29, %v6988_v20  ;;  %v7172_v20 = vadd.f32 %v7171_v28, %v13013_v17  ;;  %v7170_v17 = vadd.f32 %v7169_v40, %v13006_v42  ;;  %v7158_v42 = vadd.f32 %v13030_v9, %v12992_v43 }
 0xdb9   : > { %v7185_v14 = vpop.f32.mrf.mxu0  ;;  %v7156_v43 = vadd.f32 %v13028_v24, %v12988_v23 }
 0xdba   : > { %v7186_v63 = vadd.f32 %v7185_v14, %v6992_v39 }
 0xdbb   : > { %v7187_v5 = vpop.f32.mrf.mxu0 }
 0xdbc   : > { %v7188_v26 = vadd.f32 %v7187_v5, %v6994_v30 }
 0xdbd   : > { %v7189_v58 = vpop.f32.mrf.mxu0 }
 0xdbe   : > { %v7190_v60 = vadd.f32 %v7189_v58, %v6996_v33  ;;  %v7180_v33 = vadd.f32 %v7179_v12, %v6986_v18  ;;  %v7323_v58 = vadd.f32 %v12980_v8, %v7182_v36  ;;  %v13858_v36 = vld [vmem:[#allocation83_spill] sm:$0xff] }
 0xdbf   : > { %v7191_v55 = vpop.f32.mrf.mxu0 }
 0xdc0   : > { %v7192_v54 = vadd.f32 %v7191_v55, %v6998_v48  ;;  %v7178_v48 = vadd.f32 %v7177_v34, %v6984_v52  ;;  %v7326_v29 = vadd.f32 %v12974_v11, %v7190_v60  ;;  %v7168_v52 = vadd.f32 %v7167_v35, %v13003_v47  ;;  %v13854_v34 = vld [vmem:[#allocation63_spill] sm:$0xff] }
 0xdc1   : > { %v7195_v53 = vpop.f32.mrf.mxu0  ;;  %v7166_v47 = vadd.f32 %v13034_v37, %v13000_v31  ;;  %v7152_v31 = vadd.f32 %v13026_v61, %v12986_v57  ;;  %v13857_v57 = vld [vmem:[#allocation90_spill] sm:$0xff] }
 0xdc2   : > { %v7196_v16 = vadd.f32 %v7195_v53, %v7002_v45  ;;  %v7327_v6 = vadd.f32 %v12974_v11, %v7192_v54  ;;  %v7321_v14 = vadd.f32 %v13854_v34, %v7178_v48  ;;  %v7322_v11 = vadd.f32 %v12980_v8, %v7180_v33  ;;  %v13855_v8 = vld [vmem:[#allocation64_spill] sm:$0xff]  ;;  %v13860_v48 = vld [vmem:[#allocation86_spill] sm:$0xff] }
 0xdc3   : > { %v7197_v4 = vpop.f32.mrf.mxu0  ;;  %v7317_v40 = vadd.f32 %v13855_v8, %v7168_v52  ;;  %v7316_v9 = vadd.f32 %v13855_v8, %v7166_v47  ;;  %v7150_v61 = vadd.f32 %v13857_v57, %v12982_v13  ;;  %v7311_v23 = vadd.f32 %v13858_v36, %v7152_v31 }
 0xdc4   : > { %v7198_v0 = vadd.f32 %v7197_v4, %v7004_v62  ;;  %v7328_v41 = vadd.f32 %v13852_v51, %v7196_v16  ;;  %v13853_v62 = vld [vmem:[#allocation60_spill] sm:$0xff]  ;;  %v7359_v55 = vmax.f32 %v7327_v6, 0.0  ;;  %v7162_v6 = vadd.f32 %v7161_v38, %v12998_v25 }
 0xdc5   : > { %v7199_v2 = vpop.f32.mrf.mxu0  ;;  %v7325_v45 = vadd.f32 %v13853_v62, %v7188_v26  ;;  %v7324_v39 = vadd.f32 %v13853_v62, %v7186_v63  ;;  %v7353_v28 = vmax.f32 %v7321_v14, 0.0  ;;  %v7160_v25 = vadd.f32 %v13032_v3, %v12996_v44  ;;  %v13863_v14 = vld [vmem:[#allocation87_spill] sm:$0xff] }
 0xdc6   : > { %v7200_v46 = vadd.f32 %v7199_v2, %v7006_v15  ;;  %v7329_v1 = vadd.f32 %v13852_v51, %v7198_v0  ;;  %v7360_v51 = vmax.f32 %v7328_v41, 0.0  ;;  %v7318_v38 = vadd.f32 %v12984_v27, %v7170_v17  ;;  %v7364_v17 = vld [vmem:[%s13867_s19] sm:$0x3] }
 0xdc7   : > { %v7201_v21 = vpop.f32.mrf.mxu0  ;;  %v7356_v35 = vmax.f32 %v7324_v39, 0.0  ;;  %v7315_v37 = vadd.f32 %v12990_v49, %v7162_v6  ;;  %v7148_v44 = vadd.f32 %v13018_v50, %v12978_v19  ;;  %v7349_v16 = vmax.f32 %v7317_v40, 0.0 }
 0xdc8   : > { %v7330_v32 = vadd.f32 %v12972_v22, %v7200_v46  ;;  %v7202_v59 = vadd.f32 %v7201_v21, %v7008_v10  ;;  %v7361_v53 = vmax.f32 %v7329_v1, 0.0  ;;  %v7176_v21 = vadd.f32 %v7175_v7, %v6982_v56  ;;  %v13859_v10 = vld [vmem:[#allocation82_spill] sm:$0xff] }
 0xdc9   : > { %v7319_v1 = vadd.f32 %v12984_v27, %v7172_v20  ;;  %v7355_v56 = vmax.f32 %v7323_v58, 0.0  ;;  %v7354_v7 = vmax.f32 %v7322_v11, 0.0  ;;  %v13856_v27 = vld [vmem:[#allocation67_spill] sm:$0xff]  ;;  %v7314_v2 = vadd.f32 %v12990_v49, %v7160_v25 }
 0xdca   : > { %v7331_v30 = vadd.f32 %v12972_v22, %v7202_v59  ;;  %v7362_v5 = vmax.f32 %v7330_v32, 0.0  ;;  %v7357_v22 = vmax.f32 %v7325_v45, 0.0  ;;  %v7358_v32 = vmax.f32 %v7326_v29, 0.0  ;;  %v13861_v45 = vld [vmem:[#allocation68_spill] sm:$0xff] }
 0xdcb   : > { %v7320_v41 = vadd.f32 %v13854_v34, %v7176_v21  ;;  %v7351_v4 = vmax.f32 %v7319_v1, 0.0  ;;  %v7376_v54 = vpack.c.bf16 %v7355_v56, %v7353_v28  ;;  %v7313_v3 = vadd.f32 %v13856_v27, %v7158_v42  ;;  %v13862_v34 = vld [vmem:[#allocation89_spill] sm:$0xff] }
 0xdcc   : > { %v7363_v15 = vmax.f32 %v7331_v30, 0.0  ;;  %v7379_v18 = vpack.c.bf16 %v7362_v5, %v7360_v51  ;;  %v7378_v63 = vpack.c.bf16 %v7359_v55, %v7357_v22  ;;  %v7377_v12 = vpack.c.bf16 %v7358_v32, %v7356_v35  ;;  %v13865_v22 = vld [vmem:[#allocation85_spill] sm:$0xff] }
 0xdcd   : > { %v7352_v0 = vmax.f32 %v7320_v41, 0.0  ;;  %v7350_v26 = vmax.f32 %v7318_v38, 0.0  ;;  %v7347_v24 = vmax.f32 %v7315_v37, 0.0  ;;  %v7374_v60 = vpack.c.bf16 %v7351_v4, %v7349_v16 }
 0xdce   : > { %v7380_v59 = vpack.c.bf16 %v7363_v15, %v7361_v53  ;;  %v7146_v62 = vadd.f32 %v13860_v48, %v13859_v10  ;;  %v7312_v19 = vadd.f32 %v13856_v27, %v7156_v43  ;;  %v7348_v50 = vmax.f32 %v7316_v9, 0.0 }
 0xdcf   : > { %v7375_v46 = vpack.c.bf16 %v7354_v7, %v7352_v0  ;;  %v7309_v30 = vadd.f32 %v13861_v45, %v7148_v44  ;;  %v7345_v20 = vmax.f32 %v7313_v3, 0.0  ;;  %v7310_v13 = vadd.f32 %v13858_v36, %v7150_v61 }
 0xdd0   : > { %7387 = vmatprep.subr.bf16.mxu0 %v7380_v59  ;;  %v7346_v49 = vmax.f32 %v7314_v2, 0.0  ;;  %v7373_v33 = vpack.c.bf16 %v7350_v26, %v7348_v50  ;;  %v7343_v29 = vmax.f32 %v7311_v23, 0.0  ;;  %v7308_v58 = vadd.f32 %v13861_v45, %v7146_v62  ;;  %v13866_v59 = vld [vmem:[#allocation84_spill] sm:$0xff] }
 0xdd1   : > { %7388 = vmatpush1.bf16.msra.mxu0 %v7379_v18  ;;  %v7372_v5 = vpack.c.bf16 %v7347_v24, %v7345_v20  ;;  %v7344_v55 = vmax.f32 %v7312_v19, 0.0  ;;  %v7341_v53 = vmax.f32 %v7309_v30, 0.0  ;;  %v7342_v15 = vmax.f32 %v7310_v13, 0.0 }
 0xdd2   : > { %7389 = vmatprep.subr.bf16.mxu0 %v7378_v63  ;;  %v7340_v51 = vmax.f32 %v7308_v58, 0.0 }
 0xdd3   : > { %v7371_v21 = vpack.c.bf16 %v7346_v49, %v7344_v55  ;;  %v7370_v39 = vpack.c.bf16 %v7343_v29, %v7341_v53 }
 0xdd4   : > { %v7369_v52 = vpack.c.bf16 %v7342_v15, %v7340_v51 }
 0xdd5   : > { %7390 = vmatpush1.bf16.msra.mxu0 %v7377_v12 }
 0xdd6   : > { %7391 = vmatprep.subr.bf16.mxu0 %v7376_v54 }
 0xdd9   : > { %7392 = vmatpush1.bf16.msra.mxu0 %v7375_v46 }
 0xdda   : > { %7393 = vmatprep.subr.bf16.mxu0 %v7374_v60 }
 0xddd   : > { %7394 = vmatpush1.bf16.msra.mxu0 %v7373_v33 }
 0xdde   : > { %7395 = vmatprep.subr.bf16.mxu0 %v7372_v5 }
 0xde1   : > { %7396 = vmatpush1.bf16.msra.mxu0 %v7371_v21 }
 0xde2   : > { %7397 = vmatprep.subr.bf16.mxu0 %v7370_v39 }
 0xde5   : > { %7398 = vmatpush1.bf16.msra.mxu0 %v7369_v52 }
 0xde6   : > { %7399 = vmatprep.subr.bf16.mxu0 %v13862_v34 }
 0xde9   : > { %7400 = vmatpush1.bf16.msra.mxu0 %v13863_v14 }
 0xdea   : > { %7401 = vmatprep.subr.bf16.mxu0 %v13865_v22 }
 0xded   : > { %7402 = vmatpush1.bf16.msra.mxu0 %v13866_v59 }
 0xdf0   : > { %7420 = vmatmul.mubr.bf16.vlgmr.msra.gmra.mxu0 %v7364_v17 }
 0xdf1   : > { %8884 = shalt.err (!%p8881_p7)
}
 0xdf2   : > { %s8885_s19 = scalar_lea.hbm %s7482_s2, 32  ;;  %s8889_s13 = scalar_lea.hbm %s13868_s1, 256 }
 0xdf3   : > { %p8886_p10 = scmp.ne.s32.totalorder %s7482_s2, %s8885_s19  ;;  %p8890_p13 = scmp.lt.s32.totalorder %s7482_s2, %s13868_s1 }
 0xdf4   : > { %p8891_p0 = scmp.lt.s32.totalorder %s8889_s13, %s8885_s19 }
 0xdf5   : > { %p8887_p11 = pnand %p8886_p10, %p9116_p8 }
 0xdf6   : > { %p8892_p1 = por %p8891_p0, %p8890_p13 }
 0xdf7   : > { %p8888_p12 = pneg %p8887_p11 }
 0xdf9   : > { %p8893_p2 = pnand %p8892_p1, %p8888_p12 }
 0xdfb   : > { %8896 = shalt.err (!%p8893_p2)
}
 0xdfc   : > { %8364 = dma.vmem_to_hbm [thread:$0]  (%p9116_p8), %s7485_s3, 32, %s7482_s2, %s7459_s4   ;;  %v7385_v11 = vpop.permute.xlu1 %7384 }
 0xdfd   : > { %p642_p3 = scmp.lt.s32.totalorder %s8951_s27, 1  ;;  %p644_p4 = scmp.lt.s32.totalorder %s13088_s16, 7 }
 0xdfe   : > { %s13869_s17 = sld [smem:[#allocation178_spill]] }
 0xdff   : > { %s13889_s27 = smov (!%p642_p3, %s8951_s27), 1  ;;  %s13891_s16 = smov (!%p644_p4, %s13088_s16), 7 }
 0xe00   : > { %s7645_s5 = sshll.u32 %s13889_s27, 3 }
 0xe01   : > { %s647_s23 = sadd.s32 %s7645_s5, %s13891_s16 }
 0xe02   : > { %s7646_s18 = sshll.u32 %s647_s23, 2 }
 0xe04   : > { %s649_s26 = scalar_lea.vmem %s13869_s17, %s7646_s18 }
 0xeb0   : > { %v7421_v32 = vpop.f32.mrf.mxu0 }
 0xeb1   : > { %v7422_v18 = vadd.f32 %v7421_v32, %v7385_v11 }
 0xeb2   : > { %v7423_v6 = vpop.f32.mrf.mxu0 }
 0xeb3   : > { %v7424_v1 = vadd.f32 %v7423_v6, %v7385_v11  ;;  %v7428_v63 = vmax.f32 %v7422_v18, 0.0 }
 0xeb4   : > { %v7425_v56 = vpop.f32.mrf.mxu0 }
 0xeb5   : > { %v7429_v47 = vmax.f32 %v7424_v1, 0.0 }
 0xeb6   : > { %v7426_v41 = vpop.f32.mrf.mxu0 }
 0xeb7   : > { %v7455_v35 = vcombine.low %v7428_v63, %v7429_v47 }
 0xeb9   : > { %7457 = vst [vmem:[%s649_s26] sm:$0x77] %v7455_v35 }
 0xeba PF: > { %s13870_s2 = sld [smem:[#allocation8_spill]]  ;;  %p8370_p8 = scmp.ge.s32.totalorder %s8963_s30, 2 }
 0xebc   : > { %p8367_p5 = pnand %p8370_p8, %p9120_p9 }
 0xebe   : > { %p8368_p6 = pneg %p8367_p5 }
 0xec0   : > { %s7500_s4 = sand.u32 1, %s13870_s2  }
 0xec1   : > { %s7501_s27 = scalar_lea.sflag [#allocation6], %s7500_s4 }
 0xec2   : > { %8930 = dma.done.wait (%p8368_p6), %s7501_s27, 32  }
 0xec3   : > { %8932 = vsyncadd (%p8368_p6), %s7501_s27, 4294967264  ;;  %s32_s30 = sadd.s32 1, %s8963_s30   ;;  %s13872_s16 = sld [smem:[#allocation13_spill]] }
 0xec4   : > { %p29_p7 = scmp.ge.s32.totalorder %s32_s30, 10   ;;  %s13873_s19 = sld [smem:[#allocation9_spill]] }
 0xec5   : > { %s13874_s21 = sld [smem:[#allocation10_spill]]  ;;  %s13875_s23 = smov %s8939_s24 }
 0xec6   : > { %s13876_s24 = smov %s8943_s25  ;;  %s13878_s26 = smov %s8955_s28 }
 0xec7   : > { %s13879_s27 = smov %s8959_s29  ;;  %31 = sbr.rel (!%p29_p7) target bundleno = 15 (0xf), region = 198 }
 0xec9   : > { %s13877_s25 = smov %s13872_s16 }
 0xeca   : > { %s13880_s28 = smov %s13873_s19 }
 0xecb   : > { %s13881_s29 = smov %s13874_s21 }
 0xecc   :  { %7518 = vsyncpa [#allocation6], 1 }
 0xecd   :  { %7520 = vsyncpa [#allocation6 + $0x1], 1 }

</bundles_post_ra>
